<compile_context>
chip_gen: v7x
topology: tpu7x:2x2x1
jax: 0.10.0
libtpu: 0.0.40
codegen_flags: <defaults>
</compile_context>

<pallas_src>
import numpy as np
import jax
import jax.numpy as jnp
from jax.experimental import pallas as pl
from jax.experimental.pallas import tpu as pltpu


# -----------------------------------------------------------------------------
# Raster geometry (all static)
# -----------------------------------------------------------------------------
W1P = 32                 # conv1 padded raster width (2 + 28 + 2)
L1 = 28 * W1P            # conv1 output raster length (896)
W2P = 16                 # conv2 padded raster width (2 + 14, right pad via wrap)
R2 = 19 * W2P            # conv2 padded input raster length (304)
L2 = 14 * W2P            # conv2 output raster length (224)
P2L = L2 - 17            # pooled conv2 raster view length (207)


# -----------------------------------------------------------------------------
# The single fused kernel (one grid step == one image)
# -----------------------------------------------------------------------------
def _cnn_kernel(x1u_ref, w1k_ref, b1_ref, w2k_ref, b2_ref, wlbig_ref, bl_ref,
                out_ref, y1_ref, x2f_ref, x2u_ref, y2_ref):
    f32 = jnp.float32

    # ---- conv1: 5 ky-grouped matmuls over the flattened padded raster ------
    # x1u[r*32 + pos, kx] = xpad[r, wo[pos] + kx]  (reordered kx-unfold, built in XLA)
    acc1 = jnp.dot(x1u_ref[pl.ds(0, L1), :], w1k_ref[0],
                   preferred_element_type=f32)
    for ky in range(1, 5):
        acc1 = acc1 + jnp.dot(x1u_ref[pl.ds(32 * ky, L1), :], w1k_ref[ky],
                              preferred_element_type=f32)
    y1_ref[...] = acc1                                        # [896, 16]
    # y1 row h*32 + pos holds conv1 output at (h, w) with
    #   pos <  14 -> w = 2*pos      (even columns)
    #   pos >= 14 -> w = 2*(pos-14)+1 (odd columns); pos >= 28 is unused garbage.

    # ---- 2x2 maxpool + bias + ReLU, scattered straight into conv2's padded
    #      raster with contiguous copies (no strided access, no select matmul) --
    b1 = b1_ref[...]                                          # [1, 16]
    x2f_ref[...] = jnp.zeros_like(x2f_ref)
    for hp in range(14):
        base = 64 * hp
        blk = jnp.maximum(
            jnp.maximum(y1_ref[pl.ds(base, 14), :],       # (2hp,   even w)
                        y1_ref[pl.ds(base + 14, 14), :]),  # (2hp,   odd  w)
            jnp.maximum(y1_ref[pl.ds(base + 32, 14), :],   # (2hp+1, even w)
                        y1_ref[pl.ds(base + 46, 14), :]))  # (2hp+1, odd  w)
        blk = jnp.maximum(blk + b1, 0.0)                      # [14, 16]
        x2f_ref[pl.ds((hp + 2) * W2P + 2, 14), :] = blk

    # ---- kx-unfold conv2's raster in VMEM (5 lane-block copies) ------------
    for kx in range(5):
        x2u_ref[:, pl.ds(16 * kx, 16)] = x2f_ref[pl.ds(kx, 300), :]

    # ---- conv2: 5 ky-grouped matmuls, K = 5 * 16 = 80 ----------------------
    acc2 = jnp.dot(x2u_ref[pl.ds(0, L2), :], w2k_ref[0],
                   preferred_element_type=f32)
    for ky in range(1, 5):
        acc2 = acc2 + jnp.dot(x2u_ref[pl.ds(16 * ky, L2), :], w2k_ref[ky],
                              preferred_element_type=f32)
    y2_ref[...] = acc2                                        # [224, 32]

    # ---- 2x2 maxpool on the 14x16 raster + bias + ReLU ---------------------
    p2 = jnp.maximum(
        jnp.maximum(y2_ref[pl.ds(0, P2L), :], y2_ref[pl.ds(1, P2L), :]),
        jnp.maximum(y2_ref[pl.ds(16, P2L), :], y2_ref[pl.ds(17, P2L), :]))
    p2 = jnp.maximum(p2 + b2_ref[...], 0.0)                   # [207, 32]

    # ---- Linear: weight pre-scattered onto the sparse raster (zeros on the
    #      garbage rows), so a masked multiply-reduce gives the logits --------
    prod = wlbig_ref[...] * p2[None, :, :]                    # [10, 207, 32]
    red = jnp.sum(jnp.sum(prod, axis=2), axis=1, keepdims=True)   # [10, 1]
    out_ref[...] = red + bl_ref[...]                          # [10, 1]


# -----------------------------------------------------------------------------
# Forward pass (mirrors CNN.forward); only tiny layout glue stays in XLA
# -----------------------------------------------------------------------------
@jax.jit
def cnn_forward(x_nchw, params):
    w1, b1, w2, b2, wl, bl = params
    B = x_nchw.shape[0]
    f32 = jnp.float32

    # ---- conv1 input: zero-padded raster + reordered 5-tap kx-unfold --------
    # Output-position order inside each row: even w's first (14), then odd w's
    # (14), then 4 unused slots.  This makes 2x2 pooling purely contiguous.
    img = x_nchw.astype(f32).reshape(B, 28, 28)
    xpad = jnp.pad(img, ((0, 0), (2, 2), (2, 2)))             # [B, 32, 32]
    wo = np.concatenate([np.arange(0, 28, 2), np.arange(1, 28, 2),
                         np.full(4, 27)])                     # [32]
    cols = wo[:, None] + np.arange(5)[None, :]                # [32, 5] (<= 31)
    x1u = xpad[:, :, cols].reshape(B, 32 * W1P, 5)            # [B, 1024, 5]
    x1u = jnp.pad(x1u, ((0, 0), (0, 0), (0, 3)))              # [B, 1024, 8]

    # ---- weight re-layouts (cheap, static, done in XLA) ----------------------
    # conv1: [16,1,5,5] -> [5(ky), 8(kx padded), 16]
    w1k = jnp.pad(jnp.transpose(w1, (2, 3, 1, 0)).reshape(5, 5, 16),
                  ((0, 0), (0, 3), (0, 0))).astype(f32)
    # conv2: [32,16,5,5] -> [5(ky), 80(kx*16+ci), 32]
    w2k = jnp.transpose(w2, (2, 3, 1, 0)).reshape(5, 80, 32).astype(f32)
    # linear: scatter [10,1568] onto the sparse pooled-conv2 raster [10,207,32]
    wl4 = jnp.transpose(wl.reshape(10, 32, 7, 7), (0, 2, 3, 1))   # (o,hp,wp,c)
    wlbig = jnp.zeros((10, 7, 2 * W2P, 32), f32).at[:, :, 0:14:2, :].set(wl4)
    wlbig = wlbig.reshape(10, 7 * 2 * W2P, 32)[:, :P2L, :]        # [10,207,32]

    b1r = b1.reshape(1, 16).astype(f32)
    b2r = b2.reshape(1, 32).astype(f32)
    blr = bl.reshape(10, 1).astype(f32)

    out = pl.pallas_call(
        _cnn_kernel,
        out_shape=jax.ShapeDtypeStruct((B, 10, 1), f32),
        grid=(B,),
        in_specs=[
            pl.BlockSpec((None, 32 * W1P, 8), lambda b: (b, 0, 0)),   # x1u
            pl.BlockSpec((5, 8, 16), lambda b: (0, 0, 0)),            # w1k
            pl.BlockSpec((1, 16), lambda b: (0, 0)),                  # b1
            pl.BlockSpec((5, 80, 32), lambda b: (0, 0, 0)),           # w2k
            pl.BlockSpec((1, 32), lambda b: (0, 0)),                  # b2
            pl.BlockSpec((10, P2L, 32), lambda b: (0, 0, 0)),         # wlbig
            pl.BlockSpec((10, 1), lambda b: (0, 0)),                  # bl
        ],
        out_specs=pl.BlockSpec((None, 10, 1), lambda b: (b, 0, 0)),
        scratch_shapes=[
            pltpu.VMEM((L1, 16), f32),    # y1: conv1 pre-pool raster
            pltpu.VMEM((R2, 16), f32),    # x2f: conv2 padded input raster
            pltpu.VMEM((300, 80), f32),   # x2u: kx-unfolded conv2 input
            pltpu.VMEM((L2, 32), f32),    # y2: conv2 pre-pool raster
        ],
        compiler_params=pltpu.CompilerParams(
            dimension_semantics=("parallel",)),
    )(x1u, w1k, b1r, w2k, b2r, wlbig, blr)

    return out.reshape(B, 10)


# -----------------------------------------------------------------------------
# Deterministic parameter init (same shapes as the PyTorch module)
# -----------------------------------------------------------------------------
def init_params(key):
    k1, k2, k3, k4, k5, k6 = jax.random.split(key, 6)
    w1 = jax.random.normal(k1, (16, 1, 5, 5), jnp.float32) * 0.10
    b1 = jax.random.normal(k2, (16,), jnp.float32) * 0.10
    w2 = jax.random.normal(k3, (32, 16, 5, 5), jnp.float32) * 0.05
    b2 = jax.random.normal(k4, (32,), jnp.float32) * 0.05
    wl = jax.random.normal(k5, (10, 32 * 7 * 7), jnp.float32) * 0.02
    bl = jax.random.normal(k6, (10,), jnp.float32) * 0.02
    return w1, b1, w2, b2, wl, bl


# -----------------------------------------------------------------------------
# Pure-JAX reference (numerical sanity check)
# -----------------------------------------------------------------------------
def ref_forward(x_nchw, params):
    w1, b1, w2, b2, wl, bl = params
    x = jnp.transpose(x_nchw, (0, 2, 3, 1)).astype(jnp.float32)

    def block(x, w_pt, b):
        w = jnp.transpose(w_pt, (2, 3, 1, 0))  # HWIO
        y = jax.lax.conv_general_dilated(
            x, w, window_strides=(1, 1), padding=((2, 2), (2, 2)),
            dimension_numbers=("NHWC", "HWIO", "NHWC"))
        y = jnp.maximum(y + b, 0.0)
        return jax.lax.reduce_window(y, -jnp.inf, jax.lax.max,
                                     (1, 2, 2, 1), (1, 2, 2, 1), "VALID")

    y = block(x, w1, b1)
    y = block(y, w2, b2)
    B = x.shape[0]
    feat = jnp.transpose(y, (0, 3, 1, 2)).reshape(B, -1)
    return feat @ wl.T + bl


if __name__ == "__main__":
    key = jax.random.PRNGKey(0)
    kx_, kp = jax.random.split(key)
    # MNIST-style input implied by the module (Linear expects 32*7*7 features).
    x = jax.random.normal(kx_, (2, 1, 28, 28), jnp.float32)  # NCHW like PyTorch
    params = init_params(kp)

    out = jax.block_until_ready(cnn_forward(x, params))
    ref = jax.block_until_ready(ref_forward(x, params))

    assert out.shape == (2, 10), out.shape
    assert bool(jnp.all(jnp.isfinite(out)))
    max_err = float(jnp.max(jnp.abs(out - ref)))
    assert max_err < 5e-2, f"mismatch vs reference: {max_err}"
    print("KERNEL_OK")
</pallas_src>

<mosaic_0001>
module attributes {stable_mosaic.version = 11 : i64} {
  func.func @_cnn_kernel(%arg0: i32, %arg1: memref<1x1024x8xf32, #tpu.memory_space<vmem>>, %arg2: memref<5x8x16xf32, #tpu.memory_space<vmem>>, %arg3: memref<1x16xf32, #tpu.memory_space<vmem>>, %arg4: memref<5x80x32xf32, #tpu.memory_space<vmem>>, %arg5: memref<1x32xf32, #tpu.memory_space<vmem>>, %arg6: memref<10x207x32xf32, #tpu.memory_space<vmem>>, %arg7: memref<10x1xf32, #tpu.memory_space<vmem>>, %arg8: memref<1x10x1xf32, #tpu.memory_space<vmem>>, %arg9: memref<896x16xf32, #tpu.memory_space<vmem>>, %arg10: memref<304x16xf32, #tpu.memory_space<vmem>>, %arg11: memref<300x80xf32, #tpu.memory_space<vmem>>, %arg12: memref<224x32xf32, #tpu.memory_space<vmem>>) attributes {dimension_semantics = [#tpu.dimension_semantics<parallel>], iteration_bounds = array<i64: 2>, scalar_prefetch = 0 : i64, scratch_operands = 4 : i64, tpu.core_type = #tpu.core_type<tc>, window_params = [{transform_indices = @transform_0, window_bounds = array<i64: 1, 1024, 8>}, {pipeline_mode = #tpu.pipeline_mode<synchronous>, transform_indices = @transform_1, window_bounds = array<i64: 5, 8, 16>}, {pipeline_mode = #tpu.pipeline_mode<synchronous>, transform_indices = @transform_2, window_bounds = array<i64: 1, 16>}, {pipeline_mode = #tpu.pipeline_mode<synchronous>, transform_indices = @transform_3, window_bounds = array<i64: 5, 80, 32>}, {pipeline_mode = #tpu.pipeline_mode<synchronous>, transform_indices = @transform_4, window_bounds = array<i64: 1, 32>}, {pipeline_mode = #tpu.pipeline_mode<synchronous>, transform_indices = @transform_5, window_bounds = array<i64: 10, 207, 32>}, {pipeline_mode = #tpu.pipeline_mode<synchronous>, transform_indices = @transform_6, window_bounds = array<i64: 10, 1>}, {transform_indices = @transform_7, window_bounds = array<i64: 1, 10, 1>}]} {
    %c0 = arith.constant 0 : index
    %c0_0 = arith.constant 0 : index
    %c0_1 = arith.constant 0 : index
    %0 = vector.load %arg1[%c0, %c0_0, %c0_1] : memref<1x1024x8xf32, #tpu.memory_space<vmem>>, vector<1x896x8xf32>
    %1 = vector.shape_cast %0 : vector<1x896x8xf32> to vector<896x8xf32>
    %c0_2 = arith.constant 0 : index
    %c0_3 = arith.constant 0 : index
    %c0_4 = arith.constant 0 : index
    %2 = vector.load %arg2[%c0_2, %c0_3, %c0_4] : memref<5x8x16xf32, #tpu.memory_space<vmem>>, vector<1x8x16xf32>
    %3 = vector.shape_cast %2 : vector<1x8x16xf32> to vector<8x16xf32>
    %cst = arith.constant dense<0.000000e+00> : vector<896x16xf32>
    %4 = tpu.matmul %1, %3, %cst {dimension_numbers = #tpu.dot_dimension_numbers<[1], [0], [0], [1], [0, 0, 1, 1], [], []>} : vector<896x8xf32>, vector<8x16xf32>, vector<896x16xf32> -> vector<896x16xf32>
    %c0_5 = arith.constant 0 : index
    %c32 = arith.constant 32 : index
    %c0_6 = arith.constant 0 : index
    %5 = vector.load %arg1[%c0_5, %c32, %c0_6] : memref<1x1024x8xf32, #tpu.memory_space<vmem>>, vector<1x896x8xf32>
    %6 = vector.shape_cast %5 : vector<1x896x8xf32> to vector<896x8xf32>
    %c1 = arith.constant 1 : index
    %c0_7 = arith.constant 0 : index
    %c0_8 = arith.constant 0 : index
    %7 = vector.load %arg2[%c1, %c0_7, %c0_8] : memref<5x8x16xf32, #tpu.memory_space<vmem>>, vector<1x8x16xf32>
    %8 = vector.shape_cast %7 : vector<1x8x16xf32> to vector<8x16xf32>
    %cst_9 = arith.constant dense<0.000000e+00> : vector<896x16xf32>
    %9 = tpu.matmul %6, %8, %cst_9 {dimension_numbers = #tpu.dot_dimension_numbers<[1], [0], [0], [1], [0, 0, 1, 1], [], []>} : vector<896x8xf32>, vector<8x16xf32>, vector<896x16xf32> -> vector<896x16xf32>
    %10 = arith.addf %4, %9 : vector<896x16xf32>
    %c0_10 = arith.constant 0 : index
    %c64 = arith.constant 64 : index
    %c0_11 = arith.constant 0 : index
    %11 = vector.load %arg1[%c0_10, %c64, %c0_11] : memref<1x1024x8xf32, #tpu.memory_space<vmem>>, vector<1x896x8xf32>
    %12 = vector.shape_cast %11 : vector<1x896x8xf32> to vector<896x8xf32>
    %c2 = arith.constant 2 : index
    %c0_12 = arith.constant 0 : index
    %c0_13 = arith.constant 0 : index
    %13 = vector.load %arg2[%c2, %c0_12, %c0_13] : memref<5x8x16xf32, #tpu.memory_space<vmem>>, vector<1x8x16xf32>
    %14 = vector.shape_cast %13 : vector<1x8x16xf32> to vector<8x16xf32>
    %cst_14 = arith.constant dense<0.000000e+00> : vector<896x16xf32>
    %15 = tpu.matmul %12, %14, %cst_14 {dimension_numbers = #tpu.dot_dimension_numbers<[1], [0], [0], [1], [0, 0, 1, 1], [], []>} : vector<896x8xf32>, vector<8x16xf32>, vector<896x16xf32> -> vector<896x16xf32>
    %16 = arith.addf %10, %15 : vector<896x16xf32>
    %c0_15 = arith.constant 0 : index
    %c96 = arith.constant 96 : index
    %c0_16 = arith.constant 0 : index
    %17 = vector.load %arg1[%c0_15, %c96, %c0_16] : memref<1x1024x8xf32, #tpu.memory_space<vmem>>, vector<1x896x8xf32>
    %18 = vector.shape_cast %17 : vector<1x896x8xf32> to vector<896x8xf32>
    %c3 = arith.constant 3 : index
    %c0_17 = arith.constant 0 : index
    %c0_18 = arith.constant 0 : index
    %19 = vector.load %arg2[%c3, %c0_17, %c0_18] : memref<5x8x16xf32, #tpu.memory_space<vmem>>, vector<1x8x16xf32>
    %20 = vector.shape_cast %19 : vector<1x8x16xf32> to vector<8x16xf32>
    %cst_19 = arith.constant dense<0.000000e+00> : vector<896x16xf32>
    %21 = tpu.matmul %18, %20, %cst_19 {dimension_numbers = #tpu.dot_dimension_numbers<[1], [0], [0], [1], [0, 0, 1, 1], [], []>} : vector<896x8xf32>, vector<8x16xf32>, vector<896x16xf32> -> vector<896x16xf32>
    %22 = arith.addf %16, %21 : vector<896x16xf32>
    %c0_20 = arith.constant 0 : index
    %c128 = arith.constant 128 : index
    %c0_21 = arith.constant 0 : index
    %23 = vector.load %arg1[%c0_20, %c128, %c0_21] : memref<1x1024x8xf32, #tpu.memory_space<vmem>>, vector<1x896x8xf32>
    %24 = vector.shape_cast %23 : vector<1x896x8xf32> to vector<896x8xf32>
    %c4 = arith.constant 4 : index
    %c0_22 = arith.constant 0 : index
    %c0_23 = arith.constant 0 : index
    %25 = vector.load %arg2[%c4, %c0_22, %c0_23] : memref<5x8x16xf32, #tpu.memory_space<vmem>>, vector<1x8x16xf32>
    %26 = vector.shape_cast %25 : vector<1x8x16xf32> to vector<8x16xf32>
    %cst_24 = arith.constant dense<0.000000e+00> : vector<896x16xf32>
    %27 = tpu.matmul %24, %26, %cst_24 {dimension_numbers = #tpu.dot_dimension_numbers<[1], [0], [0], [1], [0, 0, 1, 1], [], []>} : vector<896x8xf32>, vector<8x16xf32>, vector<896x16xf32> -> vector<896x16xf32>
    %28 = arith.addf %22, %27 : vector<896x16xf32>
    %c0_25 = arith.constant 0 : index
    %c0_26 = arith.constant 0 : index
    %29 = vector.load %arg9[%c0_25, %c0_26] : memref<896x16xf32, #tpu.memory_space<vmem>>, vector<896x16xf32>
    tpu.vector_store %arg9[%c0_25, %c0_26], %28 {strides = array<i32>} : memref<896x16xf32, #tpu.memory_space<vmem>>, vector<896x16xf32>,
    %c0_27 = arith.constant 0 : index
    %c0_28 = arith.constant 0 : index
    %30 = vector.load %arg3[%c0_27, %c0_28] : memref<1x16xf32, #tpu.memory_space<vmem>>, vector<1x16xf32>
    %cst_29 = arith.constant 0.000000e+00 : f32
    %31 = vector.broadcast %cst_29 : f32 to vector<304x16xf32>
    %c0_30 = arith.constant 0 : index
    %c0_31 = arith.constant 0 : index
    %32 = vector.load %arg10[%c0_30, %c0_31] : memref<304x16xf32, #tpu.memory_space<vmem>>, vector<304x16xf32>
    tpu.vector_store %arg10[%c0_30, %c0_31], %31 {strides = array<i32>} : memref<304x16xf32, #tpu.memory_space<vmem>>, vector<304x16xf32>,
    %c0_32 = arith.constant 0 : index
    %c0_33 = arith.constant 0 : index
    %33 = vector.load %arg9[%c0_32, %c0_33] : memref<896x16xf32, #tpu.memory_space<vmem>>, vector<14x16xf32>
    %c14 = arith.constant 14 : index
    %c0_34 = arith.constant 0 : index
    %34 = vector.load %arg9[%c14, %c0_34] : memref<896x16xf32, #tpu.memory_space<vmem>>, vector<14x16xf32>
    %35 = arith.maximumf %33, %34 : vector<14x16xf32>
    %c32_35 = arith.constant 32 : index
    %c0_36 = arith.constant 0 : index
    %36 = vector.load %arg9[%c32_35, %c0_36] : memref<896x16xf32, #tpu.memory_space<vmem>>, vector<14x16xf32>
    %c46 = arith.constant 46 : index
    %c0_37 = arith.constant 0 : index
    %37 = vector.load %arg9[%c46, %c0_37] : memref<896x16xf32, #tpu.memory_space<vmem>>, vector<14x16xf32>
    %38 = arith.maximumf %36, %37 : vector<14x16xf32>
    %39 = arith.maximumf %35, %38 : vector<14x16xf32>
    %40 = vector.broadcast %30 : vector<1x16xf32> to vector<14x16xf32>
    %41 = arith.addf %39, %40 : vector<14x16xf32>
    %cst_38 = arith.constant 0.000000e+00 : f32
    %42 = vector.broadcast %cst_38 : f32 to vector<14x16xf32>
    %43 = arith.maximumf %41, %42 : vector<14x16xf32>
    %c34 = arith.constant 34 : index
    %c0_39 = arith.constant 0 : index
    %44 = vector.load %arg10[%c34, %c0_39] : memref<304x16xf32, #tpu.memory_space<vmem>>, vector<14x16xf32>
    tpu.vector_store %arg10[%c34, %c0_39], %43 {strides = array<i32>} : memref<304x16xf32, #tpu.memory_space<vmem>>, vector<14x16xf32>,
    %c64_40 = arith.constant 64 : index
    %c0_41 = arith.constant 0 : index
    %45 = vector.load %arg9[%c64_40, %c0_41] : memref<896x16xf32, #tpu.memory_space<vmem>>, vector<14x16xf32>
    %c78 = arith.constant 78 : index
    %c0_42 = arith.constant 0 : index
    %46 = vector.load %arg9[%c78, %c0_42] : memref<896x16xf32, #tpu.memory_space<vmem>>, vector<14x16xf32>
    %47 = arith.maximumf %45, %46 : vector<14x16xf32>
    %c96_43 = arith.constant 96 : index
    %c0_44 = arith.constant 0 : index
    %48 = vector.load %arg9[%c96_43, %c0_44] : memref<896x16xf32, #tpu.memory_space<vmem>>, vector<14x16xf32>
    %c110 = arith.constant 110 : index
    %c0_45 = arith.constant 0 : index
    %49 = vector.load %arg9[%c110, %c0_45] : memref<896x16xf32, #tpu.memory_space<vmem>>, vector<14x16xf32>
    %50 = arith.maximumf %48, %49 : vector<14x16xf32>
    %51 = arith.maximumf %47, %50 : vector<14x16xf32>
    %52 = vector.broadcast %30 : vector<1x16xf32> to vector<14x16xf32>
    %53 = arith.addf %51, %52 : vector<14x16xf32>
    %cst_46 = arith.constant 0.000000e+00 : f32
    %54 = vector.broadcast %cst_46 : f32 to vector<14x16xf32>
    %55 = arith.maximumf %53, %54 : vector<14x16xf32>
    %c50 = arith.constant 50 : index
    %c0_47 = arith.constant 0 : index
    %56 = vector.load %arg10[%c50, %c0_47] : memref<304x16xf32, #tpu.memory_space<vmem>>, vector<14x16xf32>
    tpu.vector_store %arg10[%c50, %c0_47], %55 {strides = array<i32>} : memref<304x16xf32, #tpu.memory_space<vmem>>, vector<14x16xf32>,
    %c128_48 = arith.constant 128 : index
    %c0_49 = arith.constant 0 : index
    %57 = vector.load %arg9[%c128_48, %c0_49] : memref<896x16xf32, #tpu.memory_space<vmem>>, vector<14x16xf32>
    %c142 = arith.constant 142 : index
    %c0_50 = arith.constant 0 : index
    %58 = vector.load %arg9[%c142, %c0_50] : memref<896x16xf32, #tpu.memory_space<vmem>>, vector<14x16xf32>
    %59 = arith.maximumf %57, %58 : vector<14x16xf32>
    %c160 = arith.constant 160 : index
    %c0_51 = arith.constant 0 : index
    %60 = vector.load %arg9[%c160, %c0_51] : memref<896x16xf32, #tpu.memory_space<vmem>>, vector<14x16xf32>
    %c174 = arith.constant 174 : index
    %c0_52 = arith.constant 0 : index
    %61 = vector.load %arg9[%c174, %c0_52] : memref<896x16xf32, #tpu.memory_space<vmem>>, vector<14x16xf32>
    %62 = arith.maximumf %60, %61 : vector<14x16xf32>
    %63 = arith.maximumf %59, %62 : vector<14x16xf32>
    %64 = vector.broadcast %30 : vector<1x16xf32> to vector<14x16xf32>
    %65 = arith.addf %63, %64 : vector<14x16xf32>
    %cst_53 = arith.constant 0.000000e+00 : f32
    %66 = vector.broadcast %cst_53 : f32 to vector<14x16xf32>
    %67 = arith.maximumf %65, %66 : vector<14x16xf32>
    %c66 = arith.constant 66 : index
    %c0_54 = arith.constant 0 : index
    %68 = vector.load %arg10[%c66, %c0_54] : memref<304x16xf32, #tpu.memory_space<vmem>>, vector<14x16xf32>
    tpu.vector_store %arg10[%c66, %c0_54], %67 {strides = array<i32>} : memref<304x16xf32, #tpu.memory_space<vmem>>, vector<14x16xf32>,
    %c192 = arith.constant 192 : index
    %c0_55 = arith.constant 0 : index
    %69 = vector.load %arg9[%c192, %c0_55] : memref<896x16xf32, #tpu.memory_space<vmem>>, vector<14x16xf32>
    %c206 = arith.constant 206 : index
    %c0_56 = arith.constant 0 : index
    %70 = vector.load %arg9[%c206, %c0_56] : memref<896x16xf32, #tpu.memory_space<vmem>>, vector<14x16xf32>
    %71 = arith.maximumf %69, %70 : vector<14x16xf32>
    %c224 = arith.constant 224 : index
    %c0_57 = arith.constant 0 : index
    %72 = vector.load %arg9[%c224, %c0_57] : memref<896x16xf32, #tpu.memory_space<vmem>>, vector<14x16xf32>
    %c238 = arith.constant 238 : index
    %c0_58 = arith.constant 0 : index
    %73 = vector.load %arg9[%c238, %c0_58] : memref<896x16xf32, #tpu.memory_space<vmem>>, vector<14x16xf32>
    %74 = arith.maximumf %72, %73 : vector<14x16xf32>
    %75 = arith.maximumf %71, %74 : vector<14x16xf32>
    %76 = vector.broadcast %30 : vector<1x16xf32> to vector<14x16xf32>
    %77 = arith.addf %75, %76 : vector<14x16xf32>
    %cst_59 = arith.constant 0.000000e+00 : f32
    %78 = vector.broadcast %cst_59 : f32 to vector<14x16xf32>
    %79 = arith.maximumf %77, %78 : vector<14x16xf32>
    %c82 = arith.constant 82 : index
    %c0_60 = arith.constant 0 : index
    %80 = vector.load %arg10[%c82, %c0_60] : memref<304x16xf32, #tpu.memory_space<vmem>>, vector<14x16xf32>
    tpu.vector_store %arg10[%c82, %c0_60], %79 {strides = array<i32>} : memref<304x16xf32, #tpu.memory_space<vmem>>, vector<14x16xf32>,
    %c256 = arith.constant 256 : index
    %c0_61 = arith.constant 0 : index
    %81 = vector.load %arg9[%c256, %c0_61] : memref<896x16xf32, #tpu.memory_space<vmem>>, vector<14x16xf32>
    %c270 = arith.constant 270 : index
    %c0_62 = arith.constant 0 : index
    %82 = vector.load %arg9[%c270, %c0_62] : memref<896x16xf32, #tpu.memory_space<vmem>>, vector<14x16xf32>
    %83 = arith.maximumf %81, %82 : vector<14x16xf32>
    %c288 = arith.constant 288 : index
    %c0_63 = arith.constant 0 : index
    %84 = vector.load %arg9[%c288, %c0_63] : memref<896x16xf32, #tpu.memory_space<vmem>>, vector<14x16xf32>
    %c302 = arith.constant 302 : index
    %c0_64 = arith.constant 0 : index
    %85 = vector.load %arg9[%c302, %c0_64] : memref<896x16xf32, #tpu.memory_space<vmem>>, vector<14x16xf32>
    %86 = arith.maximumf %84, %85 : vector<14x16xf32>
    %87 = arith.maximumf %83, %86 : vector<14x16xf32>
    %88 = vector.broadcast %30 : vector<1x16xf32> to vector<14x16xf32>
    %89 = arith.addf %87, %88 : vector<14x16xf32>
    %cst_65 = arith.constant 0.000000e+00 : f32
    %90 = vector.broadcast %cst_65 : f32 to vector<14x16xf32>
    %91 = arith.maximumf %89, %90 : vector<14x16xf32>
    %c98 = arith.constant 98 : index
    %c0_66 = arith.constant 0 : index
    %92 = vector.load %arg10[%c98, %c0_66] : memref<304x16xf32, #tpu.memory_space<vmem>>, vector<14x16xf32>
    tpu.vector_store %arg10[%c98, %c0_66], %91 {strides = array<i32>} : memref<304x16xf32, #tpu.memory_space<vmem>>, vector<14x16xf32>,
    %c320 = arith.constant 320 : index
    %c0_67 = arith.constant 0 : index
    %93 = vector.load %arg9[%c320, %c0_67] : memref<896x16xf32, #tpu.memory_space<vmem>>, vector<14x16xf32>
    %c334 = arith.constant 334 : index
    %c0_68 = arith.constant 0 : index
    %94 = vector.load %arg9[%c334, %c0_68] : memref<896x16xf32, #tpu.memory_space<vmem>>, vector<14x16xf32>
    %95 = arith.maximumf %93, %94 : vector<14x16xf32>
    %c352 = arith.constant 352 : index
    %c0_69 = arith.constant 0 : index
    %96 = vector.load %arg9[%c352, %c0_69] : memref<896x16xf32, #tpu.memory_space<vmem>>, vector<14x16xf32>
    %c366 = arith.constant 366 : index
    %c0_70 = arith.constant 0 : index
    %97 = vector.load %arg9[%c366, %c0_70] : memref<896x16xf32, #tpu.memory_space<vmem>>, vector<14x16xf32>
    %98 = arith.maximumf %96, %97 : vector<14x16xf32>
    %99 = arith.maximumf %95, %98 : vector<14x16xf32>
    %100 = vector.broadcast %30 : vector<1x16xf32> to vector<14x16xf32>
    %101 = arith.addf %99, %100 : vector<14x16xf32>
    %cst_71 = arith.constant 0.000000e+00 : f32
    %102 = vector.broadcast %cst_71 : f32 to vector<14x16xf32>
    %103 = arith.maximumf %101, %102 : vector<14x16xf32>
    %c114 = arith.constant 114 : index
    %c0_72 = arith.constant 0 : index
    %104 = vector.load %arg10[%c114, %c0_72] : memref<304x16xf32, #tpu.memory_space<vmem>>, vector<14x16xf32>
    tpu.vector_store %arg10[%c114, %c0_72], %103 {strides = array<i32>} : memref<304x16xf32, #tpu.memory_space<vmem>>, vector<14x16xf32>,
    %c384 = arith.constant 384 : index
    %c0_73 = arith.constant 0 : index
    %105 = vector.load %arg9[%c384, %c0_73] : memref<896x16xf32, #tpu.memory_space<vmem>>, vector<14x16xf32>
    %c398 = arith.constant 398 : index
    %c0_74 = arith.constant 0 : index
    %106 = vector.load %arg9[%c398, %c0_74] : memref<896x16xf32, #tpu.memory_space<vmem>>, vector<14x16xf32>
    %107 = arith.maximumf %105, %106 : vector<14x16xf32>
    %c416 = arith.constant 416 : index
    %c0_75 = arith.constant 0 : index
    %108 = vector.load %arg9[%c416, %c0_75] : memref<896x16xf32, #tpu.memory_space<vmem>>, vector<14x16xf32>
    %c430 = arith.constant 430 : index
    %c0_76 = arith.constant 0 : index
    %109 = vector.load %arg9[%c430, %c0_76] : memref<896x16xf32, #tpu.memory_space<vmem>>, vector<14x16xf32>
    %110 = arith.maximumf %108, %109 : vector<14x16xf32>
    %111 = arith.maximumf %107, %110 : vector<14x16xf32>
    %112 = vector.broadcast %30 : vector<1x16xf32> to vector<14x16xf32>
    %113 = arith.addf %111, %112 : vector<14x16xf32>
    %cst_77 = arith.constant 0.000000e+00 : f32
    %114 = vector.broadcast %cst_77 : f32 to vector<14x16xf32>
    %115 = arith.maximumf %113, %114 : vector<14x16xf32>
    %c130 = arith.constant 130 : index
    %c0_78 = arith.constant 0 : index
    %116 = vector.load %arg10[%c130, %c0_78] : memref<304x16xf32, #tpu.memory_space<vmem>>, vector<14x16xf32>
    tpu.vector_store %arg10[%c130, %c0_78], %115 {strides = array<i32>} : memref<304x16xf32, #tpu.memory_space<vmem>>, vector<14x16xf32>,
    %c448 = arith.constant 448 : index
    %c0_79 = arith.constant 0 : index
    %117 = vector.load %arg9[%c448, %c0_79] : memref<896x16xf32, #tpu.memory_space<vmem>>, vector<14x16xf32>
    %c462 = arith.constant 462 : index
    %c0_80 = arith.constant 0 : index
    %118 = vector.load %arg9[%c462, %c0_80] : memref<896x16xf32, #tpu.memory_space<vmem>>, vector<14x16xf32>
    %119 = arith.maximumf %117, %118 : vector<14x16xf32>
    %c480 = arith.constant 480 : index
    %c0_81 = arith.constant 0 : index
    %120 = vector.load %arg9[%c480, %c0_81] : memref<896x16xf32, #tpu.memory_space<vmem>>, vector<14x16xf32>
    %c494 = arith.constant 494 : index
    %c0_82 = arith.constant 0 : index
    %121 = vector.load %arg9[%c494, %c0_82] : memref<896x16xf32, #tpu.memory_space<vmem>>, vector<14x16xf32>
    %122 = arith.maximumf %120, %121 : vector<14x16xf32>
    %123 = arith.maximumf %119, %122 : vector<14x16xf32>
    %124 = vector.broadcast %30 : vector<1x16xf32> to vector<14x16xf32>
    %125 = arith.addf %123, %124 : vector<14x16xf32>
    %cst_83 = arith.constant 0.000000e+00 : f32
    %126 = vector.broadcast %cst_83 : f32 to vector<14x16xf32>
    %127 = arith.maximumf %125, %126 : vector<14x16xf32>
    %c146 = arith.constant 146 : index
    %c0_84 = arith.constant 0 : index
    %128 = vector.load %arg10[%c146, %c0_84] : memref<304x16xf32, #tpu.memory_space<vmem>>, vector<14x16xf32>
    tpu.vector_store %arg10[%c146, %c0_84], %127 {strides = array<i32>} : memref<304x16xf32, #tpu.memory_space<vmem>>, vector<14x16xf32>,
    %c512 = arith.constant 512 : index
    %c0_85 = arith.constant 0 : index
    %129 = vector.load %arg9[%c512, %c0_85] : memref<896x16xf32, #tpu.memory_space<vmem>>, vector<14x16xf32>
    %c526 = arith.constant 526 : index
    %c0_86 = arith.constant 0 : index
    %130 = vector.load %arg9[%c526, %c0_86] : memref<896x16xf32, #tpu.memory_space<vmem>>, vector<14x16xf32>
    %131 = arith.maximumf %129, %130 : vector<14x16xf32>
    %c544 = arith.constant 544 : index
    %c0_87 = arith.constant 0 : index
    %132 = vector.load %arg9[%c544, %c0_87] : memref<896x16xf32, #tpu.memory_space<vmem>>, vector<14x16xf32>
    %c558 = arith.constant 558 : index
    %c0_88 = arith.constant 0 : index
    %133 = vector.load %arg9[%c558, %c0_88] : memref<896x16xf32, #tpu.memory_space<vmem>>, vector<14x16xf32>
    %134 = arith.maximumf %132, %133 : vector<14x16xf32>
    %135 = arith.maximumf %131, %134 : vector<14x16xf32>
    %136 = vector.broadcast %30 : vector<1x16xf32> to vector<14x16xf32>
    %137 = arith.addf %135, %136 : vector<14x16xf32>
    %cst_89 = arith.constant 0.000000e+00 : f32
    %138 = vector.broadcast %cst_89 : f32 to vector<14x16xf32>
    %139 = arith.maximumf %137, %138 : vector<14x16xf32>
    %c162 = arith.constant 162 : index
    %c0_90 = arith.constant 0 : index
    %140 = vector.load %arg10[%c162, %c0_90] : memref<304x16xf32, #tpu.memory_space<vmem>>, vector<14x16xf32>
    tpu.vector_store %arg10[%c162, %c0_90], %139 {strides = array<i32>} : memref<304x16xf32, #tpu.memory_space<vmem>>, vector<14x16xf32>,
    %c576 = arith.constant 576 : index
    %c0_91 = arith.constant 0 : index
    %141 = vector.load %arg9[%c576, %c0_91] : memref<896x16xf32, #tpu.memory_space<vmem>>, vector<14x16xf32>
    %c590 = arith.constant 590 : index
    %c0_92 = arith.constant 0 : index
    %142 = vector.load %arg9[%c590, %c0_92] : memref<896x16xf32, #tpu.memory_space<vmem>>, vector<14x16xf32>
    %143 = arith.maximumf %141, %142 : vector<14x16xf32>
    %c608 = arith.constant 608 : index
    %c0_93 = arith.constant 0 : index
    %144 = vector.load %arg9[%c608, %c0_93] : memref<896x16xf32, #tpu.memory_space<vmem>>, vector<14x16xf32>
    %c622 = arith.constant 622 : index
    %c0_94 = arith.constant 0 : index
    %145 = vector.load %arg9[%c622, %c0_94] : memref<896x16xf32, #tpu.memory_space<vmem>>, vector<14x16xf32>
    %146 = arith.maximumf %144, %145 : vector<14x16xf32>
    %147 = arith.maximumf %143, %146 : vector<14x16xf32>
    %148 = vector.broadcast %30 : vector<1x16xf32> to vector<14x16xf32>
    %149 = arith.addf %147, %148 : vector<14x16xf32>
    %cst_95 = arith.constant 0.000000e+00 : f32
    %150 = vector.broadcast %cst_95 : f32 to vector<14x16xf32>
    %151 = arith.maximumf %149, %150 : vector<14x16xf32>
    %c178 = arith.constant 178 : index
    %c0_96 = arith.constant 0 : index
    %152 = vector.load %arg10[%c178, %c0_96] : memref<304x16xf32, #tpu.memory_space<vmem>>, vector<14x16xf32>
    tpu.vector_store %arg10[%c178, %c0_96], %151 {strides = array<i32>} : memref<304x16xf32, #tpu.memory_space<vmem>>, vector<14x16xf32>,
    %c640 = arith.constant 640 : index
    %c0_97 = arith.constant 0 : index
    %153 = vector.load %arg9[%c640, %c0_97] : memref<896x16xf32, #tpu.memory_space<vmem>>, vector<14x16xf32>
    %c654 = arith.constant 654 : index
    %c0_98 = arith.constant 0 : index
    %154 = vector.load %arg9[%c654, %c0_98] : memref<896x16xf32, #tpu.memory_space<vmem>>, vector<14x16xf32>
    %155 = arith.maximumf %153, %154 : vector<14x16xf32>
    %c672 = arith.constant 672 : index
    %c0_99 = arith.constant 0 : index
    %156 = vector.load %arg9[%c672, %c0_99] : memref<896x16xf32, #tpu.memory_space<vmem>>, vector<14x16xf32>
    %c686 = arith.constant 686 : index
    %c0_100 = arith.constant 0 : index
    %157 = vector.load %arg9[%c686, %c0_100] : memref<896x16xf32, #tpu.memory_space<vmem>>, vector<14x16xf32>
    %158 = arith.maximumf %156, %157 : vector<14x16xf32>
    %159 = arith.maximumf %155, %158 : vector<14x16xf32>
    %160 = vector.broadcast %30 : vector<1x16xf32> to vector<14x16xf32>
    %161 = arith.addf %159, %160 : vector<14x16xf32>
    %cst_101 = arith.constant 0.000000e+00 : f32
    %162 = vector.broadcast %cst_101 : f32 to vector<14x16xf32>
    %163 = arith.maximumf %161, %162 : vector<14x16xf32>
    %c194 = arith.constant 194 : index
    %c0_102 = arith.constant 0 : index
    %164 = vector.load %arg10[%c194, %c0_102] : memref<304x16xf32, #tpu.memory_space<vmem>>, vector<14x16xf32>
    tpu.vector_store %arg10[%c194, %c0_102], %163 {strides = array<i32>} : memref<304x16xf32, #tpu.memory_space<vmem>>, vector<14x16xf32>,
    %c704 = arith.constant 704 : index
    %c0_103 = arith.constant 0 : index
    %165 = vector.load %arg9[%c704, %c0_103] : memref<896x16xf32, #tpu.memory_space<vmem>>, vector<14x16xf32>
    %c718 = arith.constant 718 : index
    %c0_104 = arith.constant 0 : index
    %166 = vector.load %arg9[%c718, %c0_104] : memref<896x16xf32, #tpu.memory_space<vmem>>, vector<14x16xf32>
    %167 = arith.maximumf %165, %166 : vector<14x16xf32>
    %c736 = arith.constant 736 : index
    %c0_105 = arith.constant 0 : index
    %168 = vector.load %arg9[%c736, %c0_105] : memref<896x16xf32, #tpu.memory_space<vmem>>, vector<14x16xf32>
    %c750 = arith.constant 750 : index
    %c0_106 = arith.constant 0 : index
    %169 = vector.load %arg9[%c750, %c0_106] : memref<896x16xf32, #tpu.memory_space<vmem>>, vector<14x16xf32>
    %170 = arith.maximumf %168, %169 : vector<14x16xf32>
    %171 = arith.maximumf %167, %170 : vector<14x16xf32>
    %172 = vector.broadcast %30 : vector<1x16xf32> to vector<14x16xf32>
    %173 = arith.addf %171, %172 : vector<14x16xf32>
    %cst_107 = arith.constant 0.000000e+00 : f32
    %174 = vector.broadcast %cst_107 : f32 to vector<14x16xf32>
    %175 = arith.maximumf %173, %174 : vector<14x16xf32>
    %c210 = arith.constant 210 : index
    %c0_108 = arith.constant 0 : index
    %176 = vector.load %arg10[%c210, %c0_108] : memref<304x16xf32, #tpu.memory_space<vmem>>, vector<14x16xf32>
    tpu.vector_store %arg10[%c210, %c0_108], %175 {strides = array<i32>} : memref<304x16xf32, #tpu.memory_space<vmem>>, vector<14x16xf32>,
    %c768 = arith.constant 768 : index
    %c0_109 = arith.constant 0 : index
    %177 = vector.load %arg9[%c768, %c0_109] : memref<896x16xf32, #tpu.memory_space<vmem>>, vector<14x16xf32>
    %c782 = arith.constant 782 : index
    %c0_110 = arith.constant 0 : index
    %178 = vector.load %arg9[%c782, %c0_110] : memref<896x16xf32, #tpu.memory_space<vmem>>, vector<14x16xf32>
    %179 = arith.maximumf %177, %178 : vector<14x16xf32>
    %c800 = arith.constant 800 : index
    %c0_111 = arith.constant 0 : index
    %180 = vector.load %arg9[%c800, %c0_111] : memref<896x16xf32, #tpu.memory_space<vmem>>, vector<14x16xf32>
    %c814 = arith.constant 814 : index
    %c0_112 = arith.constant 0 : index
    %181 = vector.load %arg9[%c814, %c0_112] : memref<896x16xf32, #tpu.memory_space<vmem>>, vector<14x16xf32>
    %182 = arith.maximumf %180, %181 : vector<14x16xf32>
    %183 = arith.maximumf %179, %182 : vector<14x16xf32>
    %184 = vector.broadcast %30 : vector<1x16xf32> to vector<14x16xf32>
    %185 = arith.addf %183, %184 : vector<14x16xf32>
    %cst_113 = arith.constant 0.000000e+00 : f32
    %186 = vector.broadcast %cst_113 : f32 to vector<14x16xf32>
    %187 = arith.maximumf %185, %186 : vector<14x16xf32>
    %c226 = arith.constant 226 : index
    %c0_114 = arith.constant 0 : index
    %188 = vector.load %arg10[%c226, %c0_114] : memref<304x16xf32, #tpu.memory_space<vmem>>, vector<14x16xf32>
    tpu.vector_store %arg10[%c226, %c0_114], %187 {strides = array<i32>} : memref<304x16xf32, #tpu.memory_space<vmem>>, vector<14x16xf32>,
    %c832 = arith.constant 832 : index
    %c0_115 = arith.constant 0 : index
    %189 = vector.load %arg9[%c832, %c0_115] : memref<896x16xf32, #tpu.memory_space<vmem>>, vector<14x16xf32>
    %c846 = arith.constant 846 : index
    %c0_116 = arith.constant 0 : index
    %190 = vector.load %arg9[%c846, %c0_116] : memref<896x16xf32, #tpu.memory_space<vmem>>, vector<14x16xf32>
    %191 = arith.maximumf %189, %190 : vector<14x16xf32>
    %c864 = arith.constant 864 : index
    %c0_117 = arith.constant 0 : index
    %192 = vector.load %arg9[%c864, %c0_117] : memref<896x16xf32, #tpu.memory_space<vmem>>, vector<14x16xf32>
    %c878 = arith.constant 878 : index
    %c0_118 = arith.constant 0 : index
    %193 = vector.load %arg9[%c878, %c0_118] : memref<896x16xf32, #tpu.memory_space<vmem>>, vector<14x16xf32>
    %194 = arith.maximumf %192, %193 : vector<14x16xf32>
    %195 = arith.maximumf %191, %194 : vector<14x16xf32>
    %196 = vector.broadcast %30 : vector<1x16xf32> to vector<14x16xf32>
    %197 = arith.addf %195, %196 : vector<14x16xf32>
    %cst_119 = arith.constant 0.000000e+00 : f32
    %198 = vector.broadcast %cst_119 : f32 to vector<14x16xf32>
    %199 = arith.maximumf %197, %198 : vector<14x16xf32>
    %c242 = arith.constant 242 : index
    %c0_120 = arith.constant 0 : index
    %200 = vector.load %arg10[%c242, %c0_120] : memref<304x16xf32, #tpu.memory_space<vmem>>, vector<14x16xf32>
    tpu.vector_store %arg10[%c242, %c0_120], %199 {strides = array<i32>} : memref<304x16xf32, #tpu.memory_space<vmem>>, vector<14x16xf32>,
    %c0_121 = arith.constant 0 : index
    %c0_122 = arith.constant 0 : index
    %201 = vector.load %arg10[%c0_121, %c0_122] : memref<304x16xf32, #tpu.memory_space<vmem>>, vector<300x16xf32>
    %c0_123 = arith.constant 0 : index
    %c0_124 = arith.constant 0 : index
    %202 = vector.load %arg11[%c0_123, %c0_124] : memref<300x80xf32, #tpu.memory_space<vmem>>, vector<300x16xf32>
    tpu.vector_store %arg11[%c0_123, %c0_124], %201 {strides = array<i32>} : memref<300x80xf32, #tpu.memory_space<vmem>>, vector<300x16xf32>,
    %c1_125 = arith.constant 1 : index
    %c0_126 = arith.constant 0 : index
    %203 = vector.load %arg10[%c1_125, %c0_126] : memref<304x16xf32, #tpu.memory_space<vmem>>, vector<300x16xf32>
    %c0_127 = arith.constant 0 : index
    %c16 = arith.constant 16 : index
    %204 = vector.load %arg11[%c0_127, %c16] : memref<300x80xf32, #tpu.memory_space<vmem>>, vector<300x16xf32>
    tpu.vector_store %arg11[%c0_127, %c16], %203 {strides = array<i32>} : memref<300x80xf32, #tpu.memory_space<vmem>>, vector<300x16xf32>,
    %c2_128 = arith.constant 2 : index
    %c0_129 = arith.constant 0 : index
    %205 = vector.load %arg10[%c2_128, %c0_129] : memref<304x16xf32, #tpu.memory_space<vmem>>, vector<300x16xf32>
    %c0_130 = arith.constant 0 : index
    %c32_131 = arith.constant 32 : index
    %206 = vector.load %arg11[%c0_130, %c32_131] : memref<300x80xf32, #tpu.memory_space<vmem>>, vector<300x16xf32>
    tpu.vector_store %arg11[%c0_130, %c32_131], %205 {strides = array<i32>} : memref<300x80xf32, #tpu.memory_space<vmem>>, vector<300x16xf32>,
    %c3_132 = arith.constant 3 : index
    %c0_133 = arith.constant 0 : index
    %207 = vector.load %arg10[%c3_132, %c0_133] : memref<304x16xf32, #tpu.memory_space<vmem>>, vector<300x16xf32>
    %c0_134 = arith.constant 0 : index
    %c48 = arith.constant 48 : index
    %208 = vector.load %arg11[%c0_134, %c48] : memref<300x80xf32, #tpu.memory_space<vmem>>, vector<300x16xf32>
    tpu.vector_store %arg11[%c0_134, %c48], %207 {strides = array<i32>} : memref<300x80xf32, #tpu.memory_space<vmem>>, vector<300x16xf32>,
    %c4_135 = arith.constant 4 : index
    %c0_136 = arith.constant 0 : index
    %209 = vector.load %arg10[%c4_135, %c0_136] : memref<304x16xf32, #tpu.memory_space<vmem>>, vector<300x16xf32>
    %c0_137 = arith.constant 0 : index
    %c64_138 = arith.constant 64 : index
    %210 = vector.load %arg11[%c0_137, %c64_138] : memref<300x80xf32, #tpu.memory_space<vmem>>, vector<300x16xf32>
    tpu.vector_store %arg11[%c0_137, %c64_138], %209 {strides = array<i32>} : memref<300x80xf32, #tpu.memory_space<vmem>>, vector<300x16xf32>,
    %c0_139 = arith.constant 0 : index
    %c0_140 = arith.constant 0 : index
    %211 = vector.load %arg11[%c0_139, %c0_140] : memref<300x80xf32, #tpu.memory_space<vmem>>, vector<224x80xf32>
    %c0_141 = arith.constant 0 : index
    %c0_142 = arith.constant 0 : index
    %c0_143 = arith.constant 0 : index
    %212 = vector.load %arg4[%c0_141, %c0_142, %c0_143] : memref<5x80x32xf32, #tpu.memory_space<vmem>>, vector<1x80x32xf32>
    %213 = vector.shape_cast %212 : vector<1x80x32xf32> to vector<80x32xf32>
    %cst_144 = arith.constant dense<0.000000e+00> : vector<224x32xf32>
    %214 = tpu.matmul %211, %213, %cst_144 {dimension_numbers = #tpu.dot_dimension_numbers<[1], [0], [0], [1], [0, 0, 1, 1], [], []>} : vector<224x80xf32>, vector<80x32xf32>, vector<224x32xf32> -> vector<224x32xf32>
    %c16_145 = arith.constant 16 : index
    %c0_146 = arith.constant 0 : index
    %215 = vector.load %arg11[%c16_145, %c0_146] : memref<300x80xf32, #tpu.memory_space<vmem>>, vector<224x80xf32>
    %c1_147 = arith.constant 1 : index
    %c0_148 = arith.constant 0 : index
    %c0_149 = arith.constant 0 : index
    %216 = vector.load %arg4[%c1_147, %c0_148, %c0_149] : memref<5x80x32xf32, #tpu.memory_space<vmem>>, vector<1x80x32xf32>
    %217 = vector.shape_cast %216 : vector<1x80x32xf32> to vector<80x32xf32>
    %cst_150 = arith.constant dense<0.000000e+00> : vector<224x32xf32>
    %218 = tpu.matmul %215, %217, %cst_150 {dimension_numbers = #tpu.dot_dimension_numbers<[1], [0], [0], [1], [0, 0, 1, 1], [], []>} : vector<224x80xf32>, vector<80x32xf32>, vector<224x32xf32> -> vector<224x32xf32>
    %219 = arith.addf %214, %218 : vector<224x32xf32>
    %c32_151 = arith.constant 32 : index
    %c0_152 = arith.constant 0 : index
    %220 = vector.load %arg11[%c32_151, %c0_152] : memref<300x80xf32, #tpu.memory_space<vmem>>, vector<224x80xf32>
    %c2_153 = arith.constant 2 : index
    %c0_154 = arith.constant 0 : index
    %c0_155 = arith.constant 0 : index
    %221 = vector.load %arg4[%c2_153, %c0_154, %c0_155] : memref<5x80x32xf32, #tpu.memory_space<vmem>>, vector<1x80x32xf32>
    %222 = vector.shape_cast %221 : vector<1x80x32xf32> to vector<80x32xf32>
    %cst_156 = arith.constant dense<0.000000e+00> : vector<224x32xf32>
    %223 = tpu.matmul %220, %222, %cst_156 {dimension_numbers = #tpu.dot_dimension_numbers<[1], [0], [0], [1], [0, 0, 1, 1], [], []>} : vector<224x80xf32>, vector<80x32xf32>, vector<224x32xf32> -> vector<224x32xf32>
    %224 = arith.addf %219, %223 : vector<224x32xf32>
    %c48_157 = arith.constant 48 : index
    %c0_158 = arith.constant 0 : index
    %225 = vector.load %arg11[%c48_157, %c0_158] : memref<300x80xf32, #tpu.memory_space<vmem>>, vector<224x80xf32>
    %c3_159 = arith.constant 3 : index
    %c0_160 = arith.constant 0 : index
    %c0_161 = arith.constant 0 : index
    %226 = vector.load %arg4[%c3_159, %c0_160, %c0_161] : memref<5x80x32xf32, #tpu.memory_space<vmem>>, vector<1x80x32xf32>
    %227 = vector.shape_cast %226 : vector<1x80x32xf32> to vector<80x32xf32>
    %cst_162 = arith.constant dense<0.000000e+00> : vector<224x32xf32>
    %228 = tpu.matmul %225, %227, %cst_162 {dimension_numbers = #tpu.dot_dimension_numbers<[1], [0], [0], [1], [0, 0, 1, 1], [], []>} : vector<224x80xf32>, vector<80x32xf32>, vector<224x32xf32> -> vector<224x32xf32>
    %229 = arith.addf %224, %228 : vector<224x32xf32>
    %c64_163 = arith.constant 64 : index
    %c0_164 = arith.constant 0 : index
    %230 = vector.load %arg11[%c64_163, %c0_164] : memref<300x80xf32, #tpu.memory_space<vmem>>, vector<224x80xf32>
    %c4_165 = arith.constant 4 : index
    %c0_166 = arith.constant 0 : index
    %c0_167 = arith.constant 0 : index
    %231 = vector.load %arg4[%c4_165, %c0_166, %c0_167] : memref<5x80x32xf32, #tpu.memory_space<vmem>>, vector<1x80x32xf32>
    %232 = vector.shape_cast %231 : vector<1x80x32xf32> to vector<80x32xf32>
    %cst_168 = arith.constant dense<0.000000e+00> : vector<224x32xf32>
    %233 = tpu.matmul %230, %232, %cst_168 {dimension_numbers = #tpu.dot_dimension_numbers<[1], [0], [0], [1], [0, 0, 1, 1], [], []>} : vector<224x80xf32>, vector<80x32xf32>, vector<224x32xf32> -> vector<224x32xf32>
    %234 = arith.addf %229, %233 : vector<224x32xf32>
    %c0_169 = arith.constant 0 : index
    %c0_170 = arith.constant 0 : index
    %235 = vector.load %arg12[%c0_169, %c0_170] : memref<224x32xf32, #tpu.memory_space<vmem>>, vector<224x32xf32>
    tpu.vector_store %arg12[%c0_169, %c0_170], %234 {strides = array<i32>} : memref<224x32xf32, #tpu.memory_space<vmem>>, vector<224x32xf32>,
    %c0_171 = arith.constant 0 : index
    %c0_172 = arith.constant 0 : index
    %236 = vector.load %arg12[%c0_171, %c0_172] : memref<224x32xf32, #tpu.memory_space<vmem>>, vector<207x32xf32>
    %c1_173 = arith.constant 1 : index
    %c0_174 = arith.constant 0 : index
    %237 = vector.load %arg12[%c1_173, %c0_174] : memref<224x32xf32, #tpu.memory_space<vmem>>, vector<207x32xf32>
    %238 = arith.maximumf %236, %237 : vector<207x32xf32>
    %c16_175 = arith.constant 16 : index
    %c0_176 = arith.constant 0 : index
    %239 = vector.load %arg12[%c16_175, %c0_176] : memref<224x32xf32, #tpu.memory_space<vmem>>, vector<207x32xf32>
    %c17 = arith.constant 17 : index
    %c0_177 = arith.constant 0 : index
    %240 = vector.load %arg12[%c17, %c0_177] : memref<224x32xf32, #tpu.memory_space<vmem>>, vector<207x32xf32>
    %241 = arith.maximumf %239, %240 : vector<207x32xf32>
    %242 = arith.maximumf %238, %241 : vector<207x32xf32>
    %c0_178 = arith.constant 0 : index
    %c0_179 = arith.constant 0 : index
    %243 = vector.load %arg5[%c0_178, %c0_179] : memref<1x32xf32, #tpu.memory_space<vmem>>, vector<1x32xf32>
    %244 = vector.broadcast %243 : vector<1x32xf32> to vector<207x32xf32>
    %245 = arith.addf %242, %244 : vector<207x32xf32>
    %cst_180 = arith.constant 0.000000e+00 : f32
    %246 = vector.broadcast %cst_180 : f32 to vector<207x32xf32>
    %247 = arith.maximumf %245, %246 : vector<207x32xf32>
    %c0_181 = arith.constant 0 : index
    %c0_182 = arith.constant 0 : index
    %c0_183 = arith.constant 0 : index
    %248 = vector.load %arg6[%c0_181, %c0_182, %c0_183] : memref<10x207x32xf32, #tpu.memory_space<vmem>>, vector<10x207x32xf32>
    %249 = vector.shape_cast %247 : vector<207x32xf32> to vector<1x207x32xf32>
    %250 = vector.broadcast %249 : vector<1x207x32xf32> to vector<10x207x32xf32>
    %251 = arith.mulf %248, %250 : vector<10x207x32xf32>
    %cst_184 = arith.constant dense<0.000000e+00> : vector<10x207xf32>
    %252 = vector.multi_reduction <add>, %251, %cst_184 [2] : vector<10x207x32xf32> to vector<10x207xf32>
    %cst_185 = arith.constant dense<0.000000e+00> : vector<10xf32>
    %253 = vector.multi_reduction <add>, %252, %cst_185 [1] : vector<10x207xf32> to vector<10xf32>
    %254 = vector.shape_cast %253 : vector<10xf32> to vector<10x1xf32>
    %c0_186 = arith.constant 0 : index
    %c0_187 = arith.constant 0 : index
    %255 = vector.load %arg7[%c0_186, %c0_187] : memref<10x1xf32, #tpu.memory_space<vmem>>, vector<10x1xf32>
    %256 = arith.addf %254, %255 : vector<10x1xf32>
    %c0_188 = arith.constant 0 : index
    %c0_189 = arith.constant 0 : index
    %c0_190 = arith.constant 0 : index
    %257 = vector.load %arg8[%c0_188, %c0_189, %c0_190] : memref<1x10x1xf32, #tpu.memory_space<vmem>>, vector<1x10x1xf32>
    %258 = vector.shape_cast %257 : vector<1x10x1xf32> to vector<10x1xf32>
    %259 = vector.shape_cast %256 : vector<10x1xf32> to vector<1x10x1xf32>
    tpu.vector_store %arg8[%c0_188, %c0_189, %c0_190], %259 {strides = array<i32>} : memref<1x10x1xf32, #tpu.memory_space<vmem>>, vector<1x10x1xf32>,
    return
  }
  func.func @transform_0(%arg0: i32) -> (i32, i32, i32) {
    %c0_i32 = arith.constant 0 : i32
    %c0_i32_0 = arith.constant 0 : i32
    %c0_i32_1 = arith.constant 0 : i32
    return %arg0, %c0_i32, %c0_i32_0 : i32, i32, i32
  }
  func.func @transform_1(%arg0: i32) -> (i32, i32, i32) {
    %c0_i32 = arith.constant 0 : i32
    %c0_i32_0 = arith.constant 0 : i32
    %c0_i32_1 = arith.constant 0 : i32
    %c0_i32_2 = arith.constant 0 : i32
    return %c0_i32, %c0_i32_0, %c0_i32_1 : i32, i32, i32
  }
  func.func @transform_2(%arg0: i32) -> (i32, i32) {
    %c0_i32 = arith.constant 0 : i32
    %c0_i32_0 = arith.constant 0 : i32
    %c0_i32_1 = arith.constant 0 : i32
    return %c0_i32, %c0_i32_0 : i32, i32
  }
  func.func @transform_3(%arg0: i32) -> (i32, i32, i32) {
    %c0_i32 = arith.constant 0 : i32
    %c0_i32_0 = arith.constant 0 : i32
    %c0_i32_1 = arith.constant 0 : i32
    %c0_i32_2 = arith.constant 0 : i32
    return %c0_i32, %c0_i32_0, %c0_i32_1 : i32, i32, i32
  }
  func.func @transform_4(%arg0: i32) -> (i32, i32) {
    %c0_i32 = arith.constant 0 : i32
    %c0_i32_0 = arith.constant 0 : i32
    %c0_i32_1 = arith.constant 0 : i32
    return %c0_i32, %c0_i32_0 : i32, i32
  }
  func.func @transform_5(%arg0: i32) -> (i32, i32, i32) {
    %c0_i32 = arith.constant 0 : i32
    %c0_i32_0 = arith.constant 0 : i32
    %c0_i32_1 = arith.constant 0 : i32
    %c0_i32_2 = arith.constant 0 : i32
    return %c0_i32, %c0_i32_0, %c0_i32_1 : i32, i32, i32
  }
  func.func @transform_6(%arg0: i32) -> (i32, i32) {
    %c0_i32 = arith.constant 0 : i32
    %c0_i32_0 = arith.constant 0 : i32
    %c0_i32_1 = arith.constant 0 : i32
    return %c0_i32, %c0_i32_0 : i32, i32
  }
  func.func @transform_7(%arg0: i32) -> (i32, i32, i32) {
    %c0_i32 = arith.constant 0 : i32
    %c0_i32_0 = arith.constant 0 : i32
    %c0_i32_1 = arith.constant 0 : i32
    return %arg0, %c0_i32, %c0_i32_0 : i32, i32, i32
  }
}

</mosaic_0001>

<bundles_post_ra>
// kernel: cnn_forward.1
= control target key start
LH: loop header
LB: loop body
LE: loop exit
PB: predicated region body
PF: predicated region fallthrough
CT: control target
= control target key end

     0   :  { %s15198_s24 = smov 0   ;;  %s20558_s0 = inlined_call_operand.vmem [shape: f32[2,1024,8], index: 0, kind: input, shape index: {}]   ;;  %s20559_s1 = inlined_call_operand.vmem [shape: f32[5,8,16], index: 1, kind: input, shape index: {}]   ;;  %s20560_s2 = inlined_call_operand.vmem [shape: f32[1,16], index: 2, kind: input, shape index: {}]   ;;  %s20561_s3 = inlined_call_operand.vmem [shape: f32[5,80,32], index: 3, kind: input, shape index: {}]   ;;  %s20562_s4 = inlined_call_operand.vmem [shape: f32[1,32], index: 4, kind: input, shape index: {}]   ;;  %s20563_s5 = inlined_call_operand.vmem [shape: f32[10,207,32], index: 5, kind: input, shape index: {}]   ;;  %s20564_s6 = inlined_call_operand.vmem [shape: f32[10,1], index: 6, kind: input, shape index: {}]   ;;  %s20565_s7 = inlined_call_operand.vmem [shape: f32[2,10,1], index: 7, kind: output, shape index: {}]  }
   0x1 LB: > { %s11790_s25 = sadd.s32 4294967295, %s15151_s24   ;;  %p11794_p0 = scmp.ge.s32.totalorder %s15151_s24, 1  ;;  %s15151_s24 = sphi %s15198_s24, %s17_s24  }
   0x2   : > { %p237_p1 = scmp.lt.s32.totalorder %s15151_s24, 3 }
   0x4   : > { %p238_p2 = pnand %p11794_p0, %p237_p1 }
   0x6   : > { %241 = sbr.rel (%p238_p2) target bundleno = 2310 (0x906), region = 48 }
   0xd   : > { %v391_v0 = vld [vmem:[%s20559_s1] sm:$0xff]  ;;  %p269_p3 = scmp.lt.s32.totalorder %s11790_s25, 1  ;;  %v12024_v1 = vld [vmem:[%s20559_s1 + $0x10] sm:$0xff]  ;;  %v11799_v2 = vld [vmem:[%s20559_s1 + $0x8] sm:$0xff]  ;;  %vm398_vm0 = vcmask 64512   ;;  %vm5558_vm1 = vcmask 130048  }
   0xe   : > { %13474 = vmatprep.subr.mxu0 %v391_v0  ;;  %13304 = vmatprep.subr.mxu1 %v11799_v2  ;;  %v12137_v7 = vld [vmem:[%s20559_s1 + $0x18] sm:$0xff]  ;;  %s15154_s17 = smov 16   ;;  %s15155_s18 = smov 32   ;;  %vm6264_vm2 = vcmask 261248   ;;  %vm6494_vm3 = vcmask 392448   ;;  %vm6724_vm4 = vcmask 523648  }
   0xf   : > { %13475 = vmatpush3.msra.mxu0 %v391_v0  ;;  %s20882_s25 = smov (!%p269_p3, %s11790_s25), 1  ;;  %13305 = vmatpush3.msra.mxu1 %v11799_v2  ;;  %s15156_s19 = smov 48   ;;  %vm6954_vm5 = vcmask 654848   ;;  %vm7045_vm6 = vcmask 654336   ;;  %vm5735_vm7 = vcmask 128000   ;;  %vm8614_vm8 = vcmask 261120  }
  0x10   : > { %13644 = vmatprep.subr.mxu0 %v12024_v1  ;;  %s12547_s9 = sshll.u32 %s20882_s25, 10  ;;  %14564 = vmatprep.subr.mxu1 %v391_v0  ;;  %s15157_s20 = smov 64   ;;  %vm10387_vm9 = vcmask 130112   ;;  %vm10394_vm10 = vcmask 195712   ;;  %vm10401_vm11 = vcmask 261312   ;;  %vm10408_vm12 = vcmask 326912  }
  0x11   : > { %s15221_s12 = scalar_lea.vmem %s20558_s0, %s12547_s9  ;;  %vm10415_vm13 = vcmask 392512   ;;  %vm10422_vm14 = vcmask 458112   ;;  %vm10429_vm15 = vcmask 523712   ;;  %s12548_s8 = sshll.u32 %s20882_s25, 4 }
  0x12   : > { %v279_v3 = vld [vmem:[%s15221_s12] sm:$0xff]  ;;  %v280_v4 = vld [vmem:[%s15221_s12 + $0x8] sm:$0xff]  ;;  %v281_v5 = vld [vmem:[%s15221_s12 + $0x10] sm:$0xff] }
  0x13   : > { %13476 = vmatprep.mubr.msk.f32.mxu0 %vm398_vm0, %v279_v3  ;;  %v283_v6 = vld [vmem:[%s15221_s12 + $0x20] sm:$0xff]  ;;  %v282_v8 = vld [vmem:[%s15221_s12 + $0x18] sm:$0xff]  ;;  %v284_v9 = vld [vmem:[%s15221_s12 + $0x28] sm:$0xff] }
  0x14   : > { %13477 = vmatmul.mubr.msk.f32.vlgmr.msra.gmra.mrb[0].mxu0 %vm398_vm0, %v280_v4  ;;  %13306 = vmatprep.mubr.msk.f32.mxu1 %vm398_vm0, %v283_v6  ;;  %v285_v10 = vld [vmem:[%s15221_s12 + $0x30] sm:$0xff]  ;;  %v286_v11 = vld [vmem:[%s15221_s12 + $0x38] sm:$0xff]  ;;  %v287_v12 = vld [vmem:[%s15221_s12 + $0x40] sm:$0xff] }
  0x15   : > { %13645 = vmatpush3.msra.mxu0 %v12024_v1  ;;  %13479 = vmatprep.mubr.msk.f32.mxu0 %vm398_vm0, %v281_v5  ;;  %v288_v13 = vld [vmem:[%s15221_s12 + $0x48] sm:$0xff]  ;;  %v289_v14 = vld [vmem:[%s15221_s12 + $0x50] sm:$0xff]  ;;  %v290_v15 = vld [vmem:[%s15221_s12 + $0x58] sm:$0xff] }
  0x16   : > { %13814 = vmatprep.subr.mxu0 %v12137_v7  ;;  %13307 = vmatmul.mubr.msk.f32.vlgmr.msra.gmra.mrb[0].mxu1 %vm398_vm0, %v284_v9  ;;  %v15255_v16 = vld [vmem:[%s15221_s12 + $0x60] sm:$0xff]  ;;  %v15263_v17 = vld [vmem:[%s15221_s12 + $0x68] sm:$0xff]  ;;  %v15266_v18 = vld [vmem:[%s15221_s12 + $0x70] sm:$0xff] }
  0x17   : > { %13309 = vmatprep.mubr.msk.f32.mxu1 %vm398_vm0, %v285_v10  ;;  %14565 = vmatpush3.msra.mxu1 %v391_v0  ;;  %v15276_v19 = vld [vmem:[%s15221_s12 + $0x78] sm:$0xff]  ;;  %v15279_v20 = vld [vmem:[%s15221_s12 + $0x80] sm:$0xff]  ;;  %v15289_v21 = vld [vmem:[%s15221_s12 + $0x88] sm:$0xff] }
  0x18   : > { %13480 = vmatmul.mubr.msk.f32.gmra.mrb[2].mxu0 %vm398_vm0, %v282_v8  ;;  %v15292_v22 = vld [vmem:[%s15221_s12 + $0x90] sm:$0xff]  ;;  %v15301_v23 = vld [vmem:[%s15221_s12 + $0x98] sm:$0xff]  ;;  %v15304_v24 = vld [vmem:[%s15221_s12 + $0xa0] sm:$0xff] }
  0x19   : > { %13482 = vmatprep.mubr.msk.f32.mxu0 %vm398_vm0, %v283_v6  ;;  %v15314_v25 = vld [vmem:[%s15221_s12 + $0xa8] sm:$0xff]  ;;  %v15317_v26 = vld [vmem:[%s15221_s12 + $0xb0] sm:$0xff]  ;;  %v15328_v27 = vld [vmem:[%s15221_s12 + $0xb8] sm:$0xff] }
  0x1a   : > { %13310 = vmatmul.mubr.msk.f32.gmra.mrb[2].mxu1 %vm398_vm0, %v286_v11  ;;  %v15331_v28 = vld [vmem:[%s15221_s12 + $0xc0] sm:$0xff]  ;;  %v15342_v29 = vld [vmem:[%s15221_s12 + $0xc8] sm:$0xff]  ;;  %v15345_v30 = vld [vmem:[%s15221_s12 + $0xd0] sm:$0xff] }
  0x1b   : > { %13312 = vmatprep.mubr.msk.f32.mxu1 %vm398_vm0, %v287_v12  ;;  %v15356_v31 = vld [vmem:[%s15221_s12 + $0xd8] sm:$0xff]  ;;  %v15359_v32 = vld [vmem:[%s15221_s12 + $0xe0] sm:$0xff]  ;;  %v15370_v33 = vld [vmem:[%s15221_s12 + $0xe8] sm:$0xff] }
  0x1c   : > { %13483 = vmatmul.mubr.msk.f32.gmra.mrb[4].mxu0 %vm398_vm0, %v284_v9  ;;  %v15373_v34 = vld [vmem:[%s15221_s12 + $0xf0] sm:$0xff]  ;;  %v15384_v35 = vld [vmem:[%s15221_s12 + $0xf8] sm:$0xff]  ;;  %v15387_v36 = vld [vmem:[%s15221_s12 + $0x100] sm:$0xff] }
  0x1d   : > { %13485 = vmatprep.mubr.msk.f32.mxu0 %vm398_vm0, %v285_v10  ;;  %v15398_v37 = vld [vmem:[%s15221_s12 + $0x108] sm:$0xff]  ;;  %v15401_v38 = vld [vmem:[%s15221_s12 + $0x110] sm:$0xff]  ;;  %v15412_v39 = vld [vmem:[%s15221_s12 + $0x118] sm:$0xff] }
  0x1e   : > { %13313 = vmatmul.mubr.msk.f32.gmra.mrb[4].mxu1 %vm398_vm0, %v288_v13  ;;  %v15415_v40 = vld [vmem:[%s15221_s12 + $0x120] sm:$0xff]  ;;  %v15426_v41 = vld [vmem:[%s15221_s12 + $0x128] sm:$0xff]  ;;  %v15429_v42 = vld [vmem:[%s15221_s12 + $0x130] sm:$0xff] }
  0x1f   : > { %13315 = vmatprep.mubr.msk.f32.mxu1 %vm398_vm0, %v289_v14  ;;  %v15440_v43 = vld [vmem:[%s15221_s12 + $0x138] sm:$0xff]  ;;  %v15443_v44 = vld [vmem:[%s15221_s12 + $0x140] sm:$0xff]  ;;  %v15454_v45 = vld [vmem:[%s15221_s12 + $0x148] sm:$0xff] }
  0x20   : > { %13486 = vmatmul.mubr.msk.f32.gmra.mrb[6].mxu0 %vm398_vm0, %v286_v11  ;;  %v15457_v46 = vld [vmem:[%s15221_s12 + $0x150] sm:$0xff]  ;;  %v15468_v47 = vld [vmem:[%s15221_s12 + $0x158] sm:$0xff]  ;;  %v15471_v48 = vld [vmem:[%s15221_s12 + $0x160] sm:$0xff] }
  0x21   : > { %13488 = vmatprep.mubr.msk.f32.mxu0 %vm398_vm0, %v287_v12  ;;  %v15482_v49 = vld [vmem:[%s15221_s12 + $0x168] sm:$0xff]  ;;  %v15485_v50 = vld [vmem:[%s15221_s12 + $0x170] sm:$0xff]  ;;  %v15496_v51 = vld [vmem:[%s15221_s12 + $0x178] sm:$0xff] }
  0x22   : > { %13316 = vmatmul.mubr.msk.f32.gmra.mrb[6].mxu1 %vm398_vm0, %v290_v15  ;;  %v15499_v52 = vld [vmem:[%s15221_s12 + $0x180] sm:$0xff]  ;;  %v15510_v53 = vld [vmem:[%s15221_s12 + $0x188] sm:$0xff]  ;;  %v15513_v54 = vld [vmem:[%s15221_s12 + $0x190] sm:$0xff] }
  0x23   : > { %13318 = vmatprep.mubr.msk.f32.mxu1 %vm398_vm0, %v15255_v16  ;;  %v15524_v55 = vld [vmem:[%s15221_s12 + $0x198] sm:$0xff]  ;;  %v15527_v56 = vld [vmem:[%s15221_s12 + $0x1a0] sm:$0xff]  ;;  %v15538_v57 = vld [vmem:[%s15221_s12 + $0x1a8] sm:$0xff] }
  0x24   : > { %13489 = vmatmul.mubr.msk.f32.gmra.mrb[8].mxu0 %vm398_vm0, %v288_v13  ;;  %v15541_v58 = vld [vmem:[%s15221_s12 + $0x1b0] sm:$0xff]  ;;  %v15552_v59 = vld [vmem:[%s15221_s12 + $0x1b8] sm:$0xff]  ;;  %v15555_v60 = vld [vmem:[%s15221_s12 + $0x1c0] sm:$0xff] }
  0x25   : > { %13491 = vmatprep.mubr.msk.f32.mxu0 %vm398_vm0, %v289_v14  ;;  %v15566_v61 = vld [vmem:[%s15221_s12 + $0x1c8] sm:$0xff]  ;;  %v15569_v62 = vld [vmem:[%s15221_s12 + $0x1d0] sm:$0xff]  ;;  %v15580_v63 = vld [vmem:[%s15221_s12 + $0x1d8] sm:$0xff] }
  0x26   : > { %13319 = vmatmul.mubr.msk.f32.gmra.mrb[8].mxu1 %vm398_vm0, %v15263_v17  ;;  %v15583_v0 = vld [vmem:[%s15221_s12 + $0x1e0] sm:$0xff]  ;;  %v15594_v1 = vld [vmem:[%s15221_s12 + $0x1e8] sm:$0xff]  ;;  %v15597_v2 = vld [vmem:[%s15221_s12 + $0x1f0] sm:$0xff] }
  0x27   : > { %13321 = vmatprep.mubr.msk.f32.mxu1 %vm398_vm0, %v15266_v18  ;;  %20657 = vst [vmem:[#allocation6_spill] sm:$0xff] %v15597_v2  ;;  %v15608_v3 = vld [vmem:[%s15221_s12 + $0x1f8] sm:$0xff]  ;;  %v15611_v4 = vld [vmem:[%s15221_s12 + $0x200] sm:$0xff]  ;;  %v15622_v5 = vld [vmem:[%s15221_s12 + $0x208] sm:$0xff] }
  0x28   : > { %13492 = vmatmul.mubr.msk.f32.gmra.mrb[10].mxu0 %vm398_vm0, %v290_v15  ;;  %20658 = vst [vmem:[#allocation7_spill] sm:$0xff] %v15608_v3  ;;  %20659 = vst [vmem:[#allocation8_spill] sm:$0xff] %v15611_v4  ;;  %v15627_v6 = vld [vmem:[%s20559_s1 + $0x20] sm:$0xff]  ;;  %v15642_v8 = vld [vmem:[%s15221_s12 + $0x218] sm:$0xff] }
  0x29   : > { %13494 = vmatprep.mubr.msk.f32.mxu0 %vm398_vm0, %v15255_v16  ;;  %20660 = vst [vmem:[#allocation9_spill] sm:$0xff] %v15622_v5  ;;  %20662 = vst [vmem:[#allocation11_spill] sm:$0xff] %v15642_v8  ;;  %v15645_v9 = vld [vmem:[%s15221_s12 + $0x220] sm:$0xff]  ;;  %v15656_v10 = vld [vmem:[%s15221_s12 + $0x228] sm:$0xff] }
  0x2a   : > { %13322 = vmatmul.mubr.msk.f32.gmra.mrb[10].mxu1 %vm398_vm0, %v15276_v19  ;;  %20663 = vst [vmem:[#allocation12_spill] sm:$0xff] %v15645_v9  ;;  %20664 = vst [vmem:[#allocation13_spill] sm:$0xff] %v15656_v10  ;;  %v15659_v11 = vld [vmem:[%s15221_s12 + $0x230] sm:$0xff] }
  0x2b   : > { %13324 = vmatprep.mubr.msk.f32.mxu1 %vm398_vm0, %v15279_v20  ;;  %20665 = vst [vmem:[#allocation14_spill] sm:$0xff] %v15659_v11 }
  0x2c   : > { %13495 = vmatmul.mubr.msk.f32.gmra.mrb[12].mxu0 %vm398_vm0, %v15263_v17 }
  0x2d   : > { %13646 = vmatprep.mubr.msk.f32.mxu0 %vm398_vm0, %v287_v12  ;;  %v15670_v12 = vld [vmem:[%s15221_s12 + $0x238] sm:$0xff] }
  0x2e   : > { %13325 = vmatmul.mubr.msk.f32.gmra.mrb[12].mxu1 %vm398_vm0, %v15289_v21  ;;  %20666 = vst [vmem:[#allocation15_spill] sm:$0xff] %v15670_v12 }
  0x2f   : > { %13327 = vmatprep.mubr.msk.f32.mxu1 %vm398_vm0, %v15292_v22 }
  0x30   : > { %13647 = vmatmul.mubr.msk.f32.vlgmr.msra.gmra.mrb[0].mxu0 %vm398_vm0, %v288_v13  ;;  %v15673_v13 = vld [vmem:[%s15221_s12 + $0x240] sm:$0xff] }
  0x31   : > { %13815 = vmatpush3.msra.mxu0 %v12137_v7  ;;  %13649 = vmatprep.mubr.msk.f32.mxu0 %vm398_vm0, %v289_v14  ;;  %v15630_v7 = vld [vmem:[%s15221_s12 + $0x210] sm:$0xff]  ;;  %20667 = vst [vmem:[#allocation16_spill] sm:$0xff] %v15673_v13  ;;  %v15684_v14 = vld [vmem:[%s15221_s12 + $0x248] sm:$0xff] }
  0x32   : > { %13328 = vmatmul.mubr.msk.f32.gmra.mrb[14].mxu1 %vm398_vm0, %v15301_v23  ;;  %20661 = vst [vmem:[#allocation10_spill] sm:$0xff] %v15630_v7  ;;  %13984 = vmatprep.subr.mxu0 %v15627_v6  ;;  %20668 = vst [vmem:[#allocation17_spill] sm:$0xff] %v15684_v14 }
  0x33   : > { %13330 = vmatprep.mubr.msk.f32.mxu1 %vm398_vm0, %v15304_v24 }
  0x34   : > { %13650 = vmatmul.mubr.msk.f32.gmra.mrb[2].mxu0 %vm398_vm0, %v290_v15  ;;  %v15687_v15 = vld [vmem:[%s15221_s12 + $0x250] sm:$0xff] }
  0x35   : > { %13652 = vmatprep.mubr.msk.f32.mxu0 %vm398_vm0, %v15255_v16  ;;  %20669 = vst [vmem:[#allocation18_spill] sm:$0xff] %v15687_v15 }
  0x36   : > { %13331 = vmatmul.mubr.msk.f32.gmra.mrb[16].mxu1 %vm398_vm0, %v15314_v25 }
  0x37   : > { %13333 = vmatprep.mubr.msk.f32.mxu1 %vm398_vm0, %v15317_v26 }
  0x38   : > { %13653 = vmatmul.mubr.msk.f32.gmra.mrb[4].mxu0 %vm398_vm0, %v15263_v17 }
  0x39   : > { %13655 = vmatprep.mubr.msk.f32.mxu0 %vm398_vm0, %v15266_v18 }
  0x3a   : > { %13334 = vmatmul.mubr.msk.f32.gmra.mrb[18].mxu1 %vm398_vm0, %v15328_v27 }
  0x3b   : > { %13336 = vmatprep.mubr.msk.f32.mxu1 %vm398_vm0, %v15331_v28 }
  0x3c   : > { %13656 = vmatmul.mubr.msk.f32.gmra.mrb[6].mxu0 %vm398_vm0, %v15276_v19 }
  0x3d   : > { %13658 = vmatprep.mubr.msk.f32.mxu0 %vm398_vm0, %v15279_v20 }
  0x3e   : > { %13337 = vmatmul.mubr.msk.f32.gmra.mrb[20].mxu1 %vm398_vm0, %v15342_v29 }
  0x3f   : > { %13339 = vmatprep.mubr.msk.f32.mxu1 %vm398_vm0, %v15345_v30 }
  0x40   : > { %13659 = vmatmul.mubr.msk.f32.gmra.mrb[8].mxu0 %vm398_vm0, %v15289_v21 }
  0x41   : > { %13661 = vmatprep.mubr.msk.f32.mxu0 %vm398_vm0, %v15292_v22 }
  0x42   : > { %13340 = vmatmul.mubr.msk.f32.gmra.mrb[22].mxu1 %vm398_vm0, %v15356_v31 }
  0x43   : > { %13342 = vmatprep.mubr.msk.f32.mxu1 %vm398_vm0, %v15359_v32 }
  0x44   : > { %13662 = vmatmul.mubr.msk.f32.gmra.mrb[10].mxu0 %vm398_vm0, %v15301_v23 }
  0x45   : > { %13664 = vmatprep.mubr.msk.f32.mxu0 %vm398_vm0, %v15304_v24 }
  0x46   : > { %13343 = vmatmul.mubr.msk.f32.gmra.mrb[24].mxu1 %vm398_vm0, %v15370_v33 }
  0x47   : > { %13345 = vmatprep.mubr.msk.f32.mxu1 %vm398_vm0, %v15373_v34 }
  0x48   : > { %13665 = vmatmul.mubr.msk.f32.gmra.mrb[12].mxu0 %vm398_vm0, %v15314_v25 }
  0x49   : > { %13667 = vmatprep.mubr.msk.f32.mxu0 %vm398_vm0, %v15317_v26 }
  0x4a   : > { %13346 = vmatmul.mubr.msk.f32.gmra.mrb[26].mxu1 %vm398_vm0, %v15384_v35 }
  0x4b   : > { %13348 = vmatprep.mubr.msk.f32.mxu1 %vm398_vm0, %v15387_v36 }
  0x4c   : > { %13668 = vmatmul.mubr.msk.f32.gmra.mrb[14].mxu0 %vm398_vm0, %v15328_v27 }
  0x4d   : > { %13670 = vmatprep.mubr.msk.f32.mxu0 %vm398_vm0, %v15331_v28 }
  0x4e   : > { %13349 = vmatmul.mubr.msk.f32.gmra.mrb[28].mxu1 %vm398_vm0, %v15398_v37 }
  0x4f   : > { %13351 = vmatprep.mubr.msk.f32.mxu1 %vm398_vm0, %v15401_v38 }
  0x50   : > { %13671 = vmatmul.mubr.msk.f32.gmra.mrb[16].mxu0 %vm398_vm0, %v15342_v29 }
  0x51   : > { %13673 = vmatprep.mubr.msk.f32.mxu0 %vm398_vm0, %v15345_v30 }
  0x52   : > { %13352 = vmatmul.mubr.msk.f32.gmra.mrb[30].mxu1 %vm398_vm0, %v15412_v39 }
  0x53   : > { %13354 = vmatprep.mubr.msk.f32.mxu1 %vm398_vm0, %v15415_v40 }
  0x54   : > { %13674 = vmatmul.mubr.msk.f32.gmra.mrb[18].mxu0 %vm398_vm0, %v15356_v31 }
  0x55   : > { %13676 = vmatprep.mubr.msk.f32.mxu0 %vm398_vm0, %v15359_v32 }
  0x56   : > { %13355 = vmatmul.mubr.msk.f32.gmra.mrb[32].mxu1 %vm398_vm0, %v15426_v41 }
  0x57   : > { %13357 = vmatprep.mubr.msk.f32.mxu1 %vm398_vm0, %v15429_v42 }
  0x58   : > { %13677 = vmatmul.mubr.msk.f32.gmra.mrb[20].mxu0 %vm398_vm0, %v15370_v33 }
  0x59   : > { %13679 = vmatprep.mubr.msk.f32.mxu0 %vm398_vm0, %v15373_v34 }
  0x5a   : > { %13358 = vmatmul.mubr.msk.f32.gmra.mrb[34].mxu1 %vm398_vm0, %v15440_v43 }
  0x5b   : > { %13360 = vmatprep.mubr.msk.f32.mxu1 %vm398_vm0, %v15443_v44 }
  0x5c   : > { %13680 = vmatmul.mubr.msk.f32.gmra.mrb[22].mxu0 %vm398_vm0, %v15384_v35 }
  0x5d   : > { %13682 = vmatprep.mubr.msk.f32.mxu0 %vm398_vm0, %v15387_v36 }
  0x5e   : > { %13361 = vmatmul.mubr.msk.f32.gmra.mrb[36].mxu1 %vm398_vm0, %v15454_v45 }
  0x5f   : > { %13363 = vmatprep.mubr.msk.f32.mxu1 %vm398_vm0, %v15457_v46 }
  0x60   : > { %13683 = vmatmul.mubr.msk.f32.gmra.mrb[24].mxu0 %vm398_vm0, %v15398_v37 }
  0x61   : > { %13685 = vmatprep.mubr.msk.f32.mxu0 %vm398_vm0, %v15401_v38 }
  0x62   : > { %13364 = vmatmul.mubr.msk.f32.gmra.mrb[38].mxu1 %vm398_vm0, %v15468_v47 }
  0x63   : > { %13366 = vmatprep.mubr.msk.f32.mxu1 %vm398_vm0, %v15471_v48 }
  0x64   : > { %13686 = vmatmul.mubr.msk.f32.gmra.mrb[26].mxu0 %vm398_vm0, %v15412_v39 }
  0x65   : > { %13688 = vmatprep.mubr.msk.f32.mxu0 %vm398_vm0, %v15415_v40 }
  0x66   : > { %13367 = vmatmul.mubr.msk.f32.gmra.mrb[40].mxu1 %vm398_vm0, %v15482_v49 }
  0x67   : > { %13369 = vmatprep.mubr.msk.f32.mxu1 %vm398_vm0, %v15485_v50 }
  0x68   : > { %13689 = vmatmul.mubr.msk.f32.gmra.mrb[28].mxu0 %vm398_vm0, %v15426_v41 }
  0x69   : > { %13691 = vmatprep.mubr.msk.f32.mxu0 %vm398_vm0, %v15429_v42 }
  0x6a   : > { %13370 = vmatmul.mubr.msk.f32.gmra.mrb[42].mxu1 %vm398_vm0, %v15496_v51 }
  0x6b   : > { %13372 = vmatprep.mubr.msk.f32.mxu1 %vm398_vm0, %v15499_v52 }
  0x6c   : > { %13692 = vmatmul.mubr.msk.f32.gmra.mrb[30].mxu0 %vm398_vm0, %v15440_v43 }
  0x6d   : > { %13694 = vmatprep.mubr.msk.f32.mxu0 %vm398_vm0, %v15443_v44 }
  0x6e   : > { %13373 = vmatmul.mubr.msk.f32.gmra.mrb[44].mxu1 %vm398_vm0, %v15510_v53 }
  0x6f   : > { %13375 = vmatprep.mubr.msk.f32.mxu1 %vm398_vm0, %v15513_v54 }
  0x70   : > { %13695 = vmatmul.mubr.msk.f32.gmra.mrb[32].mxu0 %vm398_vm0, %v15454_v45 }
  0x71   : > { %13697 = vmatprep.mubr.msk.f32.mxu0 %vm398_vm0, %v15457_v46 }
  0x72   : > { %13376 = vmatmul.mubr.msk.f32.gmra.mrb[46].mxu1 %vm398_vm0, %v15524_v55 }
  0x73   : > { %13378 = vmatprep.mubr.msk.f32.mxu1 %vm398_vm0, %v15527_v56 }
  0x74   : > { %13698 = vmatmul.mubr.msk.f32.gmra.mrb[34].mxu0 %vm398_vm0, %v15468_v47 }
  0x75   : > { %13700 = vmatprep.mubr.msk.f32.mxu0 %vm398_vm0, %v15471_v48 }
  0x76   : > { %13379 = vmatmul.mubr.msk.f32.gmra.mrb[48].mxu1 %vm398_vm0, %v15538_v57 }
  0x77   : > { %13381 = vmatprep.mubr.msk.f32.mxu1 %vm398_vm0, %v15541_v58 }
  0x78   : > { %13701 = vmatmul.mubr.msk.f32.gmra.mrb[36].mxu0 %vm398_vm0, %v15482_v49 }
  0x79   : > { %13703 = vmatprep.mubr.msk.f32.mxu0 %vm398_vm0, %v15485_v50 }
  0x7a   : > { %13382 = vmatmul.mubr.msk.f32.gmra.mrb[50].mxu1 %vm398_vm0, %v15552_v59 }
  0x7b   : > { %13384 = vmatprep.mubr.msk.f32.mxu1 %vm398_vm0, %v15555_v60 }
  0x7c   : > { %13704 = vmatmul.mubr.msk.f32.gmra.mrb[38].mxu0 %vm398_vm0, %v15496_v51 }
  0x7d   : > { %13706 = vmatprep.mubr.msk.f32.mxu0 %vm398_vm0, %v15499_v52 }
  0x7e   : > { %13385 = vmatmul.mubr.msk.f32.gmra.mrb[52].mxu1 %vm398_vm0, %v15566_v61 }
  0x7f   : > { %13387 = vmatprep.mubr.msk.f32.mxu1 %vm398_vm0, %v15569_v62 }
  0x80   : > { %13707 = vmatmul.mubr.msk.f32.gmra.mrb[40].mxu0 %vm398_vm0, %v15510_v53 }
  0x81   : > { %13709 = vmatprep.mubr.msk.f32.mxu0 %vm398_vm0, %v15513_v54 }
  0x82   : > { %13388 = vmatmul.mubr.msk.f32.gmra.mrb[54].mxu1 %vm398_vm0, %v15580_v63 }
  0x83   : > { %13390 = vmatprep.mubr.msk.f32.mxu1 %vm398_vm0, %v15583_v0 }
  0x84   : > { %13710 = vmatmul.mubr.msk.f32.gmra.mrb[42].mxu0 %vm398_vm0, %v15524_v55 }
  0x85   : > { %13712 = vmatprep.mubr.msk.f32.mxu0 %vm398_vm0, %v15527_v56 }
  0x86   : > { %13391 = vmatmul.mubr.msk.f32.gmra.mrb[56].mxu1 %vm398_vm0, %v15594_v1 }
  0x87   : > { %13393 = vmatprep.mubr.msk.f32.mxu1 %vm398_vm0, %v15597_v2 }
  0x88   : > { %13713 = vmatmul.mubr.msk.f32.gmra.mrb[44].mxu0 %vm398_vm0, %v15538_v57 }
  0x89   : > { %13715 = vmatprep.mubr.msk.f32.mxu0 %vm398_vm0, %v15541_v58 }
  0x8a   : > { %13394 = vmatmul.mubr.msk.f32.gmra.mrb[58].mxu1 %vm398_vm0, %v15608_v3 }
  0x8b   : > { %13396 = vmatprep.mubr.msk.f32.mxu1 %vm398_vm0, %v15611_v4 }
  0x8c   : > { %13716 = vmatmul.mubr.msk.f32.gmra.mrb[46].mxu0 %vm398_vm0, %v15552_v59 }
  0x8d   : > { %13718 = vmatprep.mubr.msk.f32.mxu0 %vm398_vm0, %v15555_v60 }
  0x8e   : > { %13397 = vmatmul.mubr.msk.f32.gmra.mrb[60].mxu1 %vm398_vm0, %v15622_v5 }
  0x8f   : > { %13399 = vmatprep.mubr.msk.f32.mxu1 %vm398_vm0, %v15630_v7 }
  0x90   : > { %13719 = vmatmul.mubr.msk.f32.gmra.mrb[48].mxu0 %vm398_vm0, %v15566_v61 }
  0x91   : > { %13721 = vmatprep.mubr.msk.f32.mxu0 %vm398_vm0, %v15569_v62 }
  0x92   : > { %13400 = vmatmul.mubr.msk.f32.gmra.mrb[62].mxu1 %vm398_vm0, %v15642_v8 }
  0x93   : > { %13402 = vmatprep.mubr.msk.f32.mxu1 %vm398_vm0, %v15645_v9 }
  0x94   : > { %13722 = vmatmul.mubr.msk.f32.gmra.mrb[50].mxu0 %vm398_vm0, %v15580_v63 }
  0x95   : > { %13724 = vmatprep.mubr.msk.f32.mxu0 %vm398_vm0, %v15583_v0 }
  0x96   : > { %13403 = vmatmul.mubr.msk.f32.gmra.mrb[64].mxu1 %vm398_vm0, %v15656_v10 }
  0x97   : > { %13405 = vmatprep.mubr.msk.f32.mxu1 %vm398_vm0, %v15659_v11 }
  0x98   : > { %13725 = vmatmul.mubr.msk.f32.gmra.mrb[52].mxu0 %vm398_vm0, %v15594_v1 }
  0x99   : > { %13727 = vmatprep.mubr.msk.f32.mxu0 %vm398_vm0, %v15597_v2  ;;  %v15967_v2 = vld [vmem:[%s15221_s12 + $0x390] sm:$0xff] }
  0x9a   : > { %13406 = vmatmul.mubr.msk.f32.gmra.mrb[66].mxu1 %vm398_vm0, %v15670_v12 }
  0x9b   : > { %13408 = vmatprep.mubr.msk.f32.mxu1 %vm398_vm0, %v15673_v13 }
  0x9c   : > { %13728 = vmatmul.mubr.msk.f32.gmra.mrb[54].mxu0 %vm398_vm0, %v15608_v3  ;;  %v15698_v3 = vld [vmem:[%s15221_s12 + $0x258] sm:$0xff] }
  0x9d   : > { %13730 = vmatprep.mubr.msk.f32.mxu0 %vm398_vm0, %v15611_v4  ;;  %20670 = vst [vmem:[#allocation19_spill] sm:$0xff] %v15698_v3  ;;  %v15701_v4 = vld [vmem:[%s15221_s12 + $0x260] sm:$0xff] }
  0x9e   : > { %13409 = vmatmul.mubr.msk.f32.gmra.mrb[68].mxu1 %vm398_vm0, %v15684_v14  ;;  %20671 = vst [vmem:[#allocation20_spill] sm:$0xff] %v15701_v4 }
  0x9f   : > { %13411 = vmatprep.mubr.msk.f32.mxu1 %vm398_vm0, %v15687_v15 }
  0xa0   : > { %13731 = vmatmul.mubr.msk.f32.gmra.mrb[56].mxu0 %vm398_vm0, %v15622_v5  ;;  %v15712_v5 = vld [vmem:[%s15221_s12 + $0x268] sm:$0xff] }
  0xa1   : > { %13733 = vmatprep.mubr.msk.f32.mxu0 %vm398_vm0, %v15630_v7  ;;  %20672 = vst [vmem:[#allocation21_spill] sm:$0xff] %v15712_v5  ;;  %v15715_v7 = vld [vmem:[%s15221_s12 + $0x270] sm:$0xff] }
  0xa2   : > { %13412 = vmatmul.mubr.msk.f32.gmra.mrb[70].mxu1 %vm398_vm0, %v15698_v3  ;;  %20673 = vst [vmem:[#allocation22_spill] sm:$0xff] %v15715_v7 }
  0xa3   : > { %13414 = vmatprep.mubr.msk.f32.mxu1 %vm398_vm0, %v15701_v4 }
  0xa4   : > { %13734 = vmatmul.mubr.msk.f32.gmra.mrb[58].mxu0 %vm398_vm0, %v15642_v8  ;;  %v15726_v8 = vld [vmem:[%s15221_s12 + $0x278] sm:$0xff] }
  0xa5   : > { %13736 = vmatprep.mubr.msk.f32.mxu0 %vm398_vm0, %v15645_v9  ;;  %20674 = vst [vmem:[#allocation23_spill] sm:$0xff] %v15726_v8  ;;  %v15729_v9 = vld [vmem:[%s15221_s12 + $0x280] sm:$0xff] }
  0xa6   : > { %13415 = vmatmul.mubr.msk.f32.gmra.mrb[72].mxu1 %vm398_vm0, %v15712_v5  ;;  %20675 = vst [vmem:[#allocation24_spill] sm:$0xff] %v15729_v9 }
  0xa7   : > { %13417 = vmatprep.mubr.msk.f32.mxu1 %vm398_vm0, %v15715_v7 }
  0xa8   : > { %13737 = vmatmul.mubr.msk.f32.gmra.mrb[60].mxu0 %vm398_vm0, %v15656_v10  ;;  %v15740_v10 = vld [vmem:[%s15221_s12 + $0x288] sm:$0xff] }
  0xa9   : > { %13739 = vmatprep.mubr.msk.f32.mxu0 %vm398_vm0, %v15659_v11  ;;  %20676 = vst [vmem:[#allocation25_spill] sm:$0xff] %v15740_v10  ;;  %v15743_v11 = vld [vmem:[%s15221_s12 + $0x290] sm:$0xff] }
  0xaa   : > { %13418 = vmatmul.mubr.msk.f32.gmra.mrb[74].mxu1 %vm398_vm0, %v15726_v8  ;;  %20677 = vst [vmem:[#allocation26_spill] sm:$0xff] %v15743_v11 }
  0xab   : > { %13420 = vmatprep.mubr.msk.f32.mxu1 %vm398_vm0, %v15729_v9 }
  0xac   : > { %13740 = vmatmul.mubr.msk.f32.gmra.mrb[62].mxu0 %vm398_vm0, %v15670_v12  ;;  %v15754_v12 = vld [vmem:[%s15221_s12 + $0x298] sm:$0xff] }
  0xad   : > { %13742 = vmatprep.mubr.msk.f32.mxu0 %vm398_vm0, %v15673_v13  ;;  %20678 = vst [vmem:[#allocation27_spill] sm:$0xff] %v15754_v12  ;;  %v15757_v13 = vld [vmem:[%s15221_s12 + $0x2a0] sm:$0xff] }
  0xae   : > { %13421 = vmatmul.mubr.msk.f32.gmra.mrb[76].mxu1 %vm398_vm0, %v15740_v10  ;;  %20679 = vst [vmem:[#allocation28_spill] sm:$0xff] %v15757_v13 }
  0xaf   : > { %13423 = vmatprep.mubr.msk.f32.mxu1 %vm398_vm0, %v15743_v11 }
  0xb0   : > { %13743 = vmatmul.mubr.msk.f32.gmra.mrb[64].mxu0 %vm398_vm0, %v15684_v14  ;;  %v15768_v14 = vld [vmem:[%s15221_s12 + $0x2a8] sm:$0xff] }
  0xb1   : > { %13745 = vmatprep.mubr.msk.f32.mxu0 %vm398_vm0, %v15687_v15  ;;  %20680 = vst [vmem:[#allocation29_spill] sm:$0xff] %v15768_v14  ;;  %v15771_v15 = vld [vmem:[%s15221_s12 + $0x2b0] sm:$0xff] }
  0xb2   : > { %13424 = vmatmul.mubr.msk.f32.gmra.mrb[78].mxu1 %vm398_vm0, %v15754_v12  ;;  %20681 = vst [vmem:[#allocation30_spill] sm:$0xff] %v15771_v15 }
  0xb3   : > { %13426 = vmatprep.mubr.msk.f32.mxu1 %vm398_vm0, %v15757_v13 }
  0xb4   : > { %13746 = vmatmul.mubr.msk.f32.gmra.mrb[66].mxu0 %vm398_vm0, %v15698_v3  ;;  %v15782_v3 = vld [vmem:[%s15221_s12 + $0x2b8] sm:$0xff] }
  0xb5   : > { %13748 = vmatprep.mubr.msk.f32.mxu0 %vm398_vm0, %v15701_v4  ;;  %20682 = vst [vmem:[#allocation31_spill] sm:$0xff] %v15782_v3  ;;  %v15785_v4 = vld [vmem:[%s15221_s12 + $0x2c0] sm:$0xff] }
  0xb6   : > { %13427 = vmatmul.mubr.msk.f32.gmra.mrb[80].mxu1 %vm398_vm0, %v15768_v14  ;;  %20683 = vst [vmem:[#allocation32_spill] sm:$0xff] %v15785_v4 }
  0xb7   : > { %13429 = vmatprep.mubr.msk.f32.mxu1 %vm398_vm0, %v15771_v15 }
  0xb8   : > { %13749 = vmatmul.mubr.msk.f32.gmra.mrb[68].mxu0 %vm398_vm0, %v15712_v5  ;;  %v15796_v5 = vld [vmem:[%s15221_s12 + $0x2c8] sm:$0xff] }
  0xb9   : > { %13751 = vmatprep.mubr.msk.f32.mxu0 %vm398_vm0, %v15715_v7  ;;  %20684 = vst [vmem:[#allocation33_spill] sm:$0xff] %v15796_v5  ;;  %v15799_v7 = vld [vmem:[%s15221_s12 + $0x2d0] sm:$0xff] }
  0xba   : > { %13430 = vmatmul.mubr.msk.f32.gmra.mrb[82].mxu1 %vm398_vm0, %v15782_v3  ;;  %20685 = vst [vmem:[#allocation34_spill] sm:$0xff] %v15799_v7 }
  0xbb   : > { %13432 = vmatprep.mubr.msk.f32.mxu1 %vm398_vm0, %v15785_v4 }
  0xbc   : > { %13752 = vmatmul.mubr.msk.f32.gmra.mrb[70].mxu0 %vm398_vm0, %v15726_v8  ;;  %v15810_v8 = vld [vmem:[%s15221_s12 + $0x2d8] sm:$0xff] }
  0xbd   : > { %13754 = vmatprep.mubr.msk.f32.mxu0 %vm398_vm0, %v15729_v9  ;;  %20686 = vst [vmem:[#allocation35_spill] sm:$0xff] %v15810_v8  ;;  %v15813_v9 = vld [vmem:[%s15221_s12 + $0x2e0] sm:$0xff] }
  0xbe   : > { %13433 = vmatmul.mubr.msk.f32.gmra.mrb[84].mxu1 %vm398_vm0, %v15796_v5  ;;  %20687 = vst [vmem:[#allocation36_spill] sm:$0xff] %v15813_v9 }
  0xbf   : > { %13435 = vmatprep.mubr.msk.f32.mxu1 %vm398_vm0, %v15799_v7 }
  0xc0   : > { %13755 = vmatmul.mubr.msk.f32.gmra.mrb[72].mxu0 %vm398_vm0, %v15740_v10  ;;  %v15824_v10 = vld [vmem:[%s15221_s12 + $0x2e8] sm:$0xff] }
  0xc1   : > { %13757 = vmatprep.mubr.msk.f32.mxu0 %vm398_vm0, %v15743_v11  ;;  %20688 = vst [vmem:[#allocation37_spill] sm:$0xff] %v15824_v10  ;;  %v15827_v11 = vld [vmem:[%s15221_s12 + $0x2f0] sm:$0xff] }
  0xc2   : > { %13436 = vmatmul.mubr.msk.f32.gmra.mrb[86].mxu1 %vm398_vm0, %v15810_v8  ;;  %20689 = vst [vmem:[#allocation38_spill] sm:$0xff] %v15827_v11 }
  0xc3   : > { %13438 = vmatprep.mubr.msk.f32.mxu1 %vm398_vm0, %v15813_v9 }
  0xc4   : > { %13758 = vmatmul.mubr.msk.f32.gmra.mrb[74].mxu0 %vm398_vm0, %v15754_v12  ;;  %v15838_v12 = vld [vmem:[%s15221_s12 + $0x2f8] sm:$0xff] }
  0xc5   : > { %13760 = vmatprep.mubr.msk.f32.mxu0 %vm398_vm0, %v15757_v13  ;;  %20690 = vst [vmem:[#allocation39_spill] sm:$0xff] %v15838_v12  ;;  %v15841_v13 = vld [vmem:[%s15221_s12 + $0x300] sm:$0xff] }
  0xc6   : > { %13439 = vmatmul.mubr.msk.f32.gmra.mrb[88].mxu1 %vm398_vm0, %v15824_v10  ;;  %20691 = vst [vmem:[#allocation40_spill] sm:$0xff] %v15841_v13 }
  0xc7   : > { %13441 = vmatprep.mubr.msk.f32.mxu1 %vm398_vm0, %v15827_v11 }
  0xc8   : > { %13761 = vmatmul.mubr.msk.f32.gmra.mrb[76].mxu0 %vm398_vm0, %v15768_v14  ;;  %v15852_v14 = vld [vmem:[%s15221_s12 + $0x308] sm:$0xff] }
  0xc9   : > { %13763 = vmatprep.mubr.msk.f32.mxu0 %vm398_vm0, %v15771_v15  ;;  %20692 = vst [vmem:[#allocation41_spill] sm:$0xff] %v15852_v14  ;;  %v15855_v15 = vld [vmem:[%s15221_s12 + $0x310] sm:$0xff] }
  0xca   : > { %13442 = vmatmul.mubr.msk.f32.gmra.mrb[90].mxu1 %vm398_vm0, %v15838_v12  ;;  %20693 = vst [vmem:[#allocation42_spill] sm:$0xff] %v15855_v15 }
  0xcb   : > { %13444 = vmatprep.mubr.msk.f32.mxu1 %vm398_vm0, %v15841_v13 }
  0xcc   : > { %13764 = vmatmul.mubr.msk.f32.gmra.mrb[78].mxu0 %vm398_vm0, %v15782_v3  ;;  %v15866_v3 = vld [vmem:[%s15221_s12 + $0x318] sm:$0xff] }
  0xcd   : > { %13766 = vmatprep.mubr.msk.f32.mxu0 %vm398_vm0, %v15785_v4  ;;  %20694 = vst [vmem:[#allocation43_spill] sm:$0xff] %v15866_v3  ;;  %v15869_v4 = vld [vmem:[%s15221_s12 + $0x320] sm:$0xff] }
  0xce   : > { %13445 = vmatmul.mubr.msk.f32.gmra.mrb[92].mxu1 %vm398_vm0, %v15852_v14  ;;  %20695 = vst [vmem:[#allocation44_spill] sm:$0xff] %v15869_v4 }
  0xcf   : > { %13447 = vmatprep.mubr.msk.f32.mxu1 %vm398_vm0, %v15855_v15 }
  0xd0   : > { %13767 = vmatmul.mubr.msk.f32.gmra.mrb[80].mxu0 %vm398_vm0, %v15796_v5  ;;  %v15880_v5 = vld [vmem:[%s15221_s12 + $0x328] sm:$0xff] }
  0xd1   : > { %13769 = vmatprep.mubr.msk.f32.mxu0 %vm398_vm0, %v15799_v7  ;;  %20696 = vst [vmem:[#allocation45_spill] sm:$0xff] %v15880_v5  ;;  %v15883_v7 = vld [vmem:[%s15221_s12 + $0x330] sm:$0xff] }
  0xd2   : > { %13448 = vmatmul.mubr.msk.f32.gmra.mrb[94].mxu1 %vm398_vm0, %v15866_v3 }
  0xd3   : > { %13450 = vmatprep.mubr.msk.f32.mxu1 %vm398_vm0, %v15869_v4 }
  0xd4   : > { %13770 = vmatmul.mubr.msk.f32.gmra.mrb[82].mxu0 %vm398_vm0, %v15810_v8  ;;  %v15894_v8 = vld [vmem:[%s15221_s12 + $0x338] sm:$0xff] }
  0xd5   : > { %13772 = vmatprep.mubr.msk.f32.mxu0 %vm398_vm0, %v15813_v9  ;;  %20697 = vst [vmem:[#allocation46_spill] sm:$0xff] %v15894_v8  ;;  %v15897_v9 = vld [vmem:[%s15221_s12 + $0x340] sm:$0xff] }
  0xd6   : > { %13451 = vmatmul.mubr.msk.f32.gmra.mrb[96].mxu1 %vm398_vm0, %v15880_v5 }
  0xd7   : > { %13453 = vmatprep.mubr.msk.f32.mxu1 %vm398_vm0, %v15883_v7 }
  0xd8   : > { %13773 = vmatmul.mubr.msk.f32.gmra.mrb[84].mxu0 %vm398_vm0, %v15824_v10  ;;  %v15908_v10 = vld [vmem:[%s15221_s12 + $0x348] sm:$0xff] }
  0xd9   : > { %13775 = vmatprep.mubr.msk.f32.mxu0 %vm398_vm0, %v15827_v11  ;;  %v15911_v11 = vld [vmem:[%s15221_s12 + $0x350] sm:$0xff] }
  0xda   : > { %13454 = vmatmul.mubr.msk.f32.gmra.mrb[98].mxu1 %vm398_vm0, %v15894_v8 }
  0xdb   : > { %13456 = vmatprep.mubr.msk.f32.mxu1 %vm398_vm0, %v15897_v9 }
  0xdc   : > { %13776 = vmatmul.mubr.msk.f32.gmra.mrb[86].mxu0 %vm398_vm0, %v15838_v12  ;;  %v15922_v12 = vld [vmem:[%s15221_s12 + $0x358] sm:$0xff] }
  0xdd   : > { %13778 = vmatprep.mubr.msk.f32.mxu0 %vm398_vm0, %v15841_v13  ;;  %v15925_v13 = vld [vmem:[%s15221_s12 + $0x360] sm:$0xff] }
  0xde   : > { %13457 = vmatmul.mubr.msk.f32.gmra.mrb[100].mxu1 %vm398_vm0, %v15908_v10 }
  0xdf   : > { %13459 = vmatprep.mubr.msk.f32.mxu1 %vm398_vm0, %v15911_v11 }
  0xe0   : > { %13779 = vmatmul.mubr.msk.f32.gmra.mrb[88].mxu0 %vm398_vm0, %v15852_v14  ;;  %v15936_v14 = vld [vmem:[%s15221_s12 + $0x368] sm:$0xff] }
  0xe1   : > { %13781 = vmatprep.mubr.msk.f32.mxu0 %vm398_vm0, %v15855_v15  ;;  %v15939_v15 = vld [vmem:[%s15221_s12 + $0x370] sm:$0xff] }
  0xe2   : > { %13460 = vmatmul.mubr.msk.f32.gmra.mrb[102].mxu1 %vm398_vm0, %v15922_v12  ;;  %20698 = vst [vmem:[#allocation47_spill] sm:$0xff] %v15939_v15 }
  0xe3   : > { %13462 = vmatprep.mubr.msk.f32.mxu1 %vm398_vm0, %v15925_v13 }
  0xe4   : > { %13782 = vmatmul.mubr.msk.f32.gmra.mrb[90].mxu0 %vm398_vm0, %v15866_v3  ;;  %v15950_v3 = vld [vmem:[%s15221_s12 + $0x378] sm:$0xff] }
  0xe5   : > { %13784 = vmatprep.mubr.msk.f32.mxu0 %vm398_vm0, %v15869_v4  ;;  %v15953_v4 = vld [vmem:[%s15221_s12 + $0x380] sm:$0xff] }
  0xe6   : > { %13463 = vmatmul.mubr.msk.f32.gmra.mrb[104].mxu1 %vm398_vm0, %v15936_v14  ;;  %20699 = vst [vmem:[#allocation48_spill] sm:$0xff] %v15953_v4 }
  0xe7   : > { %13465 = vmatprep.mubr.msk.f32.mxu1 %vm398_vm0, %v15939_v15 }
  0xe8   : > { %13785 = vmatmul.mubr.msk.f32.gmra.mrb[92].mxu0 %vm398_vm0, %v15880_v5  ;;  %v15964_v5 = vld [vmem:[%s15221_s12 + $0x388] sm:$0xff] }
  0xe9   : > { %13787 = vmatprep.mubr.msk.f32.mxu0 %vm398_vm0, %v15883_v7  ;;  %20700 = vst [vmem:[#allocation49_spill] sm:$0xff] %v15964_v5 }
  0xea   : > { %13466 = vmatmul.mubr.msk.f32.gmra.mrb[106].mxu1 %vm398_vm0, %v15950_v3 }
  0xeb   : > { %13468 = vmatprep.mubr.msk.f32.mxu1 %vm398_vm0, %v15953_v4 }
  0xec   : > { %13788 = vmatmul.mubr.msk.f32.gmra.mrb[94].mxu0 %vm398_vm0, %v15894_v8  ;;  %v15978_v8 = vld [vmem:[%s15221_s12 + $0x398] sm:$0xff] }
  0xed   : > { %13790 = vmatprep.mubr.msk.f32.mxu0 %vm398_vm0, %v15897_v9  ;;  %20701 = vst [vmem:[#allocation50_spill] sm:$0xff] %v15978_v8 }
  0xee   : > { %13469 = vmatmul.mubr.msk.f32.gmra.mrb[108].mxu1 %vm398_vm0, %v15964_v5 }
  0xef   : > { %13471 = vmatprep.mubr.msk.f32.mxu1 %vm398_vm0, %v15967_v2 }
  0xf0   : > { %13791 = vmatmul.mubr.msk.f32.gmra.mrb[96].mxu0 %vm398_vm0, %v15908_v10 }
  0xf1   : > { %13793 = vmatprep.mubr.msk.f32.mxu0 %vm398_vm0, %v15911_v11 }
  0xf2   : > { %13472 = vmatmul.mubr.msk.f32.gmra.mrb[110].mxu1 %vm398_vm0, %v15978_v8 }
  0xf3   : > { %13497 = vmatprep.mubr.msk.f32.mxu1 %vm398_vm0, %v15266_v18 }
  0xf4   : > { %13794 = vmatmul.mubr.msk.f32.gmra.mrb[98].mxu0 %vm398_vm0, %v15922_v12 }
  0xf5   : > { %13796 = vmatprep.mubr.msk.f32.mxu0 %vm398_vm0, %v15925_v13 }
  0xf6   : > { %13498 = vmatmul.mubr.msk.f32.vlgmr.msra.gmra.mrb[14].mxu1 %vm398_vm0, %v15276_v19 }
  0xf7   : > { %13500 = vmatprep.mubr.msk.f32.mxu1 %vm398_vm0, %v15279_v20 }
  0xf8   : > { %13797 = vmatmul.mubr.msk.f32.gmra.mrb[100].mxu0 %vm398_vm0, %v15936_v14 }
  0xf9   : > { %13799 = vmatprep.mubr.msk.f32.mxu0 %vm398_vm0, %v15939_v15  ;;  %v16013_v15 = vld [vmem:[%s15221_s12 + $0x3a0] sm:$0xff] }
  0xfa   : > { %13501 = vmatmul.mubr.msk.f32.gmra.mrb[16].mxu1 %vm398_vm0, %v15289_v21 }
  0xfb   : > { %13503 = vmatprep.mubr.msk.f32.mxu1 %vm398_vm0, %v15292_v22 }
  0xfc   : > { %13800 = vmatmul.mubr.msk.f32.gmra.mrb[102].mxu0 %vm398_vm0, %v15950_v3 }
  0xfd   : > { %13802 = vmatprep.mubr.msk.f32.mxu0 %vm398_vm0, %v15953_v4  ;;  %v16024_v4 = vld [vmem:[%s15221_s12 + $0x3a8] sm:$0xff] }
  0xfe   : > { %13504 = vmatmul.mubr.msk.f32.gmra.mrb[18].mxu1 %vm398_vm0, %v15301_v23 }
  0xff   : > { %13506 = vmatprep.mubr.msk.f32.mxu1 %vm398_vm0, %v15304_v24 }
 0x100   : > { %13803 = vmatmul.mubr.msk.f32.gmra.mrb[104].mxu0 %vm398_vm0, %v15964_v5  ;;  %v16027_v5 = vld [vmem:[%s15221_s12 + $0x3b0] sm:$0xff] }
 0x101   : > { %13805 = vmatprep.mubr.msk.f32.mxu0 %vm398_vm0, %v15967_v2 }
 0x102   : > { %13507 = vmatmul.mubr.msk.f32.gmra.mrb[20].mxu1 %vm398_vm0, %v15314_v25 }
 0x103   : > { %13509 = vmatprep.mubr.msk.f32.mxu1 %vm398_vm0, %v15317_v26 }
 0x104   : > { %13806 = vmatmul.mubr.msk.f32.gmra.mrb[106].mxu0 %vm398_vm0, %v15978_v8  ;;  %v16038_v8 = vld [vmem:[%s15221_s12 + $0x3b8] sm:$0xff] }
 0x105   : > { %13808 = vmatprep.mubr.msk.f32.mxu0 %vm398_vm0, %v16013_v15 }
 0x106   : > { %13510 = vmatmul.mubr.msk.f32.gmra.mrb[22].mxu1 %vm398_vm0, %v15328_v27 }
 0x107   : > { %13512 = vmatprep.mubr.msk.f32.mxu1 %vm398_vm0, %v15331_v28 }
 0x108   : > { %13809 = vmatmul.mubr.msk.f32.gmra.mrb[108].mxu0 %vm398_vm0, %v16024_v4 }
 0x109   : > { %13811 = vmatprep.mubr.msk.f32.mxu0 %vm398_vm0, %v16027_v5 }
 0x10a   : > { %13513 = vmatmul.mubr.msk.f32.gmra.mrb[24].mxu1 %vm398_vm0, %v15342_v29 }
 0x10b   : > { %13515 = vmatprep.mubr.msk.f32.mxu1 %vm398_vm0, %v15345_v30 }
 0x10c   : > { %13812 = vmatmul.mubr.msk.f32.gmra.mrb[110].mxu0 %vm398_vm0, %v16038_v8 }
 0x10d   : > { %13816 = vmatprep.mubr.msk.f32.mxu0 %vm398_vm0, %v15255_v16  ;;  %v20702_v16 = vld [vmem:[#allocation6_spill] sm:$0xff] }
 0x10e   : > { %13516 = vmatmul.mubr.msk.f32.gmra.mrb[26].mxu1 %vm398_vm0, %v15356_v31 }
 0x10f   : > { %13518 = vmatprep.mubr.msk.f32.mxu1 %vm398_vm0, %v15359_v32 }
 0x110   : > { %13817 = vmatmul.mubr.msk.f32.vlgmr.msra.gmra.mrb[0].mxu0 %vm398_vm0, %v15263_v17  ;;  %v20703_v17 = vld [vmem:[#allocation7_spill] sm:$0xff] }
 0x111   : > { %13985 = vmatpush3.msra.mxu0 %v15627_v6  ;;  %13819 = vmatprep.mubr.msk.f32.mxu0 %vm398_vm0, %v15266_v18  ;;  %v20704_v18 = vld [vmem:[#allocation8_spill] sm:$0xff]  ;;  %v20738_v6 = vld [vmem:[#allocation42_spill] sm:$0xff] }
 0x112   : > { %13519 = vmatmul.mubr.msk.f32.gmra.mrb[28].mxu1 %vm398_vm0, %v15370_v33 }
 0x113   : > { %13521 = vmatprep.mubr.msk.f32.mxu1 %vm398_vm0, %v15373_v34 }
 0x114   : > { %13820 = vmatmul.mubr.msk.f32.gmra.mrb[2].mxu0 %vm398_vm0, %v15276_v19  ;;  %v20705_v19 = vld [vmem:[#allocation9_spill] sm:$0xff] }
 0x115   : > { %13822 = vmatprep.mubr.msk.f32.mxu0 %vm398_vm0, %v15279_v20  ;;  %v20706_v20 = vld [vmem:[#allocation10_spill] sm:$0xff] }
 0x116   : > { %13522 = vmatmul.mubr.msk.f32.gmra.mrb[30].mxu1 %vm398_vm0, %v15384_v35 }
 0x117   : > { %13524 = vmatprep.mubr.msk.f32.mxu1 %vm398_vm0, %v15387_v36 }
 0x118   : > { %13823 = vmatmul.mubr.msk.f32.gmra.mrb[4].mxu0 %vm398_vm0, %v15289_v21  ;;  %v20707_v21 = vld [vmem:[#allocation11_spill] sm:$0xff] }
 0x119   : > { %13825 = vmatprep.mubr.msk.f32.mxu0 %vm398_vm0, %v15292_v22  ;;  %v20708_v22 = vld [vmem:[#allocation12_spill] sm:$0xff] }
 0x11a   : > { %13525 = vmatmul.mubr.msk.f32.gmra.mrb[32].mxu1 %vm398_vm0, %v15398_v37 }
 0x11b   : > { %13527 = vmatprep.mubr.msk.f32.mxu1 %vm398_vm0, %v15401_v38 }
 0x11c   : > { %13826 = vmatmul.mubr.msk.f32.gmra.mrb[6].mxu0 %vm398_vm0, %v15301_v23  ;;  %v20709_v23 = vld [vmem:[#allocation13_spill] sm:$0xff] }
 0x11d   : > { %13828 = vmatprep.mubr.msk.f32.mxu0 %vm398_vm0, %v15304_v24  ;;  %v20710_v24 = vld [vmem:[#allocation14_spill] sm:$0xff] }
 0x11e   : > { %13528 = vmatmul.mubr.msk.f32.gmra.mrb[34].mxu1 %vm398_vm0, %v15412_v39 }
 0x11f   : > { %13530 = vmatprep.mubr.msk.f32.mxu1 %vm398_vm0, %v15415_v40 }
 0x120   : > { %13829 = vmatmul.mubr.msk.f32.gmra.mrb[8].mxu0 %vm398_vm0, %v15314_v25  ;;  %v20711_v25 = vld [vmem:[#allocation15_spill] sm:$0xff] }
 0x121   : > { %13831 = vmatprep.mubr.msk.f32.mxu0 %vm398_vm0, %v15317_v26  ;;  %v20712_v26 = vld [vmem:[#allocation16_spill] sm:$0xff] }
 0x122   : > { %13531 = vmatmul.mubr.msk.f32.gmra.mrb[36].mxu1 %vm398_vm0, %v15426_v41 }
 0x123   : > { %13533 = vmatprep.mubr.msk.f32.mxu1 %vm398_vm0, %v15429_v42 }
 0x124   : > { %13832 = vmatmul.mubr.msk.f32.gmra.mrb[10].mxu0 %vm398_vm0, %v15328_v27  ;;  %v20713_v27 = vld [vmem:[#allocation17_spill] sm:$0xff] }
 0x125   : > { %13834 = vmatprep.mubr.msk.f32.mxu0 %vm398_vm0, %v15331_v28  ;;  %v20714_v28 = vld [vmem:[#allocation18_spill] sm:$0xff] }
 0x126   : > { %13534 = vmatmul.mubr.msk.f32.gmra.mrb[38].mxu1 %vm398_vm0, %v15440_v43 }
 0x127   : > { %13536 = vmatprep.mubr.msk.f32.mxu1 %vm398_vm0, %v15443_v44 }
 0x128   : > { %13835 = vmatmul.mubr.msk.f32.gmra.mrb[12].mxu0 %vm398_vm0, %v15342_v29  ;;  %v20715_v29 = vld [vmem:[#allocation19_spill] sm:$0xff] }
 0x129   : > { %13837 = vmatprep.mubr.msk.f32.mxu0 %vm398_vm0, %v15345_v30  ;;  %v20716_v30 = vld [vmem:[#allocation20_spill] sm:$0xff] }
 0x12a   : > { %13537 = vmatmul.mubr.msk.f32.gmra.mrb[40].mxu1 %vm398_vm0, %v15454_v45 }
 0x12b   : > { %13539 = vmatprep.mubr.msk.f32.mxu1 %vm398_vm0, %v15457_v46 }
 0x12c   : > { %13838 = vmatmul.mubr.msk.f32.gmra.mrb[14].mxu0 %vm398_vm0, %v15356_v31  ;;  %v20717_v31 = vld [vmem:[#allocation21_spill] sm:$0xff] }
 0x12d   : > { %13840 = vmatprep.mubr.msk.f32.mxu0 %vm398_vm0, %v15359_v32  ;;  %v20718_v32 = vld [vmem:[#allocation22_spill] sm:$0xff] }
 0x12e   : > { %13540 = vmatmul.mubr.msk.f32.gmra.mrb[42].mxu1 %vm398_vm0, %v15468_v47 }
 0x12f   : > { %13542 = vmatprep.mubr.msk.f32.mxu1 %vm398_vm0, %v15471_v48 }
 0x130   : > { %13841 = vmatmul.mubr.msk.f32.gmra.mrb[16].mxu0 %vm398_vm0, %v15370_v33  ;;  %v20719_v33 = vld [vmem:[#allocation23_spill] sm:$0xff] }
 0x131   : > { %13843 = vmatprep.mubr.msk.f32.mxu0 %vm398_vm0, %v15373_v34  ;;  %v20720_v34 = vld [vmem:[#allocation24_spill] sm:$0xff] }
 0x132   : > { %13543 = vmatmul.mubr.msk.f32.gmra.mrb[44].mxu1 %vm398_vm0, %v15482_v49 }
 0x133   : > { %13545 = vmatprep.mubr.msk.f32.mxu1 %vm398_vm0, %v15485_v50 }
 0x134   : > { %13844 = vmatmul.mubr.msk.f32.gmra.mrb[18].mxu0 %vm398_vm0, %v15384_v35  ;;  %v20721_v35 = vld [vmem:[#allocation25_spill] sm:$0xff] }
 0x135   : > { %13846 = vmatprep.mubr.msk.f32.mxu0 %vm398_vm0, %v15387_v36  ;;  %v20722_v36 = vld [vmem:[#allocation26_spill] sm:$0xff] }
 0x136   : > { %13546 = vmatmul.mubr.msk.f32.gmra.mrb[46].mxu1 %vm398_vm0, %v15496_v51 }
 0x137   : > { %13548 = vmatprep.mubr.msk.f32.mxu1 %vm398_vm0, %v15499_v52 }
 0x138   : > { %13847 = vmatmul.mubr.msk.f32.gmra.mrb[20].mxu0 %vm398_vm0, %v15398_v37  ;;  %v16271_v37 = vpop.f32.mrb[0].mxu1 }
 0x139   : > { %13849 = vmatprep.mubr.msk.f32.mxu0 %vm398_vm0, %v15401_v38  ;;  %v16275_v38 = vpop.f32.mrb[1].mxu1 }
 0x13a   : > { %13549 = vmatmul.mubr.msk.f32.gmra.mrb[48].mxu1 %vm398_vm0, %v15510_v53 }
 0x13b   : > { %13551 = vmatprep.mubr.msk.f32.mxu1 %vm398_vm0, %v15513_v54 }
 0x13c   : > { %13850 = vmatmul.mubr.msk.f32.gmra.mrb[22].mxu0 %vm398_vm0, %v15412_v39  ;;  %v20723_v39 = vld [vmem:[#allocation27_spill] sm:$0xff] }
 0x13d   : > { %13852 = vmatprep.mubr.msk.f32.mxu0 %vm398_vm0, %v15415_v40  ;;  %v20724_v40 = vld [vmem:[#allocation28_spill] sm:$0xff] }
 0x13e   : > { %13552 = vmatmul.mubr.msk.f32.gmra.mrb[50].mxu1 %vm398_vm0, %v15524_v55 }
 0x13f   : > { %13554 = vmatprep.mubr.msk.f32.mxu1 %vm398_vm0, %v15527_v56 }
 0x140   : > { %13853 = vmatmul.mubr.msk.f32.gmra.mrb[24].mxu0 %vm398_vm0, %v15426_v41  ;;  %v16283_v41 = vpop.f32.mrb[2].mxu1 }
 0x141   : > { %13855 = vmatprep.mubr.msk.f32.mxu0 %vm398_vm0, %v15429_v42  ;;  %v16287_v42 = vpop.f32.mrb[3].mxu1 }
 0x142   : > { %13555 = vmatmul.mubr.msk.f32.gmra.mrb[52].mxu1 %vm398_vm0, %v15538_v57 }
 0x143   : > { %13557 = vmatprep.mubr.msk.f32.mxu1 %vm398_vm0, %v15541_v58 }
 0x144   : > { %13856 = vmatmul.mubr.msk.f32.gmra.mrb[26].mxu0 %vm398_vm0, %v15440_v43  ;;  %v20725_v43 = vld [vmem:[#allocation29_spill] sm:$0xff] }
 0x145   : > { %13858 = vmatprep.mubr.msk.f32.mxu0 %vm398_vm0, %v15443_v44  ;;  %v20726_v44 = vld [vmem:[#allocation30_spill] sm:$0xff] }
 0x146   : > { %13558 = vmatmul.mubr.msk.f32.gmra.mrb[54].mxu1 %vm398_vm0, %v15552_v59 }
 0x147   : > { %13560 = vmatprep.mubr.msk.f32.mxu1 %vm398_vm0, %v15555_v60 }
 0x148   : > { %13859 = vmatmul.mubr.msk.f32.gmra.mrb[28].mxu0 %vm398_vm0, %v15454_v45  ;;  %v16295_v45 = vpop.f32.mrb[4].mxu1 }
 0x149   : > { %13861 = vmatprep.mubr.msk.f32.mxu0 %vm398_vm0, %v15457_v46  ;;  %v16299_v46 = vpop.f32.mrb[5].mxu1 }
 0x14a   : > { %13561 = vmatmul.mubr.msk.f32.gmra.mrb[56].mxu1 %vm398_vm0, %v15566_v61 }
 0x14b   : > { %13563 = vmatprep.mubr.msk.f32.mxu1 %vm398_vm0, %v15569_v62 }
 0x14c   : > { %13862 = vmatmul.mubr.msk.f32.gmra.mrb[30].mxu0 %vm398_vm0, %v15468_v47  ;;  %v20727_v47 = vld [vmem:[#allocation31_spill] sm:$0xff] }
 0x14d   : > { %13864 = vmatprep.mubr.msk.f32.mxu0 %vm398_vm0, %v15471_v48  ;;  %v20728_v48 = vld [vmem:[#allocation32_spill] sm:$0xff] }
 0x14e   : > { %13564 = vmatmul.mubr.msk.f32.gmra.mrb[58].mxu1 %vm398_vm0, %v15580_v63 }
 0x14f   : > { %13566 = vmatprep.mubr.msk.f32.mxu1 %vm398_vm0, %v15583_v0 }
 0x150   : > { %13865 = vmatmul.mubr.msk.f32.gmra.mrb[32].mxu0 %vm398_vm0, %v15482_v49  ;;  %v16307_v49 = vpop.f32.mrb[6].mxu1 }
 0x151   : > { %13867 = vmatprep.mubr.msk.f32.mxu0 %vm398_vm0, %v15485_v50  ;;  %v16311_v50 = vpop.f32.mrb[7].mxu1 }
 0x152   : > { %13567 = vmatmul.mubr.msk.f32.gmra.mrb[60].mxu1 %vm398_vm0, %v15594_v1 }
 0x153   : > { %13569 = vmatprep.mubr.msk.f32.mxu1 %vm398_vm0, %v20702_v16 }
 0x154   : > { %13868 = vmatmul.mubr.msk.f32.gmra.mrb[34].mxu0 %vm398_vm0, %v15496_v51  ;;  %v20729_v51 = vld [vmem:[#allocation33_spill] sm:$0xff] }
 0x155   : > { %13870 = vmatprep.mubr.msk.f32.mxu0 %vm398_vm0, %v15499_v52  ;;  %v20730_v52 = vld [vmem:[#allocation34_spill] sm:$0xff] }
 0x156   : > { %13570 = vmatmul.mubr.msk.f32.gmra.mrb[62].mxu1 %vm398_vm0, %v20703_v17 }
 0x157   : > { %13572 = vmatprep.mubr.msk.f32.mxu1 %vm398_vm0, %v20704_v18 }
 0x158   : > { %13871 = vmatmul.mubr.msk.f32.gmra.mrb[36].mxu0 %vm398_vm0, %v15510_v53  ;;  %v16319_v53 = vpop.f32.mrb[8].mxu1 }
 0x159   : > { %13873 = vmatprep.mubr.msk.f32.mxu0 %vm398_vm0, %v15513_v54  ;;  %v16323_v54 = vpop.f32.mrb[9].mxu1 }
 0x15a   : > { %13573 = vmatmul.mubr.msk.f32.gmra.mrb[64].mxu1 %vm398_vm0, %v20705_v19 }
 0x15b   : > { %13575 = vmatprep.mubr.msk.f32.mxu1 %vm398_vm0, %v20706_v20 }
 0x15c   : > { %13874 = vmatmul.mubr.msk.f32.gmra.mrb[38].mxu0 %vm398_vm0, %v15524_v55  ;;  %v20731_v55 = vld [vmem:[#allocation35_spill] sm:$0xff] }
 0x15d   : > { %13876 = vmatprep.mubr.msk.f32.mxu0 %vm398_vm0, %v15527_v56  ;;  %v20732_v56 = vld [vmem:[#allocation36_spill] sm:$0xff] }
 0x15e   : > { %13576 = vmatmul.mubr.msk.f32.gmra.mrb[66].mxu1 %vm398_vm0, %v20707_v21 }
 0x15f   : > { %13578 = vmatprep.mubr.msk.f32.mxu1 %vm398_vm0, %v20708_v22 }
 0x160   : > { %13877 = vmatmul.mubr.msk.f32.gmra.mrb[40].mxu0 %vm398_vm0, %v15538_v57  ;;  %v16331_v57 = vpop.f32.mrb[10].mxu1 }
 0x161   : > { %13879 = vmatprep.mubr.msk.f32.mxu0 %vm398_vm0, %v15541_v58  ;;  %v16335_v58 = vpop.f32.mrb[11].mxu1 }
 0x162   : > { %13579 = vmatmul.mubr.msk.f32.gmra.mrb[68].mxu1 %vm398_vm0, %v20709_v23 }
 0x163   : > { %13581 = vmatprep.mubr.msk.f32.mxu1 %vm398_vm0, %v20710_v24 }
 0x164   : > { %13880 = vmatmul.mubr.msk.f32.gmra.mrb[42].mxu0 %vm398_vm0, %v15552_v59  ;;  %v20733_v59 = vld [vmem:[#allocation37_spill] sm:$0xff] }
 0x165   : > { %13882 = vmatprep.mubr.msk.f32.mxu0 %vm398_vm0, %v15555_v60  ;;  %v20734_v60 = vld [vmem:[#allocation38_spill] sm:$0xff] }
 0x166   : > { %13582 = vmatmul.mubr.msk.f32.gmra.mrb[70].mxu1 %vm398_vm0, %v20711_v25 }
 0x167   : > { %13584 = vmatprep.mubr.msk.f32.mxu1 %vm398_vm0, %v20712_v26 }
 0x168   : > { %13883 = vmatmul.mubr.msk.f32.gmra.mrb[44].mxu0 %vm398_vm0, %v15566_v61  ;;  %v16343_v61 = vpop.f32.mrb[12].mxu1 }
 0x169   : > { %13885 = vmatprep.mubr.msk.f32.mxu0 %vm398_vm0, %v15569_v62  ;;  %v16347_v62 = vpop.f32.mrb[13].mxu1 }
 0x16a   : > { %13585 = vmatmul.mubr.msk.f32.gmra.mrb[72].mxu1 %vm398_vm0, %v20713_v27 }
 0x16b   : > { %13587 = vmatprep.mubr.msk.f32.mxu1 %vm398_vm0, %v20714_v28 }
 0x16c   : > { %13886 = vmatmul.mubr.msk.f32.gmra.mrb[46].mxu0 %vm398_vm0, %v15580_v63  ;;  %v20735_v63 = vld [vmem:[#allocation39_spill] sm:$0xff] }
 0x16d   : > { %13888 = vmatprep.mubr.msk.f32.mxu0 %vm398_vm0, %v15583_v0  ;;  %v20736_v0 = vld [vmem:[#allocation40_spill] sm:$0xff] }
 0x16e   : > { %13588 = vmatmul.mubr.msk.f32.gmra.mrb[74].mxu1 %vm398_vm0, %v20715_v29 }
 0x16f   : > { %13590 = vmatprep.mubr.msk.f32.mxu1 %vm398_vm0, %v20716_v30 }
 0x170   : > { %13889 = vmatmul.mubr.msk.f32.gmra.mrb[48].mxu0 %vm398_vm0, %v15594_v1  ;;  %v20737_v1 = vld [vmem:[#allocation41_spill] sm:$0xff] }
 0x171   : > { %13891 = vmatprep.mubr.msk.f32.mxu0 %vm398_vm0, %v20702_v16  ;;  %v20739_v16 = vld [vmem:[#allocation43_spill] sm:$0xff] }
 0x172   : > { %13591 = vmatmul.mubr.msk.f32.gmra.mrb[76].mxu1 %vm398_vm0, %v20717_v31 }
 0x173   : > { %13593 = vmatprep.mubr.msk.f32.mxu1 %vm398_vm0, %v20718_v32 }
 0x174   : > { %13892 = vmatmul.mubr.msk.f32.gmra.mrb[50].mxu0 %vm398_vm0, %v20703_v17  ;;  %v20740_v17 = vld [vmem:[#allocation44_spill] sm:$0xff] }
 0x175   : > { %13894 = vmatprep.mubr.msk.f32.mxu0 %vm398_vm0, %v20704_v18  ;;  %v20741_v18 = vld [vmem:[#allocation45_spill] sm:$0xff] }
 0x176   : > { %13594 = vmatmul.mubr.msk.f32.gmra.mrb[78].mxu1 %vm398_vm0, %v20719_v33 }
 0x177   : > { %13596 = vmatprep.mubr.msk.f32.mxu1 %vm398_vm0, %v20720_v34 }
 0x178   : > { %13895 = vmatmul.mubr.msk.f32.gmra.mrb[52].mxu0 %vm398_vm0, %v20705_v19  ;;  %v20742_v19 = vld [vmem:[#allocation46_spill] sm:$0xff] }
 0x179   : > { %13897 = vmatprep.mubr.msk.f32.mxu0 %vm398_vm0, %v20706_v20  ;;  %v20743_v20 = vld [vmem:[#allocation47_spill] sm:$0xff] }
 0x17a   : > { %13597 = vmatmul.mubr.msk.f32.gmra.mrb[80].mxu1 %vm398_vm0, %v20721_v35 }
 0x17b   : > { %13599 = vmatprep.mubr.msk.f32.mxu1 %vm398_vm0, %v20722_v36 }
 0x17c   : > { %13898 = vmatmul.mubr.msk.f32.gmra.mrb[54].mxu0 %vm398_vm0, %v20707_v21 }
 0x17d   : > { %13900 = vmatprep.mubr.msk.f32.mxu0 %vm398_vm0, %v20708_v22 }
 0x17e   : > { %13600 = vmatmul.mubr.msk.f32.gmra.mrb[82].mxu1 %vm398_vm0, %v20723_v39 }
 0x17f   : > { %13602 = vmatprep.mubr.msk.f32.mxu1 %vm398_vm0, %v20724_v40 }
 0x180   : > { %13901 = vmatmul.mubr.msk.f32.gmra.mrb[56].mxu0 %vm398_vm0, %v20709_v23 }
 0x181   : > { %13903 = vmatprep.mubr.msk.f32.mxu0 %vm398_vm0, %v20710_v24  ;;  %v20745_v24 = vld [vmem:[#allocation49_spill] sm:$0xff] }
 0x182   : > { %13603 = vmatmul.mubr.msk.f32.gmra.mrb[84].mxu1 %vm398_vm0, %v20725_v43 }
 0x183   : > { %13605 = vmatprep.mubr.msk.f32.mxu1 %vm398_vm0, %v20726_v44 }
 0x184   : > { %13904 = vmatmul.mubr.msk.f32.gmra.mrb[58].mxu0 %vm398_vm0, %v20711_v25 }
 0x185   : > { %13906 = vmatprep.mubr.msk.f32.mxu0 %vm398_vm0, %v20712_v26 }
 0x186   : > { %13606 = vmatmul.mubr.msk.f32.gmra.mrb[86].mxu1 %vm398_vm0, %v20727_v47 }
 0x187   : > { %13608 = vmatprep.mubr.msk.f32.mxu1 %vm398_vm0, %v20728_v48 }
 0x188   : > { %13907 = vmatmul.mubr.msk.f32.gmra.mrb[60].mxu0 %vm398_vm0, %v20713_v27 }
 0x189   : > { %13909 = vmatprep.mubr.msk.f32.mxu0 %vm398_vm0, %v20714_v28  ;;  %v16486_v28 = vld [vmem:[%s15221_s12 + $0x3c0] sm:$0xff] }
 0x18a   : > { %13609 = vmatmul.mubr.msk.f32.gmra.mrb[88].mxu1 %vm398_vm0, %v20729_v51 }
 0x18b   : > { %13611 = vmatprep.mubr.msk.f32.mxu1 %vm398_vm0, %v20730_v52 }
 0x18c   : > { %13910 = vmatmul.mubr.msk.f32.gmra.mrb[62].mxu0 %vm398_vm0, %v20715_v29 }
 0x18d   : > { %13912 = vmatprep.mubr.msk.f32.mxu0 %vm398_vm0, %v20716_v30  ;;  %v16500_v30 = vld [vmem:[%s15221_s12 + $0x3d0] sm:$0xff] }
 0x18e   : > { %13612 = vmatmul.mubr.msk.f32.gmra.mrb[90].mxu1 %vm398_vm0, %v20731_v55 }
 0x18f   : > { %13614 = vmatprep.mubr.msk.f32.mxu1 %vm398_vm0, %v20732_v56 }
 0x190   : > { %13913 = vmatmul.mubr.msk.f32.gmra.mrb[64].mxu0 %vm398_vm0, %v20717_v31 }
 0x191   : > { %13915 = vmatprep.mubr.msk.f32.mxu0 %vm398_vm0, %v20718_v32  ;;  %v4371_v32 = vld [vmem:[%s15221_s12 + $0x80] sm:$0xff] }
 0x192   : > { %13615 = vmatmul.mubr.msk.f32.gmra.mrb[92].mxu1 %vm398_vm0, %v20733_v59 }
 0x193   : > { %13617 = vmatprep.mubr.msk.f32.mxu1 %vm398_vm0, %v20734_v60 }
 0x194   : > { %13916 = vmatmul.mubr.msk.f32.gmra.mrb[66].mxu0 %vm398_vm0, %v20719_v33 }
 0x195   : > { %13918 = vmatprep.mubr.msk.f32.mxu0 %vm398_vm0, %v20720_v34  ;;  %v4372_v34 = vld [vmem:[%s15221_s12 + $0x88] sm:$0xff] }
 0x196   : > { %13618 = vmatmul.mubr.msk.f32.gmra.mrb[94].mxu1 %vm398_vm0, %v20735_v63 }
 0x197   : > { %13620 = vmatprep.mubr.msk.f32.mxu1 %vm398_vm0, %v20736_v0 }
 0x198   : > { %13919 = vmatmul.mubr.msk.f32.gmra.mrb[68].mxu0 %vm398_vm0, %v20721_v35 }
 0x199   : > { %13921 = vmatprep.mubr.msk.f32.mxu0 %vm398_vm0, %v20722_v36  ;;  %v4373_v36 = vld [vmem:[%s15221_s12 + $0x90] sm:$0xff] }
 0x19a   : > { %13621 = vmatmul.mubr.msk.f32.gmra.mrb[96].mxu1 %vm398_vm0, %v20737_v1 }
 0x19b   : > { %13623 = vmatprep.mubr.msk.f32.mxu1 %vm398_vm0, %v20738_v6 }
 0x19c   : > { %13922 = vmatmul.mubr.msk.f32.gmra.mrb[70].mxu0 %vm398_vm0, %v20723_v39 }
 0x19d   : > { %13924 = vmatprep.mubr.msk.f32.mxu0 %vm398_vm0, %v20724_v40  ;;  %v4374_v40 = vld [vmem:[%s15221_s12 + $0x98] sm:$0xff] }
 0x19e   : > { %13624 = vmatmul.mubr.msk.f32.gmra.mrb[98].mxu1 %vm398_vm0, %v20739_v16 }
 0x19f   : > { %13626 = vmatprep.mubr.msk.f32.mxu1 %vm398_vm0, %v20740_v17 }
 0x1a0   : > { %13925 = vmatmul.mubr.msk.f32.gmra.mrb[72].mxu0 %vm398_vm0, %v20725_v43 }
 0x1a1   : > { %13927 = vmatprep.mubr.msk.f32.mxu0 %vm398_vm0, %v20726_v44  ;;  %v4375_v44 = vld [vmem:[%s15221_s12 + $0xa0] sm:$0xff] }
 0x1a2   : > { %13627 = vmatmul.mubr.msk.f32.gmra.mrb[100].mxu1 %vm398_vm0, %v20741_v18 }
 0x1a3   : > { %13629 = vmatprep.mubr.msk.f32.mxu1 %vm398_vm0, %v15883_v7 }
 0x1a4   : > { %13928 = vmatmul.mubr.msk.f32.gmra.mrb[74].mxu0 %vm398_vm0, %v20727_v47 }
 0x1a5   : > { %13930 = vmatprep.mubr.msk.f32.mxu0 %vm398_vm0, %v20728_v48  ;;  %v4376_v48 = vld [vmem:[%s15221_s12 + $0xa8] sm:$0xff] }
 0x1a6   : > { %13630 = vmatmul.mubr.msk.f32.gmra.mrb[102].mxu1 %vm398_vm0, %v20742_v19 }
 0x1a7   : > { %13632 = vmatprep.mubr.msk.f32.mxu1 %vm398_vm0, %v15897_v9 }
 0x1a8   : > { %13931 = vmatmul.mubr.msk.f32.gmra.mrb[76].mxu0 %vm398_vm0, %v20729_v51 }
 0x1a9   : > { %13933 = vmatprep.mubr.msk.f32.mxu0 %vm398_vm0, %v20730_v52  ;;  %v4377_v52 = vld [vmem:[%s15221_s12 + $0xb0] sm:$0xff] }
 0x1aa   : > { %13633 = vmatmul.mubr.msk.f32.gmra.mrb[104].mxu1 %vm398_vm0, %v15908_v10 }
 0x1ab   : > { %13635 = vmatprep.mubr.msk.f32.mxu1 %vm398_vm0, %v15911_v11 }
 0x1ac   : > { %13934 = vmatmul.mubr.msk.f32.gmra.mrb[78].mxu0 %vm398_vm0, %v20731_v55 }
 0x1ad   : > { %13936 = vmatprep.mubr.msk.f32.mxu0 %vm398_vm0, %v20732_v56  ;;  %v4378_v56 = vld [vmem:[%s15221_s12 + $0xb8] sm:$0xff] }
 0x1ae   : > { %13636 = vmatmul.mubr.msk.f32.gmra.mrb[106].mxu1 %vm398_vm0, %v15922_v12 }
 0x1af   : > { %13638 = vmatprep.mubr.msk.f32.mxu1 %vm398_vm0, %v15925_v13 }
 0x1b0   : > { %13937 = vmatmul.mubr.msk.f32.gmra.mrb[80].mxu0 %vm398_vm0, %v20733_v59 }
 0x1b1   : > { %13939 = vmatprep.mubr.msk.f32.mxu0 %vm398_vm0, %v20734_v60  ;;  %v4379_v60 = vld [vmem:[%s15221_s12 + $0xc0] sm:$0xff] }
 0x1b2   : > { %13639 = vmatmul.mubr.msk.f32.gmra.mrb[108].mxu1 %vm398_vm0, %v15936_v14 }
 0x1b3   : > { %13641 = vmatprep.mubr.msk.f32.mxu1 %vm398_vm0, %v20743_v20 }
 0x1b4   : > { %13940 = vmatmul.mubr.msk.f32.gmra.mrb[82].mxu0 %vm398_vm0, %v20735_v63 }
 0x1b5   : > { %13942 = vmatprep.mubr.msk.f32.mxu0 %vm398_vm0, %v20736_v0  ;;  %v4380_v0 = vld [vmem:[%s15221_s12 + $0xc8] sm:$0xff] }
 0x1b6   : > { %13642 = vmatmul.mubr.msk.f32.gmra.mrb[110].mxu1 %vm398_vm0, %v15950_v3 }
 0x1b8   : > { %13943 = vmatmul.mubr.msk.f32.gmra.mrb[84].mxu0 %vm398_vm0, %v20737_v1 }
 0x1b9   : > { %13945 = vmatprep.mubr.msk.f32.mxu0 %vm398_vm0, %v20738_v6  ;;  %v4381_v6 = vld [vmem:[%s15221_s12 + $0xd0] sm:$0xff] }
 0x1bc   : > { %13946 = vmatmul.mubr.msk.f32.gmra.mrb[86].mxu0 %vm398_vm0, %v20739_v16 }
 0x1bd   : > { %13948 = vmatprep.mubr.msk.f32.mxu0 %vm398_vm0, %v20740_v17  ;;  %v4382_v17 = vld [vmem:[%s15221_s12 + $0xd8] sm:$0xff] }
 0x1c0   : > { %13949 = vmatmul.mubr.msk.f32.gmra.mrb[88].mxu0 %vm398_vm0, %v20741_v18 }
 0x1c1   : > { %13951 = vmatprep.mubr.msk.f32.mxu0 %vm398_vm0, %v15883_v7 }
 0x1c4   : > { %13952 = vmatmul.mubr.msk.f32.gmra.mrb[90].mxu0 %vm398_vm0, %v20742_v19  ;;  %v4383_v19 = vld [vmem:[%s15221_s12 + $0xe0] sm:$0xff] }
 0x1c5   : > { %13954 = vmatprep.mubr.msk.f32.mxu0 %vm398_vm0, %v15897_v9 }
 0x1c8   : > { %13955 = vmatmul.mubr.msk.f32.gmra.mrb[92].mxu0 %vm398_vm0, %v15908_v10 }
 0x1c9   : > { %13957 = vmatprep.mubr.msk.f32.mxu0 %vm398_vm0, %v15911_v11  ;;  %v16435_v21 = vpop.f32.mrb[14].mxu1  ;;  %v20744_v11 = vld [vmem:[#allocation48_spill] sm:$0xff] }
 0x1ca   : > { %v16437_v22 = vpop.f32.mrb[15].mxu1 }
 0x1cc   : > { %13958 = vmatmul.mubr.msk.f32.gmra.mrb[94].mxu0 %vm398_vm0, %v15922_v12 }
 0x1cd   : > { %13960 = vmatprep.mubr.msk.f32.mxu0 %vm398_vm0, %v15925_v13  ;;  %v16443_v7 = vpop.f32.mrb[16].mxu1 }
 0x1ce   : > { %v16445_v23 = vpop.f32.mrb[17].mxu1 }
 0x1d0   : > { %13961 = vmatmul.mubr.msk.f32.gmra.mrb[96].mxu0 %vm398_vm0, %v15936_v14 }
 0x1d1   : > { %13963 = vmatprep.mubr.msk.f32.mxu0 %vm398_vm0, %v20743_v20  ;;  %v16451_v9 = vpop.f32.mrb[18].mxu1 }
 0x1d2   : > { %v16453_v10 = vpop.f32.mrb[19].mxu1 }
 0x1d4   : > { %13964 = vmatmul.mubr.msk.f32.gmra.mrb[98].mxu0 %vm398_vm0, %v15950_v3  ;;  %v20746_v3 = vld [vmem:[#allocation50_spill] sm:$0xff] }
 0x1d5   : > { %13966 = vmatprep.mubr.msk.f32.mxu0 %vm398_vm0, %v20744_v11  ;;  %v16459_v12 = vpop.f32.mrb[20].mxu1  ;;  %v4384_v11 = vld [vmem:[%s15221_s12 + $0xe8] sm:$0xff] }
 0x1d6   : > { %v16461_v13 = vpop.f32.mrb[21].mxu1 }
 0x1d8   : > { %13967 = vmatmul.mubr.msk.f32.gmra.mrb[100].mxu0 %vm398_vm0, %v20745_v24 }
 0x1d9   : > { %13969 = vmatprep.mubr.msk.f32.mxu0 %vm398_vm0, %v15967_v2  ;;  %v16467_v14 = vpop.f32.mrb[22].mxu1 }
 0x1da   : > { %v16469_v25 = vpop.f32.mrb[23].mxu1 }
 0x1dc   : > { %13970 = vmatmul.mubr.msk.f32.gmra.mrb[102].mxu0 %vm398_vm0, %v20746_v3  ;;  %v4385_v3 = vld [vmem:[%s15221_s12 + $0xf0] sm:$0xff] }
 0x1dd   : > { %13972 = vmatprep.mubr.msk.f32.mxu0 %vm398_vm0, %v16013_v15  ;;  %v16475_v26 = vpop.f32.mrb[24].mxu1  ;;  %v16495_v15 = vld [vmem:[%s15221_s12 + $0x3c8] sm:$0xff] }
 0x1de   : > { %v16477_v27 = vpop.f32.mrb[25].mxu1 }
 0x1e0   : > { %13973 = vmatmul.mubr.msk.f32.gmra.mrb[104].mxu0 %vm398_vm0, %v16024_v4 }
 0x1e1   : > { %13975 = vmatprep.mubr.msk.f32.mxu0 %vm398_vm0, %v16027_v5  ;;  %v16483_v2 = vpop.f32.mrb[26].mxu1 }
 0x1e2   : > { %v16488_v29 = vpop.f32.mrb[27].mxu1 }
 0x1e4   : > { %13976 = vmatmul.mubr.msk.f32.gmra.mrb[106].mxu0 %vm398_vm0, %v16038_v8  ;;  %v16509_v8 = vld [vmem:[%s15221_s12 + $0x3d8] sm:$0xff] }
 0x1e5   : > { %13978 = vmatprep.mubr.msk.f32.mxu0 %vm398_vm0, %v16486_v28  ;;  %v16497_v4 = vpop.f32.mrb[28].mxu1 }
 0x1e6   : > { %v16502_v5 = vpop.f32.mrb[29].mxu1 }
 0x1e8   : > { %13979 = vmatmul.mubr.msk.f32.gmra.mrb[108].mxu0 %vm398_vm0, %v16495_v15 }
 0x1e9   : > { %13981 = vmatprep.mubr.msk.f32.mxu0 %vm398_vm0, %v16500_v30  ;;  %v16511_v31 = vpop.f32.mrb[30].mxu1 }
 0x1ea   : > { %v16514_v33 = vpop.f32.mrb[31].mxu1 }
 0x1ec   : > { %13982 = vmatmul.mubr.msk.f32.gmra.mrb[110].mxu0 %vm398_vm0, %v16509_v8 }
 0x1ed   : > { %13986 = vmatprep.mubr.msk.f32.mxu0 %vm398_vm0, %v4371_v32  ;;  %v16520_v35 = vpop.f32.mrb[32].mxu1 }
 0x1ee   : > { %v16523_v39 = vpop.f32.mrb[33].mxu1 }
 0x1f0   : > { %13987 = vmatmul.mubr.msk.f32.vlgmr.msra.gmra.mrb[0].mxu0 %vm398_vm0, %v4372_v34  ;;  %v4386_v34 = vld [vmem:[%s15221_s12 + $0xf8] sm:$0xff] }
 0x1f1   : > { %13989 = vmatprep.mubr.msk.f32.mxu0 %vm398_vm0, %v4373_v36  ;;  %v16528_v43 = vpop.f32.mrb[34].mxu1 }
 0x1f2   : > { %v16531_v47 = vpop.f32.mrb[35].mxu1 }
 0x1f4   : > { %13990 = vmatmul.mubr.msk.f32.gmra.mrb[2].mxu0 %vm398_vm0, %v4374_v40  ;;  %v4387_v40 = vld [vmem:[%s15221_s12 + $0x100] sm:$0xff] }
 0x1f5   : > { %13992 = vmatprep.mubr.msk.f32.mxu0 %vm398_vm0, %v4375_v44  ;;  %v16536_v51 = vpop.f32.mrb[36].mxu1 }
 0x1f6   : > { %v16539_v55 = vpop.f32.mrb[37].mxu1 }
 0x1f8   : > { %13993 = vmatmul.mubr.msk.f32.gmra.mrb[4].mxu0 %vm398_vm0, %v4376_v48  ;;  %v4388_v48 = vld [vmem:[%s15221_s12 + $0x108] sm:$0xff] }
 0x1f9   : > { %13995 = vmatprep.mubr.msk.f32.mxu0 %vm398_vm0, %v4377_v52  ;;  %v16544_v59 = vpop.f32.mrb[38].mxu1 }
 0x1fa   : > { %v16547_v63 = vpop.f32.mrb[39].mxu1 }
 0x1fc   : > { %13996 = vmatmul.mubr.msk.f32.gmra.mrb[6].mxu0 %vm398_vm0, %v4378_v56  ;;  %v4389_v56 = vld [vmem:[%s15221_s12 + $0x110] sm:$0xff] }
 0x1fd   : > { %13998 = vmatprep.mubr.msk.f32.mxu0 %vm398_vm0, %v4379_v60  ;;  %v16552_v1 = vpop.f32.mrb[40].mxu1 }
 0x1fe   : > { %v16555_v16 = vpop.f32.mrb[41].mxu1 }
 0x200   : > { %13999 = vmatmul.mubr.msk.f32.gmra.mrb[8].mxu0 %vm398_vm0, %v4380_v0  ;;  %v4390_v0 = vld [vmem:[%s15221_s12 + $0x118] sm:$0xff] }
 0x201   : > { %14001 = vmatprep.mubr.msk.f32.mxu0 %vm398_vm0, %v4381_v6  ;;  %v16560_v18 = vpop.f32.mrb[42].mxu1 }
 0x202   : > { %v16563_v20 = vpop.f32.mrb[43].mxu1 }
 0x204   : > { %14002 = vmatmul.mubr.msk.f32.gmra.mrb[10].mxu0 %vm398_vm0, %v4382_v17  ;;  %v4391_v17 = vld [vmem:[%s15221_s12 + $0x120] sm:$0xff] }
 0x205   : > { %14004 = vmatprep.mubr.msk.f32.mxu0 %vm398_vm0, %v4383_v19  ;;  %v16568_v24 = vpop.f32.mrb[44].mxu1 }
 0x206   : > { %v16571_v32 = vpop.f32.mrb[45].mxu1 }
 0x208   : > { %14005 = vmatmul.mubr.msk.f32.gmra.mrb[12].mxu0 %vm398_vm0, %v4384_v11  ;;  %v15153_v11 = vmov 0.0  }
 0x209   : > { %14007 = vmatprep.mubr.msk.f32.mxu0 %vm398_vm0, %v4385_v3  ;;  %v16576_v36 = vpop.f32.mrb[46].mxu1  ;;  %5674 = vst.msk [vmem:[#allocation3 + $0x10] sm:$0xff] %vm5558_vm1, %v15153_v11  ;;  %5675 = vst.msk [vmem:[#allocation3 + $0x18] sm:$0xff] %vm5558_vm1, %v15153_v11  ;;  %v4392_v3 = vld [vmem:[%s15221_s12 + $0x128] sm:$0xff] }
 0x20a   : > { %v16579_v44 = vpop.f32.mrb[47].mxu1  ;;  %5672 = vst.msk [vmem:[#allocation3] sm:$0xff] %vm5558_vm1, %v15153_v11  ;;  %5673 = vst.msk [vmem:[#allocation3 + $0x8] sm:$0xff] %vm5558_vm1, %v15153_v11 }
 0x20b   : > { %20747 = vst [vmem:[#allocation6_spill] sm:$0xff] %v16579_v44  ;;  %5676 = vst.msk [vmem:[#allocation3 + $0x20] sm:$0xff] %vm5558_vm1, %v15153_v11 }
 0x20c   : > { %14008 = vmatmul.mubr.msk.f32.gmra.mrb[14].mxu0 %vm398_vm0, %v4386_v34  ;;  %5677 = vst.msk [vmem:[#allocation3 + $0x28] sm:$0xff] %vm5558_vm1, %v15153_v11  ;;  %5678 = vst.msk [vmem:[#allocation3 + $0x30] sm:$0xff] %vm5558_vm1, %v15153_v11 }
 0x20d   : > { %14010 = vmatprep.mubr.msk.f32.mxu0 %vm398_vm0, %v4387_v40  ;;  %v16584_v52 = vpop.f32.mrb[48].mxu1  ;;  %5679 = vst.msk [vmem:[#allocation3 + $0x38] sm:$0xff] %vm5558_vm1, %v15153_v11  ;;  %5680 = vst.msk [vmem:[#allocation3 + $0x40] sm:$0xff] %vm5558_vm1, %v15153_v11  ;;  %v4393_v40 = vld [vmem:[%s15221_s12 + $0x130] sm:$0xff] }
 0x20e   : > { %20748 = vst [vmem:[#allocation7_spill] sm:$0xff] %v16584_v52  ;;  %v16587_v60 = vpop.f32.mrb[49].mxu1  ;;  %5681 = vst.msk [vmem:[#allocation3 + $0x48] sm:$0xff] %vm5558_vm1, %v15153_v11 }
 0x20f   : > { %20749 = vst [vmem:[#allocation8_spill] sm:$0xff] %v16587_v60  ;;  %5682 = vst.msk [vmem:[#allocation3 + $0x50] sm:$0xff] %vm5558_vm1, %v15153_v11 }
 0x210   : > { %14011 = vmatmul.mubr.msk.f32.gmra.mrb[16].mxu0 %vm398_vm0, %v4388_v48  ;;  %5683 = vst.msk [vmem:[#allocation3 + $0x58] sm:$0xff] %vm5558_vm1, %v15153_v11  ;;  %5684 = vst.msk [vmem:[#allocation3 + $0x60] sm:$0xff] %vm5558_vm1, %v15153_v11 }
 0x211   : > { %14013 = vmatprep.mubr.msk.f32.mxu0 %vm398_vm0, %v4389_v56  ;;  %v16592_v6 = vpop.f32.mrb[50].mxu1  ;;  %5685 = vst.msk [vmem:[#allocation3 + $0x68] sm:$0xff] %vm5558_vm1, %v15153_v11  ;;  %5686 = vst.msk [vmem:[#allocation3 + $0x70] sm:$0xff] %vm5558_vm1, %v15153_v11  ;;  %v4394_v56 = vld [vmem:[%s15221_s12 + $0x138] sm:$0xff]  ;;  %v5997_v60 = vld [vmem:[#allocation3] sm:$0xff] }
 0x212   : > { %20750 = vst [vmem:[#allocation9_spill] sm:$0xff] %v16592_v6  ;;  %v16595_v19 = vpop.f32.mrb[51].mxu1  ;;  %5687 = vst.msk [vmem:[#allocation3 + $0x78] sm:$0xff] %vm5558_vm1, %v15153_v11  ;;  %v5998_v52 = vld [vmem:[#allocation3 + $0x8] sm:$0xff] }
 0x213   : > { %20751 = vst [vmem:[#allocation10_spill] sm:$0xff] %v16595_v19  ;;  %5688 = vst.msk [vmem:[#allocation3 + $0x80] sm:$0xff] %vm5558_vm1, %v15153_v11 }
 0x214   : > { %5689 = vst.msk [vmem:[#allocation3 + $0x88] sm:$0xff] %vm5558_vm1, %v15153_v11  ;;  %5690 = vst.msk [vmem:[#allocation3 + $0x90] sm:$0xff] %vm5558_vm1, %v15153_v11  ;;  %14014 = vmatmul.mubr.msk.f32.gmra.mrb[18].mxu0 %vm398_vm0, %v4390_v0  ;;  %v6076_v0 = vld [vmem:[#allocation3 + $0x11] sm:$0xff] }
 0x215   : > { %5691 = vst.msk [vmem:[#allocation3 + $0x98] sm:$0xff] %vm5558_vm1, %v15153_v11  ;;  %5692 = vst.msk [vmem:[#allocation3 + $0xa0] sm:$0xff] %vm5558_vm1, %v15153_v11  ;;  %14016 = vmatprep.mubr.msk.f32.mxu0 %vm398_vm0, %v4391_v17  ;;  %v16638_v34 = vpop.f32.mrb[52].mxu1  ;;  %6154 = vrot.lane.b32.xlu1 %v6076_v0, %s15154_s17  ;;  %v6077_v17 = vld [vmem:[#allocation3 + $0x19] sm:$0xff]  ;;  %v6074_v0 = vld [vmem:[#allocation3 + $0x1] sm:$0xff] }
 0x216   : > { %5693 = vst.msk [vmem:[#allocation3 + $0xa8] sm:$0xff] %vm5558_vm1, %v15153_v11  ;;  %5694 = vst.msk [vmem:[#allocation3 + $0xb0] sm:$0xff] %vm5558_vm1, %v15153_v11  ;;  %v16641_v48 = vpop.f32.mrb[53].mxu1  ;;  %6150 = vrot.lane.b32.xlu0 %v6074_v0, %s15154_s17 }
 0x217   : > { %5695 = vst.msk [vmem:[#allocation3 + $0xb8] sm:$0xff] %vm5558_vm1, %v15153_v11  ;;  %5696 = vst.msk [vmem:[#allocation3 + $0xc0] sm:$0xff] %vm5558_vm1, %v15153_v11 }
 0x218   : > { %5697 = vst.msk [vmem:[#allocation3 + $0xc8] sm:$0xff] %vm5558_vm1, %v15153_v11  ;;  %5698 = vst.msk [vmem:[#allocation3 + $0xd0] sm:$0xff] %vm5558_vm1, %v15153_v11  ;;  %14017 = vmatmul.mubr.msk.f32.gmra.mrb[20].mxu0 %vm398_vm0, %v4392_v3  ;;  %v4396_v3 = vld [vmem:[%s15221_s12 + $0x148] sm:$0xff] }
 0x219   : > { %5699 = vst.msk [vmem:[#allocation3 + $0xd8] sm:$0xff] %vm5558_vm1, %v15153_v11  ;;  %5700 = vst.msk [vmem:[#allocation3 + $0xe0] sm:$0xff] %vm5558_vm1, %v15153_v11  ;;  %14019 = vmatprep.mubr.msk.f32.mxu0 %vm398_vm0, %v4393_v40  ;;  %v16646_v19 = vpop.f32.mrb[54].mxu1  ;;  %v4397_v40 = vld [vmem:[%s15221_s12 + $0x150] sm:$0xff]  ;;  %6156 = vrot.lane.b32.xlu1 %v6077_v17, %s15154_s17 }
 0x21a   : > { %5701 = vst.msk [vmem:[#allocation3 + $0xe8] sm:$0xff] %vm5558_vm1, %v15153_v11  ;;  %5702 = vst.msk [vmem:[#allocation3 + $0xf0] sm:$0xff] %vm5558_vm1, %v15153_v11  ;;  %v16649_v6 = vpop.f32.mrb[55].mxu1 }
 0x21b   : > { %5703 = vst.msk [vmem:[#allocation3 + $0xf8] sm:$0xff] %vm5558_vm1, %v15153_v11  ;;  %5704 = vst.msk [vmem:[#allocation3 + $0x100] sm:$0xff] %vm5558_vm1, %v15153_v11 }
 0x21c   : > { %5705 = vst.msk [vmem:[#allocation3 + $0x108] sm:$0xff] %vm5558_vm1, %v15153_v11  ;;  %5706 = vst.msk [vmem:[#allocation3 + $0x110] sm:$0xff] %vm5558_vm1, %v15153_v11  ;;  %14020 = vmatmul.mubr.msk.f32.gmra.mrb[22].mxu0 %vm398_vm0, %v4394_v56  ;;  %v4398_v56 = vld [vmem:[%s15221_s12 + $0x158] sm:$0xff] }
 0x21d   : > { %5707 = vst.msk [vmem:[#allocation3 + $0x118] sm:$0xff] %vm5558_vm1, %v15153_v11  ;;  %5708 = vst.msk [vmem:[#allocation3 + $0x120] sm:$0xff] %vm5558_vm1, %v15153_v11 }
 0x21e   : > { %5709 = vst.msk [vmem:[#allocation3 + $0x128] sm:$0xff] %vm5558_vm1, %v15153_v11  ;;  %20752 = vst [vmem:[#allocation11_spill] sm:$0xff] %v16638_v34  ;;  %v4395_v11 = vld [vmem:[%s15221_s12 + $0x140] sm:$0xff] }
 0x21f   : > { %20753 = vst [vmem:[#allocation12_spill] sm:$0xff] %v16641_v48  ;;  %20754 = vst [vmem:[#allocation13_spill] sm:$0xff] %v16646_v19  ;;  %14022 = vmatprep.mubr.msk.f32.mxu0 %vm398_vm0, %v4395_v11  ;;  %v16655_v48 = vpop.f32.mrb[56].mxu1  ;;  %v4399_v11 = vld [vmem:[%s15221_s12 + $0x160] sm:$0xff] }
 0x220   : > { %20755 = vst [vmem:[#allocation14_spill] sm:$0xff] %v16649_v6  ;;  %20756 = vst [vmem:[#allocation15_spill] sm:$0xff] %v16655_v48  ;;  %v16658_v34 = vpop.f32.mrb[57].mxu1  ;;  %14023 = vmatmul.mubr.msk.f32.gmra.mrb[24].mxu0 %vm398_vm0, %v4396_v3  ;;  %v6075_v3 = vld [vmem:[#allocation3 + $0x9] sm:$0xff] }
 0x221   : > { %20757 = vst [vmem:[#allocation16_spill] sm:$0xff] %v16658_v34  ;;  %14025 = vmatprep.mubr.msk.f32.mxu0 %vm398_vm0, %v4397_v40  ;;  %v16664_v19 = vpop.f32.mrb[58].mxu1  ;;  %v4400_v34 = vld [vmem:[%s15221_s12 + $0x168] sm:$0xff]  ;;  %6152 = vrot.lane.b32.xlu0 %v6075_v3, %s15154_s17  ;;  %6035 = vst.msk [vmem:[#allocation4] sm:$0xff] %vm5558_vm1, %v5997_v60 }
 0x222   : > { %20758 = vst [vmem:[#allocation17_spill] sm:$0xff] %v16664_v19  ;;  %v16668_v48 = vpop.f32.mrb[59].mxu1  ;;  %v4401_v19 = vld [vmem:[%s15221_s12 + $0x170] sm:$0xff]  ;;  %6036 = vst.msk [vmem:[#allocation4 + $0x8] sm:$0xff] %vm5558_vm1, %v5998_v52 }
 0x223   : > { %v6107_v6 = vld [vmem:[#allocation3 + $0x109] sm:$0xff]  ;;  %20759 = vst [vmem:[#allocation18_spill] sm:$0xff] %v16668_v48  ;;  %v4402_v48 = vld [vmem:[%s15221_s12 + $0x178] sm:$0xff] }
 0x224   : > { %6216 = vrot.lane.b32.xlu1 %v6107_v6, %s15154_s17  ;;  %14026 = vmatmul.mubr.msk.f32.gmra.mrb[26].mxu0 %vm398_vm0, %v4398_v56  ;;  %v6109_v17 = vld [vmem:[#allocation3 + $0x119] sm:$0xff]  ;;  %v6106_v56 = vld [vmem:[#allocation3 + $0x101] sm:$0xff] }
 0x225   : > { %14028 = vmatprep.mubr.msk.f32.mxu0 %vm398_vm0, %v4399_v11  ;;  %v16674_v40 = vpop.f32.mrb[60].mxu1  ;;  %v6111_v6 = vld [vmem:[#allocation3 + $0x129] sm:$0xf]  ;;  %6214 = vrot.lane.b32.xlu0 %v6106_v56, %s15154_s17 }
 0x226   : > { %20760 = vst [vmem:[#allocation19_spill] sm:$0xff] %v16674_v40  ;;  %v16678_v0 = vpop.f32.mrb[61].mxu1  ;;  %v4403_v40 = vld [vmem:[%s15221_s12 + $0x180] sm:$0xff]  ;;  %v6030_v44 = vld [vmem:[#allocation3 + $0x108] sm:$0xff] }
 0x227   : > { %20761 = vst [vmem:[#allocation20_spill] sm:$0xff] %v16678_v0  ;;  %v4404_v0 = vld [vmem:[%s15221_s12 + $0x188] sm:$0xff]  ;;  %6068 = vst.msk [vmem:[#allocation4 + $0x108] sm:$0xff] %vm5558_vm1, %v6030_v44 }
 0x228   : > { %6220 = vrot.lane.b32.xlu1 %v6109_v17, %s15154_s17  ;;  %14029 = vmatmul.mubr.msk.f32.gmra.mrb[28].mxu0 %vm398_vm0, %v4400_v34  ;;  %v6305_v17 = vld [vmem:[#allocation3 + $0xa] sm:$0xff] }
 0x229   : > { %14031 = vmatprep.mubr.msk.f32.mxu0 %vm398_vm0, %v4401_v19  ;;  %v16684_v11 = vpop.f32.mrb[62].mxu1  ;;  %v6108_v34 = vld [vmem:[#allocation3 + $0x111] sm:$0xff] }
 0x22a   : > { %20762 = vst [vmem:[#allocation21_spill] sm:$0xff] %v16684_v11  ;;  %v16688_v3 = vpop.f32.mrb[63].mxu1  ;;  %6218 = vrot.lane.b32.xlu0 %v6108_v34, %s15154_s17  ;;  %v4405_v11 = vld [vmem:[%s15221_s12 + $0x190] sm:$0xff]  ;;  %v4407_v34 = vld [vmem:[%s15221_s12 + $0x1a0] sm:$0xff] }
 0x22b   : > { %20763 = vst [vmem:[#allocation22_spill] sm:$0xff] %v16688_v3 }
 0x22c   : > { %6224 = vrot.lane.b32.xlu1 %v6111_v6, %s15154_s17  ;;  %14032 = vmatmul.mubr.msk.f32.gmra.mrb[30].mxu0 %vm398_vm0, %v4402_v48  ;;  %v6307_v48 = vld [vmem:[#allocation3 + $0x1a] sm:$0xff] }
 0x22d   : > { %14034 = vmatprep.mubr.msk.f32.mxu0 %vm398_vm0, %v4403_v40  ;;  %v16694_v19 = vpop.f32.mrb[64].mxu1  ;;  %v6110_v6 = vld [vmem:[#allocation3 + $0x121] sm:$0xff]  ;;  %v4406_v40 = vld [vmem:[%s15221_s12 + $0x198] sm:$0xff] }
 0x22e   : > { %20764 = vst [vmem:[#allocation23_spill] sm:$0xff] %v16694_v19  ;;  %v16698_v56 = vpop.f32.mrb[65].mxu1  ;;  %6222 = vrot.lane.b32.xlu0 %v6110_v6, %s15154_s17 }
 0x22f   : > { %20765 = vst [vmem:[#allocation24_spill] sm:$0xff] %v16698_v56  ;;  %v4408_v56 = vld [vmem:[%s15221_s12 + $0x1a8] sm:$0xff] }
 0x230   : > { %6382 = vrot.lane.b32.xlu1 %v6305_v17, %s15155_s18  ;;  %14035 = vmatmul.mubr.msk.f32.gmra.mrb[32].mxu0 %vm398_vm0, %v4404_v0  ;;  %v6536_v17 = vld [vmem:[#allocation3 + $0x13] sm:$0xff]  ;;  %v6304_v0 = vld [vmem:[#allocation3 + $0x2] sm:$0xff] }
 0x231   : > { %14037 = vmatprep.mubr.msk.f32.mxu0 %vm398_vm0, %v4405_v11  ;;  %v16704_v3 = vpop.f32.mrb[66].mxu1 }
 0x232   : > { %20766 = vst [vmem:[#allocation25_spill] sm:$0xff] %v16704_v3  ;;  %v16708_v19 = vpop.f32.mrb[67].mxu1  ;;  %6380 = vrot.lane.b32.xlu0 %v6304_v0, %s15155_s18  ;;  %v4409_v3 = vld [vmem:[%s15221_s12 + $0x1b0] sm:$0xff]  ;;  %v4411_v0 = vld [vmem:[%s15221_s12 + $0x1c0] sm:$0xff] }
 0x233   : > { %20767 = vst [vmem:[#allocation26_spill] sm:$0xff] %v16708_v19 }
 0x234   : > { %6386 = vrot.lane.b32.xlu1 %v6307_v48, %s15155_s18  ;;  %14038 = vmatmul.mubr.msk.f32.gmra.mrb[34].mxu0 %vm398_vm0, %v4406_v40  ;;  %v6766_v48 = vld [vmem:[#allocation3 + $0x14] sm:$0xff] }
 0x235   : > { %14040 = vmatprep.mubr.msk.f32.mxu0 %vm398_vm0, %v4407_v34  ;;  %v16714_v11 = vpop.f32.mrb[68].mxu1  ;;  %v6306_v40 = vld [vmem:[#allocation3 + $0x12] sm:$0xff] }
 0x236   : > { %20768 = vst [vmem:[#allocation27_spill] sm:$0xff] %v16714_v11  ;;  %v16718_v6 = vpop.f32.mrb[69].mxu1  ;;  %v4410_v34 = vld [vmem:[%s15221_s12 + $0x1b8] sm:$0xff]  ;;  %6384 = vrot.lane.b32.xlu0 %v6306_v40, %s15155_s18  ;;  %v4413_v40 = vld [vmem:[%s15221_s12 + $0x1d0] sm:$0xff] }
 0x237   : > { %20769 = vst [vmem:[#allocation28_spill] sm:$0xff] %v16718_v6 }
 0x238   : > { %6614 = vrot.lane.b32.xlu1 %v6536_v17, %s15156_s19  ;;  %14041 = vmatmul.mubr.msk.f32.gmra.mrb[36].mxu0 %vm398_vm0, %v4408_v56  ;;  %v6535_v56 = vld [vmem:[#allocation3 + $0xb] sm:$0xff]  ;;  %v6534_v17 = vld [vmem:[#allocation3 + $0x3] sm:$0xff] }
 0x239   : > { %14043 = vmatprep.mubr.msk.f32.mxu0 %vm398_vm0, %v4409_v3  ;;  %v16724_v19 = vpop.f32.mrb[70].mxu1  ;;  %v4412_v3 = vld [vmem:[%s15221_s12 + $0x1c8] sm:$0xff] }
 0x23a   : > { %20770 = vst [vmem:[#allocation29_spill] sm:$0xff] %v16724_v19  ;;  %v16728_v11 = vpop.f32.mrb[71].mxu1  ;;  %6610 = vrot.lane.b32.xlu0 %v6534_v17, %s15156_s19  ;;  %v4415_v17 = vld [vmem:[%s15221_s12 + $0x1e0] sm:$0xff] }
 0x23b   : > { %20771 = vst [vmem:[#allocation30_spill] sm:$0xff] %v16728_v11  ;;  %v4414_v11 = vld [vmem:[%s15221_s12 + $0x1d8] sm:$0xff] }
 0x23c   : > { %6844 = vrot.lane.b32.xlu1 %v6766_v48, %s15157_s20  ;;  %14044 = vmatmul.mubr.msk.f32.gmra.mrb[38].mxu0 %vm398_vm0, %v4410_v34  ;;  %v6765_v48 = vld [vmem:[#allocation3 + $0xc] sm:$0xff]  ;;  %v6764_v34 = vld [vmem:[#allocation3 + $0x4] sm:$0xff] }
 0x23d   : > { %14046 = vmatprep.mubr.msk.f32.mxu0 %vm398_vm0, %v4411_v0  ;;  %v16734_v6 = vpop.f32.mrb[72].mxu1 }
 0x23e   : > { %20772 = vst [vmem:[#allocation31_spill] sm:$0xff] %v16734_v6  ;;  %v16738_v19 = vpop.f32.mrb[73].mxu1  ;;  %6840 = vrot.lane.b32.xlu0 %v6764_v34, %s15157_s20  ;;  %v6336_v34 = vld [vmem:[#allocation3 + $0x102] sm:$0xff] }
 0x23f   : > { %20773 = vst [vmem:[#allocation32_spill] sm:$0xff] %v16738_v19 }
 0x240   : > { %6612 = vrot.lane.b32.xlu1 %v6535_v56, %s15156_s19  ;;  %14047 = vmatmul.mubr.msk.f32.gmra.mrb[40].mxu0 %vm398_vm0, %v4412_v3  ;;  %v4416_v56 = vld [vmem:[%s15221_s12 + $0x1e8] sm:$0xff] }
 0x241   : > { %14049 = vmatprep.mubr.msk.f32.mxu0 %vm398_vm0, %v4413_v40  ;;  %v16744_v0 = vpop.f32.mrb[74].mxu1  ;;  %v4417_v40 = vld [vmem:[%s15221_s12 + $0x1f0] sm:$0xff] }
 0x242   : > { %20774 = vst [vmem:[#allocation33_spill] sm:$0xff] %v16744_v0  ;;  %v16748_v6 = vpop.f32.mrb[75].mxu1  ;;  %v6337_v0 = vld [vmem:[#allocation3 + $0x10a] sm:$0xff]  ;;  %6444 = vrot.lane.b32.xlu0 %v6336_v34, %s15155_s18 }
 0x243   : > { %20775 = vst [vmem:[#allocation34_spill] sm:$0xff] %v16748_v6  ;;  %v6339_v6 = vld [vmem:[#allocation3 + $0x11a] sm:$0xff] }
 0x244   : > { %6842 = vrot.lane.b32.xlu1 %v6765_v48, %s15157_s20  ;;  %14050 = vmatmul.mubr.msk.f32.gmra.mrb[42].mxu0 %vm398_vm0, %v4414_v11  ;;  %v4418_v11 = vld [vmem:[%s15221_s12 + $0x1f8] sm:$0xff] }
 0x245   : > { %14052 = vmatprep.mubr.msk.f32.mxu0 %vm398_vm0, %v4415_v17  ;;  %v16754_v3 = vpop.f32.mrb[76].mxu1  ;;  %v4419_v17 = vld [vmem:[%s15221_s12 + $0x200] sm:$0xff] }
 0x246   : > { %20776 = vst [vmem:[#allocation35_spill] sm:$0xff] %v16754_v3  ;;  %v16757_v19 = vpop.f32.mrb[77].mxu1 }
 0x247   : > { %20777 = vst [vmem:[#allocation36_spill] sm:$0xff] %v16757_v19  ;;  %v6338_v19 = vld [vmem:[#allocation3 + $0x112] sm:$0xff] }
 0x248   : > { %6446 = vrot.lane.b32.xlu1 %v6337_v0, %s15155_s18  ;;  %14053 = vmatmul.mubr.msk.f32.gmra.mrb[44].mxu0 %vm398_vm0, %v4416_v56  ;;  %v4420_v0 = vld [vmem:[%s15221_s12 + $0x208] sm:$0xff] }
 0x249   : > { %14055 = vmatprep.mubr.msk.f32.mxu0 %vm398_vm0, %v4417_v40  ;;  %v16764_v48 = vpop.f32.mrb[78].mxu1  ;;  %6448 = vrot.lane.b32.xlu0 %v6338_v19, %s15155_s18  ;;  %v4421_v40 = vld [vmem:[%s15221_s12 + $0x210] sm:$0xff]  ;;  %v4422_v19 = vld [vmem:[%s15221_s12 + $0x218] sm:$0xff] }
 0x24a   : > { %20778 = vst [vmem:[#allocation37_spill] sm:$0xff] %v16764_v48  ;;  %v16767_v3 = vpop.f32.mrb[79].mxu1  ;;  %v6341_v48 = vld [vmem:[#allocation3 + $0x12a] sm:$0xf] }
 0x24b   : > { %20779 = vst [vmem:[#allocation38_spill] sm:$0xff] %v16767_v3  ;;  %v6340_v3 = vld [vmem:[#allocation3 + $0x122] sm:$0xff] }
 0x24c   : > { %6450 = vrot.lane.b32.xlu1 %v6339_v6, %s15155_s18  ;;  %14056 = vmatmul.mubr.msk.f32.gmra.mrb[46].mxu0 %vm398_vm0, %v4418_v11  ;;  %v4423_v11 = vld [vmem:[%s15221_s12 + $0x220] sm:$0xff] }
 0x24d   : > { %14058 = vmatprep.mubr.msk.f32.mxu0 %vm398_vm0, %v4419_v17  ;;  %v16774_v56 = vpop.f32.mrb[80].mxu1  ;;  %6452 = vrot.lane.b32.xlu0 %v6340_v3, %s15155_s18  ;;  %v4424_v3 = vld [vmem:[%s15221_s12 + $0x228] sm:$0xff] }
 0x24e   : > { %20780 = vst [vmem:[#allocation39_spill] sm:$0xff] %v16774_v56  ;;  %v16777_v34 = vpop.f32.mrb[81].mxu1  ;;  %v6567_v56 = vld [vmem:[#allocation3 + $0x10b] sm:$0xff] }
 0x24f   : > { %20781 = vst [vmem:[#allocation40_spill] sm:$0xff] %v16777_v34  ;;  %v6566_v34 = vld [vmem:[#allocation3 + $0x103] sm:$0xff] }
 0x250   : > { %6454 = vrot.lane.b32.xlu1 %v6341_v48, %s15155_s18  ;;  %14059 = vmatmul.mubr.msk.f32.gmra.mrb[48].mxu0 %vm398_vm0, %v4420_v0  ;;  %v4425_v0 = vld [vmem:[%s15221_s12 + $0x230] sm:$0xff] }
 0x251   : > { %14061 = vmatprep.mubr.msk.f32.mxu0 %vm398_vm0, %v4421_v40  ;;  %v16784_v6 = vpop.f32.mrb[82].mxu1  ;;  %6674 = vrot.lane.b32.xlu0 %v6566_v34, %s15156_s19 }
 0x252   : > { %20782 = vst [vmem:[#allocation41_spill] sm:$0xff] %v16784_v6  ;;  %v16787_v17 = vpop.f32.mrb[83].mxu1  ;;  %v6569_v6 = vld [vmem:[#allocation3 + $0x11b] sm:$0xff] }
 0x253   : > { %20783 = vst [vmem:[#allocation42_spill] sm:$0xff] %v16787_v17  ;;  %v6568_v17 = vld [vmem:[#allocation3 + $0x113] sm:$0xff] }
 0x254   : > { %6676 = vrot.lane.b32.xlu1 %v6567_v56, %s15156_s19  ;;  %14062 = vmatmul.mubr.msk.f32.gmra.mrb[50].mxu0 %vm398_vm0, %v4422_v19  ;;  %v4426_v56 = vld [vmem:[%s15221_s12 + $0x238] sm:$0xff]  ;;  %v4427_v19 = vld [vmem:[%s15221_s12 + $0x240] sm:$0xff] }
 0x255   : > { %14064 = vmatprep.mubr.msk.f32.mxu0 %vm398_vm0, %v4423_v11  ;;  %v16794_v48 = vpop.f32.mrb[84].mxu1  ;;  %6678 = vrot.lane.b32.xlu0 %v6568_v17, %s15156_s19 }
 0x256   : > { %20784 = vst [vmem:[#allocation43_spill] sm:$0xff] %v16794_v48  ;;  %v16797_v40 = vpop.f32.mrb[85].mxu1  ;;  %v6571_v48 = vld [vmem:[#allocation3 + $0x12b] sm:$0xf] }
 0x257   : > { %20785 = vst [vmem:[#allocation44_spill] sm:$0xff] %v16797_v40  ;;  %v6570_v40 = vld [vmem:[#allocation3 + $0x123] sm:$0xff] }
 0x258   : > { %6680 = vrot.lane.b32.xlu1 %v6569_v6, %s15156_s19  ;;  %14065 = vmatmul.mubr.msk.f32.gmra.mrb[52].mxu0 %vm398_vm0, %v4424_v3  ;;  %v4428_v6 = vld [vmem:[%s15221_s12 + $0x248] sm:$0xff]  ;;  %v4429_v3 = vld [vmem:[%s15221_s12 + $0x250] sm:$0xff] }
 0x259   : > { %14067 = vmatprep.mubr.msk.f32.mxu0 %vm398_vm0, %v4425_v0  ;;  %v16804_v34 = vpop.f32.mrb[86].mxu1  ;;  %6682 = vrot.lane.b32.xlu0 %v6570_v40, %s15156_s19 }
 0x25a   : > { %20786 = vst [vmem:[#allocation45_spill] sm:$0xff] %v16804_v34  ;;  %v16807_v11 = vpop.f32.mrb[87].mxu1  ;;  %v6797_v34 = vld [vmem:[#allocation3 + $0x10c] sm:$0xff] }
 0x25b   : > { %20787 = vst [vmem:[#allocation46_spill] sm:$0xff] %v16807_v11  ;;  %v6796_v11 = vld [vmem:[#allocation3 + $0x104] sm:$0xff] }
 0x25c   : > { %6684 = vrot.lane.b32.xlu1 %v6571_v48, %s15156_s19  ;;  %14068 = vmatmul.mubr.msk.f32.gmra.mrb[54].mxu0 %vm398_vm0, %v4426_v56  ;;  %v4430_v48 = vld [vmem:[%s15221_s12 + $0x258] sm:$0xff]  ;;  %v4431_v56 = vld [vmem:[%s15221_s12 + $0x260] sm:$0xff] }
 0x25d   : > { %14070 = vmatprep.mubr.msk.f32.mxu0 %vm398_vm0, %v4427_v19  ;;  %v16814_v17 = vpop.f32.mrb[88].mxu1  ;;  %6904 = vrot.lane.b32.xlu0 %v6796_v11, %s15157_s20 }
 0x25e   : > { %20788 = vst [vmem:[#allocation47_spill] sm:$0xff] %v16814_v17  ;;  %v16817_v0 = vpop.f32.mrb[89].mxu1  ;;  %v6799_v17 = vld [vmem:[#allocation3 + $0x11c] sm:$0xff] }
 0x25f   : > { %20789 = vst [vmem:[#allocation48_spill] sm:$0xff] %v16817_v0  ;;  %v6798_v0 = vld [vmem:[#allocation3 + $0x114] sm:$0xff] }
 0x260   : > { %6906 = vrot.lane.b32.xlu1 %v6797_v34, %s15157_s20  ;;  %14071 = vmatmul.mubr.msk.f32.gmra.mrb[56].mxu0 %vm398_vm0, %v4428_v6  ;;  %v4432_v34 = vld [vmem:[%s15221_s12 + $0x268] sm:$0xff]  ;;  %v4433_v6 = vld [vmem:[%s15221_s12 + $0x270] sm:$0xff] }
 0x261   : > { %14073 = vmatprep.mubr.msk.f32.mxu0 %vm398_vm0, %v4429_v3  ;;  %v16824_v40 = vpop.f32.mrb[90].mxu1  ;;  %6908 = vrot.lane.b32.xlu0 %v6798_v0, %s15157_s20 }
 0x262   : > { %20790 = vst [vmem:[#allocation49_spill] sm:$0xff] %v16824_v40  ;;  %v16827_v19 = vpop.f32.mrb[91].mxu1  ;;  %v6800_v40 = vld [vmem:[#allocation3 + $0x124] sm:$0xff] }
 0x263   : > { %20791 = vst [vmem:[#allocation50_spill] sm:$0xff] %v16827_v19  ;;  %v6801_v19 = vld [vmem:[#allocation3 + $0x12c] sm:$0xf] }
 0x264   : > { %6910 = vrot.lane.b32.xlu1 %v6799_v17, %s15157_s20  ;;  %14074 = vmatmul.mubr.msk.f32.gmra.mrb[58].mxu0 %vm398_vm0, %v4430_v48  ;;  %v4434_v17 = vld [vmem:[%s15221_s12 + $0x278] sm:$0xff]  ;;  %v4435_v48 = vld [vmem:[%s15221_s12 + $0x280] sm:$0xff] }
 0x265   : > { %14076 = vmatprep.mubr.msk.f32.mxu0 %vm398_vm0, %v4431_v56  ;;  %v16834_v11 = vpop.f32.mrb[92].mxu1  ;;  %6912 = vrot.lane.b32.xlu0 %v6800_v40, %s15157_s20  ;;  %v4437_v40 = vld [vmem:[%s15221_s12 + $0x290] sm:$0xff] }
 0x266   : > { %20792 = vst [vmem:[#allocation51_spill] sm:$0xff] %v16834_v11  ;;  %v16837_v3 = vpop.f32.mrb[93].mxu1  ;;  %v4459_v11 = vld [vmem:[%s15221_s12 + $0x340] sm:$0xff] }
 0x267   : > { %20793 = vst [vmem:[#allocation52_spill] sm:$0xff] %v16837_v3 }
 0x268   : > { %6914 = vrot.lane.b32.xlu1 %v6801_v19, %s15157_s20  ;;  %14077 = vmatmul.mubr.msk.f32.gmra.mrb[60].mxu0 %vm398_vm0, %v4432_v34  ;;  %v4436_v19 = vld [vmem:[%s15221_s12 + $0x288] sm:$0xff] }
 0x269   : > { %14079 = vmatprep.mubr.msk.f32.mxu0 %vm398_vm0, %v4433_v6  ;;  %v16844_v0 = vpop.f32.mrb[94].mxu1  ;;  %v4438_v6 = vld [vmem:[%s15221_s12 + $0x298] sm:$0xff] }
 0x26a   : > { %20794 = vst [vmem:[#allocation53_spill] sm:$0xff] %v16844_v0  ;;  %v16847_v56 = vpop.f32.mrb[95].mxu1 }
 0x26b   : > { %20795 = vst [vmem:[#allocation54_spill] sm:$0xff] %v16847_v56  ;;  %v4439_v56 = vld [vmem:[%s15221_s12 + $0x2a0] sm:$0xff] }
 0x26c   : > { %14080 = vmatmul.mubr.msk.f32.gmra.mrb[62].mxu0 %vm398_vm0, %v4434_v17 }
 0x26d   : > { %14082 = vmatprep.mubr.msk.f32.mxu0 %vm398_vm0, %v4435_v48  ;;  %v16852_v3 = vpop.f32.mrb[96].mxu1  ;;  %v4440_v48 = vld [vmem:[%s15221_s12 + $0x2a8] sm:$0xff] }
 0x26e   : > { %20796 = vst [vmem:[#allocation55_spill] sm:$0xff] %v16852_v3  ;;  %v16855_v34 = vpop.f32.mrb[97].mxu1 }
 0x26f   : > { %20797 = vst [vmem:[#allocation56_spill] sm:$0xff] %v16855_v34  ;;  %v4441_v34 = vld [vmem:[%s15221_s12 + $0x2b0] sm:$0xff] }
 0x270   : > { %14083 = vmatmul.mubr.msk.f32.gmra.mrb[64].mxu0 %vm398_vm0, %v4436_v19 }
 0x271   : > { %14085 = vmatprep.mubr.msk.f32.mxu0 %vm398_vm0, %v4437_v40  ;;  %v16860_v0 = vpop.f32.mrb[98].mxu1  ;;  %v4442_v40 = vld [vmem:[%s15221_s12 + $0x2b8] sm:$0xff] }
 0x272   : > { %20798 = vst [vmem:[#allocation57_spill] sm:$0xff] %v16860_v0  ;;  %v16863_v17 = vpop.f32.mrb[99].mxu1 }
 0x273   : > { %20799 = vst [vmem:[#allocation58_spill] sm:$0xff] %v16863_v17  ;;  %v4443_v17 = vld [vmem:[%s15221_s12 + $0x2c0] sm:$0xff] }
 0x274   : > { %14086 = vmatmul.mubr.msk.f32.gmra.mrb[66].mxu0 %vm398_vm0, %v4438_v6 }
 0x275   : > { %14088 = vmatprep.mubr.msk.f32.mxu0 %vm398_vm0, %v4439_v56  ;;  %v16868_v3 = vpop.f32.mrb[100].mxu1  ;;  %v4444_v56 = vld [vmem:[%s15221_s12 + $0x2c8] sm:$0xff] }
 0x276   : > { %20800 = vst [vmem:[#allocation59_spill] sm:$0xff] %v16868_v3  ;;  %v16871_v19 = vpop.f32.mrb[101].mxu1 }
 0x277   : > { %20801 = vst [vmem:[#allocation60_spill] sm:$0xff] %v16871_v19  ;;  %v4445_v19 = vld [vmem:[%s15221_s12 + $0x2d0] sm:$0xff] }
 0x278   : > { %14089 = vmatmul.mubr.msk.f32.gmra.mrb[68].mxu0 %vm398_vm0, %v4440_v48 }
 0x279   : > { %14091 = vmatprep.mubr.msk.f32.mxu0 %vm398_vm0, %v4441_v34  ;;  %v16876_v0 = vpop.f32.mrb[102].mxu1  ;;  %v4446_v34 = vld [vmem:[%s15221_s12 + $0x2d8] sm:$0xff] }
 0x27a   : > { %20802 = vst [vmem:[#allocation61_spill] sm:$0xff] %v16876_v0  ;;  %v16879_v6 = vpop.f32.mrb[103].mxu1 }
 0x27b   : > { %20803 = vst [vmem:[#allocation62_spill] sm:$0xff] %v16879_v6  ;;  %v4447_v6 = vld [vmem:[%s15221_s12 + $0x2e0] sm:$0xff] }
 0x27c   : > { %14092 = vmatmul.mubr.msk.f32.gmra.mrb[70].mxu0 %vm398_vm0, %v4442_v40 }
 0x27d   : > { %14094 = vmatprep.mubr.msk.f32.mxu0 %vm398_vm0, %v4443_v17  ;;  %v16884_v3 = vpop.f32.mrb[104].mxu1  ;;  %v4448_v17 = vld [vmem:[%s15221_s12 + $0x2e8] sm:$0xff] }
 0x27e   : > { %20804 = vst [vmem:[#allocation63_spill] sm:$0xff] %v16884_v3  ;;  %v16887_v48 = vpop.f32.mrb[105].mxu1 }
 0x27f   : > { %20805 = vst [vmem:[#allocation64_spill] sm:$0xff] %v16887_v48 }
 0x280   : > { %14095 = vmatmul.mubr.msk.f32.gmra.mrb[72].mxu0 %vm398_vm0, %v4444_v56  ;;  %v4449_v56 = vld [vmem:[%s15221_s12 + $0x2f0] sm:$0xff] }
 0x281   : > { %14097 = vmatprep.mubr.msk.f32.mxu0 %vm398_vm0, %v4445_v19  ;;  %v16892_v0 = vpop.f32.mrb[106].mxu1  ;;  %v4450_v19 = vld [vmem:[%s15221_s12 + $0x2f8] sm:$0xff] }
 0x282   : > { %20806 = vst [vmem:[#allocation65_spill] sm:$0xff] %v16892_v0  ;;  %v16895_v40 = vpop.f32.mrb[107].mxu1 }
 0x283   : > { %20807 = vst [vmem:[#allocation66_spill] sm:$0xff] %v16895_v40 }
 0x284   : > { %14098 = vmatmul.mubr.msk.f32.gmra.mrb[74].mxu0 %vm398_vm0, %v4446_v34  ;;  %v4451_v34 = vld [vmem:[%s15221_s12 + $0x300] sm:$0xff] }
 0x285   : > { %14100 = vmatprep.mubr.msk.f32.mxu0 %vm398_vm0, %v4447_v6  ;;  %v16900_v3 = vpop.f32.mrb[108].mxu1  ;;  %v4452_v6 = vld [vmem:[%s15221_s12 + $0x308] sm:$0xff] }
 0x286   : > { %20808 = vst [vmem:[#allocation67_spill] sm:$0xff] %v16900_v3  ;;  %v16903_v48 = vpop.f32.mrb[109].mxu1  ;;  %v4453_v3 = vld [vmem:[%s15221_s12 + $0x310] sm:$0xff] }
 0x287   : > { %20809 = vst [vmem:[#allocation68_spill] sm:$0xff] %v16903_v48  ;;  %v6155_v48 = vpop.permute.xlu1 %6154 }
 0x288   : > { %14101 = vmatmul.mubr.msk.f32.gmra.mrb[76].mxu0 %vm398_vm0, %v4448_v17  ;;  %v4454_v17 = vld [vmem:[%s15221_s12 + $0x318] sm:$0xff] }
 0x289   : > { %14103 = vmatprep.mubr.msk.f32.mxu0 %vm398_vm0, %v4449_v56  ;;  %v16908_v40 = vpop.f32.mrb[110].mxu1  ;;  %v4455_v56 = vld [vmem:[%s15221_s12 + $0x320] sm:$0xff] }
 0x28a   : > { %20810 = vst [vmem:[#allocation69_spill] sm:$0xff] %v16908_v40  ;;  %v16911_v0 = vpop.f32.mrb[111].mxu1 }
 0x28b   : > { %20811 = vst [vmem:[#allocation70_spill] sm:$0xff] %v16911_v0  ;;  %v6157_v40 = vpop.permute.xlu1 %6156  ;;  %v4456_v0 = vld [vmem:[%s15221_s12 + $0x328] sm:$0xff] }
 0x28c   : > { %14104 = vmatmul.mubr.msk.f32.gmra.mrb[78].mxu0 %vm398_vm0, %v4450_v19  ;;  %v4457_v19 = vld [vmem:[%s15221_s12 + $0x330] sm:$0xff] }
 0x28d   : > { %14106 = vmatprep.mubr.msk.f32.mxu0 %vm398_vm0, %v4451_v34  ;;  %v5999_v34 = vld [vmem:[#allocation3 + $0x10] sm:$0xff] }
 0x28e   : > { %6037 = vst.msk [vmem:[#allocation4 + $0x10] sm:$0xff] %vm5558_vm1, %v5999_v34  ;;  %v4460_v34 = vld [vmem:[%s15221_s12 + $0x348] sm:$0xff] }
 0x28f   : > { %6267 = vst.msk [vmem:[#allocation4 + $0x10] sm:$0xff] %vm6264_vm2, %v6155_v48 }
 0x290   : > { %14107 = vmatmul.mubr.msk.f32.gmra.mrb[80].mxu0 %vm398_vm0, %v4452_v6  ;;  %v6151_v6 = vpop.permute.xlu0 %6150 }
 0x291   : > { %14109 = vmatprep.mubr.msk.f32.mxu0 %vm398_vm0, %v4453_v3  ;;  %6265 = vst.msk [vmem:[#allocation4] sm:$0xff] %vm6264_vm2, %v6151_v6 }
 0x294   : > { %14110 = vmatmul.mubr.msk.f32.gmra.mrb[82].mxu0 %vm398_vm0, %v4454_v17  ;;  %v4458_v17 = vld [vmem:[%s15221_s12 + $0x338] sm:$0xff]  ;;  %v6153_v48 = vpop.permute.xlu0 %6152 }
 0x295   : > { %14112 = vmatprep.mubr.msk.f32.mxu0 %vm398_vm0, %v4455_v56  ;;  %v6000_v56 = vld [vmem:[#allocation3 + $0x18] sm:$0xff]  ;;  %6266 = vst.msk [vmem:[#allocation4 + $0x8] sm:$0xff] %vm6264_vm2, %v6153_v48  ;;  %v4464_v48 = vld [vmem:[%s15221_s12 + $0x368] sm:$0xff] }
 0x296   : > { %v6217_v3 = vpop.permute.xlu1 %6216  ;;  %6038 = vst.msk [vmem:[#allocation4 + $0x18] sm:$0xff] %vm5558_vm1, %v6000_v56  ;;  %v6032_v56 = vld [vmem:[#allocation3 + $0x118] sm:$0xff] }
 0x297   : > { %6268 = vst.msk [vmem:[#allocation4 + $0x18] sm:$0xff] %vm6264_vm2, %v6157_v40  ;;  %6298 = vst.msk [vmem:[#allocation4 + $0x108] sm:$0xff] %vm6264_vm2, %v6217_v3  ;;  %v4463_v40 = vld [vmem:[%s15221_s12 + $0x360] sm:$0xff]  ;;  %v4465_v3 = vld [vmem:[%s15221_s12 + $0x370] sm:$0xff] }
 0x298   : > { %14113 = vmatmul.mubr.msk.f32.gmra.mrb[84].mxu0 %vm398_vm0, %v4456_v0  ;;  %v6215_v6 = vpop.permute.xlu0 %6214  ;;  %6070 = vst.msk [vmem:[#allocation4 + $0x118] sm:$0xff] %vm5558_vm1, %v6032_v56  ;;  %v4469_v56 = vld [vmem:[%s15221_s12 + $0x390] sm:$0xff] }
 0x299   : > { %14115 = vmatprep.mubr.msk.f32.mxu0 %vm398_vm0, %v4457_v19  ;;  %v4461_v19 = vld [vmem:[%s15221_s12 + $0x350] sm:$0xff] }
 0x29a   : > { %v6221_v0 = vpop.permute.xlu1 %6220 }
 0x29b   : > { %6300 = vst.msk [vmem:[#allocation4 + $0x118] sm:$0xff] %vm6264_vm2, %v6221_v0 }
 0x29c   : > { %14116 = vmatmul.mubr.msk.f32.gmra.mrb[86].mxu0 %vm398_vm0, %v4458_v17  ;;  %v6029_v17 = vld [vmem:[#allocation3 + $0x100] sm:$0xff]  ;;  %v6219_v52 = vpop.permute.xlu0 %6218 }
 0x29d   : > { %14118 = vmatprep.mubr.msk.f32.mxu0 %vm398_vm0, %v4459_v11  ;;  %v4462_v11 = vld [vmem:[%s15221_s12 + $0x358] sm:$0xff]  ;;  %6067 = vst.msk [vmem:[#allocation4 + $0x100] sm:$0xff] %vm5558_vm1, %v6029_v17  ;;  %v4468_v17 = vld [vmem:[%s15221_s12 + $0x388] sm:$0xff] }
 0x29e   : > { %v6225_v60 = vpop.permute.xlu1 %6224  ;;  %6297 = vst.msk [vmem:[#allocation4 + $0x100] sm:$0xff] %vm6264_vm2, %v6215_v6  ;;  %v4466_v6 = vld [vmem:[%s15221_s12 + $0x378] sm:$0xff] }
 0x2a0   : > { %14119 = vmatmul.mubr.msk.f32.gmra.mrb[88].mxu0 %vm398_vm0, %v4460_v34  ;;  %v6031_v34 = vld [vmem:[#allocation3 + $0x110] sm:$0xff]  ;;  %v6223_v60 = vpop.permute.xlu0 %6222 }
 0x2a1   : > { %14121 = vmatprep.mubr.msk.f32.mxu0 %vm398_vm0, %v4461_v19  ;;  %6069 = vst.msk [vmem:[#allocation4 + $0x110] sm:$0xff] %vm5558_vm1, %v6031_v34  ;;  %v4471_v34 = vld [vmem:[%s15221_s12 + $0x3a0] sm:$0xff]  ;;  %v4472_v60 = vld [vmem:[%s15221_s12 + $0x3a8] sm:$0xff] }
 0x2a2   : > { %v6383_v44 = vpop.permute.xlu1 %6382  ;;  %6299 = vst.msk [vmem:[#allocation4 + $0x110] sm:$0xff] %vm6264_vm2, %v6219_v52 }
 0x2a3   : > { %6496 = vst.msk [vmem:[#allocation4 + $0x8] sm:$0xff] %vm6494_vm3, %v6383_v44 }
 0x2a4   : > { %14122 = vmatmul.mubr.msk.f32.gmra.mrb[90].mxu0 %vm398_vm0, %v4462_v11  ;;  %v4467_v11 = vld [vmem:[%s15221_s12 + $0x380] sm:$0xff] }
 0x2a5   : > { %14124 = vmatprep.mubr.msk.f32.mxu0 %vm398_vm0, %v4463_v40  ;;  %v6381_v40 = vpop.permute.xlu0 %6380 }
 0x2a6   : > { %v6387_v19 = vpop.permute.xlu1 %6386  ;;  %6495 = vst.msk [vmem:[#allocation4] sm:$0xff] %vm6494_vm3, %v6381_v40 }
 0x2a7   : > { %6498 = vst.msk [vmem:[#allocation4 + $0x18] sm:$0xff] %vm6494_vm3, %v6387_v19 }
 0x2a8   : > { %14125 = vmatmul.mubr.msk.f32.gmra.mrb[92].mxu0 %vm398_vm0, %v4464_v48 }
 0x2a9   : > { %14127 = vmatprep.mubr.msk.f32.mxu0 %vm398_vm0, %v4465_v3  ;;  %v6385_v48 = vpop.permute.xlu0 %6384  ;;  %v4470_v3 = vld [vmem:[%s15221_s12 + $0x398] sm:$0xff] }
 0x2aa   : > { %v6615_v0 = vpop.permute.xlu1 %6614  ;;  %6497 = vst.msk [vmem:[#allocation4 + $0x10] sm:$0xff] %vm6494_vm3, %v6385_v48 }
 0x2ab   : > { %6727 = vst.msk [vmem:[#allocation4 + $0x10] sm:$0xff] %vm6724_vm4, %v6615_v0 }
 0x2ac   : > { %14128 = vmatmul.mubr.msk.f32.gmra.mrb[94].mxu0 %vm398_vm0, %v4466_v6  ;;  %v4473_v6 = vld [vmem:[%s15221_s12 + $0x3b0] sm:$0xff] }
 0x2ad   : > { %14130 = vmatprep.mubr.msk.f32.mxu0 %vm398_vm0, %v4467_v11  ;;  %v6611_v19 = vpop.permute.xlu0 %6610 }
 0x2ae   : > { %v6845_v52 = vpop.permute.xlu1 %6844  ;;  %6725 = vst.msk [vmem:[#allocation4] sm:$0xff] %vm6724_vm4, %v6611_v19 }
 0x2af   : > { %6957 = vst.msk [vmem:[#allocation4 + $0x10] sm:$0xff] %vm6954_vm5, %v6845_v52 }
 0x2b0   : > { %14131 = vmatmul.mubr.msk.f32.gmra.mrb[96].mxu0 %vm398_vm0, %v4468_v17  ;;  %v4474_v17 = vld [vmem:[%s15221_s12 + $0x3b8] sm:$0xff] }
 0x2b1   : > { %14133 = vmatprep.mubr.msk.f32.mxu0 %vm398_vm0, %v4469_v56  ;;  %v6841_v40 = vpop.permute.xlu0 %6840 }
 0x2b2   : > { %v6613_v44 = vpop.permute.xlu1 %6612  ;;  %6955 = vst.msk [vmem:[#allocation4] sm:$0xff] %vm6954_vm5, %v6841_v40 }
 0x2b3   : > { %6726 = vst.msk [vmem:[#allocation4 + $0x8] sm:$0xff] %vm6724_vm4, %v6613_v44 }
 0x2b4   : > { %14134 = vmatmul.mubr.msk.f32.gmra.mrb[98].mxu0 %vm398_vm0, %v4470_v3 }
 0x2b5   : > { %14136 = vmatprep.mubr.msk.f32.mxu0 %vm398_vm0, %v4471_v34  ;;  %v6445_v56 = vpop.permute.xlu0 %6444 }
 0x2b6   : > { %v6843_v11 = vpop.permute.xlu1 %6842  ;;  %6527 = vst.msk [vmem:[#allocation4 + $0x100] sm:$0xff] %vm6494_vm3, %v6445_v56  ;;  %v6996_v3 = vld [vmem:[#allocation4 + $0x10] sm:$0xff] }
 0x2b7   : > { %6956 = vst.msk [vmem:[#allocation4 + $0x8] sm:$0xff] %vm6954_vm5, %v6843_v11  ;;  %14174 = vmatprep.mubr.msk.f32.mxu1 %vm7045_vm6, %v6996_v3  ;;  %v4481_v11 = vld [vmem:[%s15221_s12 + $0x3f0] sm:$0xff] }
 0x2b8   : > { %14137 = vmatmul.mubr.msk.f32.gmra.mrb[100].mxu0 %vm398_vm0, %v4472_v60 }
 0x2b9   : > { %14139 = vmatprep.mubr.msk.f32.mxu0 %vm398_vm0, %v4473_v6 }
 0x2ba   : > { %v6447_v0 = vpop.permute.xlu1 %6446 }
 0x2bb   : > { %6528 = vst.msk [vmem:[#allocation4 + $0x108] sm:$0xff] %vm6494_vm3, %v6447_v0  ;;  %v6449_v48 = vpop.permute.xlu0 %6448 }
 0x2bc   : > { %14140 = vmatmul.mubr.msk.f32.gmra.mrb[102].mxu0 %vm398_vm0, %v4474_v17  ;;  %6529 = vst.msk [vmem:[#allocation4 + $0x110] sm:$0xff] %vm6494_vm3, %v6449_v48 }
 0x2bd   : > { %14142 = vmatprep.mubr.msk.f32.mxu0 %vm398_vm0, %v16486_v28  ;;  %v4479_v28 = vld [vmem:[%s15221_s12 + $0x3e0] sm:$0xff] }
 0x2be   : > { %v6451_v52 = vpop.permute.xlu1 %6450 }
 0x2bf   : > { %6530 = vst.msk [vmem:[#allocation4 + $0x118] sm:$0xff] %vm6494_vm3, %v6451_v52  ;;  %v6453_v6 = vpop.permute.xlu0 %6452 }
 0x2c0   : > { %14143 = vmatmul.mubr.msk.f32.gmra.mrb[104].mxu0 %vm398_vm0, %v16495_v15  ;;  %v12365_v6 = vld [vmem:[%s20561_s3 + $0x58] sm:$0xff] }
 0x2c1   : > { %14145 = vmatprep.mubr.msk.f32.mxu0 %vm398_vm0, %v16500_v30  ;;  %v4480_v30 = vld [vmem:[%s15221_s12 + $0x3e8] sm:$0xff] }
 0x2c2   : > { %v6455_v19 = vpop.permute.xlu1 %6454 }
 0x2c3   : > { %v13988_v34 = vpop.f32.mrb[0].mxu0  ;;  %v6675_v56 = vpop.permute.xlu0 %6674 }
 0x2c4   : > { %v14566_v44 = vadd.f32 %v13988_v34, %v16271_v37  ;;  %v4887_v15 = vpop.f32.mrb[1].mxu0  ;;  %14146 = vmatmul.mubr.msk.f32.gmra.mrb[106].mxu0 %vm398_vm0, %v16509_v8  ;;  %6757 = vst.msk [vmem:[#allocation4 + $0x100] sm:$0xff] %vm6724_vm4, %v6675_v56 }
 0x2c5   : > { %v14567_v60 = vadd.f32 %v4887_v15, %v16275_v38  ;;  %14148 = vmatprep.mubr.msk.f32.mxu0 %vm398_vm0, %v4479_v28  ;;  %v4482_v38 = vld [vmem:[%s15221_s12 + $0x3f8] sm:$0xff] }
 0x2c6   : > { %5560 = vst.msk [vmem:[#allocation2 + $0x8] sm:$0xff] %vm5558_vm1, %v14566_v44  ;;  %v6677_v8 = vpop.permute.xlu1 %6676 }
 0x2c7   : > { %5559 = vst.msk [vmem:[#allocation2] sm:$0xff] %vm5558_vm1, %v14567_v60  ;;  %v13991_v40 = vpop.f32.mrb[2].mxu0  ;;  %v6679_v28 = vpop.permute.xlu0 %6678 }
 0x2c8   : > { %v14568_v37 = vadd.f32 %v13991_v40, %v16283_v41  ;;  %v4897_v17 = vpop.f32.mrb[3].mxu0  ;;  %14149 = vmatmul.mubr.msk.f32.gmra.mrb[108].mxu0 %vm398_vm0, %v4480_v30  ;;  %6758 = vst.msk [vmem:[#allocation4 + $0x108] sm:$0xff] %vm6724_vm4, %v6677_v8  ;;  %6759 = vst.msk [vmem:[#allocation4 + $0x110] sm:$0xff] %vm6724_vm4, %v6679_v28  ;;  %v12364_v30 = vld [vmem:[%s20561_s3 + $0x50] sm:$0xff] }
 0x2c9   : > { %v14569_v0 = vadd.f32 %v4897_v17, %v16287_v42  ;;  %14151 = vmatprep.mubr.msk.f32.mxu0 %vm398_vm0, %v4481_v11  ;;  %v14464_v40 = vpack.c.bf16 %v12365_v6, %v12364_v30 }
 0x2ca   : > { %5562 = vst.msk [vmem:[#allocation2 + $0x18] sm:$0xff] %vm5558_vm1, %v14568_v37  ;;  %v6681_v3 = vpop.permute.xlu1 %6680 }
 0x2cb   : > { %5561 = vst.msk [vmem:[#allocation2 + $0x10] sm:$0xff] %vm5558_vm1, %v14569_v0  ;;  %v13994_v52 = vpop.f32.mrb[4].mxu0  ;;  %v6683_v60 = vpop.permute.xlu0 %6682  ;;  %14465 = vmatprep.subr.bf16.mxu1 %v14464_v40 }
 0x2cc   : > { %v14570_v41 = vadd.f32 %v13994_v52, %v16295_v45  ;;  %v4907_v48 = vpop.f32.mrb[5].mxu0  ;;  %14152 = vmatmul.mubr.msk.f32.gmra.mrb[110].mxu0 %vm398_vm0, %v4482_v38  ;;  %6760 = vst.msk [vmem:[#allocation4 + $0x118] sm:$0xff] %vm6724_vm4, %v6681_v3  ;;  %14467 = vmatpush3.bf16.msra.mxu1 %v14464_v40  ;;  %vm10436_vm0 = vcmask 589312  }
 0x2cd   : > { %v14571_v42 = vadd.f32 %v4907_v48, %v16299_v46 }
 0x2ce   : > { %5564 = vst.msk [vmem:[#allocation2 + $0x28] sm:$0xff] %vm5558_vm1, %v14570_v41  ;;  %v6685_v45 = vpop.permute.xlu1 %6684  ;;  %v5711_v41 = vld [vmem:[#allocation2 + $0x8] sm:$0x3f] }
 0x2cf   : > { %5563 = vst.msk [vmem:[#allocation2 + $0x20] sm:$0xff] %vm5558_vm1, %v14571_v42  ;;  %v13997_v34 = vpop.f32.mrb[6].mxu0  ;;  %v6905_v17 = vpop.permute.xlu0 %6904 }
 0x2d0   : > { %v14572_v44 = vadd.f32 %v13997_v34, %v16307_v49  ;;  %v4917_v15 = vpop.f32.mrb[7].mxu0  ;;  %6987 = vst.msk [vmem:[#allocation4 + $0x100] sm:$0xff] %vm6954_vm5, %v6905_v17 }
 0x2d1   : > { %v14573_v19 = vadd.f32 %v4917_v15, %v16311_v50 }
 0x2d2   : > { %5566 = vst.msk [vmem:[#allocation2 + $0x38] sm:$0xff] %vm5558_vm1, %v14572_v44  ;;  %v6907_v37 = vpop.permute.xlu1 %6906  ;;  %v5712_v0 = vld [vmem:[#allocation2 + $0xe] sm:$0xff]  ;;  %v5713_v38 = vld [vmem:[#allocation2 + $0x16] sm:$0x3f] }
 0x2d3   : > { %5565 = vst.msk [vmem:[#allocation2 + $0x30] sm:$0xff] %vm5558_vm1, %v14573_v19  ;;  %v14000_v46 = vpop.f32.mrb[8].mxu0  ;;  %v6909_v42 = vpop.permute.xlu0 %6908  ;;  %v5715_v45 = vmax.f32 %v5711_v41, %v5713_v38 }
 0x2d4   : > { %v14574_v49 = vadd.f32 %v14000_v46, %v16319_v53  ;;  %v4927_v11 = vpop.f32.mrb[9].mxu0  ;;  %6988 = vst.msk [vmem:[#allocation4 + $0x108] sm:$0xff] %vm6954_vm5, %v6907_v37  ;;  %6989 = vst.msk [vmem:[#allocation4 + $0x110] sm:$0xff] %vm6954_vm5, %v6909_v42 }
 0x2d5   : > { %v14575_v50 = vadd.f32 %v4927_v11, %v16323_v54  ;;  %v5710_v54 = vld [vmem:[#allocation2] sm:$0xff]  ;;  %v5717_v48 = vld [vmem:[#allocation2 + $0x28] sm:$0x3f] }
 0x2d6   : > { %5568 = vst.msk [vmem:[#allocation2 + $0x48] sm:$0xff] %vm5558_vm1, %v14574_v49  ;;  %v6911_v52 = vpop.permute.xlu1 %6910  ;;  %v5716_v28 = vld [vmem:[#allocation2 + $0x20] sm:$0xff]  ;;  %v5714_v15 = vmax.f32 %v5710_v54, %v5712_v0 }
 0x2d7   : > { %5567 = vst.msk [vmem:[#allocation2 + $0x40] sm:$0xff] %vm5558_vm1, %v14575_v50  ;;  %v14003_v8 = vpop.f32.mrb[10].mxu0  ;;  %v6913_v40 = vpop.permute.xlu0 %6912 }
 0x2d8   : > { %v14576_v53 = vadd.f32 %v14003_v8, %v16331_v57  ;;  %v4937_v56 = vpop.f32.mrb[11].mxu0  ;;  %6990 = vst.msk [vmem:[#allocation4 + $0x118] sm:$0xff] %vm6954_vm5, %v6911_v52  ;;  %v12367_v52 = vld [vmem:[%s20561_s3 + $0x68] sm:$0xff] }
 0x2d9   : > { %v14577_v3 = vadd.f32 %v4937_v56, %v16335_v58  ;;  %v17049_v58 = vld [vmem:[%s20560_s2] ss:$0 sm:$0xff] }
 0x2da   : > { %v5718_v34 = vld [vmem:[#allocation2 + $0x2e] sm:$0xff]  ;;  %v5719_v44 = vld [vmem:[#allocation2 + $0x36] sm:$0x3f]  ;;  %5570 = vst.msk [vmem:[#allocation2 + $0x58] sm:$0xff] %vm5558_vm1, %v14576_v53  ;;  %v6915_v56 = vpop.permute.xlu1 %6914 }
 0x2db   : > { %v5720_v57 = vmax.f32 %v5716_v28, %v5718_v34  ;;  %v5721_v19 = vmax.f32 %v5717_v48, %v5719_v44  ;;  %5569 = vst.msk [vmem:[#allocation2 + $0x50] sm:$0xff] %vm5558_vm1, %v14577_v3  ;;  %v14006_v60 = vpop.f32.mrb[12].mxu0  ;;  %v12368_v28 = vld [vmem:[%s20561_s3 + $0x70] sm:$0xff] }
 0x2dc   : > { %v14578_v46 = vadd.f32 %v14006_v60, %v16343_v61  ;;  %v4947_v30 = vpop.f32.mrb[13].mxu0 }
 0x2dd   : > { %v5722_v6 = vmax.f32 %v5714_v15, %v5720_v57  ;;  %v5723_v49 = vmax.f32 %v5715_v45, %v5721_v19  ;;  %v14579_v11 = vadd.f32 %v4947_v30, %v16347_v62  ;;  %v5738_v34 = vld [vmem:[#allocation2 + $0x48] sm:$0x3f] }
 0x2de   : > { %5572 = vst.msk [vmem:[#allocation2 + $0x68] sm:$0xff] %vm5558_vm1, %v14578_v46  ;;  %v5737_v57 = vld [vmem:[#allocation2 + $0x40] sm:$0xff] }
 0x2df   : > { %v5730_v37 = vadd.f32 %v17049_v58, %v5722_v6  ;;  %5571 = vst.msk [vmem:[#allocation2 + $0x60] sm:$0xff] %vm5558_vm1, %v14579_v11  ;;  %v14009_v50 = vpop.f32.mrb[14].mxu0  ;;  %v5731_v17 = vadd.f32 %v17049_v58, %v5723_v49 }
 0x2e0   : > { %v14580_v8 = vadd.f32 %v14009_v50, %v16435_v21  ;;  %v4957_v0 = vpop.f32.mrb[15].mxu0  ;;  %v12366_v21 = vld [vmem:[%s20561_s3 + $0x60] sm:$0xff] }
 0x2e1   : > { %v5732_v61 = vmax.f32 %v5730_v37, 0.0  ;;  %v14581_v38 = vadd.f32 %v4957_v0, %v16437_v22  ;;  %v5733_v53 = vmax.f32 %v5731_v17, 0.0  ;;  %v14468_v54 = vpack.c.bf16 %v12367_v52, %v12366_v21  ;;  %v12370_v52 = vld [vmem:[%s20561_s3 + $0x80] sm:$0xff] }
 0x2e2   : > { %5574 = vst.msk [vmem:[#allocation2 + $0x78] sm:$0xff] %vm5558_vm1, %v14580_v8  ;;  %v5739_v3 = vld [vmem:[#allocation2 + $0x4e] sm:$0xff]  ;;  %v5740_v44 = vld [vmem:[#allocation2 + $0x56] sm:$0x3f] }
 0x2e3   : > { %5734 = vst.msk [vmem:[#allocation3 + $0x22] sm:$0xff] %vm5558_vm1, %v5732_v61  ;;  %5573 = vst.msk [vmem:[#allocation2 + $0x70] sm:$0xff] %vm5558_vm1, %v14581_v38  ;;  %v14012_v62 = vpop.f32.mrb[16].mxu0  ;;  %14469 = vmatprep.subr.bf16.mxu1 %v14468_v54  ;;  %v5741_v30 = vmax.f32 %v5737_v57, %v5739_v3  ;;  %v5742_v40 = vmax.f32 %v5738_v34, %v5740_v44 }
 0x2e4   : > { %5736 = vst.msk [vmem:[#allocation3 + $0x2a] sm:$0x3f] %vm5735_vm7, %v5733_v53  ;;  %v14582_v22 = vadd.f32 %v14012_v62, %v16443_v7  ;;  %v4967_v41 = vpop.f32.mrb[17].mxu0  ;;  %14471 = vmatpush3.bf16.msra.mxu1 %v14468_v54  ;;  %v12369_v7 = vld [vmem:[%s20561_s3 + $0x78] sm:$0xff]  ;;  %v12372_v54 = vld [vmem:[%s20561_s3 + $0x90] sm:$0xff] }
 0x2e5   : > { %v14583_v48 = vadd.f32 %v4967_v41, %v16445_v23  ;;  %v14472_v45 = vpack.c.bf16 %v12369_v7, %v12368_v28  ;;  %v5744_v19 = vld [vmem:[#allocation2 + $0x68] sm:$0x3f] }
 0x2e6   : > { %5576 = vst.msk [vmem:[#allocation2 + $0x88] sm:$0xff] %vm5558_vm1, %v14582_v22  ;;  %v5743_v60 = vld [vmem:[#allocation2 + $0x60] sm:$0xff]  ;;  %v12371_v41 = vld [vmem:[%s20561_s3 + $0x88] sm:$0xff] }
 0x2e7   : > { %5575 = vst.msk [vmem:[#allocation2 + $0x80] sm:$0xff] %vm5558_vm1, %v14583_v48  ;;  %v14015_v42 = vpop.f32.mrb[18].mxu0  ;;  %14473 = vmatprep.subr.bf16.mxu1 %v14472_v45  ;;  %v12373_v48 = vld [vmem:[%s20561_s3 + $0x98] sm:$0xff]  ;;  %v14476_v28 = vpack.c.bf16 %v12371_v41, %v12370_v52 }
 0x2e8   : > { %v14584_v23 = vadd.f32 %v14015_v42, %v16451_v9  ;;  %v4977_v15 = vpop.f32.mrb[19].mxu0  ;;  %14475 = vmatpush3.bf16.msra.mxu1 %v14472_v45  ;;  %v14480_v7 = vpack.c.bf16 %v12373_v48, %v12372_v54 }
 0x2e9   : > { %v14585_v46 = vadd.f32 %v4977_v15, %v16453_v10  ;;  %14477 = vmatprep.subr.bf16.mxu1 %v14476_v28 }
 0x2ea   : > { %v5745_v6 = vld [vmem:[#allocation2 + $0x6e] sm:$0xff]  ;;  %v5746_v49 = vld [vmem:[#allocation2 + $0x76] sm:$0x3f]  ;;  %5578 = vst.msk [vmem:[#allocation2 + $0x98] sm:$0xff] %vm5558_vm1, %v14584_v23  ;;  %v6078_v9 = vld [vmem:[#allocation3 + $0x21] sm:$0xff] }
 0x2eb   : > { %v6079_v11 = vld [vmem:[#allocation3 + $0x29] sm:$0xff]  ;;  %v5747_v37 = vmax.f32 %v5743_v60, %v5745_v6  ;;  %v5748_v50 = vmax.f32 %v5744_v19, %v5746_v49  ;;  %5577 = vst.msk [vmem:[#allocation2 + $0x90] sm:$0xff] %vm5558_vm1, %v14585_v46  ;;  %v14018_v17 = vpop.f32.mrb[20].mxu0  ;;  %6158 = vrot.lane.b32.xlu0 %v6078_v9, %s15154_s17  ;;  %v6001_v21 = vld [vmem:[#allocation3 + $0x20] sm:$0xff] }
 0x2ec   : > { %6160 = vrot.lane.b32.xlu1 %v6079_v11, %s15154_s17  ;;  %v14586_v10 = vadd.f32 %v14018_v17, %v16459_v12  ;;  %v4987_v8 = vpop.f32.mrb[21].mxu0  ;;  %v6309_v53 = vld [vmem:[#allocation3 + $0x2a] sm:$0xff]  ;;  %v6308_v56 = vld [vmem:[#allocation3 + $0x22] sm:$0xff]  ;;  %6039 = vst.msk [vmem:[#allocation4 + $0x20] sm:$0xff] %vm5558_vm1, %v6001_v21  ;;  %14479 = vmatpush3.bf16.msra.mxu1 %v14476_v28 }
 0x2ed   : > { %v5749_v0 = vmax.f32 %v5741_v30, %v5747_v37  ;;  %v5750_v61 = vmax.f32 %v5742_v40, %v5748_v50  ;;  %v14587_v38 = vadd.f32 %v4987_v8, %v16461_v13  ;;  %v6002_v62 = vld [vmem:[#allocation3 + $0x28] sm:$0xff]  ;;  %v6537_v45 = vld [vmem:[#allocation3 + $0x1b] sm:$0xff]  ;;  %14481 = vmatprep.subr.bf16.mxu1 %v14480_v7 }
 0x2ee   : > { %5580 = vst.msk [vmem:[#allocation2 + $0xa8] sm:$0xff] %vm5558_vm1, %v14586_v10  ;;  %6040 = vst.msk [vmem:[#allocation4 + $0x28] sm:$0xff] %vm5558_vm1, %v6002_v62  ;;  %v6538_v15 = vld [vmem:[#allocation3 + $0x23] sm:$0xff] }
 0x2ef   : > { %v5751_v22 = vadd.f32 %v17049_v58, %v5749_v0  ;;  %5579 = vst.msk [vmem:[#allocation2 + $0xa0] sm:$0xff] %vm5558_vm1, %v14587_v38  ;;  %v14021_v12 = vpop.f32.mrb[22].mxu0  ;;  %v5752_v13 = vadd.f32 %v17049_v58, %v5750_v61  ;;  %6388 = vrot.lane.b32.xlu0 %v6308_v56, %s15155_s18  ;;  %v6768_v60 = vld [vmem:[#allocation3 + $0x24] sm:$0xff]  ;;  %v6767_v46 = vld [vmem:[#allocation3 + $0x1c] sm:$0xff] }
 0x2f0   : > { %6390 = vrot.lane.b32.xlu1 %v6309_v53, %s15155_s18  ;;  %v14588_v3 = vadd.f32 %v14021_v12, %v16467_v14  ;;  %v4997_v42 = vpop.f32.mrb[23].mxu0  ;;  %14483 = vmatpush3.bf16.msra.mxu1 %v14480_v7  ;;  %v5758_v6 = vld [vmem:[#allocation2 + $0x88] sm:$0x3f]  ;;  %v5757_v37 = vld [vmem:[#allocation2 + $0x80] sm:$0xff] }
 0x2f1   : > { %v5753_v34 = vmax.f32 %v5751_v22, 0.0  ;;  %v14589_v44 = vadd.f32 %v4997_v42, %v16469_v25  ;;  %v5754_v23 = vmax.f32 %v5752_v13, 0.0 }
 0x2f2   : > { %5582 = vst.msk [vmem:[#allocation2 + $0xb8] sm:$0xff] %vm5558_vm1, %v14588_v3  ;;  %v5759_v49 = vld [vmem:[#allocation2 + $0x8e] sm:$0xff]  ;;  %v5760_v11 = vld [vmem:[#allocation2 + $0x96] sm:$0x3f] }
 0x2f3   : > { %5755 = vst.msk [vmem:[#allocation3 + $0x32] sm:$0xff] %vm5558_vm1, %v5753_v34  ;;  %5581 = vst.msk [vmem:[#allocation2 + $0xb0] sm:$0xff] %vm5558_vm1, %v14589_v44  ;;  %v14024_v57 = vpop.f32.mrb[24].mxu0  ;;  %6616 = vrot.lane.b32.xlu0 %v6537_v45, %s15156_s19  ;;  %v5761_v0 = vmax.f32 %v5757_v37, %v5759_v49  ;;  %v5762_v61 = vmax.f32 %v5758_v6, %v5760_v11 }
 0x2f4   : > { %6618 = vrot.lane.b32.xlu1 %v6538_v15, %s15156_s19  ;;  %5756 = vst.msk [vmem:[#allocation3 + $0x3a] sm:$0x3f] %vm5735_vm7, %v5754_v23  ;;  %v14590_v14 = vadd.f32 %v14024_v57, %v16475_v26  ;;  %v5007_v25 = vpop.f32.mrb[25].mxu0 }
 0x2f5   : > { %v14591_v19 = vadd.f32 %v5007_v25, %v16477_v27  ;;  %v5764_v27 = vld [vmem:[#allocation2 + $0xa8] sm:$0x3f] }
 0x2f6   : > { %5584 = vst.msk [vmem:[#allocation2 + $0xc8] sm:$0xff] %vm5558_vm1, %v14590_v14  ;;  %v5763_v50 = vld [vmem:[#allocation2 + $0xa0] sm:$0xff] }
 0x2f7   : > { %5583 = vst.msk [vmem:[#allocation2 + $0xc0] sm:$0xff] %vm5558_vm1, %v14591_v19  ;;  %v14027_v30 = vpop.f32.mrb[26].mxu0  ;;  %6846 = vrot.lane.b32.xlu0 %v6767_v46, %s15157_s20 }
 0x2f8   : > { %6848 = vrot.lane.b32.xlu1 %v6768_v60, %s15157_s20  ;;  %v14592_v26 = vadd.f32 %v14027_v30, %v16483_v2  ;;  %v5017_v40 = vpop.f32.mrb[27].mxu0 }
 0x2f9   : > { %v14593_v9 = vadd.f32 %v5017_v40, %v16488_v29 }
 0x2fa   : > { %v5765_v17 = vld [vmem:[#allocation2 + $0xae] sm:$0xff]  ;;  %v5766_v10 = vld [vmem:[#allocation2 + $0xb6] sm:$0x3f]  ;;  %5586 = vst.msk [vmem:[#allocation2 + $0xd8] sm:$0xff] %vm5558_vm1, %v14592_v26 }
 0x2fb   : > { %v6081_v8 = vld [vmem:[#allocation3 + $0x39] sm:$0xff]  ;;  %v5767_v38 = vmax.f32 %v5763_v50, %v5765_v17  ;;  %v5768_v53 = vmax.f32 %v5764_v27, %v5766_v10  ;;  %5585 = vst.msk [vmem:[#allocation2 + $0xd0] sm:$0xff] %vm5558_vm1, %v14593_v9  ;;  %v6080_v2 = vld [vmem:[#allocation3 + $0x31] sm:$0xff]  ;;  %v14030_v62 = vpop.f32.mrb[28].mxu0 }
 0x2fc   : > { %6164 = vrot.lane.b32.xlu1 %v6081_v8, %s15154_s17  ;;  %6162 = vrot.lane.b32.xlu0 %v6080_v2, %s15154_s17  ;;  %v14594_v56 = vadd.f32 %v14030_v62, %v16497_v4  ;;  %v5027_v29 = vpop.f32.mrb[29].mxu0  ;;  %v6004_v12 = vld [vmem:[#allocation3 + $0x38] sm:$0xff]  ;;  %v6003_v41 = vld [vmem:[#allocation3 + $0x30] sm:$0xff] }
 0x2fd   : > { %v5769_v21 = vmax.f32 %v5761_v0, %v5767_v38  ;;  %v5770_v52 = vmax.f32 %v5762_v61, %v5768_v53  ;;  %v14595_v22 = vadd.f32 %v5027_v29, %v16502_v5  ;;  %v6311_v13 = vld [vmem:[#allocation3 + $0x3a] sm:$0xff]  ;;  %6042 = vst.msk [vmem:[#allocation4 + $0x38] sm:$0xff] %vm5558_vm1, %v6004_v12  ;;  %v6310_v48 = vld [vmem:[#allocation3 + $0x32] sm:$0xff]  ;;  %6041 = vst.msk [vmem:[#allocation4 + $0x30] sm:$0xff] %vm5558_vm1, %v6003_v41 }
 0x2fe   : > { %5588 = vst.msk [vmem:[#allocation2 + $0xe8] sm:$0xff] %vm5558_vm1, %v14594_v56  ;;  %v6540_v44 = vld [vmem:[#allocation3 + $0x33] sm:$0xff]  ;;  %v6539_v23 = vld [vmem:[#allocation3 + $0x2b] sm:$0xff]  ;;  %v5777_v6 = vld [vmem:[#allocation2 + $0xc0] sm:$0xff] }
 0x2ff   : > { %v5771_v54 = vadd.f32 %v17049_v58, %v5769_v21  ;;  %5587 = vst.msk [vmem:[#allocation2 + $0xe0] sm:$0xff] %vm5558_vm1, %v14595_v22  ;;  %v14033_v4 = vpop.f32.mrb[30].mxu0  ;;  %v5772_v3 = vadd.f32 %v17049_v58, %v5770_v52  ;;  %v6770_v57 = vld [vmem:[#allocation3 + $0x34] sm:$0xff]  ;;  %v6769_v14 = vld [vmem:[#allocation3 + $0x2c] sm:$0xff] }
 0x300   : > { %6394 = vrot.lane.b32.xlu1 %v6311_v13, %s15155_s18  ;;  %6392 = vrot.lane.b32.xlu0 %v6310_v48, %s15155_s18  ;;  %v14596_v5 = vadd.f32 %v14033_v4, %v16511_v31  ;;  %v5037_v42 = vpop.f32.mrb[31].mxu0  ;;  %v5778_v19 = vld [vmem:[#allocation2 + $0xc8] sm:$0x3f] }
 0x301   : > { %v5773_v28 = vmax.f32 %v5771_v54, 0.0  ;;  %v14597_v7 = vadd.f32 %v5037_v42, %v16514_v33  ;;  %v5774_v34 = vmax.f32 %v5772_v3, 0.0 }
 0x302   : > { %5590 = vst.msk [vmem:[#allocation2 + $0xf8] sm:$0xff] %vm5558_vm1, %v14596_v5  ;;  %v5779_v60 = vld [vmem:[#allocation2 + $0xce] sm:$0xff]  ;;  %v5780_v46 = vld [vmem:[#allocation2 + $0xd6] sm:$0x3f] }
 0x303   : > { %5775 = vst.msk [vmem:[#allocation3 + $0x42] sm:$0xff] %vm5558_vm1, %v5773_v28  ;;  %5589 = vst.msk [vmem:[#allocation2 + $0xf0] sm:$0xff] %vm5558_vm1, %v14597_v7  ;;  %v14036_v15 = vpop.f32.mrb[32].mxu0  ;;  %v5781_v27 = vmax.f32 %v5777_v6, %v5779_v60  ;;  %v5782_v50 = vmax.f32 %v5778_v19, %v5780_v46 }
 0x304   : > { %6622 = vrot.lane.b32.xlu1 %v6540_v44, %s15156_s19  ;;  %5776 = vst.msk [vmem:[#allocation3 + $0x4a] sm:$0x3f] %vm5735_vm7, %v5774_v34  ;;  %6620 = vrot.lane.b32.xlu0 %v6539_v23, %s15156_s19  ;;  %v14598_v31 = vadd.f32 %v14036_v15, %v16520_v35  ;;  %v5047_v45 = vpop.f32.mrb[33].mxu0 }
 0x305   : > { %v14599_v33 = vadd.f32 %v5047_v45, %v16523_v39  ;;  %v5784_v49 = vld [vmem:[#allocation2 + $0xe8] sm:$0x3f] }
 0x306   : > { %5592 = vst.msk [vmem:[#allocation2 + $0x108] sm:$0xff] %vm5558_vm1, %v14598_v31  ;;  %v5783_v39 = vld [vmem:[#allocation2 + $0xe0] sm:$0xff] }
 0x307   : > { %5591 = vst.msk [vmem:[#allocation2 + $0x100] sm:$0xff] %vm5558_vm1, %v14599_v33  ;;  %v14039_v25 = vpop.f32.mrb[34].mxu0 }
 0x308   : > { %6852 = vrot.lane.b32.xlu1 %v6770_v57, %s15157_s20  ;;  %6850 = vrot.lane.b32.xlu0 %v6769_v14, %s15157_s20  ;;  %v14600_v30 = vadd.f32 %v14039_v25, %v16528_v43  ;;  %v5057_v35 = vpop.f32.mrb[35].mxu0 }
 0x309   : > { %v14601_v11 = vadd.f32 %v5057_v35, %v16531_v47 }
 0x30a   : > { %v5785_v26 = vld [vmem:[#allocation2 + $0xee] sm:$0xff]  ;;  %v5786_v40 = vld [vmem:[#allocation2 + $0xf6] sm:$0x3f]  ;;  %5594 = vst.msk [vmem:[#allocation2 + $0x118] sm:$0xff] %vm5558_vm1, %v14600_v30  ;;  %v6082_v43 = vld [vmem:[#allocation3 + $0x41] sm:$0xff] }
 0x30b   : > { %v6083_v37 = vld [vmem:[#allocation3 + $0x49] sm:$0xff]  ;;  %v5787_v9 = vmax.f32 %v5783_v39, %v5785_v26  ;;  %v5788_v17 = vmax.f32 %v5784_v49, %v5786_v40  ;;  %5593 = vst.msk [vmem:[#allocation2 + $0x110] sm:$0xff] %vm5558_vm1, %v14601_v11  ;;  %v14042_v10 = vpop.f32.mrb[36].mxu0  ;;  %v6005_v62 = vld [vmem:[#allocation3 + $0x40] sm:$0xff] }
 0x30c   : > { %6168 = vrot.lane.b32.xlu1 %v6083_v37, %s15154_s17  ;;  %6166 = vrot.lane.b32.xlu0 %v6082_v43, %s15154_s17  ;;  %v14602_v8 = vadd.f32 %v14042_v10, %v16536_v51  ;;  %v5067_v47 = vpop.f32.mrb[37].mxu0  ;;  %v6006_v53 = vld [vmem:[#allocation3 + $0x48] sm:$0xff]  ;;  %6043 = vst.msk [vmem:[#allocation4 + $0x40] sm:$0xff] %vm5558_vm1, %v6005_v62  ;;  %v6541_v54 = vld [vmem:[#allocation3 + $0x3b] sm:$0xff] }
 0x30d   : > { %v5789_v0 = vmax.f32 %v5781_v27, %v5787_v9  ;;  %v5790_v61 = vmax.f32 %v5782_v50, %v5788_v17  ;;  %v14603_v38 = vadd.f32 %v5067_v47, %v16539_v55  ;;  %v6313_v2 = vld [vmem:[#allocation3 + $0x4a] sm:$0xff]  ;;  %6044 = vst.msk [vmem:[#allocation4 + $0x48] sm:$0xff] %vm5558_vm1, %v6006_v53  ;;  %v6312_v29 = vld [vmem:[#allocation3 + $0x42] sm:$0xff] }
 0x30e   : > { %5596 = vst.msk [vmem:[#allocation2 + $0x128] sm:$0xff] %vm5558_vm1, %v14602_v8  ;;  %v6542_v41 = vld [vmem:[#allocation3 + $0x43] sm:$0xff]  ;;  %v20814_v53 = vld [vmem:[#allocation8_spill] sm:$0xff] }
 0x30f   : > { %v5791_v56 = vadd.f32 %v17049_v58, %v5789_v0  ;;  %5595 = vst.msk [vmem:[#allocation2 + $0x120] sm:$0xff] %vm5558_vm1, %v14603_v38  ;;  %v14045_v51 = vpop.f32.mrb[38].mxu0  ;;  %v5792_v21 = vadd.f32 %v17049_v58, %v5790_v61  ;;  %v6772_v3 = vld [vmem:[#allocation3 + $0x44] sm:$0xff]  ;;  %v6771_v5 = vld [vmem:[#allocation3 + $0x3c] sm:$0xff] }
 0x310   : > { %6398 = vrot.lane.b32.xlu1 %v6313_v2, %s15155_s18  ;;  %6396 = vrot.lane.b32.xlu0 %v6312_v29, %s15155_s18  ;;  %v14604_v55 = vadd.f32 %v14045_v51, %v16544_v59  ;;  %v5077_v52 = vpop.f32.mrb[39].mxu0  ;;  %v5798_v28 = vld [vmem:[#allocation2 + $0x108] sm:$0x3f]  ;;  %v5797_v23 = vld [vmem:[#allocation2 + $0x100] sm:$0xff] }
 0x311   : > { %v5793_v22 = vmax.f32 %v5791_v56, 0.0  ;;  %v14605_v12 = vadd.f32 %v5077_v52, %v16547_v63  ;;  %v5794_v13 = vmax.f32 %v5792_v21, 0.0  ;;  %v20812_v17 = vld [vmem:[#allocation6_spill] sm:$0xff]  ;;  %v20815_v52 = vld [vmem:[#allocation9_spill] sm:$0xff] }
 0x312   : > { %5598 = vst.msk [vmem:[#allocation2 + $0x138] sm:$0xff] %vm5558_vm1, %v14604_v55  ;;  %v5799_v7 = vld [vmem:[#allocation2 + $0x10e] sm:$0xff]  ;;  %v5800_v34 = vld [vmem:[#allocation2 + $0x116] sm:$0x3f] }
 0x313   : > { %5795 = vst.msk [vmem:[#allocation3 + $0x52] sm:$0xff] %vm5558_vm1, %v5793_v22  ;;  %5597 = vst.msk [vmem:[#allocation2 + $0x130] sm:$0xff] %vm5558_vm1, %v14605_v12  ;;  %v14048_v48 = vpop.f32.mrb[40].mxu0  ;;  %v5801_v14 = vmax.f32 %v5797_v23, %v5799_v7  ;;  %v5802_v25 = vmax.f32 %v5798_v28, %v5800_v34 }
 0x314   : > { %6626 = vrot.lane.b32.xlu1 %v6542_v41, %s15156_s19  ;;  %5796 = vst.msk [vmem:[#allocation3 + $0x5a] sm:$0x3f] %vm5735_vm7, %v5794_v13  ;;  %6624 = vrot.lane.b32.xlu0 %v6541_v54, %s15156_s19  ;;  %v14606_v59 = vadd.f32 %v14048_v48, %v16552_v1  ;;  %v5087_v4 = vpop.f32.mrb[41].mxu0  ;;  %v20816_v48 = vld [vmem:[#allocation10_spill] sm:$0xff] }
 0x315   : > { %v14607_v63 = vadd.f32 %v5087_v4, %v16555_v16  ;;  %v5804_v15 = vld [vmem:[#allocation2 + $0x128] sm:$0x3f] }
 0x316   : > { %5600 = vst.msk [vmem:[#allocation2 + $0x148] sm:$0xff] %vm5558_vm1, %v14606_v59  ;;  %v5803_v16 = vld [vmem:[#allocation2 + $0x120] sm:$0xff] }
 0x317   : > { %5599 = vst.msk [vmem:[#allocation2 + $0x140] sm:$0xff] %vm5558_vm1, %v14607_v63  ;;  %v14051_v42 = vpop.f32.mrb[42].mxu0 }
 0x318   : > { %6856 = vrot.lane.b32.xlu1 %v6772_v3, %s15157_s20  ;;  %6854 = vrot.lane.b32.xlu0 %v6771_v5, %s15157_s20  ;;  %v14608_v44 = vadd.f32 %v14051_v42, %v16560_v18  ;;  %v5097_v1 = vpop.f32.mrb[43].mxu0 }
 0x319   : > { %v14609_v31 = vadd.f32 %v5097_v1, %v16563_v20  ;;  %v20817_v1 = vld [vmem:[#allocation11_spill] sm:$0xff] }
 0x31a   : > { %v5805_v45 = vld [vmem:[#allocation2 + $0x12e] sm:$0xff]  ;;  %v5806_v33 = vld [vmem:[#allocation2 + $0x136] sm:$0x3f]  ;;  %5602 = vst.msk [vmem:[#allocation2 + $0x158] sm:$0xff] %vm5558_vm1, %v14608_v44 }
 0x31b   : > { %v6085_v57 = vld [vmem:[#allocation3 + $0x59] sm:$0xff]  ;;  %v5807_v19 = vmax.f32 %v5803_v16, %v5805_v45  ;;  %v5808_v60 = vmax.f32 %v5804_v15, %v5806_v33  ;;  %5601 = vst.msk [vmem:[#allocation2 + $0x150] sm:$0xff] %vm5558_vm1, %v14609_v31  ;;  %v6084_v18 = vld [vmem:[#allocation3 + $0x51] sm:$0xff]  ;;  %v14054_v46 = vpop.f32.mrb[44].mxu0 }
 0x31c   : > { %6172 = vrot.lane.b32.xlu1 %v6085_v57, %s15154_s17  ;;  %6170 = vrot.lane.b32.xlu0 %v6084_v18, %s15154_s17  ;;  %v14610_v30 = vadd.f32 %v14054_v46, %v16568_v24  ;;  %v5107_v20 = vpop.f32.mrb[45].mxu0  ;;  %v6008_v39 = vld [vmem:[#allocation3 + $0x58] sm:$0xff]  ;;  %v6007_v26 = vld [vmem:[#allocation3 + $0x50] sm:$0xff] }
 0x31d   : > { %v5809_v35 = vmax.f32 %v5801_v14, %v5807_v19  ;;  %v5810_v6 = vmax.f32 %v5802_v25, %v5808_v60  ;;  %v14611_v49 = vadd.f32 %v5107_v20, %v16571_v32  ;;  %v6315_v11 = vld [vmem:[#allocation3 + $0x5a] sm:$0xff]  ;;  %6046 = vst.msk [vmem:[#allocation4 + $0x58] sm:$0xff] %vm5558_vm1, %v6008_v39  ;;  %v6314_v37 = vld [vmem:[#allocation3 + $0x52] sm:$0xff]  ;;  %6045 = vst.msk [vmem:[#allocation4 + $0x50] sm:$0xff] %vm5558_vm1, %v6007_v26 }
 0x31e   : > { %5604 = vst.msk [vmem:[#allocation2 + $0x168] sm:$0xff] %vm5558_vm1, %v14610_v30  ;;  %v6544_v8 = vld [vmem:[#allocation3 + $0x53] sm:$0xff]  ;;  %v6543_v47 = vld [vmem:[#allocation3 + $0x4b] sm:$0xff]  ;;  %v5817_v13 = vld [vmem:[#allocation2 + $0x140] sm:$0xff] }
 0x31f   : > { %v5811_v40 = vadd.f32 %v17049_v58, %v5809_v35  ;;  %5603 = vst.msk [vmem:[#allocation2 + $0x160] sm:$0xff] %vm5558_vm1, %v14611_v49  ;;  %v14057_v24 = vpop.f32.mrb[46].mxu0  ;;  %v5812_v27 = vadd.f32 %v17049_v58, %v5810_v6  ;;  %v6774_v62 = vld [vmem:[#allocation3 + $0x54] sm:$0xff]  ;;  %v6773_v56 = vld [vmem:[#allocation3 + $0x4c] sm:$0xff]  ;;  %v20820_v49 = vld [vmem:[#allocation14_spill] sm:$0xff] }
 0x320   : > { %6402 = vrot.lane.b32.xlu1 %v6315_v11, %s15155_s18  ;;  %6400 = vrot.lane.b32.xlu0 %v6314_v37, %s15155_s18  ;;  %v14612_v32 = vadd.f32 %v14057_v24, %v16576_v36  ;;  %v5117_v50 = vpop.f32.mrb[47].mxu0  ;;  %v20813_v36 = vld [vmem:[#allocation7_spill] sm:$0xff]  ;;  %v20818_v45 = vld [vmem:[#allocation12_spill] sm:$0xff]  ;;  %v20819_v30 = vld [vmem:[#allocation13_spill] sm:$0xff] }
 0x321   : > { %v5813_v9 = vmax.f32 %v5811_v40, 0.0  ;;  %v14613_v43 = vadd.f32 %v5117_v50, %v20812_v17  ;;  %v5814_v10 = vmax.f32 %v5812_v27, 0.0  ;;  %v5818_v51 = vld [vmem:[#allocation2 + $0x148] sm:$0x3f]  ;;  %v20822_v50 = vld [vmem:[#allocation16_spill] sm:$0xff] }
 0x322   : > { %5606 = vst.msk [vmem:[#allocation2 + $0x178] sm:$0xff] %vm5558_vm1, %v14612_v32  ;;  %v5819_v21 = vld [vmem:[#allocation2 + $0x14e] sm:$0xff]  ;;  %v5820_v55 = vld [vmem:[#allocation2 + $0x156] sm:$0x3f] }
 0x323   : > { %5815 = vst.msk [vmem:[#allocation3 + $0x62] sm:$0xff] %vm5558_vm1, %v5813_v9  ;;  %5605 = vst.msk [vmem:[#allocation2 + $0x170] sm:$0xff] %vm5558_vm1, %v14613_v43  ;;  %v14060_v0 = vpop.f32.mrb[48].mxu0  ;;  %v5821_v5 = vmax.f32 %v5817_v13, %v5819_v21  ;;  %v5822_v42 = vmax.f32 %v5818_v51, %v5820_v55  ;;  %v20821_v24 = vld [vmem:[#allocation15_spill] sm:$0xff] }
 0x324   : > { %6630 = vrot.lane.b32.xlu1 %v6544_v8, %s15156_s19  ;;  %5816 = vst.msk [vmem:[#allocation3 + $0x6a] sm:$0x3f] %vm5735_vm7, %v5814_v10  ;;  %6628 = vrot.lane.b32.xlu0 %v6543_v47, %s15156_s19  ;;  %v14614_v61 = vadd.f32 %v14060_v0, %v20813_v36  ;;  %v5127_v38 = vpop.f32.mrb[49].mxu0  ;;  %v20823_v36 = vld [vmem:[#allocation17_spill] sm:$0xff] }
 0x325   : > { %v14615_v2 = vadd.f32 %v5127_v38, %v20814_v53  ;;  %v5824_v41 = vld [vmem:[#allocation2 + $0x168] sm:$0x3f] }
 0x326   : > { %5608 = vst.msk [vmem:[#allocation2 + $0x188] sm:$0xff] %vm5558_vm1, %v14614_v61  ;;  %v5823_v54 = vld [vmem:[#allocation2 + $0x160] sm:$0xff] }
 0x327   : > { %5607 = vst.msk [vmem:[#allocation2 + $0x180] sm:$0xff] %vm5558_vm1, %v14615_v2  ;;  %v14063_v29 = vpop.f32.mrb[50].mxu0 }
 0x328   : > { %6860 = vrot.lane.b32.xlu1 %v6774_v62, %s15157_s20  ;;  %6858 = vrot.lane.b32.xlu0 %v6773_v56, %s15157_s20  ;;  %v14616_v22 = vadd.f32 %v14063_v29, %v20815_v52  ;;  %v5137_v12 = vpop.f32.mrb[51].mxu0  ;;  %v20824_v56 = vld [vmem:[#allocation18_spill] sm:$0xff] }
 0x329   : > { %v14617_v59 = vadd.f32 %v5137_v12, %v20816_v48  ;;  %v20825_v48 = vld [vmem:[#allocation19_spill] sm:$0xff] }
 0x32a   : > { %v5825_v4 = vld [vmem:[#allocation2 + $0x16e] sm:$0xff]  ;;  %v5826_v63 = vld [vmem:[#allocation2 + $0x176] sm:$0x3f]  ;;  %5610 = vst.msk [vmem:[#allocation2 + $0x198] sm:$0xff] %vm5558_vm1, %v14616_v22  ;;  %v6086_v34 = vld [vmem:[#allocation3 + $0x61] sm:$0xff] }
 0x32b   : > { %v6087_v3 = vld [vmem:[#allocation3 + $0x69] sm:$0xff]  ;;  %v5827_v28 = vmax.f32 %v5823_v54, %v5825_v4  ;;  %v5828_v7 = vmax.f32 %v5824_v41, %v5826_v63  ;;  %5609 = vst.msk [vmem:[#allocation2 + $0x190] sm:$0xff] %vm5558_vm1, %v14617_v59  ;;  %v14066_v44 = vpop.f32.mrb[52].mxu0  ;;  %v6009_v25 = vld [vmem:[#allocation3 + $0x60] sm:$0xff] }
 0x32c   : > { %6176 = vrot.lane.b32.xlu1 %v6087_v3, %s15154_s17  ;;  %6174 = vrot.lane.b32.xlu0 %v6086_v34, %s15154_s17  ;;  %v14618_v23 = vadd.f32 %v14066_v44, %v20817_v1  ;;  %v5147_v15 = vpop.f32.mrb[53].mxu0  ;;  %v6010_v57 = vld [vmem:[#allocation3 + $0x68] sm:$0xff]  ;;  %6047 = vst.msk [vmem:[#allocation4 + $0x60] sm:$0xff] %vm5558_vm1, %v6009_v25  ;;  %v6545_v40 = vld [vmem:[#allocation3 + $0x5b] sm:$0xff] }
 0x32d   : > { %v5829_v16 = vmax.f32 %v5821_v5, %v5827_v28  ;;  %v5830_v31 = vmax.f32 %v5822_v42, %v5828_v7  ;;  %v14619_v33 = vadd.f32 %v5147_v15, %v20818_v45  ;;  %v6317_v14 = vld [vmem:[#allocation3 + $0x6a] sm:$0xff]  ;;  %6048 = vst.msk [vmem:[#allocation4 + $0x68] sm:$0xff] %vm5558_vm1, %v6010_v57  ;;  %v6316_v60 = vld [vmem:[#allocation3 + $0x62] sm:$0xff] }
 0x32e   : > { %5612 = vst.msk [vmem:[#allocation2 + $0x1a8] sm:$0xff] %vm5558_vm1, %v14618_v23  ;;  %v6546_v26 = vld [vmem:[#allocation3 + $0x63] sm:$0xff]  ;;  %v20826_v5 = vld [vmem:[#allocation20_spill] sm:$0xff] }
 0x32f   : > { %v5831_v19 = vadd.f32 %v17049_v58, %v5829_v16  ;;  %5611 = vst.msk [vmem:[#allocation2 + $0x1a0] sm:$0xff] %vm5558_vm1, %v14619_v33  ;;  %v14069_v18 = vpop.f32.mrb[54].mxu0  ;;  %v5832_v46 = vadd.f32 %v17049_v58, %v5830_v31  ;;  %v6776_v17 = vld [vmem:[#allocation3 + $0x64] sm:$0xff]  ;;  %v6775_v43 = vld [vmem:[#allocation3 + $0x5c] sm:$0xff] }
 0x330   : > { %6406 = vrot.lane.b32.xlu1 %v6317_v14, %s15155_s18  ;;  %6404 = vrot.lane.b32.xlu0 %v6316_v60, %s15155_s18  ;;  %v14620_v20 = vadd.f32 %v14069_v18, %v20819_v30  ;;  %v5157_v35 = vpop.f32.mrb[55].mxu0  ;;  %v5838_v8 = vld [vmem:[#allocation2 + $0x188] sm:$0x3f]  ;;  %v5837_v53 = vld [vmem:[#allocation2 + $0x180] sm:$0xff]  ;;  %v20827_v16 = vld [vmem:[#allocation21_spill] sm:$0xff] }
 0x331   : > { %v5833_v6 = vmax.f32 %v5831_v19, 0.0  ;;  %v14621_v39 = vadd.f32 %v5157_v35, %v20820_v49  ;;  %v5834_v11 = vmax.f32 %v5832_v46, 0.0  ;;  %v20828_v57 = vld [vmem:[#allocation22_spill] sm:$0xff]  ;;  %v20829_v18 = vld [vmem:[#allocation23_spill] sm:$0xff] }
 0x332   : > { %5614 = vst.msk [vmem:[#allocation2 + $0x1b8] sm:$0xff] %vm5558_vm1, %v14620_v20  ;;  %v5839_v47 = vld [vmem:[#allocation2 + $0x18e] sm:$0xff]  ;;  %v5840_v0 = vld [vmem:[#allocation2 + $0x196] sm:$0x3f] }
 0x333   : > { %5835 = vst.msk [vmem:[#allocation3 + $0x72] sm:$0xff] %vm5558_vm1, %v5833_v6  ;;  %5613 = vst.msk [vmem:[#allocation2 + $0x1b0] sm:$0xff] %vm5558_vm1, %v14621_v39  ;;  %v14072_v37 = vpop.f32.mrb[56].mxu0  ;;  %v5841_v52 = vmax.f32 %v5837_v53, %v5839_v47  ;;  %v5842_v22 = vmax.f32 %v5838_v8, %v5840_v0  ;;  %v20830_v20 = vld [vmem:[#allocation24_spill] sm:$0xff] }
 0x334   : > { %6634 = vrot.lane.b32.xlu1 %v6546_v26, %s15156_s19  ;;  %5836 = vst.msk [vmem:[#allocation3 + $0x7a] sm:$0x3f] %vm5735_vm7, %v5834_v11  ;;  %6632 = vrot.lane.b32.xlu0 %v6545_v40, %s15156_s19  ;;  %v14622_v27 = vadd.f32 %v14072_v37, %v20821_v24  ;;  %v5167_v32 = vpop.f32.mrb[57].mxu0  ;;  %v20831_v40 = vld [vmem:[#allocation25_spill] sm:$0xff] }
 0x335   : > { %v14623_v9 = vadd.f32 %v5167_v32, %v20822_v50  ;;  %v5844_v2 = vld [vmem:[#allocation2 + $0x1a8] sm:$0x3f] }
 0x336   : > { %5616 = vst.msk [vmem:[#allocation2 + $0x1c8] sm:$0xff] %vm5558_vm1, %v14622_v27  ;;  %v5843_v62 = vld [vmem:[#allocation2 + $0x1a0] sm:$0xff] }
 0x337   : > { %5615 = vst.msk [vmem:[#allocation2 + $0x1c0] sm:$0xff] %vm5558_vm1, %v14623_v9  ;;  %v14075_v10 = vpop.f32.mrb[58].mxu0  ;;  %v20832_v9 = vld [vmem:[#allocation26_spill] sm:$0xff] }
 0x338   : > { %6864 = vrot.lane.b32.xlu1 %v6776_v17, %s15157_s20  ;;  %6862 = vrot.lane.b32.xlu0 %v6775_v43, %s15157_s20  ;;  %v14624_v61 = vadd.f32 %v14075_v10, %v20823_v36  ;;  %v5177_v38 = vpop.f32.mrb[59].mxu0 }
 0x339   : > { %v14625_v29 = vadd.f32 %v5177_v38, %v20824_v56 }
 0x33a   : > { %v5845_v51 = vld [vmem:[#allocation2 + $0x1ae] sm:$0xff]  ;;  %v5846_v21 = vld [vmem:[#allocation2 + $0x1b6] sm:$0x3f]  ;;  %5618 = vst.msk [vmem:[#allocation2 + $0x1d8] sm:$0xff] %vm5558_vm1, %v14624_v61 }
 0x33b   : > { %v6089_v55 = vld [vmem:[#allocation3 + $0x79] sm:$0xff]  ;;  %v5847_v12 = vmax.f32 %v5843_v62, %v5845_v51  ;;  %v5848_v13 = vmax.f32 %v5844_v2, %v5846_v21  ;;  %5617 = vst.msk [vmem:[#allocation2 + $0x1d0] sm:$0xff] %vm5558_vm1, %v14625_v29  ;;  %v6088_v41 = vld [vmem:[#allocation3 + $0x71] sm:$0xff]  ;;  %v14078_v54 = vpop.f32.mrb[60].mxu0  ;;  %v20833_v2 = vld [vmem:[#allocation27_spill] sm:$0xff] }
 0x33c   : > { %6180 = vrot.lane.b32.xlu1 %v6089_v55, %s15154_s17  ;;  %6178 = vrot.lane.b32.xlu0 %v6088_v41, %s15154_s17  ;;  %v14626_v59 = vadd.f32 %v14078_v54, %v20825_v48  ;;  %v5187_v4 = vpop.f32.mrb[61].mxu0  ;;  %v6012_v28 = vld [vmem:[#allocation3 + $0x78] sm:$0xff]  ;;  %v6011_v34 = vld [vmem:[#allocation3 + $0x70] sm:$0xff] }
 0x33d   : > { %v5849_v63 = vmax.f32 %v5841_v52, %v5847_v12  ;;  %v5850_v3 = vmax.f32 %v5842_v22, %v5848_v13  ;;  %v14627_v42 = vadd.f32 %v5187_v4, %v20826_v5  ;;  %v6319_v7 = vld [vmem:[#allocation3 + $0x7a] sm:$0xff]  ;;  %6050 = vst.msk [vmem:[#allocation4 + $0x78] sm:$0xff] %vm5558_vm1, %v6012_v28  ;;  %v6318_v1 = vld [vmem:[#allocation3 + $0x72] sm:$0xff]  ;;  %6049 = vst.msk [vmem:[#allocation4 + $0x70] sm:$0xff] %vm5558_vm1, %v6011_v34 }
 0x33e   : > { %5620 = vst.msk [vmem:[#allocation2 + $0x1e8] sm:$0xff] %vm5558_vm1, %v14626_v59  ;;  %v6547_v19 = vld [vmem:[#allocation3 + $0x6b] sm:$0xff]  ;;  %v5857_v27 = vld [vmem:[#allocation2 + $0x1c0] sm:$0xff]  ;;  %v6548_v38 = vld [vmem:[#allocation3 + $0x73] sm:$0xff] }
 0x33f   : > { %v5851_v44 = vadd.f32 %v17049_v58, %v5849_v63  ;;  %5619 = vst.msk [vmem:[#allocation2 + $0x1e0] sm:$0xff] %vm5558_vm1, %v14627_v42  ;;  %v14081_v23 = vpop.f32.mrb[62].mxu0  ;;  %v5852_v15 = vadd.f32 %v17049_v58, %v5850_v3  ;;  %v6777_v6 = vld [vmem:[#allocation3 + $0x6c] sm:$0xff]  ;;  %v6778_v41 = vld [vmem:[#allocation3 + $0x74] sm:$0xff]  ;;  %v20836_v5 = vld [vmem:[#allocation30_spill] sm:$0xff] }
 0x340   : > { %6410 = vrot.lane.b32.xlu1 %v6319_v7, %s15155_s18  ;;  %6408 = vrot.lane.b32.xlu0 %v6318_v1, %s15155_s18  ;;  %v14628_v31 = vadd.f32 %v14081_v23, %v20827_v16  ;;  %v5197_v45 = vpop.f32.mrb[63].mxu0  ;;  %v5858_v39 = vld [vmem:[#allocation2 + $0x1c8] sm:$0x3f]  ;;  %v20834_v21 = vld [vmem:[#allocation28_spill] sm:$0xff]  ;;  %v20835_v59 = vld [vmem:[#allocation29_spill] sm:$0xff] }
 0x341   : > { %v5853_v33 = vmax.f32 %v5851_v44, 0.0  ;;  %v14629_v14 = vadd.f32 %v5197_v45, %v20828_v57  ;;  %v5854_v25 = vmax.f32 %v5852_v15, 0.0  ;;  %v20837_v44 = vld [vmem:[#allocation31_spill] sm:$0xff]  ;;  %v20838_v15 = vld [vmem:[#allocation32_spill] sm:$0xff] }
 0x342   : > { %5622 = vst.msk [vmem:[#allocation2 + $0x1f8] sm:$0xff] %vm5558_vm1, %v14628_v31  ;;  %v5859_v11 = vld [vmem:[#allocation2 + $0x1ce] sm:$0xff]  ;;  %v5860_v26 = vld [vmem:[#allocation2 + $0x1d6] sm:$0x3f] }
 0x343   : > { %5855 = vst.msk [vmem:[#allocation3 + $0x82] sm:$0xff] %vm5558_vm1, %v5853_v33  ;;  %5621 = vst.msk [vmem:[#allocation2 + $0x1f0] sm:$0xff] %vm5558_vm1, %v14629_v14  ;;  %v14084_v60 = vpop.f32.mrb[64].mxu0  ;;  %v5861_v47 = vmax.f32 %v5857_v27, %v5859_v11  ;;  %v5862_v0 = vmax.f32 %v5858_v39, %v5860_v26 }
 0x344   : > { %5856 = vst.msk [vmem:[#allocation3 + $0x8a] sm:$0x3f] %vm5735_vm7, %v5854_v25  ;;  %6636 = vrot.lane.b32.xlu0 %v6547_v19, %s15156_s19  ;;  %v14630_v46 = vadd.f32 %v14084_v60, %v20829_v18  ;;  %v5207_v30 = vpop.f32.mrb[65].mxu0  ;;  %v20839_v19 = vld [vmem:[#allocation33_spill] sm:$0xff] }
 0x345   : > { %v14631_v35 = vadd.f32 %v5207_v30, %v20830_v20  ;;  %v5864_v32 = vld [vmem:[#allocation2 + $0x1e8] sm:$0x3f] }
 0x346   : > { %5624 = vst.msk [vmem:[#allocation2 + $0x208] sm:$0xff] %vm5558_vm1, %v14630_v46  ;;  %v5863_v50 = vld [vmem:[#allocation2 + $0x1e0] sm:$0xff] }
 0x347   : > { %5623 = vst.msk [vmem:[#allocation2 + $0x200] sm:$0xff] %vm5558_vm1, %v14631_v35  ;;  %v14087_v49 = vpop.f32.mrb[66].mxu0  ;;  %v20840_v35 = vld [vmem:[#allocation34_spill] sm:$0xff] }
 0x348   : > { %6866 = vrot.lane.b32.xlu0 %v6777_v6, %s15157_s20  ;;  %v14632_v37 = vadd.f32 %v14087_v49, %v20831_v40  ;;  %v5217_v24 = vpop.f32.mrb[67].mxu0 }
 0x349   : > { %v14633_v17 = vadd.f32 %v5217_v24, %v20832_v9 }
 0x34a   : > { %v5865_v43 = vld [vmem:[#allocation2 + $0x1ee] sm:$0xff]  ;;  %v5866_v10 = vld [vmem:[#allocation2 + $0x1f6] sm:$0x3f]  ;;  %5626 = vst.msk [vmem:[#allocation2 + $0x218] sm:$0xff] %vm5558_vm1, %v14632_v37  ;;  %v6013_v12 = vld [vmem:[#allocation3 + $0x80] sm:$0xff] }
 0x34b   : > { %v6091_v8 = vld [vmem:[#allocation3 + $0x89] sm:$0xff]  ;;  %v5867_v36 = vmax.f32 %v5863_v50, %v5865_v43  ;;  %v5868_v61 = vmax.f32 %v5864_v32, %v5866_v10  ;;  %5625 = vst.msk [vmem:[#allocation2 + $0x210] sm:$0xff] %vm5558_vm1, %v14633_v17  ;;  %v14090_v53 = vpop.f32.mrb[68].mxu0  ;;  %v6549_v22 = vld [vmem:[#allocation3 + $0x7b] sm:$0xff]  ;;  %6051 = vst.msk [vmem:[#allocation4 + $0x80] sm:$0xff] %vm5558_vm1, %v6013_v12 }
 0x34c   : > { %6184 = vrot.lane.b32.xlu1 %v6091_v8, %s15154_s17  ;;  %6638 = vrot.lane.b32.xlu0 %v6548_v38, %s15156_s19  ;;  %v14634_v62 = vadd.f32 %v14090_v53, %v20833_v2  ;;  %v5227_v56 = vpop.f32.mrb[69].mxu0  ;;  %v6014_v52 = vld [vmem:[#allocation3 + $0x88] sm:$0xff]  ;;  %v6779_v7 = vld [vmem:[#allocation3 + $0x7c] sm:$0xff]  ;;  %v20842_v8 = vld [vmem:[#allocation36_spill] sm:$0xff] }
 0x34d   : > { %v5869_v29 = vmax.f32 %v5861_v47, %v5867_v36  ;;  %v5870_v51 = vmax.f32 %v5862_v0, %v5868_v61  ;;  %v14635_v55 = vadd.f32 %v5227_v56, %v20834_v21  ;;  %6052 = vst.msk [vmem:[#allocation4 + $0x88] sm:$0xff] %vm5558_vm1, %v6014_v52  ;;  %v6321_v31 = vld [vmem:[#allocation3 + $0x8a] sm:$0xff]  ;;  %v6320_v45 = vld [vmem:[#allocation3 + $0x82] sm:$0xff]  ;;  %v17313_v2 = vld [vmem:[%s20560_s2] ss:$0 sm:$0xff] }
 0x34e   : > { %5628 = vst.msk [vmem:[#allocation2 + $0x228] sm:$0xff] %vm5558_vm1, %v14634_v62  ;;  %v5878_v57 = vld [vmem:[#allocation2 + $0x208] sm:$0x3f]  ;;  %v5877_v46 = vld [vmem:[#allocation2 + $0x200] sm:$0xff]  ;;  %v20843_v21 = vld [vmem:[#allocation37_spill] sm:$0xff] }
 0x34f   : > { %v5871_v13 = vadd.f32 %v17049_v58, %v5869_v29  ;;  %5627 = vst.msk [vmem:[#allocation2 + $0x220] sm:$0xff] %vm5558_vm1, %v14635_v55  ;;  %v14093_v54 = vpop.f32.mrb[70].mxu0  ;;  %v5872_v48 = vadd.f32 %v17049_v58, %v5870_v51  ;;  %v6090_v58 = vld [vmem:[#allocation3 + $0x81] sm:$0xff] }
 0x350   : > { %6640 = vrot.lane.b32.xlu1 %v6549_v22, %s15156_s19  ;;  %6868 = vrot.lane.b32.xlu0 %v6778_v41, %s15157_s20  ;;  %v14636_v4 = vadd.f32 %v14093_v54, %v20835_v59  ;;  %v5237_v63 = vpop.f32.mrb[71].mxu0  ;;  %v6550_v27 = vld [vmem:[#allocation3 + $0x83] sm:$0xff] }
 0x351   : > { %v5873_v3 = vmax.f32 %v5871_v13, 0.0  ;;  %v14637_v42 = vadd.f32 %v5237_v63, %v20836_v5  ;;  %v5874_v28 = vmax.f32 %v5872_v48, 0.0  ;;  %v20841_v50 = vld [vmem:[#allocation35_spill] sm:$0xff]  ;;  %v20844_v12 = vld [vmem:[#allocation38_spill] sm:$0xff] }
 0x352   : > { %5630 = vst.msk [vmem:[#allocation2 + $0x238] sm:$0xff] %vm5558_vm1, %v14636_v4  ;;  %v5879_v14 = vld [vmem:[#allocation2 + $0x20e] sm:$0xff]  ;;  %v5880_v25 = vld [vmem:[#allocation2 + $0x216] sm:$0x3f]  ;;  %v6780_v29 = vld [vmem:[#allocation3 + $0x84] sm:$0xff] }
 0x353   : > { %5875 = vst.msk [vmem:[#allocation3 + $0x92] sm:$0xff] %vm5558_vm1, %v5873_v3  ;;  %5629 = vst.msk [vmem:[#allocation2 + $0x230] sm:$0xff] %vm5558_vm1, %v14637_v42  ;;  %v14096_v34 = vpop.f32.mrb[72].mxu0  ;;  %v5881_v26 = vmax.f32 %v5877_v46, %v5879_v14  ;;  %v5882_v40 = vmax.f32 %v5878_v57, %v5880_v25  ;;  %v20845_v3 = vld [vmem:[#allocation39_spill] sm:$0xff] }
 0x354   : > { %6870 = vrot.lane.b32.xlu1 %v6779_v7, %s15157_s20  ;;  %5876 = vst.msk [vmem:[#allocation3 + $0x9a] sm:$0x3f] %vm5735_vm7, %v5874_v28  ;;  %6182 = vrot.lane.b32.xlu0 %v6090_v58, %s15154_s17  ;;  %v14638_v1 = vadd.f32 %v14096_v34, %v20837_v44  ;;  %v5247_v23 = vpop.f32.mrb[73].mxu0  ;;  %v20846_v28 = vld [vmem:[#allocation40_spill] sm:$0xff] }
 0x355   : > { %v14639_v16 = vadd.f32 %v5247_v23, %v20838_v15  ;;  %v5884_v30 = vld [vmem:[#allocation2 + $0x228] sm:$0x3f] }
 0x356   : > { %5632 = vst.msk [vmem:[#allocation2 + $0x248] sm:$0xff] %vm5558_vm1, %v14638_v1  ;;  %v5883_v20 = vld [vmem:[#allocation2 + $0x220] sm:$0xff] }
 0x357   : > { %5631 = vst.msk [vmem:[#allocation2 + $0x240] sm:$0xff] %vm5558_vm1, %v14639_v16  ;;  %v14099_v33 = vpop.f32.mrb[74].mxu0 }
 0x358   : > { %6414 = vrot.lane.b32.xlu1 %v6321_v31, %s15155_s18  ;;  %6412 = vrot.lane.b32.xlu0 %v6320_v45, %s15155_s18  ;;  %v14640_v60 = vadd.f32 %v14099_v33, %v20839_v19  ;;  %v5257_v18 = vpop.f32.mrb[75].mxu0  ;;  %v20847_v45 = vld [vmem:[#allocation41_spill] sm:$0xff] }
 0x359   : > { %v14641_v6 = vadd.f32 %v5257_v18, %v20840_v35 }
 0x35a   : > { %v5885_v49 = vld [vmem:[#allocation2 + $0x22e] sm:$0xff]  ;;  %v5886_v39 = vld [vmem:[#allocation2 + $0x236] sm:$0x3f]  ;;  %5634 = vst.msk [vmem:[#allocation2 + $0x258] sm:$0xff] %vm5558_vm1, %v14640_v60  ;;  %v20848_v60 = vld [vmem:[#allocation42_spill] sm:$0xff] }
 0x35b   : > { %v6093_v11 = vld [vmem:[#allocation3 + $0x99] sm:$0xff]  ;;  %v5887_v37 = vmax.f32 %v5883_v20, %v5885_v49  ;;  %v5888_v24 = vmax.f32 %v5884_v30, %v5886_v39  ;;  %5633 = vst.msk [vmem:[#allocation2 + $0x250] sm:$0xff] %vm5558_vm1, %v14641_v6  ;;  %v14102_v32 = vpop.f32.mrb[76].mxu0  ;;  %v6551_v38 = vld [vmem:[#allocation3 + $0x8b] sm:$0xff] }
 0x35c   : > { %6188 = vrot.lane.b32.xlu1 %v6093_v11, %s15154_s17  ;;  %6642 = vrot.lane.b32.xlu0 %v6550_v27, %s15156_s19  ;;  %v14642_v9 = vadd.f32 %v14102_v32, %v20841_v50  ;;  %v5267_v17 = vpop.f32.mrb[77].mxu0  ;;  %v6016_v36 = vld [vmem:[#allocation3 + $0x98] sm:$0xff]  ;;  %v6015_v53 = vld [vmem:[#allocation3 + $0x90] sm:$0xff] }
 0x35d   : > { %v5889_v43 = vmax.f32 %v5881_v26, %v5887_v37  ;;  %v5890_v10 = vmax.f32 %v5882_v40, %v5888_v24  ;;  %v14643_v47 = vadd.f32 %v5267_v17, %v20842_v8  ;;  %v6159_v61 = vpop.permute.xlu0 %6158  ;;  %6054 = vst.msk [vmem:[#allocation4 + $0x98] sm:$0xff] %vm5558_vm1, %v6016_v36  ;;  %6053 = vst.msk [vmem:[#allocation4 + $0x90] sm:$0xff] %vm5558_vm1, %v6015_v53  ;;  %v6781_v59 = vld [vmem:[#allocation3 + $0x8c] sm:$0xff]  ;;  %v6323_v44 = vld [vmem:[#allocation3 + $0x9a] sm:$0xff] }
 0x35e   : > { %v6161_v0 = vpop.permute.xlu1 %6160  ;;  %5636 = vst.msk [vmem:[#allocation2 + $0x268] sm:$0xff] %vm5558_vm1, %v14642_v9  ;;  %v6092_v4 = vld [vmem:[#allocation3 + $0x91] sm:$0xff]  ;;  %v5898_v15 = vld [vmem:[#allocation2 + $0x248] sm:$0x3f]  ;;  %v5897_v14 = vld [vmem:[#allocation2 + $0x240] sm:$0xff] }
 0x35f   : > { %6270 = vst.msk [vmem:[#allocation4 + $0x28] sm:$0xff] %vm6264_vm2, %v6161_v0  ;;  %v5891_v62 = vadd.f32 %v17313_v2, %v5889_v43  ;;  %v5892_v56 = vadd.f32 %v17313_v2, %v5890_v10  ;;  %6269 = vst.msk [vmem:[#allocation4 + $0x20] sm:$0xff] %vm6264_vm2, %v6159_v61  ;;  %v14105_v51 = vpop.f32.mrb[78].mxu0  ;;  %v6322_v1 = vld [vmem:[#allocation3 + $0x92] sm:$0xff]  ;;  %v20849_v24 = vld [vmem:[#allocation43_spill] sm:$0xff] }
 0x360   : > { %5635 = vst.msk [vmem:[#allocation2 + $0x260] sm:$0xff] %vm5558_vm1, %v14643_v47  ;;  %6644 = vrot.lane.b32.xlu1 %v6551_v38, %s15156_s19  ;;  %6872 = vrot.lane.b32.xlu0 %v6780_v29, %s15157_s20  ;;  %v14644_v55 = vadd.f32 %v14105_v51, %v20843_v21  ;;  %v5277_v52 = vpop.f32.mrb[79].mxu0  ;;  %v6552_v40 = vld [vmem:[#allocation3 + $0x93] sm:$0xff] }
 0x361   : > { %v5893_v22 = vmax.f32 %v5891_v62, 0.0  ;;  %v14645_v13 = vadd.f32 %v5277_v52, %v20844_v12  ;;  %v5894_v54 = vmax.f32 %v5892_v56, 0.0  ;;  %v6389_v48 = vpop.permute.xlu0 %6388  ;;  %v20850_v17 = vld [vmem:[#allocation44_spill] sm:$0xff]  ;;  %v20851_v56 = vld [vmem:[#allocation45_spill] sm:$0xff] }
 0x362   : > { %v6391_v41 = vpop.permute.xlu1 %6390  ;;  %5638 = vst.msk [vmem:[#allocation2 + $0x278] sm:$0xff] %vm5558_vm1, %v14644_v55  ;;  %v5899_v16 = vld [vmem:[#allocation2 + $0x24e] sm:$0xff]  ;;  %v5900_v31 = vld [vmem:[#allocation2 + $0x256] sm:$0x3f]  ;;  %v20852_v55 = vld [vmem:[#allocation46_spill] sm:$0xff] }
 0x363   : > { %6500 = vst.msk [vmem:[#allocation4 + $0x28] sm:$0xff] %vm6494_vm3, %v6391_v41  ;;  %6499 = vst.msk [vmem:[#allocation4 + $0x20] sm:$0xff] %vm6494_vm3, %v6389_v48  ;;  %v14108_v63 = vpop.f32.mrb[80].mxu0  ;;  %v5901_v49 = vmax.f32 %v5897_v14, %v5899_v16  ;;  %v5902_v39 = vmax.f32 %v5898_v15, %v5900_v31  ;;  %v6782_v53 = vld [vmem:[#allocation3 + $0x94] sm:$0xff] }
 0x364   : > { %5895 = vst.msk [vmem:[#allocation3 + $0xa2] sm:$0xff] %vm5558_vm1, %v5893_v22  ;;  %5637 = vst.msk [vmem:[#allocation2 + $0x270] sm:$0xff] %vm5558_vm1, %v14645_v13  ;;  %6874 = vrot.lane.b32.xlu1 %v6781_v59, %s15157_s20  ;;  %6186 = vrot.lane.b32.xlu0 %v6092_v4, %s15154_s17  ;;  %v14646_v5 = vadd.f32 %v14108_v63, %v20845_v3  ;;  %v5287_v42 = vpop.f32.mrb[81].mxu0  ;;  %v20853_v63 = vld [vmem:[#allocation47_spill] sm:$0xff]  ;;  %v20855_v31 = vld [vmem:[#allocation49_spill] sm:$0xff] }
 0x365   : > { %5896 = vst.msk [vmem:[#allocation3 + $0xaa] sm:$0x3f] %vm5735_vm7, %v5894_v54  ;;  %v14647_v7 = vadd.f32 %v5287_v42, %v20846_v28  ;;  %v6617_v34 = vpop.permute.xlu0 %6616  ;;  %v5904_v25 = vld [vmem:[#allocation2 + $0x268] sm:$0x3f]  ;;  %v20854_v42 = vld [vmem:[#allocation48_spill] sm:$0xff] }
 0x366   : > { %v6619_v58 = vpop.permute.xlu1 %6618  ;;  %5640 = vst.msk [vmem:[#allocation2 + $0x288] sm:$0xff] %vm5558_vm1, %v14646_v5 }
 0x367   : > { %6729 = vst.msk [vmem:[#allocation4 + $0x20] sm:$0xff] %vm6724_vm4, %v6619_v58  ;;  %6728 = vst.msk [vmem:[#allocation4 + $0x18] sm:$0xff] %vm6724_vm4, %v6617_v34  ;;  %v14111_v23 = vpop.f32.mrb[82].mxu0  ;;  %v5903_v19 = vld [vmem:[#allocation2 + $0x260] sm:$0xff] }
 0x368   : > { %5639 = vst.msk [vmem:[#allocation2 + $0x280] sm:$0xff] %vm5558_vm1, %v14647_v7  ;;  %6418 = vrot.lane.b32.xlu1 %v6323_v44, %s15155_s18  ;;  %6416 = vrot.lane.b32.xlu0 %v6322_v1, %s15155_s18  ;;  %v14648_v33 = vadd.f32 %v14111_v23, %v20847_v45  ;;  %v5297_v57 = vpop.f32.mrb[83].mxu0 }
 0x369   : > { %v14649_v18 = vadd.f32 %v5297_v57, %v20848_v60  ;;  %v6847_v35 = vpop.permute.xlu0 %6846 }
 0x36a   : > { %v6849_v46 = vpop.permute.xlu1 %6848  ;;  %5642 = vst.msk [vmem:[#allocation2 + $0x298] sm:$0xff] %vm5558_vm1, %v14648_v33 }
 0x36b   : > { %v5905_v30 = vld [vmem:[#allocation2 + $0x26e] sm:$0xff]  ;;  %v5906_v20 = vld [vmem:[#allocation2 + $0x276] sm:$0x3f]  ;;  %6959 = vst.msk [vmem:[#allocation4 + $0x20] sm:$0xff] %vm6954_vm5, %v6849_v46  ;;  %6958 = vst.msk [vmem:[#allocation4 + $0x18] sm:$0xff] %vm6954_vm5, %v6847_v35  ;;  %v14114_v37 = vpop.f32.mrb[84].mxu0 }
 0x36c   : > { %v6095_v6 = vld [vmem:[#allocation3 + $0xa9] sm:$0xff]  ;;  %v5907_v11 = vmax.f32 %v5903_v19, %v5905_v30  ;;  %v5908_v26 = vmax.f32 %v5904_v25, %v5906_v20  ;;  %5641 = vst.msk [vmem:[#allocation2 + $0x290] sm:$0xff] %vm5558_vm1, %v14649_v18  ;;  %6646 = vrot.lane.b32.xlu0 %v6552_v40, %s15156_s19  ;;  %v14650_v27 = vadd.f32 %v14114_v37, %v20849_v24  ;;  %v5307_v32 = vpop.f32.mrb[85].mxu0  ;;  %v6553_v0 = vld [vmem:[#allocation3 + $0x9b] sm:$0xff] }
 0x36d   : > { %6192 = vrot.lane.b32.xlu1 %v6095_v6, %s15154_s17  ;;  %v14651_v43 = vadd.f32 %v5307_v32, %v20850_v17  ;;  %v6018_v8 = vld [vmem:[#allocation3 + $0xa8] sm:$0xff]  ;;  %v6017_v36 = vld [vmem:[#allocation3 + $0xa0] sm:$0xff] }
 0x36e   : > { %v5909_v50 = vmax.f32 %v5901_v49, %v5907_v11  ;;  %v5910_v9 = vmax.f32 %v5902_v39, %v5908_v26  ;;  %v6165_v10 = vpop.permute.xlu1 %6164  ;;  %5644 = vst.msk [vmem:[#allocation2 + $0x2a8] sm:$0xff] %vm5558_vm1, %v14650_v27  ;;  %v6163_v47 = vpop.permute.xlu0 %6162  ;;  %6056 = vst.msk [vmem:[#allocation4 + $0xa8] sm:$0xff] %vm5558_vm1, %v6018_v8  ;;  %v6783_v48 = vld [vmem:[#allocation3 + $0x9c] sm:$0xff]  ;;  %v6325_v34 = vld [vmem:[#allocation3 + $0xaa] sm:$0xff] }
 0x36f   : > { %6272 = vst.msk [vmem:[#allocation4 + $0x38] sm:$0xff] %vm6264_vm2, %v6165_v10  ;;  %6271 = vst.msk [vmem:[#allocation4 + $0x30] sm:$0xff] %vm6264_vm2, %v6163_v47  ;;  %v14117_v62 = vpop.f32.mrb[86].mxu0  ;;  %v6094_v59 = vld [vmem:[#allocation3 + $0xa1] sm:$0xff] }
 0x370   : > { %v5911_v61 = vadd.f32 %v17313_v2, %v5909_v50  ;;  %v5912_v38 = vadd.f32 %v17313_v2, %v5910_v9  ;;  %5643 = vst.msk [vmem:[#allocation2 + $0x2a0] sm:$0xff] %vm5558_vm1, %v14651_v43  ;;  %6055 = vst.msk [vmem:[#allocation4 + $0xa0] sm:$0xff] %vm5558_vm1, %v6017_v36  ;;  %6876 = vrot.lane.b32.xlu0 %v6782_v53, %s15157_s20  ;;  %v14652_v29 = vadd.f32 %v14117_v62, %v20851_v56  ;;  %v5317_v51 = vpop.f32.mrb[87].mxu0  ;;  %v6324_v44 = vld [vmem:[#allocation3 + $0xa2] sm:$0xff]  ;;  %v20858_v9 = vld [vmem:[#allocation52_spill] sm:$0xff] }
 0x371   : > { %6648 = vrot.lane.b32.xlu1 %v6553_v0, %s15156_s19  ;;  %v14653_v52 = vadd.f32 %v5317_v51, %v20852_v55  ;;  %v5918_v23 = vld [vmem:[#allocation2 + $0x288] sm:$0x3f]  ;;  %v5917_v57 = vld [vmem:[#allocation2 + $0x280] sm:$0xff]  ;;  %v20859_v62 = vld [vmem:[#allocation53_spill] sm:$0xff] }
 0x372   : > { %v5913_v21 = vmax.f32 %v5911_v61, 0.0  ;;  %v6395_v22 = vpop.permute.xlu1 %6394  ;;  %v6998_v12 = vld [vmem:[#allocation4 + $0x20] sm:$0xff]  ;;  %v5914_v13 = vmax.f32 %v5912_v38, 0.0  ;;  %5646 = vst.msk [vmem:[#allocation2 + $0x2b8] sm:$0xff] %vm5558_vm1, %v14652_v29  ;;  %v6393_v41 = vpop.permute.xlu0 %6392  ;;  %v6997_v54 = vld [vmem:[#allocation4 + $0x18] sm:$0xff]  ;;  %v20856_v19 = vld [vmem:[#allocation50_spill] sm:$0xff] }
 0x373   : > { %6502 = vst.msk [vmem:[#allocation4 + $0x38] sm:$0xff] %vm6494_vm3, %v6395_v22  ;;  %6501 = vst.msk [vmem:[#allocation4 + $0x30] sm:$0xff] %vm6494_vm3, %v6393_v41  ;;  %14175 = vmatmul.mubr.msk.f32.vlgmr.msra.gmra.mrb[112].mxu1 %vm7045_vm6, %v6997_v54  ;;  %v14120_v4 = vpop.f32.mrb[88].mxu0  ;;  %v5919_v15 = vld [vmem:[#allocation2 + $0x28e] sm:$0xff]  ;;  %v5920_v16 = vld [vmem:[#allocation2 + $0x296] sm:$0x3f] }
 0x374   : > { %5915 = vst.msk [vmem:[#allocation3 + $0xb2] sm:$0xff] %vm5558_vm1, %v5913_v21  ;;  %5645 = vst.msk [vmem:[#allocation2 + $0x2b0] sm:$0xff] %vm5558_vm1, %v14653_v52  ;;  %14177 = vmatprep.mubr.msk.f32.mxu1 %vm7045_vm6, %v6998_v12  ;;  %6190 = vrot.lane.b32.xlu0 %v6094_v59, %s15154_s17  ;;  %v14654_v3 = vadd.f32 %v14120_v4, %v20853_v63  ;;  %v5327_v5 = vpop.f32.mrb[89].mxu0  ;;  %v5921_v6 = vmax.f32 %v5917_v57, %v5919_v15  ;;  %v6554_v26 = vld [vmem:[#allocation3 + $0xa3] sm:$0xff] }
 0x375   : > { %6878 = vrot.lane.b32.xlu1 %v6783_v48, %s15157_s20  ;;  %5916 = vst.msk [vmem:[#allocation3 + $0xba] sm:$0x3f] %vm5735_vm7, %v5914_v13  ;;  %v14655_v28 = vadd.f32 %v5327_v5, %v20854_v42  ;;  %v5924_v14 = vld [vmem:[#allocation2 + $0x2a8] sm:$0x3f]  ;;  %v5922_v49 = vmax.f32 %v5918_v23, %v5920_v16  ;;  %v20860_v21 = vld [vmem:[#allocation54_spill] sm:$0xff]  ;;  %v20862_v5 = vld [vmem:[#allocation56_spill] sm:$0xff] }
 0x376   : > { %v6623_v7 = vpop.permute.xlu1 %6622  ;;  %5648 = vst.msk [vmem:[#allocation2 + $0x2c8] sm:$0xff] %vm5558_vm1, %v14654_v3  ;;  %v6621_v58 = vpop.permute.xlu0 %6620  ;;  %v20857_v37 = vld [vmem:[#allocation51_spill] sm:$0xff]  ;;  %v7022_v23 = vld [vmem:[%s20561_s3] sm:$0xff] }
 0x377   : > { %6731 = vst.msk [vmem:[#allocation4 + $0x30] sm:$0xff] %vm6724_vm4, %v6623_v7  ;;  %6730 = vst.msk [vmem:[#allocation4 + $0x28] sm:$0xff] %vm6724_vm4, %v6621_v58  ;;  %v14123_v1 = vpop.f32.mrb[90].mxu0  ;;  %v5923_v25 = vld [vmem:[#allocation2 + $0x2a0] sm:$0xff]  ;;  %v20861_v4 = vld [vmem:[#allocation55_spill] sm:$0xff] }
 0x378   : > { %5647 = vst.msk [vmem:[#allocation2 + $0x2c0] sm:$0xff] %vm5558_vm1, %v14655_v28  ;;  %6420 = vrot.lane.b32.xlu0 %v6324_v44, %s15155_s18  ;;  %v14656_v45 = vadd.f32 %v14123_v1, %v20855_v31  ;;  %v5337_v33 = vpop.f32.mrb[91].mxu0  ;;  %v6784_v38 = vld [vmem:[#allocation3 + $0xa4] sm:$0xff] }
 0x379   : > { %6422 = vrot.lane.b32.xlu1 %v6325_v34, %s15155_s18  ;;  %v14657_v60 = vadd.f32 %v5337_v33, %v20856_v19  ;;  %v7023_v15 = vld [vmem:[%s20561_s3 + $0x8] sm:$0xff] }
 0x37a   : > { %v6853_v18 = vpop.permute.xlu1 %6852  ;;  %5650 = vst.msk [vmem:[#allocation2 + $0x2d8] sm:$0xff] %vm5558_vm1, %v14656_v45  ;;  %v6851_v20 = vpop.permute.xlu0 %6850  ;;  %v20863_v45 = vld [vmem:[#allocation57_spill] sm:$0xff] }
 0x37b   : > { %v5925_v46 = vld [vmem:[#allocation2 + $0x2ae] sm:$0xff]  ;;  %v5926_v30 = vld [vmem:[#allocation2 + $0x2b6] sm:$0x3f]  ;;  %6961 = vst.msk [vmem:[#allocation4 + $0x30] sm:$0xff] %vm6954_vm5, %v6853_v18  ;;  %6960 = vst.msk [vmem:[#allocation4 + $0x28] sm:$0xff] %vm6954_vm5, %v6851_v20  ;;  %v14126_v40 = vpop.f32.mrb[92].mxu0 }
 0x37c   : > { %v6097_v35 = vld [vmem:[#allocation3 + $0xb9] sm:$0xff]  ;;  %v5927_v39 = vmax.f32 %v5923_v25, %v5925_v46  ;;  %v5928_v11 = vmax.f32 %v5924_v14, %v5926_v30  ;;  %5649 = vst.msk [vmem:[#allocation2 + $0x2d0] sm:$0xff] %vm5558_vm1, %v14657_v60  ;;  %6650 = vrot.lane.b32.xlu0 %v6554_v26, %s15156_s19  ;;  %v14658_v24 = vadd.f32 %v14126_v40, %v20857_v37  ;;  %v5347_v27 = vpop.f32.mrb[93].mxu0  ;;  %v6555_v47 = vld [vmem:[#allocation3 + $0xab] sm:$0xff] }
 0x37d   : > { %6196 = vrot.lane.b32.xlu1 %v6097_v35, %s15154_s17  ;;  %v14659_v17 = vadd.f32 %v5347_v27, %v20858_v9  ;;  %v6020_v10 = vld [vmem:[#allocation3 + $0xb8] sm:$0xff]  ;;  %v6019_v0 = vld [vmem:[#allocation3 + $0xb0] sm:$0xff]  ;;  %v5938_v16 = vld [vmem:[#allocation2 + $0x2c8] sm:$0x3f]  ;;  %v14484_v14 = vpack.c.bf16 %v7023_v15, %v7022_v23 }
 0x37e   : > { %v5929_v32 = vmax.f32 %v5921_v6, %v5927_v39  ;;  %v5930_v50 = vmax.f32 %v5922_v49, %v5928_v11  ;;  %v6169_v43 = vpop.permute.xlu1 %6168  ;;  %5652 = vst.msk [vmem:[#allocation2 + $0x2e8] sm:$0xff] %vm5558_vm1, %v14658_v24  ;;  %v6167_v8 = vpop.permute.xlu0 %6166  ;;  %6058 = vst.msk [vmem:[#allocation4 + $0xb8] sm:$0xff] %vm5558_vm1, %v6020_v10  ;;  %v6785_v54 = vld [vmem:[#allocation3 + $0xac] sm:$0xff]  ;;  %v6327_v58 = vld [vmem:[#allocation3 + $0xba] sm:$0xff] }
 0x37f   : > { %6274 = vst.msk [vmem:[#allocation4 + $0x48] sm:$0xff] %vm6264_vm2, %v6169_v43  ;;  %6273 = vst.msk [vmem:[#allocation4 + $0x40] sm:$0xff] %vm6264_vm2, %v6167_v8  ;;  %v14129_v53 = vpop.f32.mrb[94].mxu0  ;;  %v6096_v48 = vld [vmem:[#allocation3 + $0xb1] sm:$0xff]  ;;  %v5937_v25 = vld [vmem:[#allocation2 + $0x2c0] sm:$0xff]  ;;  %14485 = vmatprep.subr.bf16.mxu1 %v14484_v14 }
 0x380   : > { %v5931_v36 = vadd.f32 %v17313_v2, %v5929_v32  ;;  %v5932_v61 = vadd.f32 %v17313_v2, %v5930_v50  ;;  %5651 = vst.msk [vmem:[#allocation2 + $0x2e0] sm:$0xff] %vm5558_vm1, %v14659_v17  ;;  %6057 = vst.msk [vmem:[#allocation4 + $0xb0] sm:$0xff] %vm5558_vm1, %v6019_v0  ;;  %6880 = vrot.lane.b32.xlu0 %v6784_v38, %s15157_s20  ;;  %v14660_v56 = vadd.f32 %v14129_v53, %v20859_v62  ;;  %v5357_v29 = vpop.f32.mrb[95].mxu0  ;;  %v6326_v34 = vld [vmem:[#allocation3 + $0xb2] sm:$0xff]  ;;  %v20864_v18 = vld [vmem:[#allocation58_spill] sm:$0xff] }
 0x381   : > { %6652 = vrot.lane.b32.xlu1 %v6555_v47, %s15156_s19  ;;  %v14661_v55 = vadd.f32 %v5357_v29, %v20860_v21  ;;  %v6556_v37 = vld [vmem:[#allocation3 + $0xb3] sm:$0xff]  ;;  %14487 = vmatpush3.bf16.msra.mxu1 %v14484_v14  ;;  %v20865_v27 = vld [vmem:[#allocation59_spill] sm:$0xff] }
 0x382   : > { %v5933_v51 = vmax.f32 %v5931_v36, 0.0  ;;  %v6399_v52 = vpop.permute.xlu1 %6398  ;;  %v17402_v22 = vld [vmem:[#allocation4 + $0x30] sm:$0xff]  ;;  %v5934_v12 = vmax.f32 %v5932_v61, 0.0  ;;  %5654 = vst.msk [vmem:[#allocation2 + $0x2f8] sm:$0xff] %vm5558_vm1, %v14660_v56  ;;  %v6397_v13 = vpop.permute.xlu0 %6396  ;;  %v17406_v41 = vld [vmem:[#allocation4 + $0x28] sm:$0xff]  ;;  %v20866_v43 = vld [vmem:[#allocation60_spill] sm:$0xff] }
 0x383   : > { %6504 = vst.msk [vmem:[#allocation4 + $0x48] sm:$0xff] %vm6494_vm3, %v6399_v52  ;;  %6503 = vst.msk [vmem:[#allocation4 + $0x40] sm:$0xff] %vm6494_vm3, %v6397_v13  ;;  %14178 = vmatmul.mubr.msk.f32.gmra.mrb[114].mxu1 %vm7045_vm6, %v17406_v41  ;;  %v14132_v59 = vpop.f32.mrb[96].mxu0  ;;  %v5939_v44 = vld [vmem:[#allocation2 + $0x2ce] sm:$0xff]  ;;  %v5940_v31 = vld [vmem:[#allocation2 + $0x2d6] sm:$0x3f] }
 0x384   : > { %5935 = vst.msk [vmem:[#allocation3 + $0xc2] sm:$0xff] %vm5558_vm1, %v5933_v51  ;;  %5653 = vst.msk [vmem:[#allocation2 + $0x2f0] sm:$0xff] %vm5558_vm1, %v14661_v55  ;;  %14180 = vmatprep.mubr.msk.f32.mxu1 %vm7045_vm6, %v17402_v22  ;;  %6194 = vrot.lane.b32.xlu0 %v6096_v48, %s15154_s17  ;;  %v14662_v63 = vadd.f32 %v14132_v59, %v20861_v4  ;;  %v5367_v3 = vpop.f32.mrb[97].mxu0  ;;  %v5941_v20 = vmax.f32 %v5937_v25, %v5939_v44  ;;  %v6786_v62 = vld [vmem:[#allocation3 + $0xb4] sm:$0xff]  ;;  %v20868_v52 = vld [vmem:[#allocation62_spill] sm:$0xff] }
 0x385   : > { %6882 = vrot.lane.b32.xlu1 %v6785_v54, %s15157_s20  ;;  %5936 = vst.msk [vmem:[#allocation3 + $0xca] sm:$0x3f] %vm5735_vm7, %v5934_v12  ;;  %v14663_v42 = vadd.f32 %v5367_v3, %v20862_v5  ;;  %v5944_v19 = vld [vmem:[#allocation2 + $0x2e8] sm:$0x3f]  ;;  %v5942_v11 = vmax.f32 %v5938_v16, %v5940_v31  ;;  %v20867_v29 = vld [vmem:[#allocation61_spill] sm:$0xff] }
 0x386   : > { %v6627_v28 = vpop.permute.xlu1 %6626  ;;  %5656 = vst.msk [vmem:[#allocation2 + $0x308] sm:$0xff] %vm5558_vm1, %v14662_v63  ;;  %v6625_v7 = vpop.permute.xlu0 %6624 }
 0x387   : > { %6733 = vst.msk [vmem:[#allocation4 + $0x40] sm:$0xff] %vm6724_vm4, %v6627_v28  ;;  %6732 = vst.msk [vmem:[#allocation4 + $0x38] sm:$0xff] %vm6724_vm4, %v6625_v7  ;;  %v14135_v1 = vpop.f32.mrb[98].mxu0  ;;  %v5943_v60 = vld [vmem:[#allocation2 + $0x2e0] sm:$0xff]  ;;  %v7025_v28 = vld [vmem:[%s20561_s3 + $0x18] sm:$0xff] }
 0x388   : > { %5655 = vst.msk [vmem:[#allocation2 + $0x300] sm:$0xff] %vm5558_vm1, %v14663_v42  ;;  %6424 = vrot.lane.b32.xlu0 %v6326_v34, %s15155_s18  ;;  %v14664_v33 = vadd.f32 %v14135_v1, %v20863_v45  ;;  %v5377_v57 = vpop.f32.mrb[99].mxu0  ;;  %v7024_v42 = vld [vmem:[%s20561_s3 + $0x10] sm:$0xff]  ;;  %v20869_v7 = vld [vmem:[#allocation63_spill] sm:$0xff] }
 0x389   : > { %6426 = vrot.lane.b32.xlu1 %v6327_v58, %s15155_s18  ;;  %v14665_v46 = vadd.f32 %v5377_v57, %v20864_v18  ;;  %v14488_v44 = vpack.c.bf16 %v7025_v28, %v7024_v42  ;;  %v20870_v1 = vld [vmem:[#allocation64_spill] sm:$0xff] }
 0x38a   : > { %v6857_v30 = vpop.permute.xlu1 %6856  ;;  %5658 = vst.msk [vmem:[#allocation2 + $0x318] sm:$0xff] %vm5558_vm1, %v14664_v33  ;;  %v6855_v49 = vpop.permute.xlu0 %6854 }
 0x38b   : > { %v5945_v35 = vld [vmem:[#allocation2 + $0x2ee] sm:$0xff]  ;;  %v5946_v6 = vld [vmem:[#allocation2 + $0x2f6] sm:$0x3f]  ;;  %6963 = vst.msk [vmem:[#allocation4 + $0x40] sm:$0xff] %vm6954_vm5, %v6857_v30  ;;  %6962 = vst.msk [vmem:[#allocation4 + $0x38] sm:$0xff] %vm6954_vm5, %v6855_v49  ;;  %v14138_v24 = vpop.f32.mrb[100].mxu0  ;;  %14489 = vmatprep.subr.bf16.mxu1 %v14488_v44 }
 0x38c   : > { %v6099_v39 = vld [vmem:[#allocation3 + $0xc9] sm:$0xff]  ;;  %v5947_v26 = vmax.f32 %v5943_v60, %v5945_v35  ;;  %v5948_v40 = vmax.f32 %v5944_v19, %v5946_v6  ;;  %5657 = vst.msk [vmem:[#allocation2 + $0x310] sm:$0xff] %vm5558_vm1, %v14665_v46  ;;  %6654 = vrot.lane.b32.xlu0 %v6556_v37, %s15156_s19  ;;  %v14666_v32 = vadd.f32 %v14138_v24, %v20865_v27  ;;  %v5387_v50 = vpop.f32.mrb[101].mxu0  ;;  %v6557_v36 = vld [vmem:[#allocation3 + $0xbb] sm:$0xff] }
 0x38d   : > { %6200 = vrot.lane.b32.xlu1 %v6099_v39, %s15154_s17  ;;  %v14667_v10 = vadd.f32 %v5387_v50, %v20866_v43  ;;  %v6022_v47 = vld [vmem:[#allocation3 + $0xc8] sm:$0xff]  ;;  %v6021_v61 = vld [vmem:[#allocation3 + $0xc0] sm:$0xff]  ;;  %14491 = vmatpush3.bf16.msra.mxu1 %v14488_v44  ;;  %v20871_v19 = vld [vmem:[#allocation65_spill] sm:$0xff] }
 0x38e   : > { %v5949_v9 = vmax.f32 %v5941_v20, %v5947_v26  ;;  %v5950_v17 = vmax.f32 %v5942_v11, %v5948_v40  ;;  %v6173_v8 = vpop.permute.xlu1 %6172  ;;  %5660 = vst.msk [vmem:[#allocation2 + $0x328] sm:$0xff] %vm5558_vm1, %v14666_v32  ;;  %v6171_v0 = vpop.permute.xlu0 %6170  ;;  %6060 = vst.msk [vmem:[#allocation4 + $0xc8] sm:$0xff] %vm5558_vm1, %v6022_v47  ;;  %v6787_v63 = vld [vmem:[#allocation3 + $0xbc] sm:$0xff]  ;;  %v6329_v31 = vld [vmem:[#allocation3 + $0xca] sm:$0xff] }
 0x38f   : > { %6276 = vst.msk [vmem:[#allocation4 + $0x58] sm:$0xff] %vm6264_vm2, %v6173_v8  ;;  %6275 = vst.msk [vmem:[#allocation4 + $0x50] sm:$0xff] %vm6264_vm2, %v6171_v0  ;;  %v14141_v56 = vpop.f32.mrb[102].mxu0  ;;  %v6098_v3 = vld [vmem:[#allocation3 + $0xc1] sm:$0xff]  ;;  %v20874_v0 = vld [vmem:[#allocation68_spill] sm:$0xff] }
 0x390   : > { %v5951_v38 = vadd.f32 %v17313_v2, %v5949_v9  ;;  %v5952_v53 = vadd.f32 %v17313_v2, %v5950_v17  ;;  %5659 = vst.msk [vmem:[#allocation2 + $0x320] sm:$0xff] %vm5558_vm1, %v14667_v10  ;;  %6059 = vst.msk [vmem:[#allocation4 + $0xc0] sm:$0xff] %vm5558_vm1, %v6021_v61  ;;  %6884 = vrot.lane.b32.xlu0 %v6786_v62, %s15157_s20  ;;  %v14668_v51 = vadd.f32 %v14141_v56, %v20867_v29  ;;  %v5397_v21 = vpop.f32.mrb[103].mxu0  ;;  %v6328_v45 = vld [vmem:[#allocation3 + $0xc2] sm:$0xff] }
 0x391   : > { %6656 = vrot.lane.b32.xlu1 %v6557_v36, %s15156_s19  ;;  %v14669_v12 = vadd.f32 %v5397_v21, %v20868_v52  ;;  %v5958_v57 = vld [vmem:[#allocation2 + $0x308] sm:$0x3f]  ;;  %v5957_v46 = vld [vmem:[#allocation2 + $0x300] sm:$0xff] }
 0x392   : > { %v5953_v55 = vmax.f32 %v5951_v38, 0.0  ;;  %v6403_v13 = vpop.permute.xlu1 %6402  ;;  %v17454_v54 = vld [vmem:[#allocation4 + $0x40] sm:$0xff]  ;;  %v5954_v48 = vmax.f32 %v5952_v53, 0.0  ;;  %5662 = vst.msk [vmem:[#allocation2 + $0x338] sm:$0xff] %vm5558_vm1, %v14668_v51  ;;  %v6401_v59 = vpop.permute.xlu0 %6400  ;;  %v17458_v4 = vld [vmem:[#allocation4 + $0x38] sm:$0xff]  ;;  %v20872_v35 = vld [vmem:[#allocation66_spill] sm:$0xff] }
 0x393   : > { %6506 = vst.msk [vmem:[#allocation4 + $0x58] sm:$0xff] %vm6494_vm3, %v6403_v13  ;;  %6505 = vst.msk [vmem:[#allocation4 + $0x50] sm:$0xff] %vm6494_vm3, %v6401_v59  ;;  %14181 = vmatmul.mubr.msk.f32.gmra.mrb[116].mxu1 %vm7045_vm6, %v17458_v4  ;;  %v14144_v5 = vpop.f32.mrb[104].mxu0  ;;  %v5959_v14 = vld [vmem:[#allocation2 + $0x30e] sm:$0xff]  ;;  %v5960_v25 = vld [vmem:[#allocation2 + $0x316] sm:$0x3f] }
 0x394   : > { %5955 = vst.msk [vmem:[#allocation3 + $0xd2] sm:$0xff] %vm5558_vm1, %v5953_v55  ;;  %5661 = vst.msk [vmem:[#allocation2 + $0x330] sm:$0xff] %vm5558_vm1, %v14669_v12  ;;  %14183 = vmatprep.mubr.msk.f32.mxu1 %vm7045_vm6, %v17454_v54  ;;  %6198 = vrot.lane.b32.xlu0 %v6098_v3, %s15154_s17  ;;  %v14670_v58 = vadd.f32 %v14144_v5, %v20869_v7  ;;  %v5407_v34 = vpop.f32.mrb[105].mxu0  ;;  %v5961_v37 = vmax.f32 %v5957_v46, %v5959_v14  ;;  %v6558_v50 = vld [vmem:[#allocation3 + $0xc3] sm:$0xff]  ;;  %v20875_v13 = vld [vmem:[#allocation69_spill] sm:$0xff] }
 0x395   : > { %6886 = vrot.lane.b32.xlu1 %v6787_v63, %s15157_s20  ;;  %5956 = vst.msk [vmem:[#allocation3 + $0xda] sm:$0x3f] %vm5735_vm7, %v5954_v48  ;;  %v14671_v23 = vadd.f32 %v5407_v34, %v20870_v1  ;;  %v5964_v30 = vld [vmem:[#allocation2 + $0x328] sm:$0x3f]  ;;  %v5962_v24 = vmax.f32 %v5958_v57, %v5960_v25  ;;  %v7026_v52 = vld [vmem:[%s20561_s3 + $0x20] sm:$0xff] }
 0x396   : > { %v6631_v15 = vpop.permute.xlu1 %6630  ;;  %5664 = vst.msk [vmem:[#allocation2 + $0x348] sm:$0xff] %vm5558_vm1, %v14670_v58  ;;  %v6629_v16 = vpop.permute.xlu0 %6628  ;;  %v20873_v17 = vld [vmem:[#allocation67_spill] sm:$0xff]  ;;  %v20876_v5 = vld [vmem:[#allocation70_spill] sm:$0xff] }
 0x397   : > { %6735 = vst.msk [vmem:[#allocation4 + $0x50] sm:$0xff] %vm6724_vm4, %v6631_v15  ;;  %6734 = vst.msk [vmem:[#allocation4 + $0x48] sm:$0xff] %vm6724_vm4, %v6629_v16  ;;  %v14147_v33 = vpop.f32.mrb[106].mxu0  ;;  %v5963_v20 = vld [vmem:[#allocation2 + $0x320] sm:$0xff]  ;;  %v7027_v12 = vld [vmem:[%s20561_s3 + $0x28] sm:$0xff] }
 0x398   : > { %5663 = vst.msk [vmem:[#allocation2 + $0x340] sm:$0xff] %vm5558_vm1, %v14671_v23  ;;  %6428 = vrot.lane.b32.xlu0 %v6328_v45, %s15155_s18  ;;  %v14672_v60 = vadd.f32 %v14147_v33, %v20871_v19  ;;  %v5417_v18 = vpop.f32.mrb[107].mxu0  ;;  %v6788_v21 = vld [vmem:[#allocation3 + $0xc4] sm:$0xff]  ;;  %v14492_v63 = vpack.c.bf16 %v7027_v12, %v7026_v52 }
 0x399   : > { %6430 = vrot.lane.b32.xlu1 %v6329_v31, %s15155_s18  ;;  %v14673_v6 = vadd.f32 %v5417_v18, %v20872_v35  ;;  %v7030_v52 = vld [vmem:[%s20561_s3 + $0x40] sm:$0xff]  ;;  %v7031_v12 = vld [vmem:[%s20561_s3 + $0x48] sm:$0xff] }
 0x39a   : > { %v6861_v49 = vpop.permute.xlu1 %6860  ;;  %5666 = vst.msk [vmem:[#allocation2 + $0x358] sm:$0xff] %vm5558_vm1, %v14672_v60  ;;  %v6859_v26 = vpop.permute.xlu0 %6858  ;;  %14493 = vmatprep.subr.bf16.mxu1 %v14492_v63 }
 0x39b   : > { %v5965_v39 = vld [vmem:[#allocation2 + $0x32e] sm:$0xff]  ;;  %v5966_v11 = vld [vmem:[#allocation2 + $0x336] sm:$0x3f]  ;;  %6965 = vst.msk [vmem:[#allocation4 + $0x50] sm:$0xff] %vm6954_vm5, %v6861_v49  ;;  %6964 = vst.msk [vmem:[#allocation4 + $0x48] sm:$0xff] %vm6954_vm5, %v6859_v26  ;;  %v14150_v9 = vpop.f32.mrb[108].mxu0  ;;  %14495 = vmatpush3.bf16.msra.mxu1 %v14492_v63 }
 0x39c   : > { %v6101_v40 = vld [vmem:[#allocation3 + $0xd9] sm:$0xff]  ;;  %v5967_v27 = vmax.f32 %v5963_v20, %v5965_v39  ;;  %v5968_v32 = vmax.f32 %v5964_v30, %v5966_v11  ;;  %5665 = vst.msk [vmem:[#allocation2 + $0x350] sm:$0xff] %vm5558_vm1, %v14673_v6  ;;  %6658 = vrot.lane.b32.xlu0 %v6558_v50, %s15156_s19  ;;  %v14674_v43 = vadd.f32 %v14150_v9, %v20873_v17  ;;  %v5427_v10 = vpop.f32.mrb[109].mxu0  ;;  %v6559_v62 = vld [vmem:[#allocation3 + $0xcb] sm:$0xff] }
 0x39d   : > { %6204 = vrot.lane.b32.xlu1 %v6101_v40, %s15154_s17  ;;  %v14675_v36 = vadd.f32 %v5427_v10, %v20874_v0  ;;  %v6024_v38 = vld [vmem:[#allocation3 + $0xd8] sm:$0xff]  ;;  %v6023_v56 = vld [vmem:[#allocation3 + $0xd0] sm:$0xff]  ;;  %v5978_v33 = vld [vmem:[#allocation2 + $0x348] sm:$0x3f] }
 0x39e   : > { %v5969_v8 = vmax.f32 %v5961_v37, %v5967_v27  ;;  %v5970_v47 = vmax.f32 %v5962_v24, %v5968_v32  ;;  %v6177_v61 = vpop.permute.xlu1 %6176  ;;  %5668 = vst.msk [vmem:[#allocation2 + $0x368] sm:$0xff] %vm5558_vm1, %v14674_v43  ;;  %v6175_v53 = vpop.permute.xlu0 %6174  ;;  %6062 = vst.msk [vmem:[#allocation4 + $0xd8] sm:$0xff] %vm5558_vm1, %v6024_v38  ;;  %v6789_v1 = vld [vmem:[#allocation3 + $0xcc] sm:$0xff]  ;;  %v6331_v31 = vld [vmem:[#allocation3 + $0xda] sm:$0xff] }
 0x39f   : > { %6278 = vst.msk [vmem:[#allocation4 + $0x68] sm:$0xff] %vm6264_vm2, %v6177_v61  ;;  %6277 = vst.msk [vmem:[#allocation4 + $0x60] sm:$0xff] %vm6264_vm2, %v6175_v53  ;;  %v14153_v55 = vpop.f32.mrb[110].mxu0  ;;  %v6100_v23 = vld [vmem:[#allocation3 + $0xd1] sm:$0xff]  ;;  %v5977_v25 = vld [vmem:[#allocation2 + $0x340] sm:$0xff] }
 0x3a0   : > { %v5971_v29 = vadd.f32 %v17313_v2, %v5969_v8  ;;  %v5972_v51 = vadd.f32 %v17313_v2, %v5970_v47  ;;  %5667 = vst.msk [vmem:[#allocation2 + $0x360] sm:$0xff] %vm5558_vm1, %v14675_v36  ;;  %6061 = vst.msk [vmem:[#allocation4 + $0xd0] sm:$0xff] %vm5558_vm1, %v6023_v56  ;;  %6888 = vrot.lane.b32.xlu0 %v6788_v21, %s15157_s20  ;;  %v14676_v48 = vadd.f32 %v14153_v55, %v20875_v13  ;;  %v5437_v59 = vpop.f32.mrb[111].mxu0  ;;  %v6330_v45 = vld [vmem:[#allocation3 + $0xd2] sm:$0xff] }
 0x3a1   : > { %6660 = vrot.lane.b32.xlu1 %v6559_v62, %s15156_s19  ;;  %v14677_v42 = vadd.f32 %v5437_v59, %v20876_v5  ;;  %v6560_v26 = vld [vmem:[#allocation3 + $0xd3] sm:$0xff]  ;;  %v14500_v13 = vpack.c.bf16 %v7031_v12, %v7030_v52 }
 0x3a2   : > { %v5973_v3 = vmax.f32 %v5971_v29, 0.0  ;;  %v6407_v28 = vpop.permute.xlu1 %6406  ;;  %v17512_v7 = vld [vmem:[#allocation4 + $0x50] sm:$0xff]  ;;  %v5974_v58 = vmax.f32 %v5972_v51, 0.0  ;;  %5670 = vst.msk [vmem:[#allocation2 + $0x378] sm:$0xff] %vm5558_vm1, %v14676_v48  ;;  %v6405_v34 = vpop.permute.xlu0 %6404  ;;  %v17516_v44 = vld [vmem:[#allocation4 + $0x48] sm:$0xff]  ;;  %v7028_v17 = vld [vmem:[%s20561_s3 + $0x30] sm:$0xff] }
 0x3a3   : > { %6508 = vst.msk [vmem:[#allocation4 + $0x68] sm:$0xff] %vm6494_vm3, %v6407_v28  ;;  %6507 = vst.msk [vmem:[#allocation4 + $0x60] sm:$0xff] %vm6494_vm3, %v6405_v34  ;;  %14184 = vmatmul.mubr.msk.f32.gmra.mrb[118].mxu1 %vm7045_vm6, %v17516_v44  ;;  %v5979_v57 = vld [vmem:[#allocation2 + $0x34e] sm:$0xff]  ;;  %v5980_v14 = vld [vmem:[#allocation2 + $0x356] sm:$0x3f] }
 0x3a4   : > { %5975 = vst.msk [vmem:[#allocation3 + $0xe2] sm:$0xff] %vm5558_vm1, %v5973_v3  ;;  %5669 = vst.msk [vmem:[#allocation2 + $0x370] sm:$0xff] %vm5558_vm1, %v14677_v42  ;;  %14186 = vmatprep.mubr.msk.f32.mxu1 %vm7045_vm6, %v17512_v7  ;;  %6202 = vrot.lane.b32.xlu0 %v6100_v23, %s15154_s17  ;;  %v5981_v6 = vmax.f32 %v5977_v25, %v5979_v57  ;;  %v5982_v49 = vmax.f32 %v5978_v33, %v5980_v14  ;;  %v7029_v43 = vld [vmem:[%s20561_s3 + $0x38] sm:$0xff]  ;;  %v12431_v23 = vld [vmem:[%s20561_s3 + $0xa8] sm:$0xff] }
 0x3a5   : > { %6890 = vrot.lane.b32.xlu1 %v6789_v1, %s15157_s20  ;;  %5976 = vst.msk [vmem:[#allocation3 + $0xea] sm:$0x3f] %vm5735_vm7, %v5974_v58  ;;  %v5984_v19 = vld [vmem:[#allocation2 + $0x368] sm:$0x3f]  ;;  %v6790_v47 = vld [vmem:[#allocation3 + $0xd4] sm:$0xff]  ;;  %v14496_v0 = vpack.c.bf16 %v7029_v43, %v7028_v17  ;;  %v12430_v1 = vld [vmem:[%s20561_s3 + $0xa0] sm:$0xff] }
 0x3a6   : > { %v6635_v15 = vpop.permute.xlu1 %6634  ;;  %v6633_v16 = vpop.permute.xlu0 %6632 }
 0x3a7   : > { %6737 = vst.msk [vmem:[#allocation4 + $0x60] sm:$0xff] %vm6724_vm4, %v6635_v15  ;;  %6736 = vst.msk [vmem:[#allocation4 + $0x58] sm:$0xff] %vm6724_vm4, %v6633_v16  ;;  %v5983_v60 = vld [vmem:[#allocation2 + $0x360] sm:$0xff]  ;;  %14497 = vmatprep.subr.bf16.mxu1 %v14496_v0  ;;  %v17588_v15 = vpack.c.bf16 %v12431_v23, %v12430_v1 }
 0x3a8   : > { %6432 = vrot.lane.b32.xlu0 %v6330_v45, %s15155_s18  ;;  %14499 = vmatpush3.bf16.msra.mxu1 %v14496_v0 }
 0x3a9   : > { %6434 = vrot.lane.b32.xlu1 %v6331_v31, %s15155_s18  ;;  %14501 = vmatprep.subr.bf16.mxu1 %v14500_v13 }
 0x3aa   : > { %v6865_v18 = vpop.permute.xlu1 %6864  ;;  %v6863_v20 = vpop.permute.xlu0 %6862 }
 0x3ab   : > { %v5985_v46 = vld [vmem:[#allocation2 + $0x36e] sm:$0xff]  ;;  %v5986_v30 = vld [vmem:[#allocation2 + $0x376] sm:$0x3f]  ;;  %6967 = vst.msk [vmem:[#allocation4 + $0x60] sm:$0xff] %vm6954_vm5, %v6865_v18  ;;  %6966 = vst.msk [vmem:[#allocation4 + $0x58] sm:$0xff] %vm6954_vm5, %v6863_v20 }
 0x3ac   : > { %v6103_v35 = vld [vmem:[#allocation3 + $0xe9] sm:$0xff]  ;;  %v5987_v39 = vmax.f32 %v5983_v60, %v5985_v46  ;;  %v5988_v11 = vmax.f32 %v5984_v19, %v5986_v30  ;;  %6662 = vrot.lane.b32.xlu0 %v6560_v26, %s15156_s19  ;;  %v6025_v32 = vld [vmem:[#allocation3 + $0xe0] sm:$0xff]  ;;  %14503 = vmatpush3.bf16.msra.mxu1 %v14500_v13 }
 0x3ad   : > { %6208 = vrot.lane.b32.xlu1 %v6103_v35, %s15154_s17  ;;  %v6026_v27 = vld [vmem:[#allocation3 + $0xe8] sm:$0xff]  ;;  %v6561_v9 = vld [vmem:[#allocation3 + $0xdb] sm:$0xff]  ;;  %6063 = vst.msk [vmem:[#allocation4 + $0xe0] sm:$0xff] %vm5558_vm1, %v6025_v32  ;;  %14505 = vmatprep.subr.bf16.mxu1 %v17588_v15 }
 0x3ae   : > { %v5989_v40 = vmax.f32 %v5981_v6, %v5987_v39  ;;  %v5990_v37 = vmax.f32 %v5982_v49, %v5988_v11  ;;  %v6181_v24 = vpop.permute.xlu1 %6180  ;;  %v6179_v50 = vpop.permute.xlu0 %6178  ;;  %6064 = vst.msk [vmem:[#allocation4 + $0xe8] sm:$0xff] %vm5558_vm1, %v6026_v27  ;;  %v6102_v29 = vld [vmem:[#allocation3 + $0xe1] sm:$0xff]  ;;  %v6333_v21 = vld [vmem:[#allocation3 + $0xea] sm:$0xff] }
 0x3af   : > { %6280 = vst.msk [vmem:[#allocation4 + $0x78] sm:$0xff] %vm6264_vm2, %v6181_v24  ;;  %6279 = vst.msk [vmem:[#allocation4 + $0x70] sm:$0xff] %vm6264_vm2, %v6179_v50  ;;  %v6332_v55 = vld [vmem:[#allocation3 + $0xe2] sm:$0xff] }
 0x3b0   : > { %v5991_v10 = vadd.f32 %v17313_v2, %v5989_v40  ;;  %v5992_v8 = vadd.f32 %v17313_v2, %v5990_v37  ;;  %6892 = vrot.lane.b32.xlu0 %v6790_v47, %s15157_s20  ;;  %v6791_v2 = vld [vmem:[#allocation3 + $0xdc] sm:$0xff]  ;;  %v6792_v34 = vld [vmem:[#allocation3 + $0xe4] sm:$0xff] }
 0x3b1   : > { %6664 = vrot.lane.b32.xlu1 %v6561_v9, %s15156_s19  ;;  %v6562_v63 = vld [vmem:[#allocation3 + $0xe3] sm:$0xff] }
 0x3b2   : > { %v5993_v36 = vmax.f32 %v5991_v10, 0.0  ;;  %v6411_v61 = vpop.permute.xlu1 %6410  ;;  %v17550_v38 = vld [vmem:[#allocation4 + $0x60] sm:$0xff]  ;;  %v5994_v53 = vmax.f32 %v5992_v8, 0.0  ;;  %v6409_v62 = vpop.permute.xlu0 %6408  ;;  %v17553_v56 = vld [vmem:[#allocation4 + $0x58] sm:$0xff] }
 0x3b3   : > { %6510 = vst.msk [vmem:[#allocation4 + $0x78] sm:$0xff] %vm6494_vm3, %v6411_v61  ;;  %6509 = vst.msk [vmem:[#allocation4 + $0x70] sm:$0xff] %vm6494_vm3, %v6409_v62  ;;  %14187 = vmatmul.mubr.msk.f32.gmra.mrb[120].mxu1 %vm7045_vm6, %v17553_v56 }
 0x3b4   : > { %5995 = vst.msk [vmem:[#allocation3 + $0xf2] sm:$0xff] %vm5558_vm1, %v5993_v36  ;;  %14189 = vmatprep.mubr.msk.f32.mxu1 %vm7045_vm6, %v17550_v38  ;;  %6206 = vrot.lane.b32.xlu0 %v6102_v29, %s15154_s17 }
 0x3b5   : > { %6894 = vrot.lane.b32.xlu1 %v6791_v2, %s15157_s20  ;;  %5996 = vst.msk [vmem:[#allocation3 + $0xfa] sm:$0x3f] %vm5735_vm7, %v5994_v53  ;;  %vm10485_vm7 = vcmask 1048512  }
 0x3b6   : > { %v6637_v51 = vpop.permute.xlu0 %6636 }
 0x3b7   : > { %6738 = vst.msk [vmem:[#allocation4 + $0x68] sm:$0xff] %vm6724_vm4, %v6637_v51 }
 0x3b8   : > { %6436 = vrot.lane.b32.xlu0 %v6332_v55, %s15155_s18 }
 0x3b9   : > { %6438 = vrot.lane.b32.xlu1 %v6333_v21, %s15155_s18 }
 0x3ba   : > { %v6867_v48 = vpop.permute.xlu0 %6866 }
 0x3bb   : > { %6968 = vst.msk [vmem:[#allocation4 + $0x68] sm:$0xff] %vm6954_vm5, %v6867_v48  ;;  %v6027_v42 = vld [vmem:[#allocation3 + $0xf0] sm:$0xff] }
 0x3bc   : > { %v6105_v59 = vld [vmem:[#allocation3 + $0xf9] sm:$0xff]  ;;  %6666 = vrot.lane.b32.xlu0 %v6562_v63, %s15156_s19  ;;  %v6563_v58 = vld [vmem:[#allocation3 + $0xeb] sm:$0xff]  ;;  %6065 = vst.msk [vmem:[#allocation4 + $0xf0] sm:$0xff] %vm5558_vm1, %v6027_v42 }
 0x3bd   : > { %6212 = vrot.lane.b32.xlu1 %v6105_v59, %s15154_s17  ;;  %v6028_v5 = vld [vmem:[#allocation3 + $0xf8] sm:$0xff]  ;;  %v6793_v33 = vld [vmem:[#allocation3 + $0xec] sm:$0xff] }
 0x3be   : > { %v6185_v3 = vpop.permute.xlu1 %6184  ;;  %v6639_v28 = vpop.permute.xlu0 %6638  ;;  %6066 = vst.msk [vmem:[#allocation4 + $0xf8] sm:$0xff] %vm5558_vm1, %v6028_v5  ;;  %v6104_v57 = vld [vmem:[#allocation3 + $0xf1] sm:$0xff]  ;;  %v6335_v19 = vld [vmem:[#allocation3 + $0xfa] sm:$0xff]  ;;  %vm10443_vm1 = vcmask 654912  }
 0x3bf   : > { %6282 = vst.msk [vmem:[#allocation4 + $0x88] sm:$0xff] %vm6264_vm2, %v6185_v3  ;;  %v6334_v60 = vld [vmem:[#allocation3 + $0xf2] sm:$0xff]  ;;  %v6565_v35 = vld [vmem:[#allocation3 + $0xfb] sm:$0xff] }
 0x3c0   : > { %6739 = vst.msk [vmem:[#allocation4 + $0x70] sm:$0xff] %vm6724_vm4, %v6639_v28  ;;  %6896 = vrot.lane.b32.xlu0 %v6792_v34, %s15157_s20  ;;  %v6564_v20 = vld [vmem:[#allocation3 + $0xf3] sm:$0xff]  ;;  %v6795_v26 = vld [vmem:[#allocation3 + $0xfc] sm:$0xff] }
 0x3c1   : > { %6668 = vrot.lane.b32.xlu1 %v6563_v58, %s15156_s19  ;;  %v6794_v11 = vld [vmem:[#allocation3 + $0xf4] sm:$0xff] }
 0x3c2   : > { %v6641_v16 = vpop.permute.xlu1 %6640  ;;  %v6869_v31 = vpop.permute.xlu0 %6868  ;;  %v17591_v45 = vld [vmem:[#allocation4 + $0x68] sm:$0xff] }
 0x3c3   : > { %6740 = vst.msk [vmem:[#allocation4 + $0x78] sm:$0xff] %vm6724_vm4, %v6641_v16  ;;  %14190 = vmatmul.mubr.msk.f32.gmra.mrb[122].mxu1 %vm7045_vm6, %v17591_v45 }
 0x3c4   : > { %6969 = vst.msk [vmem:[#allocation4 + $0x70] sm:$0xff] %vm6954_vm5, %v6869_v31  ;;  %6210 = vrot.lane.b32.xlu0 %v6104_v57, %s15154_s17 }
 0x3c5   : > { %6898 = vrot.lane.b32.xlu1 %v6793_v33, %s15157_s20 }
 0x3c6   : > { %v6871_v14 = vpop.permute.xlu1 %6870  ;;  %v6183_v25 = vpop.permute.xlu0 %6182 }
 0x3c7   : > { %6970 = vst.msk [vmem:[#allocation4 + $0x78] sm:$0xff] %vm6954_vm5, %v6871_v14 }
 0x3c8   : > { %6281 = vst.msk [vmem:[#allocation4 + $0x80] sm:$0xff] %vm6264_vm2, %v6183_v25  ;;  %6440 = vrot.lane.b32.xlu0 %v6334_v60, %s15155_s18 }
 0x3c9   : > { %6442 = vrot.lane.b32.xlu1 %v6335_v19, %s15155_s18  ;;  %s278_s18 = scalar_lea.vmem %s20565_s7, %s12548_s8 }
 0x3ca   : > { %v6415_v18 = vpop.permute.xlu1 %6414  ;;  %v6413_v46 = vpop.permute.xlu0 %6412 }
 0x3cb   : > { %6512 = vst.msk [vmem:[#allocation4 + $0x88] sm:$0xff] %vm6494_vm3, %v6415_v18  ;;  %v17604_v30 = vld [vmem:[#allocation4 + $0x70] sm:$0xff]  ;;  %6511 = vst.msk [vmem:[#allocation4 + $0x80] sm:$0xff] %vm6494_vm3, %v6413_v46 }
 0x3cc   : > { %14192 = vmatprep.mubr.msk.f32.mxu1 %vm7045_vm6, %v17604_v30  ;;  %6672 = vrot.lane.b32.xlu0 %v6565_v35, %s15156_s19 }
 0x3cd   : > { %6670 = vrot.lane.b32.xlu1 %v6564_v20, %s15156_s19 }
 0x3ce   : > { %v6189_v6 = vpop.permute.xlu1 %6188  ;;  %v17611_v49 = vld [vmem:[#allocation4 + $0x78] sm:$0xff]  ;;  %v6643_v39 = vpop.permute.xlu0 %6642 }
 0x3cf   : > { %6284 = vst.msk [vmem:[#allocation4 + $0x98] sm:$0xff] %vm6264_vm2, %v6189_v6  ;;  %14193 = vmatmul.mubr.msk.f32.gmra.mrb[124].mxu1 %vm7045_vm6, %v17611_v49 }
 0x3d0   : > { %6741 = vst.msk [vmem:[#allocation4 + $0x80] sm:$0xff] %vm6724_vm4, %v6643_v39  ;;  %6902 = vrot.lane.b32.xlu0 %v6795_v26, %s15157_s20 }
 0x3d1   : > { %6900 = vrot.lane.b32.xlu1 %v6794_v11, %s15157_s20 }
 0x3d2   : > { %v6645_v40 = vpop.permute.xlu1 %6644  ;;  %v6873_v37 = vpop.permute.xlu0 %6872 }
 0x3d3   : > { %6742 = vst.msk [vmem:[#allocation4 + $0x88] sm:$0xff] %vm6724_vm4, %v6645_v40 }
 0x3d4   : > { %6971 = vst.msk [vmem:[#allocation4 + $0x80] sm:$0xff] %vm6954_vm5, %v6873_v37 }
 0x3d6   : > { %v6875_v24 = vpop.permute.xlu1 %6874  ;;  %v6187_v27 = vpop.permute.xlu0 %6186 }
 0x3d7   : > { %6972 = vst.msk [vmem:[#allocation4 + $0x88] sm:$0xff] %vm6954_vm5, %v6875_v24 }
 0x3d8   : > { %6283 = vst.msk [vmem:[#allocation4 + $0x90] sm:$0xff] %vm6264_vm2, %v6187_v27 }
 0x3da   : > { %v6419_v32 = vpop.permute.xlu1 %6418  ;;  %v6417_v50 = vpop.permute.xlu0 %6416 }
 0x3db   : > { %6514 = vst.msk [vmem:[#allocation4 + $0x98] sm:$0xff] %vm6494_vm3, %v6419_v32  ;;  %v17624_v9 = vld [vmem:[#allocation4 + $0x80] sm:$0xff]  ;;  %6513 = vst.msk [vmem:[#allocation4 + $0x90] sm:$0xff] %vm6494_vm3, %v6417_v50 }
 0x3dc   : > { %14195 = vmatprep.mubr.msk.f32.mxu1 %vm7045_vm6, %v17624_v9 }
 0x3de   : > { %v17629_v43 = vld [vmem:[#allocation4 + $0x88] sm:$0xff]  ;;  %v6647_v10 = vpop.permute.xlu0 %6646 }
 0x3df   : > { %v6193_v17 = vpop.permute.xlu1 %6192  ;;  %14196 = vmatmul.mubr.msk.f32.gmra.mrb[126].mxu1 %vm7045_vm6, %v17629_v43  ;;  %6743 = vst.msk [vmem:[#allocation4 + $0x90] sm:$0xff] %vm6724_vm4, %v6647_v10 }
 0x3e0   : > { %6286 = vst.msk [vmem:[#allocation4 + $0xa8] sm:$0xff] %vm6264_vm2, %v6193_v17 }
 0x3e2   : > { %v6877_v47 = vpop.permute.xlu0 %6876 }
 0x3e3   : > { %v6649_v8 = vpop.permute.xlu1 %6648  ;;  %6973 = vst.msk [vmem:[#allocation4 + $0x90] sm:$0xff] %vm6954_vm5, %v6877_v47 }
 0x3e4   : > { %6744 = vst.msk [vmem:[#allocation4 + $0x98] sm:$0xff] %vm6724_vm4, %v6649_v8 }
 0x3e6   : > { %v6191_v36 = vpop.permute.xlu0 %6190 }
 0x3e7   : > { %v6879_v0 = vpop.permute.xlu1 %6878  ;;  %6285 = vst.msk [vmem:[#allocation4 + $0xa0] sm:$0xff] %vm6264_vm2, %v6191_v36 }
 0x3e8   : > { %6974 = vst.msk [vmem:[#allocation4 + $0x98] sm:$0xff] %vm6954_vm5, %v6879_v0 }
 0x3ea   : > { %v6421_v53 = vpop.permute.xlu0 %6420  ;;  %v17640_v62 = vld [vmem:[#allocation4 + $0x90] sm:$0xff] }
 0x3eb   : > { %v6423_v61 = vpop.permute.xlu1 %6422  ;;  %6515 = vst.msk [vmem:[#allocation4 + $0xa0] sm:$0xff] %vm6494_vm3, %v6421_v53  ;;  %14198 = vmatprep.mubr.msk.f32.mxu1 %vm7045_vm6, %v17640_v62 }
 0x3ec   : > { %6516 = vst.msk [vmem:[#allocation4 + $0xa8] sm:$0xff] %vm6494_vm3, %v6423_v61 }
 0x3ee   : > { %v6651_v51 = vpop.permute.xlu0 %6650 }
 0x3ef   : > { %v6197_v2 = vpop.permute.xlu1 %6196  ;;  %v17645_v29 = vld [vmem:[#allocation4 + $0x98] sm:$0xff]  ;;  %6745 = vst.msk [vmem:[#allocation4 + $0xa0] sm:$0xff] %vm6724_vm4, %v6651_v51 }
 0x3f0   : > { %6288 = vst.msk [vmem:[#allocation4 + $0xb8] sm:$0xff] %vm6264_vm2, %v6197_v2  ;;  %14199 = vmatmul.mubr.msk.f32.gmra.mrb[128].mxu1 %vm7045_vm6, %v17645_v29 }
 0x3f2   : > { %v6881_v55 = vpop.permute.xlu0 %6880 }
 0x3f3   : > { %v6653_v21 = vpop.permute.xlu1 %6652  ;;  %6975 = vst.msk [vmem:[#allocation4 + $0xa0] sm:$0xff] %vm6954_vm5, %v6881_v55  ;;  %v12432_v55 = vld [vmem:[%s20561_s3 + $0xb0] sm:$0xff] }
 0x3f4   : > { %6746 = vst.msk [vmem:[#allocation4 + $0xa8] sm:$0xff] %vm6724_vm4, %v6653_v21 }
 0x3f6   : > { %v6195_v12 = vpop.permute.xlu0 %6194 }
 0x3f7   : > { %v6883_v52 = vpop.permute.xlu1 %6882  ;;  %6287 = vst.msk [vmem:[#allocation4 + $0xb0] sm:$0xff] %vm6264_vm2, %v6195_v12 }
 0x3f8   : > { %6976 = vst.msk [vmem:[#allocation4 + $0xa8] sm:$0xff] %vm6954_vm5, %v6883_v52  ;;  %v12433_v52 = vld [vmem:[%s20561_s3 + $0xb8] sm:$0xff] }
 0x3fa   : > { %v6425_v48 = vpop.permute.xlu0 %6424  ;;  %v17656_v59 = vld [vmem:[#allocation4 + $0xa0] sm:$0xff] }
 0x3fb   : > { %v6427_v13 = vpop.permute.xlu1 %6426  ;;  %6517 = vst.msk [vmem:[#allocation4 + $0xb0] sm:$0xff] %vm6494_vm3, %v6425_v48  ;;  %14201 = vmatprep.mubr.msk.f32.mxu1 %vm7045_vm6, %v17656_v59  ;;  %v14508_v48 = vpack.c.bf16 %v12433_v52, %v12432_v55  ;;  %v12508_v55 = vld [vmem:[%s20561_s3 + $0x150] sm:$0xff]  ;;  %v12509_v52 = vld [vmem:[%s20561_s3 + $0x158] sm:$0xff] }
 0x3fc   : > { %6518 = vst.msk [vmem:[#allocation4 + $0xb8] sm:$0xff] %vm6494_vm3, %v6427_v13  ;;  %v6994_v13 = vld [vmem:[#allocation4] sm:$0xff] }
 0x3fe   : > { %v6655_v5 = vpop.permute.xlu0 %6654 }
 0x3ff   : > { %v6201_v63 = vpop.permute.xlu1 %6200  ;;  %v17661_v3 = vld [vmem:[#allocation4 + $0xa8] sm:$0xff]  ;;  %6747 = vst.msk [vmem:[#allocation4 + $0xb0] sm:$0xff] %vm6724_vm4, %v6655_v5 }
 0x400   : > { %6290 = vst.msk [vmem:[#allocation4 + $0xc8] sm:$0xff] %vm6264_vm2, %v6201_v63  ;;  %14202 = vmatmul.mubr.msk.f32.gmra.mrb[130].mxu1 %vm7045_vm6, %v17661_v3  ;;  %v6995_v5 = vld [vmem:[#allocation4 + $0x8] sm:$0xff] }
 0x402   : > { %v6885_v28 = vpop.permute.xlu0 %6884 }
 0x403   : > { %v6657_v42 = vpop.permute.xlu1 %6656  ;;  %6977 = vst.msk [vmem:[#allocation4 + $0xb0] sm:$0xff] %vm6954_vm5, %v6885_v28  ;;  %v12435_v28 = vld [vmem:[%s20561_s3 + $0xc8] sm:$0xff] }
 0x404   : > { %6748 = vst.msk [vmem:[#allocation4 + $0xb8] sm:$0xff] %vm6724_vm4, %v6657_v42  ;;  %v12434_v42 = vld [vmem:[%s20561_s3 + $0xc0] sm:$0xff] }
 0x406   : > { %v6199_v34 = vpop.permute.xlu0 %6198 }
 0x407   : > { %v6887_v58 = vpop.permute.xlu1 %6886  ;;  %6289 = vst.msk [vmem:[#allocation4 + $0xc0] sm:$0xff] %vm6264_vm2, %v6199_v34  ;;  %v15140_v34 = vld [vmem:[#allocation4 + $0x10] sm:$0xff] }
 0x408   : > { %6978 = vst.msk [vmem:[#allocation4 + $0xb8] sm:$0xff] %vm6954_vm5, %v6887_v58 }
 0x40a   : > { %v6429_v23 = vpop.permute.xlu0 %6428  ;;  %v17672_v16 = vld [vmem:[#allocation4 + $0xb0] sm:$0xff] }
 0x40b   : > { %v6431_v1 = vpop.permute.xlu1 %6430  ;;  %6519 = vst.msk [vmem:[#allocation4 + $0xc0] sm:$0xff] %vm6494_vm3, %v6429_v23  ;;  %14204 = vmatprep.mubr.msk.f32.mxu1 %vm7045_vm6, %v17672_v16  ;;  %v12436_v23 = vld [vmem:[%s20561_s3 + $0xd0] sm:$0xff] }
 0x40c   : > { %6520 = vst.msk [vmem:[#allocation4 + $0xc8] sm:$0xff] %vm6494_vm3, %v6431_v1  ;;  %v14512_v1 = vpack.c.bf16 %v12435_v28, %v12434_v42  ;;  %v12512_v28 = vld [vmem:[%s20561_s3 + $0x170] sm:$0xff] }
 0x40e   : > { %v6659_v57 = vpop.permute.xlu0 %6658 }
 0x40f   : > { %v6205_v31 = vpop.permute.xlu1 %6204  ;;  %v17677_v33 = vld [vmem:[#allocation4 + $0xb8] sm:$0xff]  ;;  %6749 = vst.msk [vmem:[#allocation4 + $0xc0] sm:$0xff] %vm6724_vm4, %v6659_v57 }
 0x410   : > { %6292 = vst.msk [vmem:[#allocation4 + $0xd8] sm:$0xff] %vm6264_vm2, %v6205_v31  ;;  %14205 = vmatmul.mubr.msk.f32.gmra.mrb[132].mxu1 %vm7045_vm6, %v17677_v33  ;;  %v12437_v31 = vld [vmem:[%s20561_s3 + $0xd8] sm:$0xff]  ;;  %v15141_v57 = vld [vmem:[#allocation4 + $0x18] sm:$0xff] }
 0x412   : > { %v6889_v25 = vpop.permute.xlu0 %6888 }
 0x413   : > { %v6661_v14 = vpop.permute.xlu1 %6660  ;;  %6979 = vst.msk [vmem:[#allocation4 + $0xc0] sm:$0xff] %vm6954_vm5, %v6889_v25  ;;  %v12438_v25 = vld [vmem:[%s20561_s3 + $0xe0] sm:$0xff] }
 0x414   : > { %6750 = vst.msk [vmem:[#allocation4 + $0xc8] sm:$0xff] %vm6724_vm4, %v6661_v14  ;;  %v15142_v14 = vld [vmem:[#allocation4 + $0x20] sm:$0xff] }
 0x416   : > { %v6203_v60 = vpop.permute.xlu0 %6202 }
 0x417   : > { %v6891_v19 = vpop.permute.xlu1 %6890  ;;  %6291 = vst.msk [vmem:[#allocation4 + $0xd0] sm:$0xff] %vm6264_vm2, %v6203_v60 }
 0x418   : > { %6980 = vst.msk [vmem:[#allocation4 + $0xc8] sm:$0xff] %vm6954_vm5, %v6891_v19  ;;  %v12439_v19 = vld [vmem:[%s20561_s3 + $0xe8] sm:$0xff] }
 0x419   : > { %v14520_v60 = vpack.c.bf16 %v12439_v19, %v12438_v25 }
 0x41a   : > { %v6433_v46 = vpop.permute.xlu0 %6432  ;;  %v17688_v20 = vld [vmem:[#allocation4 + $0xc0] sm:$0xff] }
 0x41b   : > { %v6435_v18 = vpop.permute.xlu1 %6434  ;;  %6521 = vst.msk [vmem:[#allocation4 + $0xd0] sm:$0xff] %vm6494_vm3, %v6433_v46  ;;  %14207 = vmatprep.mubr.msk.f32.mxu1 %vm7045_vm6, %v17688_v20  ;;  %v12469_v46 = vld [vmem:[%s20561_s3 + $0xf8] sm:$0xff] }
 0x41c   : > { %6522 = vst.msk [vmem:[#allocation4 + $0xd8] sm:$0xff] %vm6494_vm3, %v6435_v18  ;;  %v12468_v18 = vld [vmem:[%s20561_s3 + $0xf0] sm:$0xff] }
 0x41e   : > { %v6663_v39 = vpop.permute.xlu0 %6662 }
 0x41f   : > { %v6209_v35 = vpop.permute.xlu1 %6208  ;;  %v17693_v6 = vld [vmem:[#allocation4 + $0xc8] sm:$0xff]  ;;  %6751 = vst.msk [vmem:[#allocation4 + $0xd0] sm:$0xff] %vm6724_vm4, %v6663_v39  ;;  %v7546_v39 = vld [vmem:[#allocation4 + $0x20] sm:$0xff] }
 0x420   : > { %6294 = vst.msk [vmem:[#allocation4 + $0xe8] sm:$0xff] %vm6264_vm2, %v6209_v35  ;;  %14208 = vmatmul.mubr.msk.f32.gmra.mrb[134].mxu1 %vm7045_vm6, %v17693_v6  ;;  %v12471_v35 = vld [vmem:[%s20561_s3 + $0x108] sm:$0xff] }
 0x422   : > { %v6893_v26 = vpop.permute.xlu0 %6892 }
 0x423   : > { %v6665_v11 = vpop.permute.xlu1 %6664  ;;  %6981 = vst.msk [vmem:[#allocation4 + $0xd0] sm:$0xff] %vm6954_vm5, %v6893_v26  ;;  %v7547_v26 = vld [vmem:[#allocation4 + $0x28] sm:$0xff] }
 0x424   : > { %6752 = vst.msk [vmem:[#allocation4 + $0xd8] sm:$0xff] %vm6724_vm4, %v6665_v11 }
 0x426   : > { %v6207_v37 = vpop.permute.xlu0 %6206 }
 0x427   : > { %v6895_v40 = vpop.permute.xlu1 %6894  ;;  %6293 = vst.msk [vmem:[#allocation4 + $0xe0] sm:$0xff] %vm6264_vm2, %v6207_v37  ;;  %v12473_v37 = vld [vmem:[%s20561_s3 + $0x118] sm:$0xff] }
 0x428   : > { %6982 = vst.msk [vmem:[#allocation4 + $0xd8] sm:$0xff] %vm6954_vm5, %v6895_v40  ;;  %v12472_v40 = vld [vmem:[%s20561_s3 + $0x110] sm:$0xff] }
 0x42a   : > { %v6437_v27 = vpop.permute.xlu0 %6436  ;;  %v17704_v32 = vld [vmem:[#allocation4 + $0xd0] sm:$0xff] }
 0x42b   : > { %v6439_v24 = vpop.permute.xlu1 %6438  ;;  %6523 = vst.msk [vmem:[#allocation4 + $0xe0] sm:$0xff] %vm6494_vm3, %v6437_v27  ;;  %14210 = vmatprep.mubr.msk.f32.mxu1 %vm7045_vm6, %v17704_v32  ;;  %v14532_v27 = vpack.c.bf16 %v12473_v37, %v12472_v40 }
 0x42c   : > { %6524 = vst.msk [vmem:[#allocation4 + $0xe8] sm:$0xff] %vm6494_vm3, %v6439_v24  ;;  %v7548_v24 = vld [vmem:[#allocation4 + $0x30] sm:$0xff] }
 0x42e   : > { %v6667_v10 = vpop.permute.xlu0 %6666 }
 0x42f   : > { %v6213_v50 = vpop.permute.xlu1 %6212  ;;  %v17709_v17 = vld [vmem:[#allocation4 + $0xd8] sm:$0xff]  ;;  %6753 = vst.msk [vmem:[#allocation4 + $0xe0] sm:$0xff] %vm6724_vm4, %v6667_v10 }
 0x430   : > { %6296 = vst.msk [vmem:[#allocation4 + $0xf8] sm:$0xff] %vm6264_vm2, %v6213_v50  ;;  %14211 = vmatmul.mubr.msk.f32.gmra.mrb[136].mxu1 %vm7045_vm6, %v17709_v17  ;;  %v12474_v50 = vld [vmem:[%s20561_s3 + $0x120] sm:$0xff]  ;;  %v12475_v10 = vld [vmem:[%s20561_s3 + $0x128] sm:$0xff] }
 0x432   : > { %v6897_v47 = vpop.permute.xlu0 %6896 }
 0x433   : > { %v6669_v8 = vpop.permute.xlu1 %6668  ;;  %6983 = vst.msk [vmem:[#allocation4 + $0xe0] sm:$0xff] %vm6954_vm5, %v6897_v47  ;;  %v12476_v47 = vld [vmem:[%s20561_s3 + $0x130] sm:$0xff] }
 0x434   : > { %6754 = vst.msk [vmem:[#allocation4 + $0xe8] sm:$0xff] %vm6724_vm4, %v6669_v8  ;;  %v14536_v8 = vpack.c.bf16 %v12475_v10, %v12474_v50 }
 0x436   : > { %v6211_v36 = vpop.permute.xlu0 %6210 }
 0x437   : > { %v6899_v0 = vpop.permute.xlu1 %6898  ;;  %6295 = vst.msk [vmem:[#allocation4 + $0xf0] sm:$0xff] %vm6264_vm2, %v6211_v36  ;;  %v12507_v36 = vld [vmem:[%s20561_s3 + $0x148] sm:$0xff]  ;;  %vm10450_vm2 = vcmask 720512  }
 0x438   : > { %6984 = vst.msk [vmem:[#allocation4 + $0xe8] sm:$0xff] %vm6954_vm5, %v6899_v0  ;;  %v12477_v0 = vld [vmem:[%s20561_s3 + $0x138] sm:$0xff] }
 0x43a   : > { %v6441_v53 = vpop.permute.xlu0 %6440  ;;  %v17720_v2 = vld [vmem:[#allocation4 + $0xe0] sm:$0xff] }
 0x43b   : > { %v6443_v61 = vpop.permute.xlu1 %6442  ;;  %6525 = vst.msk [vmem:[#allocation4 + $0xf0] sm:$0xff] %vm6494_vm3, %v6441_v53  ;;  %14213 = vmatprep.mubr.msk.f32.mxu1 %vm7045_vm6, %v17720_v2 }
 0x43c   : > { %6526 = vst.msk [vmem:[#allocation4 + $0xf8] sm:$0xff] %vm6494_vm3, %v6443_v61  ;;  %vm10457_vm3 = vcmask 786112  }
 0x43e   : > { %v6673_v12 = vpop.permute.xlu0 %6672 }
 0x43f   : > { %v6671_v51 = vpop.permute.xlu1 %6670  ;;  %v17725_v21 = vld [vmem:[#allocation4 + $0xe8] sm:$0xff]  ;;  %6756 = vst.msk [vmem:[#allocation4 + $0xf8] sm:$0xff] %vm6724_vm4, %v6673_v12  ;;  %v14548_v12 = vpack.c.bf16 %v12509_v52, %v12508_v55  ;;  %v9049_v55 = vld [vmem:[%s20563_s5 + $0x750] sm:$0xff] }
 0x440   : > { %6755 = vst.msk [vmem:[#allocation4 + $0xf0] sm:$0xff] %vm6724_vm4, %v6671_v51  ;;  %14214 = vmatmul.mubr.msk.f32.gmra.mrb[138].mxu1 %vm7045_vm6, %v17725_v21  ;;  %vm10464_vm4 = vcmask 851712  }
 0x441   : > { %14236 = vmatprep.mubr.msk.f32.mxu1 %vm7045_vm6, %v6994_v13  ;;  %v7903_v13 = vld [vmem:[#allocation4 + $0x38] sm:$0xff] }
 0x442   : > { %v6903_v58 = vpop.permute.xlu0 %6902 }
 0x443   : > { %v6901_v63 = vpop.permute.xlu1 %6900  ;;  %6986 = vst.msk [vmem:[#allocation4 + $0xf8] sm:$0xff] %vm6954_vm5, %v6903_v58  ;;  %v12513_v58 = vld [vmem:[%s20561_s3 + $0x178] sm:$0xff] }
 0x444   : > { %6985 = vst.msk [vmem:[#allocation4 + $0xf0] sm:$0xff] %vm6954_vm5, %v6901_v63  ;;  %14237 = vmatmul.mubr.msk.f32.vlgmr.msra.gmra.mrb[112].mxu1 %vm7045_vm6, %v6995_v5  ;;  %v12511_v63 = vld [vmem:[%s20561_s3 + $0x168] sm:$0xff]  ;;  %v7904_v5 = vld [vmem:[#allocation4 + $0x40] sm:$0xff]  ;;  %vm10471_vm5 = vcmask 917312  }
 0x445   : > { %14507 = vmatpush3.bf16.msra.mxu1 %v17588_v15  ;;  %14239 = vmatprep.mubr.msk.f32.mxu1 %vm7045_vm6, %v15140_v34  ;;  %v14516_v15 = vpack.c.bf16 %v12437_v31, %v12436_v23  ;;  %v14556_v34 = vpack.c.bf16 %v12513_v58, %v12512_v28  ;;  %v12515_v23 = vld [vmem:[%s20561_s3 + $0x188] sm:$0xff]  ;;  %v7929_v31 = vld [vmem:[#allocation4 + $0x108] sm:$0xff] }
 0x446   : > { %14509 = vmatprep.subr.bf16.mxu1 %v14508_v48 }
 0x448   : > { %14240 = vmatmul.mubr.msk.f32.gmra.mrb[114].mxu1 %vm7045_vm6, %v15141_v57  ;;  %v8259_v57 = vld [vmem:[#allocation4 + $0x48] sm:$0xff] }
 0x449   : > { %14242 = vmatprep.mubr.msk.f32.mxu1 %vm7045_vm6, %v15142_v14  ;;  %14511 = vmatpush3.bf16.msra.mxu1 %v14508_v48  ;;  %v12510_v48 = vld [vmem:[%s20561_s3 + $0x160] sm:$0xff] }
 0x44a   : > { %14513 = vmatprep.subr.bf16.mxu1 %v14512_v1  ;;  %v17898_v51 = vld [vmem:[#allocation4 + $0xf8] sm:$0xff]  ;;  %v14552_v42 = vpack.c.bf16 %v12511_v63, %v12510_v48  ;;  %v8260_v14 = vld [vmem:[#allocation4 + $0x50] sm:$0xff] }
 0x44b   : > { %v17894_v53 = vld [vmem:[#allocation4 + $0xf0] sm:$0xff] }
 0x44c   : > { %14243 = vmatmul.mubr.msk.f32.gmra.mrb[116].mxu1 %vm7045_vm6, %v17406_v41  ;;  %v12470_v41 = vld [vmem:[%s20561_s3 + $0x100] sm:$0xff] }
 0x44d   : > { %14245 = vmatprep.mubr.msk.f32.mxu1 %vm7045_vm6, %v17402_v22  ;;  %14515 = vmatpush3.bf16.msra.mxu1 %v14512_v1  ;;  %v14524_v22 = vpack.c.bf16 %v12469_v46, %v12468_v18  ;;  %v14528_v11 = vpack.c.bf16 %v12471_v35, %v12470_v41  ;;  %v12514_v1 = vld [vmem:[%s20561_s3 + $0x180] sm:$0xff] }
 0x44e   : > { %14517 = vmatprep.subr.bf16.mxu1 %v14516_v15  ;;  %v8815_v41 = vld [vmem:[%s20563_s5] sm:$0xff] }
 0x450   : > { %14246 = vmatmul.mubr.msk.f32.gmra.mrb[118].mxu1 %vm7045_vm6, %v17458_v4 }
 0x451   : > { %14248 = vmatprep.mubr.msk.f32.mxu1 %vm7045_vm6, %v17454_v54  ;;  %14519 = vmatpush3.bf16.msra.mxu1 %v14516_v15 }
 0x452   : > { %14521 = vmatprep.subr.bf16.mxu1 %v14520_v60 }
 0x454   : > { %14249 = vmatmul.mubr.msk.f32.gmra.mrb[120].mxu1 %vm7045_vm6, %v17516_v44 }
 0x455   : > { %14251 = vmatprep.mubr.msk.f32.mxu1 %vm7045_vm6, %v17512_v7  ;;  %14523 = vmatpush3.bf16.msra.mxu1 %v14520_v60 }
 0x456   : > { %14525 = vmatprep.subr.bf16.mxu1 %v14524_v22 }
 0x458   : > { %14252 = vmatmul.mubr.msk.f32.gmra.mrb[122].mxu1 %vm7045_vm6, %v17553_v56 }
 0x459   : > { %14254 = vmatprep.mubr.msk.f32.mxu1 %vm7045_vm6, %v17550_v38 }
 0x45c   : > { %14255 = vmatmul.mubr.msk.f32.gmra.mrb[124].mxu1 %vm7045_vm6, %v17591_v45 }
 0x45d   : > { %14257 = vmatprep.mubr.msk.f32.mxu1 %vm7045_vm6, %v17604_v30 }
 0x460   : > { %14258 = vmatmul.mubr.msk.f32.gmra.mrb[126].mxu1 %vm7045_vm6, %v17611_v49 }
 0x461   : > { %14260 = vmatprep.mubr.msk.f32.mxu1 %vm7045_vm6, %v17624_v9 }
 0x464   : > { %14261 = vmatmul.mubr.msk.f32.gmra.mrb[128].mxu1 %vm7045_vm6, %v17629_v43 }
 0x465   : > { %14263 = vmatprep.mubr.msk.f32.mxu1 %vm7045_vm6, %v17640_v62 }
 0x468   : > { %14264 = vmatmul.mubr.msk.f32.gmra.mrb[130].mxu1 %vm7045_vm6, %v17645_v29 }
 0x469   : > { %14266 = vmatprep.mubr.msk.f32.mxu1 %vm7045_vm6, %v17656_v59 }
 0x46c   : > { %14267 = vmatmul.mubr.msk.f32.gmra.mrb[132].mxu1 %vm7045_vm6, %v17661_v3 }
 0x46d   : > { %14269 = vmatprep.mubr.msk.f32.mxu1 %vm7045_vm6, %v17672_v16 }
 0x470   : > { %14270 = vmatmul.mubr.msk.f32.gmra.mrb[134].mxu1 %vm7045_vm6, %v17677_v33 }
 0x471   : > { %14272 = vmatprep.mubr.msk.f32.mxu1 %vm7045_vm6, %v17688_v20 }
 0x474   : > { %14273 = vmatmul.mubr.msk.f32.gmra.mrb[136].mxu1 %vm7045_vm6, %v17693_v6 }
 0x475   : > { %14275 = vmatprep.mubr.msk.f32.mxu1 %vm7045_vm6, %v17704_v32 }
 0x478   : > { %14276 = vmatmul.mubr.msk.f32.gmra.mrb[138].mxu1 %vm7045_vm6, %v17709_v17 }
 0x479   : > { %14298 = vmatprep.mubr.msk.f32.mxu1 %vm7045_vm6, %v7546_v39 }
 0x47c   : > { %14299 = vmatmul.mubr.msk.f32.vlgmr.msra.gmra.mrb[112].mxu1 %vm7045_vm6, %v7547_v26 }
 0x47d   : > { %14527 = vmatpush3.bf16.msra.mxu1 %v14524_v22  ;;  %14301 = vmatprep.mubr.msk.f32.mxu1 %vm7045_vm6, %v7548_v24  ;;  %v8841_v22 = vld [vmem:[%s20563_s5 + $0xd0] sm:$0xff] }
 0x47e   : > { %14529 = vmatprep.subr.bf16.mxu1 %v14528_v11 }
 0x480   : > { %14302 = vmatmul.mubr.msk.f32.gmra.mrb[114].mxu1 %vm7045_vm6, %v17458_v4  ;;  %v12506_v4 = vld [vmem:[%s20561_s3 + $0x140] sm:$0xff] }
 0x481   : > { %14304 = vmatprep.mubr.msk.f32.mxu1 %vm7045_vm6, %v17454_v54  ;;  %14531 = vmatpush3.bf16.msra.mxu1 %v14528_v11  ;;  %v14540_v54 = vpack.c.bf16 %v12477_v0, %v12476_v47  ;;  %v14544_v61 = vpack.c.bf16 %v12507_v36, %v12506_v4  ;;  %v8867_v11 = vld [vmem:[%s20563_s5 + $0x1a0] sm:$0xff] }
 0x482   : > { %14533 = vmatprep.subr.bf16.mxu1 %v14532_v27 }
 0x484   : > { %14305 = vmatmul.mubr.msk.f32.gmra.mrb[116].mxu1 %vm7045_vm6, %v17516_v44 }
 0x485   : > { %14307 = vmatprep.mubr.msk.f32.mxu1 %vm7045_vm6, %v17512_v7  ;;  %14535 = vmatpush3.bf16.msra.mxu1 %v14532_v27 }
 0x486   : > { %14537 = vmatprep.subr.bf16.mxu1 %v14536_v8 }
 0x488   : > { %14308 = vmatmul.mubr.msk.f32.gmra.mrb[118].mxu1 %vm7045_vm6, %v17553_v56 }
 0x489   : > { %14310 = vmatprep.mubr.msk.f32.mxu1 %vm7045_vm6, %v17550_v38  ;;  %14539 = vmatpush3.bf16.msra.mxu1 %v14536_v8 }
 0x48a   : > { %14541 = vmatprep.subr.bf16.mxu1 %v14540_v54 }
 0x48c   : > { %14311 = vmatmul.mubr.msk.f32.gmra.mrb[120].mxu1 %vm7045_vm6, %v17591_v45 }
 0x48d   : > { %14313 = vmatprep.mubr.msk.f32.mxu1 %vm7045_vm6, %v17604_v30  ;;  %14543 = vmatpush3.bf16.msra.mxu1 %v14540_v54 }
 0x48e   : > { %14545 = vmatprep.subr.bf16.mxu1 %v14544_v61 }
 0x490   : > { %14314 = vmatmul.mubr.msk.f32.gmra.mrb[122].mxu1 %vm7045_vm6, %v17611_v49 }
 0x491   : > { %14316 = vmatprep.mubr.msk.f32.mxu1 %vm7045_vm6, %v17624_v9 }
 0x494   : > { %14317 = vmatmul.mubr.msk.f32.gmra.mrb[124].mxu1 %vm7045_vm6, %v17629_v43 }
 0x495   : > { %14319 = vmatprep.mubr.msk.f32.mxu1 %vm7045_vm6, %v17640_v62 }
 0x498   : > { %14320 = vmatmul.mubr.msk.f32.gmra.mrb[126].mxu1 %vm7045_vm6, %v17645_v29 }
 0x499   : > { %14322 = vmatprep.mubr.msk.f32.mxu1 %vm7045_vm6, %v17656_v59 }
 0x49c   : > { %14323 = vmatmul.mubr.msk.f32.gmra.mrb[128].mxu1 %vm7045_vm6, %v17661_v3 }
 0x49d   : > { %14325 = vmatprep.mubr.msk.f32.mxu1 %vm7045_vm6, %v17672_v16 }
 0x4a0   : > { %14326 = vmatmul.mubr.msk.f32.gmra.mrb[130].mxu1 %vm7045_vm6, %v17677_v33 }
 0x4a1   : > { %14328 = vmatprep.mubr.msk.f32.mxu1 %vm7045_vm6, %v17688_v20 }
 0x4a4   : > { %14329 = vmatmul.mubr.msk.f32.gmra.mrb[132].mxu1 %vm7045_vm6, %v17693_v6 }
 0x4a5   : > { %14331 = vmatprep.mubr.msk.f32.mxu1 %vm7045_vm6, %v17704_v32 }
 0x4a8   : > { %14332 = vmatmul.mubr.msk.f32.gmra.mrb[134].mxu1 %vm7045_vm6, %v17709_v17 }
 0x4a9   : > { %14334 = vmatprep.mubr.msk.f32.mxu1 %vm7045_vm6, %v17720_v2 }
 0x4ac   : > { %14335 = vmatmul.mubr.msk.f32.gmra.mrb[136].mxu1 %vm7045_vm6, %v17725_v21 }
 0x4ad   : > { %14337 = vmatprep.mubr.msk.f32.mxu1 %vm7045_vm6, %v17894_v53 }
 0x4b0   : > { %14338 = vmatmul.mubr.msk.f32.gmra.mrb[138].mxu1 %vm7045_vm6, %v17898_v51 }
 0x4b1   : > { %14360 = vmatprep.mubr.msk.f32.mxu1 %vm7045_vm6, %v7548_v24  ;;  %v9023_v24 = vld [vmem:[%s20563_s5 + $0x680] sm:$0xff] }
 0x4b4   : > { %14361 = vmatmul.mubr.msk.f32.vlgmr.msra.gmra.mrb[112].mxu1 %vm7045_vm6, %v7903_v13 }
 0x4b5   : > { %14547 = vmatpush3.bf16.msra.mxu1 %v14544_v61  ;;  %14363 = vmatprep.mubr.msk.f32.mxu1 %vm7045_vm6, %v7904_v5 }
 0x4b6   : > { %14549 = vmatprep.subr.bf16.mxu1 %v14548_v12 }
 0x4b8   : > { %14364 = vmatmul.mubr.msk.f32.gmra.mrb[114].mxu1 %vm7045_vm6, %v17516_v44  ;;  %v7928_v44 = vld [vmem:[#allocation4 + $0x100] sm:$0xff] }
 0x4b9   : > { %14366 = vmatprep.mubr.msk.f32.mxu1 %vm7045_vm6, %v17512_v7  ;;  %14551 = vmatpush3.bf16.msra.mxu1 %v14548_v12  ;;  %v14560_v7 = vpack.c.bf16 %v12515_v23, %v12514_v1  ;;  %v8997_v1 = vld [vmem:[%s20563_s5 + $0x5b0] sm:$0xff] }
 0x4ba   : > { %14553 = vmatprep.subr.bf16.mxu1 %v14552_v42 }
 0x4bc   : > { %14367 = vmatmul.mubr.msk.f32.gmra.mrb[116].mxu1 %vm7045_vm6, %v17553_v56 }
 0x4bd   : > { %14369 = vmatprep.mubr.msk.f32.mxu1 %vm7045_vm6, %v17550_v38  ;;  %14555 = vmatpush3.bf16.msra.mxu1 %v14552_v42 }
 0x4be   : > { %14557 = vmatprep.subr.bf16.mxu1 %v14556_v34 }
 0x4c0   : > { %14370 = vmatmul.mubr.msk.f32.gmra.mrb[118].mxu1 %vm7045_vm6, %v17591_v45 }
 0x4c1   : > { %14372 = vmatprep.mubr.msk.f32.mxu1 %vm7045_vm6, %v17604_v30  ;;  %14559 = vmatpush3.bf16.msra.mxu1 %v14556_v34  ;;  %v8919_v34 = vld [vmem:[%s20563_s5 + $0x340] sm:$0xff] }
 0x4c2   : > { %14561 = vmatprep.subr.bf16.mxu1 %v14560_v7 }
 0x4c4   : > { %14373 = vmatmul.mubr.msk.f32.gmra.mrb[120].mxu1 %vm7045_vm6, %v17611_v49 }
 0x4c5   : > { %14375 = vmatprep.mubr.msk.f32.mxu1 %vm7045_vm6, %v17624_v9  ;;  %14563 = vmatpush3.bf16.msra.mxu1 %v14560_v7 }
 0x4c8   : > { %14376 = vmatmul.mubr.msk.f32.gmra.mrb[122].mxu1 %vm7045_vm6, %v17629_v43 }
 0x4c9   : > { %14378 = vmatprep.mubr.msk.f32.mxu1 %vm7045_vm6, %v17640_v62 }
 0x4cc   : > { %14379 = vmatmul.mubr.msk.f32.gmra.mrb[124].mxu1 %vm7045_vm6, %v17645_v29 }
 0x4cd   : > { %14381 = vmatprep.mubr.msk.f32.mxu1 %vm7045_vm6, %v17656_v59 }
 0x4d0   : > { %14382 = vmatmul.mubr.msk.f32.gmra.mrb[126].mxu1 %vm7045_vm6, %v17661_v3 }
 0x4d1   : > { %14384 = vmatprep.mubr.msk.f32.mxu1 %vm7045_vm6, %v17672_v16 }
 0x4d4   : > { %14385 = vmatmul.mubr.msk.f32.gmra.mrb[128].mxu1 %vm7045_vm6, %v17677_v33 }
 0x4d5   : > { %14387 = vmatprep.mubr.msk.f32.mxu1 %vm7045_vm6, %v17688_v20 }
 0x4d8   : > { %14388 = vmatmul.mubr.msk.f32.gmra.mrb[130].mxu1 %vm7045_vm6, %v17693_v6 }
 0x4d9   : > { %14390 = vmatprep.mubr.msk.f32.mxu1 %vm7045_vm6, %v17704_v32 }
 0x4dc   : > { %14391 = vmatmul.mubr.msk.f32.gmra.mrb[132].mxu1 %vm7045_vm6, %v17709_v17 }
 0x4dd   : > { %14393 = vmatprep.mubr.msk.f32.mxu1 %vm7045_vm6, %v17720_v2 }
 0x4e0   : > { %14394 = vmatmul.mubr.msk.f32.gmra.mrb[134].mxu1 %vm7045_vm6, %v17725_v21 }
 0x4e1   : > { %14396 = vmatprep.mubr.msk.f32.mxu1 %vm7045_vm6, %v17894_v53 }
 0x4e4   : > { %14397 = vmatmul.mubr.msk.f32.gmra.mrb[136].mxu1 %vm7045_vm6, %v17898_v51 }
 0x4e5   : > { %14399 = vmatprep.mubr.msk.f32.mxu1 %vm7045_vm6, %v7928_v44 }
 0x4e8   : > { %14400 = vmatmul.mubr.msk.f32.gmra.mrb[138].mxu1 %vm7045_vm6, %v7929_v31 }
 0x4e9   : > { %14422 = vmatprep.mubr.msk.f32.mxu1 %vm7045_vm6, %v7904_v5 }
 0x4ec   : > { %14423 = vmatmul.mubr.msk.f32.vlgmr.msra.gmra.mrb[112].mxu1 %vm7045_vm6, %v8259_v57 }
 0x4ed   : > { %14425 = vmatprep.mubr.msk.f32.mxu1 %vm7045_vm6, %v8260_v14 }
 0x4f0   : > { %14426 = vmatmul.mubr.msk.f32.gmra.mrb[114].mxu1 %vm7045_vm6, %v17553_v56  ;;  %v8285_v56 = vld [vmem:[#allocation4 + $0x118] sm:$0xff] }
 0x4f1   : > { %14428 = vmatprep.mubr.msk.f32.mxu1 %vm7045_vm6, %v17550_v38  ;;  %v8284_v38 = vld [vmem:[#allocation4 + $0x110] sm:$0xff] }
 0x4f4   : > { %14429 = vmatmul.mubr.msk.f32.gmra.mrb[116].mxu1 %vm7045_vm6, %v17591_v45 }
 0x4f5   : > { %14431 = vmatprep.mubr.msk.f32.mxu1 %vm7045_vm6, %v17604_v30 }
 0x4f8   : > { %14432 = vmatmul.mubr.msk.f32.gmra.mrb[118].mxu1 %vm7045_vm6, %v17611_v49 }
 0x4f9   : > { %14434 = vmatprep.mubr.msk.f32.mxu1 %vm7045_vm6, %v17624_v9 }
 0x4fc   : > { %14435 = vmatmul.mubr.msk.f32.gmra.mrb[120].mxu1 %vm7045_vm6, %v17629_v43 }
 0x4fd   : > { %14437 = vmatprep.mubr.msk.f32.mxu1 %vm7045_vm6, %v17640_v62 }
 0x500   : > { %14438 = vmatmul.mubr.msk.f32.gmra.mrb[122].mxu1 %vm7045_vm6, %v17645_v29 }
 0x501   : > { %14440 = vmatprep.mubr.msk.f32.mxu1 %vm7045_vm6, %v17656_v59 }
 0x504   : > { %14441 = vmatmul.mubr.msk.f32.gmra.mrb[124].mxu1 %vm7045_vm6, %v17661_v3 }
 0x505   : > { %14443 = vmatprep.mubr.msk.f32.mxu1 %vm7045_vm6, %v17672_v16 }
 0x508   : > { %14444 = vmatmul.mubr.msk.f32.gmra.mrb[126].mxu1 %vm7045_vm6, %v17677_v33 }
 0x509   : > { %14446 = vmatprep.mubr.msk.f32.mxu1 %vm7045_vm6, %v17688_v20 }
 0x50c   : > { %14447 = vmatmul.mubr.msk.f32.gmra.mrb[128].mxu1 %vm7045_vm6, %v17693_v6 }
 0x50d   : > { %14449 = vmatprep.mubr.msk.f32.mxu1 %vm7045_vm6, %v17704_v32 }
 0x510   : > { %14450 = vmatmul.mubr.msk.f32.gmra.mrb[130].mxu1 %vm7045_vm6, %v17709_v17  ;;  %v18037_v17 = vld [vmem:[%s20562_s4] ss:$0 sm:$0xff] }
 0x511   : > { %14452 = vmatprep.mubr.msk.f32.mxu1 %vm7045_vm6, %v17720_v2 }
 0x514   : > { %14453 = vmatmul.mubr.msk.f32.gmra.mrb[132].mxu1 %vm7045_vm6, %v17725_v21 }
 0x515   : > { %14455 = vmatprep.mubr.msk.f32.mxu1 %vm7045_vm6, %v17894_v53  ;;  %v8893_v53 = vld [vmem:[%s20563_s5 + $0x270] sm:$0xff] }
 0x518   : > { %14456 = vmatmul.mubr.msk.f32.gmra.mrb[134].mxu1 %vm7045_vm6, %v17898_v51 }
 0x519   : > { %14458 = vmatprep.mubr.msk.f32.mxu1 %vm7045_vm6, %v7928_v44 }
 0x51c   : > { %14459 = vmatmul.mubr.msk.f32.gmra.mrb[136].mxu1 %vm7045_vm6, %v7929_v31 }
 0x51d   : > { %14461 = vmatprep.mubr.msk.f32.mxu1 %vm7045_vm6, %v8284_v38 }
 0x520   : > { %14462 = vmatmul.mubr.msk.f32.gmra.mrb[138].mxu1 %vm7045_vm6, %v8285_v56  ;;  %vm10478_vm6 = vcmask 982912  }
 0x5bf   : > { %v14424_v45 = vpop.f32.mrb[112].mxu1 }
 0x5c0   : > { %8616 = vst.msk [vmem:[#allocation5 + $0x8] sm:$0xff] %vm8614_vm8, %v14424_v45  ;;  %v8447_v30 = vpop.f32.mrb[113].mxu1  ;;  %v8945_v45 = vld [vmem:[%s20563_s5 + $0x410] sm:$0xff] }
 0x5c1   : > { %8615 = vst.msk [vmem:[#allocation5] sm:$0xff] %vm8614_vm8, %v8447_v30  ;;  %v8817_v30 = vld [vmem:[%s20563_s5 + $0x10] sm:$0xff] }
 0x5c3   : > { %v14427_v49 = vpop.f32.mrb[114].mxu1 }
 0x5c4   : > { %8618 = vst.msk [vmem:[#allocation5 + $0x18] sm:$0xff] %vm8614_vm8, %v14427_v49  ;;  %v8457_v9 = vpop.f32.mrb[115].mxu1 }
 0x5c5   : > { %8617 = vst.msk [vmem:[#allocation5 + $0x10] sm:$0xff] %vm8614_vm8, %v8457_v9 }
 0x5c7   : > { %v14430_v43 = vpop.f32.mrb[116].mxu1  ;;  %v8644_v51 = vld [vmem:[#allocation5 + $0x8] sm:$0xff] }
 0x5c8   : > { %8620 = vst.msk [vmem:[#allocation5 + $0x28] sm:$0xff] %vm8614_vm8, %v14430_v43  ;;  %v8467_v62 = vpop.f32.mrb[117].mxu1  ;;  %v8643_v29 = vld [vmem:[#allocation5] sm:$0xff] }
 0x5c9   : > { %8619 = vst.msk [vmem:[#allocation5 + $0x20] sm:$0xff] %vm8614_vm8, %v8467_v62  ;;  %v8669_v59 = vld [vmem:[#allocation5 + $0x1] sm:$0xff] }
 0x5ca   : > { %v8695_v6 = vmax.f32 %v8643_v29, %v8669_v59 }
 0x5cb   : > { %v14433_v3 = vpop.f32.mrb[118].mxu1  ;;  %v8646_v50 = vld [vmem:[#allocation5 + $0x18] sm:$0xff] }
 0x5cc   : > { %v8645_v16 = vld [vmem:[#allocation5 + $0x10] sm:$0xff]  ;;  %8622 = vst.msk [vmem:[#allocation5 + $0x38] sm:$0xff] %vm8614_vm8, %v14433_v3  ;;  %v8477_v20 = vpop.f32.mrb[119].mxu1 }
 0x5cd   : > { %v8671_v33 = vld [vmem:[#allocation5 + $0x11] sm:$0xff]  ;;  %8621 = vst.msk [vmem:[#allocation5 + $0x30] sm:$0xff] %vm8614_vm8, %v8477_v20  ;;  %v8670_v10 = vld [vmem:[#allocation5 + $0x9] sm:$0xff] }
 0x5ce   : > { %v8697_v32 = vmax.f32 %v8645_v16, %v8671_v33  ;;  %v8696_v52 = vmax.f32 %v8644_v51, %v8670_v10  ;;  %v8971_v16 = vld [vmem:[%s20563_s5 + $0x4e0] sm:$0xff]  ;;  %v8842_v33 = vld [vmem:[%s20563_s5 + $0xd8] sm:$0xff] }
 0x5cf   : > { %v14436_v21 = vpop.f32.mrb[120].mxu1 }
 0x5d0   : > { %v8730_v2 = vmax.f32 %v8695_v6, %v8697_v32  ;;  %8624 = vst.msk [vmem:[#allocation5 + $0x48] sm:$0xff] %vm8614_vm8, %v14436_v21  ;;  %v8487_v15 = vpop.f32.mrb[121].mxu1  ;;  %v8647_v19 = vld [vmem:[#allocation5 + $0x20] sm:$0xff] }
 0x5d1   : > { %8623 = vst.msk [vmem:[#allocation5 + $0x40] sm:$0xff] %vm8614_vm8, %v8487_v15  ;;  %v8673_v60 = vld [vmem:[#allocation5 + $0x21] sm:$0xff]  ;;  %v8672_v26 = vld [vmem:[#allocation5 + $0x19] sm:$0xff] }
 0x5d2   : > { %v8763_v25 = vadd.f32 %v18037_v17, %v8730_v2  ;;  %v18051_v39 = vmax.f32 %v8647_v19, %v8673_v60  ;;  %v18066_v4 = vmax.f32 %v8646_v50, %v8672_v26  ;;  %v8868_v19 = vld [vmem:[%s20563_s5 + $0x1a8] sm:$0xff]  ;;  %v8894_v26 = vld [vmem:[%s20563_s5 + $0x278] sm:$0xff] }
 0x5d3   : > { %v14439_v46 = vpop.f32.mrb[122].mxu1 }
 0x5d4   : > { %v18042_v18 = vmax.f32 %v8763_v25, 0.0  ;;  %8626 = vst.msk [vmem:[#allocation5 + $0x58] sm:$0xff] %vm8614_vm8, %v14439_v46  ;;  %v8497_v35 = vpop.f32.mrb[123].mxu1  ;;  %v8732_v36 = vmax.f32 %v8697_v32, %v18051_v39  ;;  %v8731_v5 = vmax.f32 %v8696_v52, %v18066_v4  ;;  %v8816_v25 = vld [vmem:[%s20563_s5 + $0x8] sm:$0xff]  ;;  %v8895_v52 = vld [vmem:[%s20563_s5 + $0x280] sm:$0xff] }
 0x5d5   : > { %8625 = vst.msk [vmem:[#allocation5 + $0x50] sm:$0xff] %vm8614_vm8, %v8497_v35 }
 0x5d6   : > { %v9101_v40 = vmul.f32 %v8841_v22, %v18042_v18  ;;  %v9075_v37 = vmul.f32 %v8815_v41, %v18042_v18  ;;  %v9127_v54 = vmul.f32 %v8867_v11, %v18042_v18  ;;  %v9283_v61 = vmul.f32 %v9023_v24, %v18042_v18  ;;  %v8843_v11 = vld [vmem:[%s20563_s5 + $0xe0] sm:$0xff] }
 0x5d7   : > { %v14442_v27 = vpop.f32.mrb[124].mxu1  ;;  %v9153_v63 = vmul.f32 %v8893_v53, %v18042_v18  ;;  %v8765_v42 = vadd.f32 %v18037_v17, %v8732_v36  ;;  %v9309_v58 = vmul.f32 %v9049_v55, %v18042_v18  ;;  %v9179_v31 = vmul.f32 %v8919_v34, %v18042_v18  ;;  %v8674_v53 = vld [vmem:[#allocation5 + $0x29] sm:$0xff] }
 0x5d8   : > { %8628 = vst.msk [vmem:[#allocation5 + $0x68] sm:$0xff] %vm8614_vm8, %v14442_v27  ;;  %v9414_v8 = vsel %vm8614_vm8, %v9101_v40, 0.0  ;;  %v9335_v47 = vsel %vm8614_vm8, %v9075_v37, 0.0  ;;  %v8507_v0 = vpop.f32.mrb[125].mxu1  ;;  %v9492_v13 = vsel %vm8614_vm8, %v9127_v54, 0.0  ;;  %v9960_v28 = vsel %vm8614_vm8, %v9283_v61, 0.0 }
 0x5d9   : > { %9415 = vadd.xlane.f32.xlu1 %v9414_v8  ;;  %8627 = vst.msk [vmem:[#allocation5 + $0x60] sm:$0xff] %vm8614_vm8, %v8507_v0  ;;  %9336 = vadd.xlane.f32.xlu0 %v9335_v47  ;;  %v9570_v7 = vsel %vm8614_vm8, %v9153_v63, 0.0  ;;  %v8764_v57 = vadd.f32 %v18037_v17, %v8731_v5  ;;  %v18095_v14 = vmax.f32 %v8765_v42, 0.0  ;;  %v10038_v38 = vsel %vm8614_vm8, %v9309_v58, 0.0  ;;  %v8869_v8 = vld [vmem:[%s20563_s5 + $0x1b0] sm:$0xff]  ;;  %v8920_v47 = vld [vmem:[%s20563_s5 + $0x348] sm:$0xff] }
 0x5da   : > { %v9257_v56 = vmul.f32 %v8997_v1, %v18042_v18  ;;  %v9648_v9 = vsel %vm8614_vm8, %v9179_v31, 0.0  ;;  %v9205_v62 = vmul.f32 %v8945_v45, %v18042_v18  ;;  %v9231_v2 = vmul.f32 %v8971_v16, %v18042_v18  ;;  %v8921_v58 = vld [vmem:[%s20563_s5 + $0x350] sm:$0xff]  ;;  %v8972_v1 = vld [vmem:[%s20563_s5 + $0x4e8] sm:$0xff] }
 0x5db   : > { %v14445_v12 = vpop.f32.mrb[126].mxu1  ;;  %v18109_v29 = vmax.f32 %v8764_v57, 0.0  ;;  %v9077_v3 = vmul.f32 %v8817_v30, %v18095_v14  ;;  %v9103_v27 = vmul.f32 %v8843_v11, %v18095_v14  ;;  %v9129_v61 = vmul.f32 %v8869_v8, %v18095_v14 }
 0x5dc   : > { %8630 = vst.msk [vmem:[#allocation5 + $0x78] sm:$0xff] %vm8614_vm8, %v14445_v12  ;;  %v8517_v48 = vpop.f32.mrb[127].mxu1  ;;  %v9882_v59 = vsel %vm8614_vm8, %v9257_v56, 0.0  ;;  %v9726_v6 = vsel %vm8614_vm8, %v9205_v62, 0.0  ;;  %v9804_v18 = vsel %vm8614_vm8, %v9231_v2, 0.0  ;;  %v8946_v12 = vld [vmem:[%s20563_s5 + $0x418] sm:$0xff]  ;;  %v9155_v5 = vmul.f32 %v8895_v52, %v18095_v14 }
 0x5dd   : > { %9493 = vadd.xlane.f32.xlu1 %v9492_v13  ;;  %8629 = vst.msk [vmem:[#allocation5 + $0x70] sm:$0xff] %vm8614_vm8, %v8517_v48  ;;  %9961 = vadd.xlane.f32.xlu0 %v9960_v28  ;;  %v9341_v21 = vsel %vm8614_vm8, %v9077_v3, 0.0  ;;  %v9102_v15 = vmul.f32 %v8842_v33, %v18109_v29  ;;  %v9076_v22 = vmul.f32 %v8816_v25, %v18109_v29  ;;  %v9420_v54 = vsel %vm8614_vm8, %v9103_v27, 0.0  ;;  %v8648_v13 = vld [vmem:[#allocation5 + $0x28] sm:$0xff]  ;;  %v8675_v25 = vld [vmem:[#allocation5 + $0x31] sm:$0xff] }
 0x5de   : > { %v9128_v35 = vmul.f32 %v8868_v19, %v18109_v29  ;;  %v9154_v10 = vmul.f32 %v8894_v26, %v18109_v29  ;;  %v9180_v55 = vmul.f32 %v8920_v47, %v18109_v29  ;;  %v18168_v48 = vmax.f32 %v8648_v13, %v8674_v53  ;;  %v8896_v52 = vld [vmem:[%s20563_s5 + $0x288] sm:$0xff] }
 0x5df   : > { %v14448_v23 = vpop.f32.mrb[128].mxu1  ;;  %v9417_v41 = vsel %vm8614_vm8, %v9102_v15, 0.0  ;;  %v9338_v37 = vsel %vm8614_vm8, %v9076_v22, 0.0  ;;  %v9498_v63 = vsel %vm8614_vm8, %v9129_v61, 0.0  ;;  %v9206_v28 = vmul.f32 %v8946_v12, %v18109_v29  ;;  %v8649_v15 = vld [vmem:[#allocation5 + $0x30] sm:$0xff]  ;;  %v8818_v22 = vld [vmem:[%s20563_s5 + $0x18] sm:$0xff] }
 0x5e0   : > { %8632 = vst.msk [vmem:[#allocation5 + $0x88] sm:$0xff] %vm8614_vm8, %v14448_v23  ;;  %v8527_v44 = vpop.f32.mrb[129].mxu1  ;;  %v9495_v50 = vsel %vm8614_vm8, %v9128_v35, 0.0  ;;  %v9573_v51 = vsel %vm8614_vm8, %v9154_v10, 0.0  ;;  %v9651_v42 = vsel %vm8614_vm8, %v9180_v55, 0.0  ;;  %v8733_v23 = vmax.f32 %v18066_v4, %v18168_v48  ;;  %v9025_v4 = vld [vmem:[%s20563_s5 + $0x690] sm:$0xff] }
 0x5e1   : > { %9571 = vadd.xlane.f32.xlu1 %v9570_v7  ;;  %8631 = vst.msk [vmem:[#allocation5 + $0x80] sm:$0xff] %vm8614_vm8, %v8527_v44  ;;  %10039 = vadd.xlane.f32.xlu0 %v10038_v38  ;;  %v9576_v57 = vsel %vm8614_vm8, %v9155_v5, 0.0  ;;  %v9181_v38 = vmul.f32 %v8921_v58, %v18095_v14  ;;  %v9729_v30 = vsel %vm8614_vm8, %v9206_v28, 0.0  ;;  %v9051_v55 = vld [vmem:[%s20563_s5 + $0x760] sm:$0xff]  ;;  %v8922_v28 = vld [vmem:[%s20563_s5 + $0x358] sm:$0xff] }
 0x5e2   : > { %v8766_v3 = vadd.f32 %v18037_v17, %v8733_v23  ;;  %v8845_v23 = vld [vmem:[%s20563_s5 + $0xf0] sm:$0xff] }
 0x5e3   : > { %v14451_v49 = vpop.f32.mrb[130].mxu1  ;;  %v9654_v62 = vsel %vm8614_vm8, %v9181_v38, 0.0 }
 0x5e4   : > { %8634 = vst.msk [vmem:[#allocation5 + $0x98] sm:$0xff] %vm8614_vm8, %v14451_v49  ;;  %v8537_v43 = vpop.f32.mrb[131].mxu1  ;;  %v9232_v49 = vmul.f32 %v8972_v1, %v18109_v29  ;;  %v18211_v19 = vmax.f32 %v8766_v3, 0.0 }
 0x5e5   : > { %9649 = vadd.xlane.f32.xlu1 %v9648_v9  ;;  %8633 = vst.msk [vmem:[#allocation5 + $0x90] sm:$0xff] %vm8614_vm8, %v8537_v43  ;;  %9883 = vadd.xlane.f32.xlu0 %v9882_v59  ;;  %v8947_v9 = vld [vmem:[%s20563_s5 + $0x420] sm:$0xff] }
 0x5e6   : > { %v9207_v59 = vmul.f32 %v8947_v9, %v18095_v14  ;;  %v9807_v33 = vsel %vm8614_vm8, %v9232_v49, 0.0  ;;  %v9156_v5 = vmul.f32 %v8896_v52, %v18211_v19  ;;  %v9182_v1 = vmul.f32 %v8922_v28, %v18211_v19  ;;  %v8974_v49 = vld [vmem:[%s20563_s5 + $0x4f8] sm:$0xff]  ;;  %v8872_v28 = vld [vmem:[%s20563_s5 + $0x1c8] sm:$0xff] }
 0x5e7   : > { %v14454_v20 = vpop.f32.mrb[132].mxu1  ;;  %v8650_v9 = vld [vmem:[#allocation5 + $0x38] sm:$0xff]  ;;  %v9234_v3 = vmul.f32 %v8974_v49, %v18211_v19 }
 0x5e8   : > { %8636 = vst.msk [vmem:[#allocation5 + $0xa8] sm:$0xff] %vm8614_vm8, %v14454_v20  ;;  %v8547_v32 = vpop.f32.mrb[133].mxu1  ;;  %v9285_v20 = vmul.f32 %v9025_v4, %v18095_v14  ;;  %v9732_v2 = vsel %vm8614_vm8, %v9207_v59, 0.0 }
 0x5e9   : > { %9727 = vadd.xlane.f32.xlu1 %v9726_v6  ;;  %8635 = vst.msk [vmem:[#allocation5 + $0xa0] sm:$0xff] %vm8614_vm8, %v8547_v32  ;;  %9342 = vadd.xlane.f32.xlu0 %v9341_v21  ;;  %v8973_v6 = vld [vmem:[%s20563_s5 + $0x4f0] sm:$0xff]  ;;  %v8999_v32 = vld [vmem:[%s20563_s5 + $0x5c0] sm:$0xff] }
 0x5ea   : > { %v9233_v21 = vmul.f32 %v8973_v6, %v18095_v14 }
 0x5eb   : > { %v14457_v60 = vpop.f32.mrb[134].mxu1 }
 0x5ec   : > { %8638 = vst.msk [vmem:[#allocation5 + $0xb8] sm:$0xff] %vm8614_vm8, %v14457_v60  ;;  %v8557_v46 = vpop.f32.mrb[135].mxu1  ;;  %v9966_v60 = vsel %vm8614_vm8, %v9285_v20, 0.0  ;;  %v9810_v35 = vsel %vm8614_vm8, %v9233_v21, 0.0  ;;  %v9052_v20 = vld [vmem:[%s20563_s5 + $0x768] sm:$0xff]  ;;  %v9813_v21 = vsel %vm8614_vm8, %v9234_v3, 0.0 }
 0x5ed   : > { %9805 = vadd.xlane.f32.xlu1 %v9804_v18  ;;  %8637 = vst.msk [vmem:[#allocation5 + $0xb0] sm:$0xff] %vm8614_vm8, %v8557_v46  ;;  %9418 = vadd.xlane.f32.xlu0 %v9417_v41  ;;  %v9259_v18 = vmul.f32 %v8999_v32, %v18095_v14  ;;  %v9024_v46 = vld [vmem:[%s20563_s5 + $0x688] sm:$0xff]  ;;  %v18221_v41 = vmax.f32 %v8649_v15, %v8675_v25  ;;  %v8923_v25 = vld [vmem:[%s20563_s5 + $0x360] sm:$0xff] }
 0x5ee   : > { %v9284_v11 = vmul.f32 %v9024_v46, %v18109_v29  ;;  %v9312_v15 = vmul.f32 %v9052_v20, %v18211_v19 }
 0x5ef   : > { %v14460_v40 = vpop.f32.mrb[136].mxu1  ;;  %v9888_v26 = vsel %vm8614_vm8, %v9259_v18, 0.0  ;;  %v8734_v27 = vmax.f32 %v18051_v39, %v18221_v41 }
 0x5f0   : > { %8640 = vst.msk [vmem:[#allocation5 + $0xc8] sm:$0xff] %vm8614_vm8, %v14460_v40  ;;  %v8567_v24 = vpop.f32.mrb[137].mxu1  ;;  %v9078_v40 = vmul.f32 %v8818_v22, %v18211_v19  ;;  %v10047_v22 = vsel %vm8614_vm8, %v9312_v15, 0.0  ;;  %v8652_v15 = vld [vmem:[#allocation5 + $0x48] sm:$0xff] }
 0x5f1   : > { %9339 = vadd.xlane.f32.xlu1 %v9338_v37  ;;  %8639 = vst.msk [vmem:[#allocation5 + $0xc0] sm:$0xff] %vm8614_vm8, %v8567_v24  ;;  %9496 = vadd.xlane.f32.xlu0 %v9495_v50  ;;  %v9050_v37 = vld [vmem:[%s20563_s5 + $0x758] sm:$0xff]  ;;  %v8844_v24 = vld [vmem:[%s20563_s5 + $0xe8] sm:$0xff]  ;;  %v9963_v50 = vsel %vm8614_vm8, %v9284_v11, 0.0  ;;  %v8767_v39 = vadd.f32 %v18037_v17, %v8734_v27  ;;  %v8949_v11 = vld [vmem:[%s20563_s5 + $0x430] sm:$0xff] }
 0x5f2   : > { %v9310_v10 = vmul.f32 %v9050_v37, %v18109_v29  ;;  %v9344_v8 = vsel %vm8614_vm8, %v9078_v40, 0.0  ;;  %v9104_v47 = vmul.f32 %v8844_v24, %v18211_v19  ;;  %v8651_v24 = vld [vmem:[#allocation5 + $0x40] sm:$0xff] }
 0x5f3   : > { %v14463_v0 = vpop.f32.mrb[138].mxu1  ;;  %v8666_v7 = vld [vmem:[#allocation5 + $0xb8] sm:$0xff]  ;;  %v18256_v12 = vmax.f32 %v8767_v39, 0.0  ;;  %v8677_v27 = vld [vmem:[#allocation5 + $0x41] sm:$0xff] }
 0x5f4   : > { %8642 = vst.msk [vmem:[#allocation5 + $0xd8] sm:$0xff] %vm8614_vm8, %v14463_v0  ;;  %v8577_v36 = vpop.f32.mrb[139].mxu1  ;;  %v8998_v0 = vld [vmem:[%s20563_s5 + $0x5b8] sm:$0xff]  ;;  %v9423_v53 = vsel %vm8614_vm8, %v9104_v47, 0.0  ;;  %v8975_v47 = vld [vmem:[%s20563_s5 + $0x500] sm:$0xff] }
 0x5f5   : > { %9421 = vadd.xlane.f32.xlu1 %v9420_v54  ;;  %8641 = vst.msk [vmem:[#allocation5 + $0xd0] sm:$0xff] %vm8614_vm8, %v8577_v36  ;;  %9574 = vadd.xlane.f32.xlu0 %v9573_v51  ;;  %v8870_v54 = vld [vmem:[%s20563_s5 + $0x1b8] sm:$0xff]  ;;  %v10041_v36 = vsel %vm8614_vm8, %v9310_v10, 0.0  ;;  %v9258_v61 = vmul.f32 %v8998_v0, %v18109_v29  ;;  %v9311_v29 = vmul.f32 %v9051_v55, %v18095_v14  ;;  %v9579_v14 = vsel %vm8614_vm8, %v9156_v5, 0.0  ;;  %v8820_v0 = vld [vmem:[%s20563_s5 + $0x28] sm:$0xff] }
 0x5f6   : > { %v9130_v51 = vmul.f32 %v8870_v54, %v18211_v19  ;;  %v9183_v46 = vmul.f32 %v8923_v25, %v18256_v12  ;;  %v9209_v37 = vmul.f32 %v8949_v11, %v18256_v12  ;;  %v18335_v54 = vmax.f32 %v8651_v24, %v8677_v27  ;;  %v8846_v55 = vld [vmem:[%s20563_s5 + $0xf8] sm:$0xff]  ;;  %v8925_v27 = vld [vmem:[%s20563_s5 + $0x370] sm:$0xff] }
 0x5f7   : > { %v8721_v44 = vld [vmem:[#allocation5 + $0xc8] sm:$0xff]  ;;  %v9885_v13 = vsel %vm8614_vm8, %v9258_v61, 0.0  ;;  %v10044_v58 = vsel %vm8614_vm8, %v9311_v29, 0.0 }
 0x5f8   : > { %v8692_v34 = vld [vmem:[#allocation5 + $0xb9] sm:$0xff]  ;;  %v9660_v40 = vsel %vm8614_vm8, %v9183_v46, 0.0  ;;  %v9738_v39 = vsel %vm8614_vm8, %v9209_v37, 0.0  ;;  %v8736_v52 = vmax.f32 %v18221_v41, %v18335_v54 }
 0x5f9   : > { %9499 = vadd.xlane.f32.xlu1 %v9498_v63  ;;  %9652 = vadd.xlane.f32.xlu0 %v9651_v42  ;;  %v18184_v56 = vmax.f32 %v8666_v7, %v8692_v34  ;;  %v9501_v63 = vsel %vm8614_vm8, %v9130_v51, 0.0  ;;  %v8819_v42 = vld [vmem:[%s20563_s5 + $0x20] sm:$0xff]  ;;  %v8948_v7 = vld [vmem:[%s20563_s5 + $0x428] sm:$0xff]  ;;  %v9026_v51 = vld [vmem:[%s20563_s5 + $0x698] sm:$0xff] }
 0x5fa   : > { %v9079_v34 = vmul.f32 %v8819_v42, %v18256_v12  ;;  %v9208_v38 = vmul.f32 %v8948_v7, %v18211_v19  ;;  %v9286_v29 = vmul.f32 %v9026_v51, %v18211_v19  ;;  %v9000_v42 = vld [vmem:[%s20563_s5 + $0x5c8] sm:$0xff]  ;;  %v8769_v41 = vadd.f32 %v18037_v17, %v8736_v52  ;;  %v8898_v7 = vld [vmem:[%s20563_s5 + $0x298] sm:$0xff] }
 0x5fb   : > { %v8679_v52 = vld [vmem:[#allocation5 + $0x51] sm:$0xff] }
 0x5fc   : > { %v8724_v31 = vld [vmem:[#allocation5 + $0xc9] sm:$0xff]  ;;  %v9735_v59 = vsel %vm8614_vm8, %v9208_v38, 0.0 }
 0x5fd   : > { %v8727_v45 = vmax.f32 %v8721_v44, %v8724_v31  ;;  %9577 = vadd.xlane.f32.xlu1 %v9576_v57  ;;  %9730 = vadd.xlane.f32.xlu0 %v9729_v30  ;;  %v9347_v44 = vsel %vm8614_vm8, %v9079_v34, 0.0  ;;  %v9105_v31 = vmul.f32 %v8845_v23, %v18256_v12  ;;  %v9657_v57 = vsel %vm8614_vm8, %v9182_v1, 0.0  ;;  %v8676_v30 = vld [vmem:[#allocation5 + $0x39] sm:$0xff]  ;;  %v9053_v23 = vld [vmem:[%s20563_s5 + $0x770] sm:$0xff] }
 0x5fe   : > { %v9260_v34 = vmul.f32 %v9000_v42, %v18211_v19  ;;  %v9313_v19 = vmul.f32 %v9053_v23, %v18256_v12  ;;  %v8822_v42 = vld [vmem:[%s20563_s5 + $0x38] sm:$0xff]  ;;  %v8848_v23 = vld [vmem:[%s20563_s5 + $0x108] sm:$0xff] }
 0x5ff   : > { %v8753_v43 = vmax.f32 %v18184_v56, %v8727_v45  ;;  %v8871_v45 = vld [vmem:[%s20563_s5 + $0x1c0] sm:$0xff]  ;;  %v9426_v4 = vsel %vm8614_vm8, %v9105_v31, 0.0 }
 0x600   : > { %v9891_v31 = vsel %vm8614_vm8, %v9260_v34, 0.0  ;;  %v10050_v49 = vsel %vm8614_vm8, %v9313_v19, 0.0 }
 0x601   : > { %v18199_v16 = vadd.f32 %v18037_v17, %v8753_v43  ;;  %9655 = vadd.xlane.f32.xlu1 %v9654_v62  ;;  %9808 = vadd.xlane.f32.xlu0 %v9807_v33  ;;  %v9131_v43 = vmul.f32 %v8871_v45, %v18256_v12  ;;  %v18290_v62 = vmax.f32 %v8650_v9, %v8676_v30  ;;  %v8897_v33 = vld [vmem:[%s20563_s5 + $0x290] sm:$0xff]  ;;  %v8924_v30 = vld [vmem:[%s20563_s5 + $0x368] sm:$0xff] }
 0x602   : > { %v9157_v32 = vmul.f32 %v8897_v33, %v18256_v12  ;;  %v8821_v45 = vld [vmem:[%s20563_s5 + $0x30] sm:$0xff] }
 0x603   : > { %v9504_v6 = vsel %vm8614_vm8, %v9131_v43, 0.0  ;;  %v8847_v43 = vld [vmem:[%s20563_s5 + $0x100] sm:$0xff] }
 0x604   : > { %v9582_v18 = vsel %vm8614_vm8, %v9157_v32, 0.0  ;;  %v8873_v32 = vld [vmem:[%s20563_s5 + $0x1d0] sm:$0xff] }
 0x605   : > { %9733 = vadd.xlane.f32.xlu1 %v9732_v2  ;;  %9967 = vadd.xlane.f32.xlu0 %v9966_v60  ;;  %v8735_v2 = vmax.f32 %v18168_v48, %v18290_v62  ;;  %v9027_v60 = vld [vmem:[%s20563_s5 + $0x6a0] sm:$0xff] }
 0x607   : > { %v8768_v48 = vadd.f32 %v18037_v17, %v8735_v2  ;;  %v8678_v2 = vld [vmem:[#allocation5 + $0x49] sm:$0xff] }
 0x609   : > { %9811 = vadd.xlane.f32.xlu1 %v9810_v35  ;;  %9889 = vadd.xlane.f32.xlu0 %v9888_v26  ;;  %v9287_v35 = vmul.f32 %v9027_v60, %v18256_v12  ;;  %v9001_v26 = vld [vmem:[%s20563_s5 + $0x5d0] sm:$0xff] }
 0x60b   : > { %v9972_v10 = vsel %vm8614_vm8, %v9287_v35, 0.0  ;;  %v9054_v35 = vld [vmem:[%s20563_s5 + $0x778] sm:$0xff] }
 0x60d   : > { %9964 = vadd.xlane.f32.xlu1 %v9963_v50  ;;  %9345 = vadd.xlane.f32.xlu0 %v9344_v8  ;;  %v18325_v50 = vmax.f32 %v8768_v48, 0.0  ;;  %v9261_v8 = vmul.f32 %v9001_v26, %v18256_v12 }
 0x60f   : > { %v9894_v61 = vsel %vm8614_vm8, %v9261_v8, 0.0  ;;  %v9106_v5 = vmul.f32 %v8846_v55, %v18325_v50  ;;  %v9132_v1 = vmul.f32 %v8872_v28, %v18325_v50  ;;  %v9158_v38 = vmul.f32 %v8898_v7, %v18325_v50  ;;  %v8653_v55 = vld [vmem:[#allocation5 + $0x50] sm:$0xff] }
 0x610   : > { %v9314_v24 = vmul.f32 %v9054_v35, %v18325_v50  ;;  %v18449_v28 = vmax.f32 %v8653_v55, %v8679_v52 }
 0x611   : > { %10042 = vadd.xlane.f32.xlu1 %v10041_v36  ;;  %9424 = vadd.xlane.f32.xlu0 %v9423_v53  ;;  %v9235_v36 = vmul.f32 %v8975_v47, %v18256_v12  ;;  %v9080_v53 = vmul.f32 %v8820_v0, %v18325_v50  ;;  %v9585_v12 = vsel %vm8614_vm8, %v9158_v38, 0.0 }
 0x612   : > { %v10053_v0 = vsel %vm8614_vm8, %v9314_v24, 0.0  ;;  %v8738_v7 = vmax.f32 %v18335_v54, %v18449_v28 }
 0x614   : > { %v8771_v54 = vadd.f32 %v18037_v17, %v8738_v7 }
 0x615   : > { %9886 = vadd.xlane.f32.xlu1 %v9885_v13  ;;  %9502 = vadd.xlane.f32.xlu0 %v9501_v63  ;;  %v9816_v13 = vsel %vm8614_vm8, %v9235_v36, 0.0  ;;  %v9350_v63 = vsel %vm8614_vm8, %v9080_v53, 0.0  ;;  %v8951_v36 = vld [vmem:[%s20563_s5 + $0x440] sm:$0xff] }
 0x619   : > { %10045 = vadd.xlane.f32.xlu1 %v10044_v58  ;;  %9580 = vadd.xlane.f32.xlu0 %v9579_v14  ;;  %v9969_v58 = vsel %vm8614_vm8, %v9286_v29, 0.0  ;;  %v9429_v14 = vsel %vm8614_vm8, %v9106_v5, 0.0  ;;  %v8977_v5 = vld [vmem:[%s20563_s5 + $0x510] sm:$0xff] }
 0x61d   : > { %9348 = vadd.xlane.f32.xlu1 %v9347_v44  ;;  %9658 = vadd.xlane.f32.xlu0 %v9657_v57  ;;  %v18370_v44 = vmax.f32 %v8769_v41, 0.0  ;;  %v9507_v57 = vsel %vm8614_vm8, %v9132_v1, 0.0  ;;  %v9028_v1 = vld [vmem:[%s20563_s5 + $0x6a8] sm:$0xff] }
 0x61e   : > { %v9288_v19 = vmul.f32 %v9028_v1, %v18325_v50 }
 0x61f   : > { %v9081_v9 = vmul.f32 %v8821_v45, %v18370_v44  ;;  %v9107_v33 = vmul.f32 %v8847_v43, %v18370_v44  ;;  %v9133_v60 = vmul.f32 %v8873_v32, %v18370_v44  ;;  %v9185_v47 = vmul.f32 %v8925_v27, %v18370_v44  ;;  %v9002_v45 = vld [vmem:[%s20563_s5 + $0x5d8] sm:$0xff]  ;;  %v9055_v43 = vld [vmem:[%s20563_s5 + $0x780] sm:$0xff] }
 0x620   : > { %v9211_v51 = vmul.f32 %v8951_v36, %v18370_v44  ;;  %v8823_v32 = vld [vmem:[%s20563_s5 + $0x40] sm:$0xff]  ;;  %v8978_v36 = vld [vmem:[%s20563_s5 + $0x518] sm:$0xff] }
 0x621   : > { %9427 = vadd.xlane.f32.xlu1 %v9426_v4  ;;  %9736 = vadd.xlane.f32.xlu0 %v9735_v59  ;;  %v9184_v4 = vmul.f32 %v8924_v30, %v18325_v50  ;;  %v8950_v59 = vld [vmem:[%s20563_s5 + $0x438] sm:$0xff]  ;;  %v9353_v3 = vsel %vm8614_vm8, %v9081_v9, 0.0  ;;  %v9432_v25 = vsel %vm8614_vm8, %v9107_v33, 0.0  ;;  %v9510_v11 = vsel %vm8614_vm8, %v9133_v60, 0.0 }
 0x622   : > { %v9666_v53 = vsel %vm8614_vm8, %v9185_v47, 0.0  ;;  %v9744_v41 = vsel %vm8614_vm8, %v9211_v51, 0.0  ;;  %v8874_v30 = vld [vmem:[%s20563_s5 + $0x1d8] sm:$0xff]  ;;  %v9262_v9 = vmul.f32 %v9002_v45, %v18325_v50 }
 0x623   : > { %v9663_v20 = vsel %vm8614_vm8, %v9184_v4, 0.0 }
 0x624   : > { %v9897_v33 = vsel %vm8614_vm8, %v9262_v9, 0.0 }
 0x625   : > { %9505 = vadd.xlane.f32.xlu1 %v9504_v6  ;;  %9814 = vadd.xlane.f32.xlu0 %v9813_v21  ;;  %v9210_v6 = vmul.f32 %v8950_v59, %v18325_v50  ;;  %v8976_v21 = vld [vmem:[%s20563_s5 + $0x508] sm:$0xff] }
 0x626   : > { %v9236_v48 = vmul.f32 %v8976_v21, %v18325_v50  ;;  %v8900_v59 = vld [vmem:[%s20563_s5 + $0x2a8] sm:$0xff]  ;;  %v9315_v50 = vmul.f32 %v9055_v43, %v18370_v44  ;;  %v8953_v43 = vld [vmem:[%s20563_s5 + $0x450] sm:$0xff] }
 0x627   : > { %v9741_v46 = vsel %vm8614_vm8, %v9210_v6, 0.0 }
 0x628   : > { %v9819_v37 = vsel %vm8614_vm8, %v9236_v48, 0.0  ;;  %v10056_v60 = vsel %vm8614_vm8, %v9315_v50, 0.0 }
 0x629   : > { %9583 = vadd.xlane.f32.xlu1 %v9582_v18  ;;  %10048 = vadd.xlane.f32.xlu0 %v10047_v22  ;;  %v18404_v18 = vmax.f32 %v8652_v15, %v8678_v2  ;;  %v8899_v22 = vld [vmem:[%s20563_s5 + $0x2a0] sm:$0xff]  ;;  %v8926_v15 = vld [vmem:[%s20563_s5 + $0x378] sm:$0xff] }
 0x62a   : > { %v9159_v26 = vmul.f32 %v8899_v22, %v18370_v44  ;;  %v8680_v2 = vld [vmem:[#allocation5 + $0x59] sm:$0xff] }
 0x62c   : > { %v9588_v8 = vsel %vm8614_vm8, %v9159_v26, 0.0 }
 0x62d   : > { %9661 = vadd.xlane.f32.xlu1 %v9660_v40  ;;  %9973 = vadd.xlane.f32.xlu0 %v9972_v10  ;;  %v8737_v40 = vmax.f32 %v18290_v62, %v18404_v18  ;;  %v9029_v10 = vld [vmem:[%s20563_s5 + $0x6b0] sm:$0xff] }
 0x62f   : > { %v8770_v62 = vadd.f32 %v18037_v17, %v8737_v40  ;;  %v8952_v40 = vld [vmem:[%s20563_s5 + $0x448] sm:$0xff] }
 0x631   : > { %9739 = vadd.xlane.f32.xlu1 %v9738_v39  ;;  %9895 = vadd.xlane.f32.xlu0 %v9894_v61  ;;  %v9289_v39 = vmul.f32 %v9029_v10, %v18370_v44  ;;  %v9003_v61 = vld [vmem:[%s20563_s5 + $0x5e0] sm:$0xff] }
 0x633   : > { %v9978_v29 = vsel %vm8614_vm8, %v9289_v39, 0.0 }
 0x635   : > { %9817 = vadd.xlane.f32.xlu1 %v9816_v13  ;;  %9351 = vadd.xlane.f32.xlu0 %v9350_v63  ;;  %v18439_v13 = vmax.f32 %v8770_v62, 0.0  ;;  %v9263_v63 = vmul.f32 %v9003_v61, %v18370_v44  ;;  %v8875_v62 = vld [vmem:[%s20563_s5 + $0x1e0] sm:$0xff] }
 0x637   : > { %v9900_v34 = vsel %vm8614_vm8, %v9263_v63, 0.0  ;;  %v9108_v38 = vmul.f32 %v8848_v23, %v18439_v13  ;;  %v9134_v4 = vmul.f32 %v8874_v30, %v18439_v13  ;;  %v9160_v6 = vmul.f32 %v8900_v59, %v18439_v13 }
 0x638   : > { %v9186_v35 = vmul.f32 %v8926_v15, %v18439_v13  ;;  %v9212_v47 = vmul.f32 %v8952_v40, %v18439_v13  ;;  %v9238_v52 = vmul.f32 %v8978_v36, %v18439_v13 }
 0x639   : > { %9970 = vadd.xlane.f32.xlu1 %v9969_v58  ;;  %9430 = vadd.xlane.f32.xlu0 %v9429_v14  ;;  %v9237_v58 = vmul.f32 %v8977_v5, %v18370_v44  ;;  %v9082_v14 = vmul.f32 %v8822_v42, %v18439_v13  ;;  %v8654_v44 = vld [vmem:[#allocation5 + $0x58] sm:$0xff]  ;;  %v9591_v22 = vsel %vm8614_vm8, %v9160_v6, 0.0  ;;  %v9056_v42 = vld [vmem:[%s20563_s5 + $0x788] sm:$0xff] }
 0x63a   : > { %v18502_v48 = vmax.f32 %v8654_v44, %v8680_v2  ;;  %v9747_v55 = vsel %vm8614_vm8, %v9212_v47, 0.0  ;;  %v9825_v23 = vsel %vm8614_vm8, %v9238_v52, 0.0  ;;  %v9316_v7 = vmul.f32 %v9056_v42, %v18439_v13  ;;  %v8979_v44 = vld [vmem:[%s20563_s5 + $0x520] sm:$0xff] }
 0x63c   : > { %v8739_v10 = vmax.f32 %v18404_v18, %v18502_v48 }
 0x63d   : > { %9892 = vadd.xlane.f32.xlu1 %v9891_v31  ;;  %9508 = vadd.xlane.f32.xlu0 %v9507_v57  ;;  %v9822_v31 = vsel %vm8614_vm8, %v9237_v58, 0.0  ;;  %v9356_v57 = vsel %vm8614_vm8, %v9082_v14, 0.0 }
 0x63e   : > { %v8772_v51 = vadd.f32 %v18037_v17, %v8739_v10 }
 0x640   : > { %v18554_v1 = vmax.f32 %v8772_v51, 0.0 }
 0x641   : > { %10051 = vadd.xlane.f32.xlu1 %v10050_v49  ;;  %9586 = vadd.xlane.f32.xlu0 %v9585_v12  ;;  %v9975_v49 = vsel %vm8614_vm8, %v9288_v19, 0.0  ;;  %v9435_v12 = vsel %vm8614_vm8, %v9108_v38, 0.0 }
 0x645   : > { %9354 = vadd.xlane.f32.xlu1 %v9353_v3  ;;  %9664 = vadd.xlane.f32.xlu0 %v9663_v20  ;;  %v18484_v3 = vmax.f32 %v8771_v54, 0.0  ;;  %v9513_v20 = vsel %vm8614_vm8, %v9134_v4, 0.0 }
 0x647   : > { %v9213_v15 = vmul.f32 %v8953_v43, %v18484_v3  ;;  %v8928_v43 = vld [vmem:[%s20563_s5 + $0x388] sm:$0xff] }
 0x649   : > { %9433 = vadd.xlane.f32.xlu1 %v9432_v25  ;;  %9742 = vadd.xlane.f32.xlu0 %v9741_v46  ;;  %v9083_v46 = vmul.f32 %v8823_v32, %v18484_v3 }
 0x64b   : > { %v9359_v24 = vsel %vm8614_vm8, %v9083_v46, 0.0 }
 0x64d   : > { %9511 = vadd.xlane.f32.xlu1 %v9510_v11  ;;  %9820 = vadd.xlane.f32.xlu0 %v9819_v37  ;;  %v8849_v11 = vld [vmem:[%s20563_s5 + $0x110] sm:$0xff] }
 0x64e   : > { %v9109_v27 = vmul.f32 %v8849_v11, %v18484_v3 }
 0x650   : > { %v9438_v18 = vsel %vm8614_vm8, %v9109_v27, 0.0  ;;  %v9239_v27 = vmul.f32 %v8979_v44, %v18484_v3 }
 0x651   : > { %9589 = vadd.xlane.f32.xlu1 %v9588_v8  ;;  %10054 = vadd.xlane.f32.xlu0 %v10053_v0  ;;  %v9669_v8 = vsel %vm8614_vm8, %v9186_v35, 0.0  ;;  %v10376_v0 = vlaneseq }
 0x653   : > { %v18540_v63 = vand.u32 127, %v10376_v0  ;;  %v18549_v17 = vshrl.u32 %v10376_v0, 7 }
 0x655   : > { %9667 = vadd.xlane.f32.xlu1 %v9666_v53  ;;  %9979 = vadd.xlane.f32.xlu0 %v9978_v29  ;;  %v9135_v53 = vmul.f32 %v8875_v62, %v18484_v3  ;;  %v8901_v29 = vld [vmem:[%s20563_s5 + $0x2b0] sm:$0xff]  ;;  %v10382_v14 = vadd.s32 4294967288, %v18540_v63  ;;  %v10389_v38 = vadd.s32 4294967280, %v18540_v63  ;;  %v18569_v30 = vsub.s32 %v18540_v63, %v18549_v17 }
 0x656   : > { %v9750_v62 = vsel %vm8614_vm8, %v9213_v15, 0.0 }
 0x657   : > { %v9516_v58 = vsel %vm8614_vm8, %v9135_v53, 0.0  ;;  %v18587_v50 = vsub.s32 %v10389_v38, %v18549_v17  ;;  %v8682_v53 = vld [vmem:[#allocation5 + $0x69] sm:$0xff] }
 0x659   : > { %9745 = vadd.xlane.f32.xlu1 %v9744_v41  ;;  %9901 = vadd.xlane.f32.xlu0 %v9900_v34  ;;  %v9161_v34 = vmul.f32 %v8901_v29, %v18484_v3 }
 0x65b   : > { %v9594_v54 = vsel %vm8614_vm8, %v9161_v34, 0.0  ;;  %v8655_v34 = vld [vmem:[#allocation5 + $0x60] sm:$0xff] }
 0x65d   : > { %9823 = vadd.xlane.f32.xlu1 %v9822_v31  ;;  %9357 = vadd.xlane.f32.xlu0 %v9356_v57  ;;  %v8927_v31 = vld [vmem:[%s20563_s5 + $0x380] sm:$0xff]  ;;  %v8824_v57 = vld [vmem:[%s20563_s5 + $0x48] sm:$0xff] }
 0x65e   : > { %v9187_v9 = vmul.f32 %v8927_v31, %v18484_v3  ;;  %v9084_v4 = vmul.f32 %v8824_v57, %v18554_v1  ;;  %v9828_v31 = vsel %vm8614_vm8, %v9239_v27, 0.0 }
 0x660   : > { %v9672_v2 = vsel %vm8614_vm8, %v9187_v9, 0.0 }
 0x661   : > { %9976 = vadd.xlane.f32.xlu1 %v9975_v49  ;;  %9436 = vadd.xlane.f32.xlu0 %v9435_v12  ;;  %v18573_v49 = vsub.s32 %v10382_v14, %v18549_v17  ;;  %v10059_v12 = vsel %vm8614_vm8, %v9316_v7, 0.0  ;;  %v8681_v14 = vld [vmem:[#allocation5 + $0x61] sm:$0xff] }
 0x665   : > { %9898 = vadd.xlane.f32.xlu1 %v9897_v33  ;;  %9514 = vadd.xlane.f32.xlu0 %v9513_v20  ;;  %v8850_v33 = vld [vmem:[%s20563_s5 + $0x118] sm:$0xff] }
 0x666   : > { %v18493_v21 = vpop.xlane.xlu1 %9415  ;;  %v18498_v25 = vpop.xlane.xlu0 %9336  ;;  %v9110_v46 = vmul.f32 %v8850_v33, %v18554_v1  ;;  %v18645_v33 = vmax.f32 %v8655_v34, %v8681_v14 }
 0x667   : > { %v10539_v6 = vrot.slane %v18493_v21, %v18569_v30  ;;  %v8876_v21 = vld [vmem:[%s20563_s5 + $0x1e8] sm:$0xff]  ;;  %v10381_v11 = vrot.slane %v18498_v25, %v18569_v30 }
 0x668   : > { %v9441_v25 = vsel %vm8614_vm8, %v9110_v46, 0.0  ;;  %v9136_v36 = vmul.f32 %v8876_v21, %v18554_v1 }
 0x669   : > { %10057 = vadd.xlane.f32.xlu1 %v10056_v60  ;;  %9592 = vadd.xlane.f32.xlu0 %v9591_v22  ;;  %v9362_v60 = vsel %vm8614_vm8, %v9084_v4, 0.0 }
 0x66a   : > { %v18509_v26 = vpop.xlane.xlu1 %9493  ;;  %v18514_v37 = vpop.xlane.xlu0 %9961 }
 0x66b   : > { %v10667_v10 = vrot.slane %v18509_v26, %v18569_v30 }
 0x66d   : > { %9360 = vadd.xlane.f32.xlu1 %v9359_v24  ;;  %9670 = vadd.xlane.f32.xlu0 %v9669_v8 }
 0x66e   : > { %v18525_v39 = vpop.xlane.xlu1 %9571  ;;  %v18530_v61 = vpop.xlane.xlu0 %10039 }
 0x671   : > { %9439 = vadd.xlane.f32.xlu1 %v9438_v18  ;;  %9748 = vadd.xlane.f32.xlu0 %v9747_v55  ;;  %v9030_v18 = vld [vmem:[%s20563_s5 + $0x6b8] sm:$0xff] }
 0x672   : > { %v18542_v5 = vpop.xlane.xlu1 %9649  ;;  %v18547_v41 = vpop.xlane.xlu0 %9883  ;;  %v8902_v55 = vld [vmem:[%s20563_s5 + $0x2b8] sm:$0xff]  ;;  %v9290_v57 = vmul.f32 %v9030_v18, %v18439_v13 }
 0x673   : > { %v9162_v9 = vmul.f32 %v8902_v55, %v18554_v1 }
 0x674   : > { %v9981_v15 = vsel %vm8614_vm8, %v9290_v57, 0.0 }
 0x675   : > { %9517 = vadd.xlane.f32.xlu1 %v9516_v58  ;;  %9826 = vadd.xlane.f32.xlu0 %v9825_v23  ;;  %v8656_v58 = vld [vmem:[#allocation5 + $0x68] sm:$0xff]  ;;  %v10795_v23 = vrot.slane %v18525_v39, %v18569_v30 }
 0x676   : > { %v18561_v19 = vpop.xlane.xlu1 %9727  ;;  %v9343_v45 = vpop.xlane.xlu0 %9342  ;;  %v18631_v38 = vmax.f32 %v8656_v58, %v8682_v53  ;;  %v9004_v39 = vld [vmem:[%s20563_s5 + $0x5e8] sm:$0xff] }
 0x677   : > { %v10393_v8 = vrot.slane %v9343_v45, %v18587_v50  ;;  %v9264_v44 = vmul.f32 %v9004_v39, %v18439_v13  ;;  %v8954_v13 = vld [vmem:[%s20563_s5 + $0x458] sm:$0xff]  ;;  %v11051_v27 = vrot.slane %v18561_v19, %v18569_v30 }
 0x678   : > { %v9214_v19 = vmul.f32 %v8954_v13, %v18554_v1  ;;  %v8826_v39 = vld [vmem:[%s20563_s5 + $0x58] sm:$0xff] }
 0x679   : > { %9595 = vadd.xlane.f32.xlu1 %v9594_v54  ;;  %10060 = vadd.xlane.f32.xlu0 %v10059_v12  ;;  %v9519_v54 = vsel %vm8614_vm8, %v9136_v36, 0.0  ;;  %v9057_v36 = vld [vmem:[%s20563_s5 + $0x790] sm:$0xff] }
 0x67a   : > { %v18581_v59 = vpop.xlane.xlu1 %9805  ;;  %v9419_v20 = vpop.xlane.xlu0 %9418  ;;  %v9317_v14 = vmul.f32 %v9057_v36, %v18484_v3 }
 0x67b   : > { %v10543_v32 = vrot.slane %v9419_v20, %v18573_v49 }
 0x67d   : > { %9673 = vadd.xlane.f32.xlu1 %v9672_v2  ;;  %v10544_v22 = vsel %vm10387_vm9, %v10543_v32, %v10539_v6  ;;  %9363 = vadd.xlane.f32.xlu0 %v9362_v60  ;;  %v10923_v32 = vrot.slane %v18542_v5, %v18569_v30  ;;  %v8741_v60 = vmax.f32 %v18502_v48, %v18631_v38  ;;  %v9031_v5 = vld [vmem:[%s20563_s5 + $0x6c0] sm:$0xff] }
 0x67e   : > { %v9340_v35 = vpop.xlane.xlu1 %9339  ;;  %v9497_v24 = vpop.xlane.xlu0 %9496  ;;  %v8740_v48 = vmax.f32 %v18449_v28, %v18645_v33 }
 0x67f   : > { %v10386_v40 = vrot.slane %v9340_v35, %v18573_v49  ;;  %v10671_v47 = vrot.slane %v9497_v24, %v18573_v49  ;;  %v9188_v35 = vmul.f32 %v8928_v43, %v18554_v1 }
 0x681   : > { %v10388_v0 = vsel %vm10387_vm9, %v10386_v40, %v10381_v11  ;;  %9751 = vadd.xlane.f32.xlu1 %v9750_v62  ;;  %v10672_v26 = vsel %vm10387_vm9, %v10671_v47, %v10667_v10  ;;  %9442 = vadd.xlane.f32.xlu0 %v9441_v25  ;;  %v9291_v47 = vmul.f32 %v9031_v5, %v18484_v3  ;;  %v18678_v62 = vld [vmem:[%s20562_s4] ss:$0 sm:$0xff]  ;;  %v9675_v25 = vsel %vm8614_vm8, %v9188_v35, 0.0 }
 0x682   : > { %v9422_v51 = vpop.xlane.xlu1 %9421  ;;  %v18623_v52 = vsel %vm10394_vm10, %v10393_v8, %v10388_v0  ;;  %v9575_v42 = vpop.xlane.xlu0 %9574  ;;  %v9903_v8 = vsel %vm8614_vm8, %v9264_v44, 0.0  ;;  %v8774_v0 = vadd.f32 %v18678_v62, %v8741_v60  ;;  %v8825_v60 = vld [vmem:[%s20563_s5 + $0x50] sm:$0xff] }
 0x683   : > { %v10548_v29 = vrot.slane %v9422_v51, %v18587_v50  ;;  %v10799_v7 = vrot.slane %v9575_v42, %v18573_v49  ;;  %v8773_v51 = vadd.f32 %v18678_v62, %v8740_v48  ;;  %v11179_v42 = vrot.slane %v18581_v59, %v18569_v30  ;;  %v9005_v59 = vld [vmem:[%s20563_s5 + $0x5f0] sm:$0xff] }
 0x684   : > { %v9984_v34 = vsel %vm8614_vm8, %v9291_v47, 0.0  ;;  %v11435_v47 = vrot.slane %v18514_v37, %v18569_v30  ;;  %v8877_v37 = vld [vmem:[%s20563_s5 + $0x1f0] sm:$0xff] }
 0x685   : > { %v18634_v45 = vsel %vm10394_vm10, %v10548_v29, %v10544_v22  ;;  %9829 = vadd.xlane.f32.xlu1 %v9828_v31  ;;  %v10800_v12 = vsel %vm10387_vm9, %v10799_v7, %v10795_v23  ;;  %9520 = vadd.xlane.f32.xlu0 %v9519_v54  ;;  %v9597_v22 = vsel %vm8614_vm8, %v9162_v9, 0.0  ;;  %v18700_v23 = vmax.f32 %v8774_v0, 0.0 }
 0x686   : > { %v9500_v4 = vpop.xlane.xlu1 %9499  ;;  %v9653_v6 = vpop.xlane.xlu0 %9652  ;;  %v9753_v31 = vsel %vm8614_vm8, %v9214_v19, 0.0  ;;  %v18715_v43 = vmax.f32 %v8773_v51, 0.0 }
 0x687   : > { %v10676_v20 = vrot.slane %v9500_v4, %v18587_v50  ;;  %v10927_v2 = vrot.slane %v9653_v6, %v18573_v49  ;;  %v9265_v6 = vmul.f32 %v9005_v59, %v18484_v3  ;;  %v9086_v44 = vmul.f32 %v8826_v39, %v18700_v23  ;;  %v8852_v3 = vld [vmem:[%s20563_s5 + $0x128] sm:$0xff]  ;;  %v8657_v59 = vld [vmem:[#allocation5 + $0x70] sm:$0xff] }
 0x688   : > { %v9085_v13 = vmul.f32 %v8825_v60, %v18715_v43  ;;  %v9137_v39 = vmul.f32 %v8877_v37, %v18715_v43  ;;  %v11307_v60 = vrot.slane %v18547_v41, %v18569_v30 }
 0x689   : > { %v18656_v46 = vsel %vm10394_vm10, %v10676_v20, %v10672_v26  ;;  %9982 = vadd.xlane.f32.xlu1 %v9981_v15  ;;  %v10928_v21 = vsel %vm10387_vm9, %v10927_v2, %v10923_v32  ;;  %9598 = vadd.xlane.f32.xlu0 %v9597_v22  ;;  %v8980_v26 = vld [vmem:[%s20563_s5 + $0x528] sm:$0xff]  ;;  %v10062_v20 = vsel %vm8614_vm8, %v9317_v14, 0.0  ;;  %v10396_v32 = vadd.s32 4294967272, %v18540_v63 }
 0x68a   : > { %v9578_v11 = vpop.xlane.xlu1 %9577  ;;  %v9731_v24 = vpop.xlane.xlu0 %9730  ;;  %v9240_v57 = vmul.f32 %v8980_v26, %v18554_v1  ;;  %v11563_v14 = vrot.slane %v18530_v61, %v18569_v30  ;;  %v8903_v61 = vld [vmem:[%s20563_s5 + $0x2c0] sm:$0xff] }
 0x68b   : > { %v10804_v40 = vrot.slane %v9578_v11, %v18587_v50  ;;  %v11055_v10 = vrot.slane %v9731_v24, %v18573_v49  ;;  %v18736_v11 = vsub.s32 %v10396_v32, %v18549_v17  ;;  %v9112_v24 = vmul.f32 %v8852_v3, %v18700_v23 }
 0x68c   : > { %v9831_v15 = vsel %vm8614_vm8, %v9240_v57, 0.0 }
 0x68d   : > { %v18682_v28 = vsel %vm10394_vm10, %v10804_v40, %v10800_v12  ;;  %9904 = vadd.xlane.f32.xlu1 %v9903_v8  ;;  %v11056_v18 = vsel %vm10387_vm9, %v11055_v10, %v11051_v27  ;;  %9676 = vadd.xlane.f32.xlu0 %v9675_v25  ;;  %v9368_v40 = vsel %vm8614_vm8, %v9086_v44, 0.0  ;;  %v8851_v27 = vld [vmem:[%s20563_s5 + $0x120] sm:$0xff]  ;;  %v8878_v8 = vld [vmem:[%s20563_s5 + $0x1f8] sm:$0xff]  ;;  %v9447_v51 = vsel %vm8614_vm8, %v9112_v24, 0.0 }
 0x68e   : > { %v9656_v53 = vpop.xlane.xlu1 %9655  ;;  %v9809_v29 = vpop.xlane.xlu0 %9808 }
 0x68f   : > { %v10932_v55 = vrot.slane %v9656_v53, %v18587_v50  ;;  %v11183_v58 = vrot.slane %v9809_v29, %v18573_v49  ;;  %v9111_v53 = vmul.f32 %v8851_v27, %v18715_v43 }
 0x691   : > { %v18703_v7 = vsel %vm10394_vm10, %v10932_v55, %v10928_v21  ;;  %9985 = vadd.xlane.f32.xlu1 %v9984_v34  ;;  %v11184_v54 = vsel %vm10387_vm9, %v11183_v58, %v11179_v42  ;;  %9754 = vadd.xlane.f32.xlu0 %v9753_v31  ;;  %v9906_v21 = vsel %vm8614_vm8, %v9265_v6, 0.0  ;;  %v9138_v55 = vmul.f32 %v8878_v8, %v18700_v23  ;;  %v8904_v58 = vld [vmem:[%s20563_s5 + $0x2c8] sm:$0xff] }
 0x692   : > { %v9734_v9 = vpop.xlane.xlu1 %9733  ;;  %v9968_v4 = vpop.xlane.xlu0 %9967 }
 0x693   : > { %v11060_v12 = vrot.slane %v9734_v9, %v18587_v50  ;;  %v11444_v19 = vrot.slane %v9968_v4, %v18587_v50  ;;  %v9444_v9 = vsel %vm8614_vm8, %v9111_v53, 0.0  ;;  %v9525_v4 = vsel %vm8614_vm8, %v9138_v55, 0.0 }
 0x695   : > { %v18721_v2 = vsel %vm10394_vm10, %v11060_v12, %v11056_v18  ;;  %10063 = vadd.xlane.f32.xlu1 %v10062_v20  ;;  %9832 = vadd.xlane.f32.xlu0 %v9831_v15  ;;  %v9365_v18 = vsel %vm8614_vm8, %v9085_v13, 0.0  ;;  %v9164_v20 = vmul.f32 %v8904_v58, %v18700_v23  ;;  %v8930_v15 = vld [vmem:[%s20563_s5 + $0x398] sm:$0xff]  ;;  %v9522_v13 = vsel %vm8614_vm8, %v9137_v39, 0.0 }
 0x696   : > { %v9812_v22 = vpop.xlane.xlu1 %9811  ;;  %v18732_v5 = vpop.xlane.xlu0 %9889  ;;  %v9190_v41 = vmul.f32 %v8930_v15, %v18700_v23  ;;  %v8684_v58 = vld [vmem:[#allocation5 + $0x79] sm:$0xff] }
 0x697   : > { %v11188_v35 = vrot.slane %v9812_v22, %v18587_v50  ;;  %v9603_v27 = vsel %vm8614_vm8, %v9164_v20, 0.0 }
 0x698   : > { %v9681_v55 = vsel %vm8614_vm8, %v9190_v41, 0.0  ;;  %v9032_v41 = vld [vmem:[%s20563_s5 + $0x6c8] sm:$0xff] }
 0x699   : > { %v18740_v48 = vsel %vm10394_vm10, %v11188_v35, %v11184_v54  ;;  %9907 = vadd.xlane.f32.xlu1 %v9906_v21  ;;  %9369 = vadd.xlane.f32.xlu0 %v9368_v40  ;;  %v8683_v54 = vld [vmem:[#allocation5 + $0x71] sm:$0xff]  ;;  %v10403_v35 = vadd.s32 4294967264, %v18540_v63  ;;  %v9163_v40 = vmul.f32 %v8903_v61, %v18715_v43 }
 0x69a   : > { %v9965_v10 = vpop.xlane.xlu1 %9964  ;;  %v9346_v25 = vpop.xlane.xlu0 %9345  ;;  %v18792_v44 = vmax.f32 %v8657_v59, %v8683_v54  ;;  %v8658_v54 = vld [vmem:[#allocation5 + $0x78] sm:$0xff] }
 0x69b   : > { %v11439_v0 = vrot.slane %v9965_v10, %v18573_v49  ;;  %v10400_v36 = vrot.slane %v9346_v25, %v18736_v11  ;;  %v8929_v10 = vld [vmem:[%s20563_s5 + $0x390] sm:$0xff]  ;;  %v9600_v53 = vsel %vm8614_vm8, %v9163_v40, 0.0 }
 0x69d   : > { %v11440_v26 = vsel %vm10387_vm9, %v11439_v0, %v11435_v47  ;;  %9366 = vadd.xlane.f32.xlu1 %v9365_v18  ;;  %v18765_v29 = vsel %vm10401_vm11, %v10400_v36, %v18623_v52  ;;  %9448 = vadd.xlane.f32.xlu0 %v9447_v51  ;;  %v8956_v47 = vld [vmem:[%s20563_s5 + $0x468] sm:$0xff]  ;;  %v18821_v36 = vsub.s32 %v10403_v35, %v18549_v17 }
 0x69e   : > { %v10043_v42 = vpop.xlane.xlu1 %10042  ;;  %v18771_v34 = vsel %vm10394_vm10, %v11444_v19, %v11440_v26  ;;  %v9425_v57 = vpop.xlane.xlu0 %9424  ;;  %v8742_v18 = vmax.f32 %v18645_v33, %v18792_v44  ;;  %v9189_v26 = vmul.f32 %v8929_v10, %v18715_v43  ;;  %v9216_v37 = vmul.f32 %v8956_v47, %v18700_v23 }
 0x69f   : > { %v11567_v31 = vrot.slane %v10043_v42, %v18573_v49  ;;  %v10553_v52 = vrot.slane %v9425_v57, %v18736_v11  ;;  %v8955_v42 = vld [vmem:[%s20563_s5 + $0x460] sm:$0xff] }
 0x6a0   : > { %v9678_v39 = vsel %vm8614_vm8, %v9189_v26, 0.0  ;;  %v9759_v20 = vsel %vm8614_vm8, %v9216_v37, 0.0 }
 0x6a1   : > { %v11568_v12 = vsel %vm10387_vm9, %v11567_v31, %v11563_v14  ;;  %9445 = vadd.xlane.f32.xlu1 %v9444_v9  ;;  %v18787_v6 = vsel %vm10401_vm11, %v10553_v52, %v18634_v45  ;;  %9526 = vadd.xlane.f32.xlu0 %v9525_v4  ;;  %v11316_v45 = vrot.slane %v18732_v5, %v18587_v50  ;;  %v8982_v31 = vld [vmem:[%s20563_s5 + $0x538] sm:$0xff] }
 0x6a2   : > { %v9887_v32 = vpop.xlane.xlu1 %9886  ;;  %v9503_v3 = vpop.xlane.xlu0 %9502  ;;  %v8775_v52 = vadd.f32 %v18678_v62, %v8742_v18  ;;  %v9242_v61 = vmul.f32 %v8982_v31, %v18700_v23  ;;  %v9292_v18 = vmul.f32 %v9032_v41, %v18554_v1 }
 0x6a3   : > { %v11311_v22 = vrot.slane %v9887_v32, %v18573_v49  ;;  %v10681_v21 = vrot.slane %v9503_v3, %v18736_v11  ;;  %v8981_v32 = vld [vmem:[%s20563_s5 + $0x530] sm:$0xff] }
 0x6a4   : > { %v18863_v35 = vmax.f32 %v8775_v52, 0.0 }
 0x6a5   : > { %v11312_v24 = vsel %vm10387_vm9, %v11311_v22, %v11307_v60  ;;  %9523 = vadd.xlane.f32.xlu1 %v9522_v13  ;;  %v18811_v5 = vsel %vm10401_vm11, %v10681_v21, %v18656_v46  ;;  %9604 = vadd.xlane.f32.xlu0 %v9603_v27  ;;  %v9008_v22 = vld [vmem:[%s20563_s5 + $0x608] sm:$0xff]  ;;  %v9241_v13 = vmul.f32 %v8981_v32, %v18715_v43 }
 0x6a6   : > { %v10046_v8 = vpop.xlane.xlu1 %10045  ;;  %v18817_v0 = vsel %vm10394_vm10, %v11316_v45, %v11312_v24  ;;  %v9581_v19 = vpop.xlane.xlu0 %9580  ;;  %v9837_v24 = vsel %vm8614_vm8, %v9242_v61, 0.0  ;;  %v9268_v27 = vmul.f32 %v9008_v22, %v18700_v23 }
 0x6a7   : > { %v11572_v25 = vrot.slane %v10046_v8, %v18587_v50  ;;  %v10809_v46 = vrot.slane %v9581_v19, %v18736_v11  ;;  %v9834_v19 = vsel %vm8614_vm8, %v9241_v13, 0.0 }
 0x6a9   : > { %v18829_v51 = vsel %vm10394_vm10, %v11572_v25, %v11568_v12  ;;  %9601 = vadd.xlane.f32.xlu1 %v9600_v53  ;;  %v10810_v33 = vsel %vm10401_vm11, %v10809_v46, %v18682_v28  ;;  %9682 = vadd.xlane.f32.xlu0 %v9681_v55  ;;  %v9215_v12 = vmul.f32 %v8955_v42, %v18715_v43  ;;  %v9915_v53 = vsel %vm8614_vm8, %v9268_v27, 0.0  ;;  %v9058_v55 = vld [vmem:[%s20563_s5 + $0x798] sm:$0xff] }
 0x6aa   : > { %v9349_v14 = vpop.xlane.xlu1 %9348  ;;  %v9659_v57 = vpop.xlane.xlu0 %9658  ;;  %v18846_v28 = vmax.f32 %v8658_v54, %v8684_v58  ;;  %v9061_v58 = vld [vmem:[%s20563_s5 + $0x7b0] sm:$0xff] }
 0x6ab   : > { %v10407_v59 = vrot.slane %v9349_v14, %v18821_v36  ;;  %v10937_v9 = vrot.slane %v9659_v57, %v18736_v11  ;;  %v9756_v21 = vsel %vm8614_vm8, %v9215_v12, 0.0  ;;  %v9987_v57 = vsel %vm8614_vm8, %v9292_v18, 0.0 }
 0x6ad   : > { %v18850_v4 = vsel %vm10408_vm12, %v10407_v59, %v18765_v29  ;;  %9679 = vadd.xlane.f32.xlu1 %v9678_v39  ;;  %v10938_v15 = vsel %vm10401_vm11, %v10937_v9, %v18703_v7  ;;  %9760 = vadd.xlane.f32.xlu0 %v9759_v20  ;;  %v8743_v7 = vmax.f32 %v18631_v38, %v18846_v28  ;;  %v9035_v38 = vld [vmem:[%s20563_s5 + $0x6e0] sm:$0xff]  ;;  %v9006_v39 = vld [vmem:[%s20563_s5 + $0x5f8] sm:$0xff] }
 0x6ae   : > { %v9428_v60 = vpop.xlane.xlu1 %9427  ;;  %v9737_v29 = vpop.xlane.xlu0 %9736  ;;  %v9295_v26 = vmul.f32 %v9035_v38, %v18863_v35  ;;  %v9318_v59 = vmul.f32 %v9058_v55, %v18554_v1  ;;  %v9321_v9 = vmul.f32 %v9061_v58, %v18863_v35  ;;  %v9266_v22 = vmul.f32 %v9006_v39, %v18554_v1  ;;  %v8854_v1 = vld [vmem:[%s20563_s5 + $0x138] sm:$0xff] }
 0x6af   : > { %v10558_v3 = vrot.slane %v9428_v60, %v18821_v36  ;;  %v11065_v45 = vrot.slane %v9737_v29, %v18736_v11  ;;  %v8776_v46 = vadd.f32 %v18678_v62, %v8743_v7  ;;  %v10410_v29 = vadd.s32 4294967256, %v18540_v63 }
 0x6b0   : > { %v10065_v60 = vsel %vm8614_vm8, %v9318_v59, 0.0 }
 0x6b1   : > { %v18872_v40 = vsel %vm10408_vm12, %v10558_v3, %v18787_v6  ;;  %9757 = vadd.xlane.f32.xlu1 %v9756_v21  ;;  %v11066_v10 = vsel %vm10401_vm11, %v11065_v45, %v18721_v2  ;;  %9838 = vadd.xlane.f32.xlu0 %v9837_v24  ;;  %v18907_v54 = vmax.f32 %v8776_v46, 0.0  ;;  %v9033_v21 = vld [vmem:[%s20563_s5 + $0x6d0] sm:$0xff]  ;;  %v9909_v24 = vsel %vm8614_vm8, %v9266_v22, 0.0  ;;  %v8659_v22 = vld [vmem:[#allocation5 + $0x80] sm:$0xff] }
 0x6b2   : > { %v9506_v8 = vpop.xlane.xlu1 %9505  ;;  %v9815_v6 = vpop.xlane.xlu0 %9814  ;;  %v18944_v27 = vsub.s32 %v10410_v29, %v18549_v17  ;;  %v9293_v41 = vmul.f32 %v9033_v21, %v18715_v43 }
 0x6b3   : > { %v10686_v47 = vrot.slane %v9506_v8, %v18821_v36  ;;  %v11193_v25 = vrot.slane %v9815_v6, %v18736_v11  ;;  %v9114_v6 = vmul.f32 %v8854_v1, %v18907_v54 }
 0x6b5   : > { %v18891_v2 = vsel %vm10408_vm12, %v10686_v47, %v18811_v5  ;;  %9835 = vadd.xlane.f32.xlu1 %v9834_v19  ;;  %v11194_v37 = vsel %vm10401_vm11, %v11193_v25, %v18740_v48  ;;  %9916 = vadd.xlane.f32.xlu0 %v9915_v53  ;;  %v9996_v48 = vsel %vm8614_vm8, %v9295_v26, 0.0  ;;  %v9059_v47 = vld [vmem:[%s20563_s5 + $0x7a0] sm:$0xff]  ;;  %v8880_v19 = vld [vmem:[%s20563_s5 + $0x208] sm:$0xff]  ;;  %v9990_v53 = vsel %vm8614_vm8, %v9293_v41, 0.0 }
 0x6b6   : > { %v9584_v42 = vpop.xlane.xlu1 %9583  ;;  %v10049_v5 = vpop.xlane.xlu0 %10048  ;;  %v9319_v26 = vmul.f32 %v9059_v47, %v18715_v43  ;;  %v9140_v58 = vmul.f32 %v8880_v19, %v18907_v54 }
 0x6b7   : > { %v10814_v14 = vrot.slane %v9584_v42, %v18821_v36  ;;  %v11577_v31 = vrot.slane %v10049_v5, %v18736_v11  ;;  %v9453_v42 = vsel %vm8614_vm8, %v9114_v6, 0.0  ;;  %v9007_v5 = vld [vmem:[%s20563_s5 + $0x600] sm:$0xff] }
 0x6b8   : > { %v10068_v39 = vsel %vm8614_vm8, %v9319_v26, 0.0 }
 0x6b9   : > { %v18910_v52 = vsel %vm10408_vm12, %v10814_v14, %v10810_v33  ;;  %9988 = vadd.xlane.f32.xlu1 %v9987_v57  ;;  %v18919_v12 = vsel %vm10401_vm11, %v11577_v31, %v18829_v51  ;;  %9997 = vadd.xlane.f32.xlu0 %v9996_v48  ;;  %v8828_v33 = vld [vmem:[%s20563_s5 + $0x68] sm:$0xff]  ;;  %v10074_v51 = vsel %vm8614_vm8, %v9321_v9, 0.0 }
 0x6ba   : > { %v9662_v20 = vpop.xlane.xlu1 %9661  ;;  %v9974_v61 = vpop.xlane.xlu0 %9973  ;;  %v9088_v45 = vmul.f32 %v8828_v33, %v18907_v54  ;;  %v9531_v33 = vsel %vm8614_vm8, %v9140_v58, 0.0 }
 0x6bb   : > { %v10942_v32 = vrot.slane %v9662_v20, %v18821_v36  ;;  %v11454_v48 = vrot.slane %v9974_v61, %v18821_v36  ;;  %v9267_v20 = vmul.f32 %v9007_v5, %v18715_v43  ;;  %v8685_v61 = vld [vmem:[#allocation5 + $0x81] sm:$0xff] }
 0x6bc   : > { %v9374_v38 = vsel %vm8614_vm8, %v9088_v45, 0.0  ;;  %v19006_v41 = vmax.f32 %v8659_v22, %v8685_v61  ;;  %v8905_v61 = vld [vmem:[%s20563_s5 + $0x2d0] sm:$0xff] }
 0x6bd   : > { %v18929_v3 = vsel %vm10408_vm12, %v10942_v32, %v10938_v15  ;;  %10066 = vadd.xlane.f32.xlu1 %v10065_v60  ;;  %10075 = vadd.xlane.f32.xlu0 %v10074_v51  ;;  %v8827_v60 = vld [vmem:[%s20563_s5 + $0x60] sm:$0xff] }
 0x6be   : > { %v9740_v13 = vpop.xlane.xlu1 %9739  ;;  %v18939_v7 = vpop.xlane.xlu0 %9895  ;;  %v8744_v58 = vmax.f32 %v18792_v44, %v19006_v41  ;;  %v8984_v44 = vld [vmem:[%s20563_s5 + $0x548] sm:$0xff] }
 0x6bf   : > { %v11070_v15 = vrot.slane %v9740_v13, %v18821_v36  ;;  %v10417_v13 = vadd.s32 4294967248, %v18540_v63  ;;  %v11326_v1 = vrot.slane %v18939_v7, %v18821_v36  ;;  %v8853_v7 = vld [vmem:[%s20563_s5 + $0x130] sm:$0xff]  ;;  %v9244_v22 = vmul.f32 %v8984_v44, %v18907_v54 }
 0x6c1   : > { %v18948_v8 = vsel %vm10408_vm12, %v11070_v15, %v11066_v10  ;;  %9910 = vadd.xlane.f32.xlu1 %v9909_v24  ;;  %9375 = vadd.xlane.f32.xlu0 %v9374_v38  ;;  %v9912_v15 = vsel %vm8614_vm8, %v9267_v20, 0.0  ;;  %v9087_v24 = vmul.f32 %v8827_v60, %v18863_v35 }
 0x6c2   : > { %v9818_v25 = vpop.xlane.xlu1 %9817  ;;  %v9352_v10 = vpop.xlane.xlu0 %9351 }
 0x6c3   : > { %v11198_v18 = vrot.slane %v9818_v25, %v18821_v36  ;;  %v10414_v46 = vrot.slane %v9352_v10, %v18944_v27 }
 0x6c5   : > { %v18963_v55 = vsel %vm10408_vm12, %v11198_v18, %v11194_v37  ;;  %9991 = vadd.xlane.f32.xlu1 %v9990_v53  ;;  %v18972_v14 = vsel %vm10415_vm13, %v10414_v46, %v18850_v4  ;;  %9454 = vadd.xlane.f32.xlu0 %v9453_v42  ;;  %v8906_v37 = vld [vmem:[%s20563_s5 + $0x2d8] sm:$0xff]  ;;  %v19025_v53 = vsub.s32 %v10417_v13, %v18549_v17  ;;  %v9371_v42 = vsel %vm8614_vm8, %v9087_v24, 0.0 }
 0x6c6   : > { %v9971_v31 = vpop.xlane.xlu1 %9970  ;;  %v9431_v59 = vpop.xlane.xlu0 %9430  ;;  %v9166_v32 = vmul.f32 %v8906_v37, %v18907_v54  ;;  %v8958_v18 = vld [vmem:[%s20563_s5 + $0x478] sm:$0xff]  ;;  %v9165_v24 = vmul.f32 %v8905_v61, %v18863_v35 }
 0x6c7   : > { %v11449_v57 = vrot.slane %v9971_v31, %v18736_v11  ;;  %v10563_v9 = vrot.slane %v9431_v59, %v18944_v27  ;;  %v9218_v37 = vmul.f32 %v8958_v18, %v18907_v54 }
 0x6c8   : > { %v9609_v6 = vsel %vm8614_vm8, %v9166_v32, 0.0  ;;  %v8686_v32 = vld [vmem:[#allocation5 + $0x89] sm:$0xff] }
 0x6c9   : > { %v11450_v4 = vsel %vm10401_vm11, %v11449_v57, %v18771_v34  ;;  %10069 = vadd.xlane.f32.xlu1 %v10068_v39  ;;  %v18991_v29 = vsel %vm10415_vm13, %v10563_v9, %v18872_v40  ;;  %9532 = vadd.xlane.f32.xlu0 %v9531_v33  ;;  %v8932_v34 = vld [vmem:[%s20563_s5 + $0x3a8] sm:$0xff]  ;;  %v8879_v57 = vld [vmem:[%s20563_s5 + $0x200] sm:$0xff]  ;;  %v8777_v33 = vadd.f32 %v18678_v62, %v8744_v58  ;;  %v9765_v60 = vsel %vm8614_vm8, %v9218_v37, 0.0 }
 0x6ca   : > { %v9893_v43 = vpop.xlane.xlu1 %9892  ;;  %v18997_v51 = vsel %vm10408_vm12, %v11454_v48, %v11450_v4  ;;  %v9509_v21 = vpop.xlane.xlu0 %9508  ;;  %v9192_v47 = vmul.f32 %v8932_v34, %v18907_v54  ;;  %v9139_v4 = vmul.f32 %v8879_v57, %v18863_v35  ;;  %v8957_v57 = vld [vmem:[%s20563_s5 + $0x470] sm:$0xff] }
 0x6cb   : > { %v11321_v45 = vrot.slane %v9893_v43, %v18736_v11  ;;  %v10691_v40 = vrot.slane %v9509_v21, %v18944_v27 }
 0x6cc   : > { %v9687_v31 = vsel %vm8614_vm8, %v9192_v47, 0.0 }
 0x6cd   : > { %v11322_v38 = vsel %vm10401_vm11, %v11321_v45, %v18817_v0  ;;  %9913 = vadd.xlane.f32.xlu1 %v9912_v15  ;;  %v10692_v25 = vsel %vm10415_vm13, %v10691_v40, %v18891_v2  ;;  %9610 = vadd.xlane.f32.xlu0 %v9609_v6  ;;  %v9113_v2 = vmul.f32 %v8853_v7, %v18863_v35  ;;  %v9010_v45 = vld [vmem:[%s20563_s5 + $0x618] sm:$0xff]  ;;  %v9528_v15 = vsel %vm8614_vm8, %v9139_v4, 0.0  ;;  %v8931_v7 = vld [vmem:[%s20563_s5 + $0x3a0] sm:$0xff] }
 0x6ce   : > { %v10052_v19 = vpop.xlane.xlu1 %10051  ;;  %v19021_v0 = vsel %vm10408_vm12, %v11326_v1, %v11322_v38  ;;  %v9587_v46 = vpop.xlane.xlu0 %9586  ;;  %v19071_v38 = vmax.f32 %v8777_v33, 0.0  ;;  %v9843_v6 = vsel %vm8614_vm8, %v9244_v22, 0.0  ;;  %v9270_v47 = vmul.f32 %v9010_v45, %v18907_v54 }
 0x6cf   : > { %v11582_v10 = vrot.slane %v10052_v19, %v18821_v36  ;;  %v10819_v26 = vrot.slane %v9587_v46, %v18944_v27  ;;  %v9450_v20 = vsel %vm8614_vm8, %v9113_v2, 0.0  ;;  %v9191_v2 = vmul.f32 %v8931_v7, %v18863_v35  ;;  %v8830_v7 = vld [vmem:[%s20563_s5 + $0x78] sm:$0xff] }
 0x6d1   : > { %v19034_v5 = vsel %vm10408_vm12, %v11582_v10, %v18919_v12  ;;  %9372 = vadd.xlane.f32.xlu1 %v9371_v42  ;;  %v10820_v59 = vsel %vm10415_vm13, %v10819_v26, %v18910_v52  ;;  %9688 = vadd.xlane.f32.xlu0 %v9687_v31  ;;  %v9037_v10 = vld [vmem:[%s20563_s5 + $0x6f0] sm:$0xff]  ;;  %v9606_v42 = vsel %vm8614_vm8, %v9165_v24, 0.0  ;;  %v9921_v31 = vsel %vm8614_vm8, %v9270_v47, 0.0 }
 0x6d2   : > { %v9355_v48 = vpop.xlane.xlu1 %9354  ;;  %v9665_v12 = vpop.xlane.xlu0 %9664  ;;  %v9297_v37 = vmul.f32 %v9037_v10, %v19071_v38 }
 0x6d3   : > { %v10421_v9 = vrot.slane %v9355_v48, %v19025_v53  ;;  %v10947_v39 = vrot.slane %v9665_v12, %v18944_v27 }
 0x6d5   : > { %v19053_v52 = vsel %vm10422_vm14, %v10421_v9, %v18972_v14  ;;  %9451 = vadd.xlane.f32.xlu1 %v9450_v20  ;;  %v10948_v43 = vsel %vm10415_vm13, %v10947_v39, %v18929_v3  ;;  %9766 = vadd.xlane.f32.xlu0 %v9765_v60  ;;  %v8660_v14 = vld [vmem:[#allocation5 + $0x88] sm:$0xff]  ;;  %v9684_v39 = vsel %vm8614_vm8, %v9191_v2, 0.0  ;;  %v9217_v20 = vmul.f32 %v8957_v57, %v18863_v35  ;;  %v8983_v60 = vld [vmem:[%s20563_s5 + $0x540] sm:$0xff] }
 0x6d6   : > { %v9434_v34 = vpop.xlane.xlu1 %9433  ;;  %v9743_v21 = vpop.xlane.xlu0 %9742  ;;  %v19066_v1 = vmax.f32 %v8660_v14, %v8686_v32 }
 0x6d7   : > { %v10568_v13 = vrot.slane %v9434_v34, %v19025_v53  ;;  %v11075_v40 = vrot.slane %v9743_v21, %v18944_v27  ;;  %v9762_v14 = vsel %vm8614_vm8, %v9217_v20, 0.0  ;;  %v9243_v21 = vmul.f32 %v8983_v60, %v18863_v35  ;;  %v9009_v20 = vld [vmem:[%s20563_s5 + $0x610] sm:$0xff] }
 0x6d8   : > { %v8745_v58 = vmax.f32 %v18846_v28, %v19066_v1  ;;  %v9063_v28 = vld [vmem:[%s20563_s5 + $0x7c0] sm:$0xff] }
 0x6d9   : > { %v19075_v3 = vsel %vm10422_vm14, %v10568_v13, %v18991_v29  ;;  %9529 = vadd.xlane.f32.xlu1 %v9528_v15  ;;  %v11076_v19 = vsel %vm10415_vm13, %v11075_v40, %v18948_v8  ;;  %9844 = vadd.xlane.f32.xlu0 %v9843_v6  ;;  %v9323_v32 = vmul.f32 %v9063_v28, %v19071_v38  ;;  %v10424_v13 = vadd.s32 4294967240, %v18540_v63  ;;  %v9034_v6 = vld [vmem:[%s20563_s5 + $0x6d8] sm:$0xff] }
 0x6da   : > { %v9512_v18 = vpop.xlane.xlu1 %9511  ;;  %v9821_v29 = vpop.xlane.xlu0 %9820  ;;  %v8778_v4 = vadd.f32 %v18678_v62, %v8745_v58  ;;  %v9840_v10 = vsel %vm8614_vm8, %v9243_v21, 0.0  ;;  %v9060_v58 = vld [vmem:[%s20563_s5 + $0x7a8] sm:$0xff] }
 0x6db   : > { %v10696_v46 = vrot.slane %v9512_v18, %v19025_v53  ;;  %v11203_v26 = vrot.slane %v9821_v29, %v18944_v27  ;;  %v10080_v15 = vsel %vm8614_vm8, %v9323_v32, 0.0  ;;  %v19148_v29 = vsub.s32 %v10424_v13, %v18549_v17  ;;  %v8829_v13 = vld [vmem:[%s20563_s5 + $0x70] sm:$0xff] }
 0x6dc   : > { %v19130_v40 = vmax.f32 %v8778_v4, 0.0 }
 0x6dd   : > { %v19094_v8 = vsel %vm10422_vm14, %v10696_v46, %v10692_v25  ;;  %9607 = vadd.xlane.f32.xlu1 %v9606_v42  ;;  %v11204_v48 = vsel %vm10415_vm13, %v11203_v26, %v18963_v55  ;;  %9922 = vadd.xlane.f32.xlu0 %v9921_v31  ;;  %v10002_v55 = vsel %vm8614_vm8, %v9297_v37, 0.0  ;;  %v9294_v46 = vmul.f32 %v9034_v6, %v18700_v23  ;;  %v8856_v37 = vld [vmem:[%s20563_s5 + $0x148] sm:$0xff] }
 0x6de   : > { %v9590_v44 = vpop.xlane.xlu1 %9589  ;;  %v10055_v25 = vpop.xlane.xlu0 %10054  ;;  %v9090_v2 = vmul.f32 %v8830_v7, %v19130_v40 }
 0x6df   : > { %v10824_v12 = vrot.slane %v9590_v44, %v19025_v53  ;;  %v11587_v9 = vrot.slane %v10055_v25, %v18944_v27  ;;  %v9993_v28 = vsel %vm8614_vm8, %v9294_v46, 0.0  ;;  %v9320_v25 = vmul.f32 %v9060_v58, %v18700_v23  ;;  %v8882_v23 = vld [vmem:[%s20563_s5 + $0x218] sm:$0xff] }
 0x6e0   : > { %v9142_v21 = vmul.f32 %v8882_v23, %v19130_v40 }
 0x6e1   : > { %v19112_v33 = vsel %vm10422_vm14, %v10824_v12, %v10820_v59  ;;  %9685 = vadd.xlane.f32.xlu1 %v9684_v39  ;;  %v19121_v22 = vsel %vm10415_vm13, %v11587_v9, %v19034_v5  ;;  %10003 = vadd.xlane.f32.xlu0 %v10002_v55  ;;  %v9011_v59 = vld [vmem:[%s20563_s5 + $0x620] sm:$0xff]  ;;  %v9380_v9 = vsel %vm8614_vm8, %v9090_v2, 0.0  ;;  %v9116_v39 = vmul.f32 %v8856_v37, %v19130_v40 }
 0x6e2   : > { %v9668_v61 = vpop.xlane.xlu1 %9667  ;;  %v9980_v34 = vpop.xlane.xlu0 %9979  ;;  %v9271_v24 = vmul.f32 %v9011_v59, %v19071_v38  ;;  %v10071_v59 = vsel %vm8614_vm8, %v9320_v25, 0.0 }
 0x6e3   : > { %v10952_v45 = vrot.slane %v9668_v61, %v19025_v53  ;;  %v11464_v60 = vrot.slane %v9980_v34, %v19025_v53  ;;  %v8687_v34 = vld [vmem:[#allocation5 + $0x91] sm:$0xff] }
 0x6e4   : > { %v9924_v42 = vsel %vm8614_vm8, %v9271_v24, 0.0 }
 0x6e5   : > { %v19133_v5 = vsel %vm10422_vm14, %v10952_v45, %v10948_v43  ;;  %9763 = vadd.xlane.f32.xlu1 %v9762_v14  ;;  %10081 = vadd.xlane.f32.xlu0 %v10080_v15  ;;  %v9269_v45 = vmul.f32 %v9009_v20, %v18863_v35  ;;  %v9459_v14 = vsel %vm8614_vm8, %v9116_v39, 0.0  ;;  %v8661_v15 = vld [vmem:[#allocation5 + $0x90] sm:$0xff] }
 0x6e6   : > { %v9746_v47 = vpop.xlane.xlu1 %9745  ;;  %v19143_v18 = vpop.xlane.xlu0 %9901  ;;  %v19210_v2 = vmax.f32 %v8661_v15, %v8687_v34  ;;  %v8688_v15 = vld [vmem:[#allocation5 + $0x99] sm:$0xff] }
 0x6e7   : > { %v11080_v43 = vrot.slane %v9746_v47, %v19025_v53  ;;  %v9918_v46 = vsel %vm8614_vm8, %v9269_v45, 0.0 }
 0x6e9   : > { %v19152_v26 = vsel %vm10422_vm14, %v11080_v43, %v11076_v19  ;;  %9841 = vadd.xlane.f32.xlu1 %v9840_v10  ;;  %9925 = vadd.xlane.f32.xlu0 %v9924_v42  ;;  %v10431_v43 = vadd.s32 4294967232, %v18540_v63  ;;  %v11336_v10 = vrot.slane %v19143_v18, %v19025_v53  ;;  %v9089_v42 = vmul.f32 %v8829_v13, %v19071_v38  ;;  %v8855_v18 = vld [vmem:[%s20563_s5 + $0x140] sm:$0xff] }
 0x6ea   : > { %v9824_v31 = vpop.xlane.xlu1 %9823  ;;  %v9358_v19 = vpop.xlane.xlu0 %9357  ;;  %v9115_v20 = vmul.f32 %v8855_v18, %v19071_v38 }
 0x6eb   : > { %v11208_v57 = vrot.slane %v9824_v31, %v19025_v53  ;;  %v10428_v44 = vrot.slane %v9358_v19, %v19148_v29  ;;  %v9537_v31 = vsel %vm8614_vm8, %v9142_v21, 0.0 }
 0x6ed   : > { %v19167_v12 = vsel %vm10422_vm14, %v11208_v57, %v11204_v48  ;;  %9994 = vadd.xlane.f32.xlu1 %v9993_v28  ;;  %v19176_v4 = vsel %vm10429_vm15, %v10428_v44, %v19053_v52  ;;  %9381 = vadd.xlane.f32.xlu0 %v9380_v9  ;;  %v8934_v44 = vld [vmem:[%s20563_s5 + $0x3b8] sm:$0xff]  ;;  %v19231_v9 = vsub.s32 %v10431_v43, %v18549_v17 }
 0x6ee   : > { %v9977_v55 = vpop.xlane.xlu1 %9976  ;;  %v9437_v32 = vpop.xlane.xlu0 %9436  ;;  %v8986_v43 = vld [vmem:[%s20563_s5 + $0x558] sm:$0xff] }
 0x6ef   : > { %v11459_v48 = vrot.slane %v9977_v55, %v18944_v27  ;;  %v10573_v61 = vrot.slane %v9437_v32, %v19148_v29  ;;  %v8746_v55 = vmax.f32 %v19006_v41, %v19210_v2  ;;  %v9194_v32 = vmul.f32 %v8934_v44, %v19130_v40  ;;  %v8960_v41 = vld [vmem:[%s20563_s5 + $0x488] sm:$0xff]  ;;  %v8933_v44 = vld [vmem:[%s20563_s5 + $0x3b0] sm:$0xff] }
 0x6f1   : > { %v11460_v52 = vsel %vm10415_vm13, %v11459_v48, %v18997_v51  ;;  %10072 = vadd.xlane.f32.xlu1 %v10071_v59  ;;  %v19195_v24 = vsel %vm10429_vm15, %v10573_v61, %v19075_v3  ;;  %9460 = vadd.xlane.f32.xlu0 %v9459_v14  ;;  %v8908_v51 = vld [vmem:[%s20563_s5 + $0x2e8] sm:$0xff]  ;;  %v9456_v14 = vsel %vm8614_vm8, %v9115_v20, 0.0  ;;  %v8779_v13 = vadd.f32 %v18678_v62, %v8746_v55 }
 0x6f2   : > { %v9899_v35 = vpop.xlane.xlu1 %9898  ;;  %v19201_v6 = vsel %vm10422_vm14, %v11464_v60, %v11460_v52  ;;  %v9515_v7 = vpop.xlane.xlu0 %9514  ;;  %v9168_v37 = vmul.f32 %v8908_v51, %v19130_v40  ;;  %v8881_v60 = vld [vmem:[%s20563_s5 + $0x210] sm:$0xff]  ;;  %v9693_v34 = vsel %vm8614_vm8, %v9194_v32, 0.0  ;;  %v8907_v51 = vld [vmem:[%s20563_s5 + $0x2e0] sm:$0xff]  ;;  %v10438_v32 = vadd.s32 4294967224, %v18540_v63 }
 0x6f3   : > { %v11331_v47 = vrot.slane %v9899_v35, %v18944_v27  ;;  %v10701_v3 = vrot.slane %v9515_v7, %v19148_v29  ;;  %v9141_v21 = vmul.f32 %v8881_v60, %v19071_v38  ;;  %v9220_v35 = vmul.f32 %v8960_v41, %v19130_v40 }
 0x6f4   : > { %v9615_v48 = vsel %vm8614_vm8, %v9168_v37, 0.0  ;;  %v19277_v37 = vmax.f32 %v8779_v13, 0.0 }
 0x6f5   : > { %v11332_v58 = vsel %vm10415_vm13, %v11331_v47, %v19021_v0  ;;  %9919 = vadd.xlane.f32.xlu1 %v9918_v46  ;;  %v19221_v57 = vsel %vm10429_vm15, %v10701_v3, %v19094_v8  ;;  %9538 = vadd.xlane.f32.xlu0 %v9537_v31  ;;  %v9377_v8 = vsel %vm8614_vm8, %v9089_v42, 0.0  ;;  %v9167_v31 = vmul.f32 %v8907_v51, %v19071_v38 }
 0x6f6   : > { %v10058_v19 = vpop.xlane.xlu1 %10057  ;;  %v19227_v0 = vsel %vm10422_vm14, %v11336_v10, %v11332_v58  ;;  %v9593_v25 = vpop.xlane.xlu0 %9592  ;;  %v9534_v58 = vsel %vm8614_vm8, %v9141_v21, 0.0  ;;  %v9771_v18 = vsel %vm8614_vm8, %v9220_v35, 0.0 }
 0x6f7   : > { %v11592_v28 = vrot.slane %v10058_v19, %v19025_v53  ;;  %v10829_v39 = vrot.slane %v9593_v25, %v19148_v29  ;;  %v9246_v19 = vmul.f32 %v8986_v43, %v19130_v40  ;;  %v9612_v55 = vsel %vm8614_vm8, %v9167_v31, 0.0  ;;  %v8985_v43 = vld [vmem:[%s20563_s5 + $0x550] sm:$0xff] }
 0x6f8   : > { %v9245_v31 = vmul.f32 %v8985_v43, %v19071_v38 }
 0x6f9   : > { %v19240_v23 = vsel %vm10422_vm14, %v11592_v28, %v19121_v22  ;;  %9378 = vadd.xlane.f32.xlu1 %v9377_v8  ;;  %v10830_v61 = vsel %vm10429_vm15, %v10829_v39, %v19112_v33  ;;  %9616 = vadd.xlane.f32.xlu0 %v9615_v48  ;;  %v9039_v39 = vld [vmem:[%s20563_s5 + $0x700] sm:$0xff]  ;;  %v9193_v48 = vmul.f32 %v8933_v44, %v19071_v38 }
 0x6fa   : > { %v9361_v59 = vpop.xlane.xlu1 %9360  ;;  %v9671_v22 = vpop.xlane.xlu0 %9670  ;;  %v9299_v41 = vmul.f32 %v9039_v39, %v19277_v37 }
 0x6fb   : > { %v10435_v45 = vrot.slane %v9361_v59, %v19231_v9  ;;  %v10957_v52 = vrot.slane %v9671_v22, %v19148_v29  ;;  %v9849_v59 = vsel %vm8614_vm8, %v9246_v19, 0.0  ;;  %v8959_v22 = vld [vmem:[%s20563_s5 + $0x480] sm:$0xff]  ;;  %v9690_v13 = vsel %vm8614_vm8, %v9193_v48, 0.0 }
 0x6fc   : > { %v10008_v51 = vsel %vm8614_vm8, %v9299_v41, 0.0 }
 0x6fd   : > { %v19259_v33 = vsel %vm10436_vm0, %v10435_v45, %v19176_v4  ;;  %9457 = vadd.xlane.f32.xlu1 %v9456_v14  ;;  %v10958_v47 = vsel %vm10429_vm15, %v10957_v52, %v19133_v5  ;;  %9694 = vadd.xlane.f32.xlu0 %v9693_v34  ;;  %v8662_v4 = vld [vmem:[#allocation5 + $0x98] sm:$0xff]  ;;  %v9219_v34 = vmul.f32 %v8959_v22, %v19071_v38  ;;  %v8832_v38 = vld [vmem:[%s20563_s5 + $0x88] sm:$0xff] }
 0x6fe   : > { %v9440_v7 = vpop.xlane.xlu1 %9439  ;;  %v9749_v10 = vpop.xlane.xlu0 %9748  ;;  %v19272_v46 = vmax.f32 %v8662_v4, %v8688_v15  ;;  %v19318_v15 = vsub.s32 %v10438_v32, %v18549_v17 }
 0x6ff   : > { %v10578_v3 = vrot.slane %v9440_v7, %v19231_v9  ;;  %v11085_v42 = vrot.slane %v9749_v10, %v19148_v29 }
 0x701   : > { %v19281_v5 = vsel %vm10436_vm0, %v10578_v3, %v19195_v24  ;;  %9535 = vadd.xlane.f32.xlu1 %v9534_v58  ;;  %v11086_v28 = vsel %vm10429_vm15, %v11085_v42, %v19152_v26  ;;  %9772 = vadd.xlane.f32.xlu0 %v9771_v18  ;;  %v8747_v26 = vmax.f32 %v19066_v1, %v19272_v46  ;;  %v9038_v1 = vld [vmem:[%s20563_s5 + $0x6f8] sm:$0xff]  ;;  %v9768_v58 = vsel %vm8614_vm8, %v9219_v34, 0.0 }
 0x702   : > { %v9518_v25 = vpop.xlane.xlu1 %9517  ;;  %v9827_v24 = vpop.xlane.xlu0 %9826  ;;  %v9298_v7 = vmul.f32 %v9038_v1, %v19130_v40 }
 0x703   : > { %v10706_v8 = vrot.slane %v9518_v25, %v19231_v9  ;;  %v11213_v20 = vrot.slane %v9827_v24, %v19148_v29  ;;  %v9036_v25 = vld [vmem:[%s20563_s5 + $0x6e8] sm:$0xff] }
 0x704   : > { %v10005_v19 = vsel %vm8614_vm8, %v9298_v7, 0.0  ;;  %v9296_v48 = vmul.f32 %v9036_v25, %v18907_v54 }
 0x705   : > { %v19302_v60 = vsel %vm10436_vm0, %v10706_v8, %v19221_v57  ;;  %9613 = vadd.xlane.f32.xlu1 %v9612_v55  ;;  %v11214_v45 = vsel %vm10429_vm15, %v11213_v20, %v19167_v12  ;;  %9850 = vadd.xlane.f32.xlu0 %v9849_v59  ;;  %v8780_v12 = vadd.f32 %v18678_v62, %v8747_v26  ;;  %v9064_v62 = vld [vmem:[%s20563_s5 + $0x7c8] sm:$0xff]  ;;  %v9846_v55 = vsel %vm8614_vm8, %v9245_v31, 0.0  ;;  %v9062_v59 = vld [vmem:[%s20563_s5 + $0x7b8] sm:$0xff] }
 0x706   : > { %v9596_v52 = vpop.xlane.xlu1 %9595  ;;  %v10061_v57 = vpop.xlane.xlu0 %10060  ;;  %v9324_v44 = vmul.f32 %v9064_v62, %v19130_v40 }
 0x707   : > { %v10834_v14 = vrot.slane %v9596_v52, %v19231_v9  ;;  %v11597_v21 = vrot.slane %v10061_v57, %v19148_v29  ;;  %v19341_v18 = vmax.f32 %v8780_v12, 0.0  ;;  %v8831_v12 = vld [vmem:[%s20563_s5 + $0x80] sm:$0xff] }
 0x709   : > { %v19323_v35 = vsel %vm10436_vm0, %v10834_v14, %v10830_v61  ;;  %9691 = vadd.xlane.f32.xlu1 %v9690_v13  ;;  %v19332_v4 = vsel %vm10429_vm15, %v11597_v21, %v19240_v23  ;;  %10009 = vadd.xlane.f32.xlu0 %v10008_v51  ;;  %v9092_v26 = vmul.f32 %v8832_v38, %v19341_v18  ;;  %v9999_v14 = vsel %vm8614_vm8, %v9296_v48, 0.0 }
 0x70a   : > { %v9674_v10 = vpop.xlane.xlu1 %9673  ;;  %v9364_v3 = vpop.xlane.xlu0 %9363  ;;  %v9322_v21 = vmul.f32 %v9062_v59, %v18907_v54  ;;  %v8884_v54 = vld [vmem:[%s20563_s5 + $0x228] sm:$0xff] }
 0x70b   : > { %v10962_v61 = vrot.slane %v9674_v10, %v19231_v9  ;;  %v10442_v42 = vrot.slane %v9364_v3, %v19318_v15 }
 0x70c   : > { %v10077_v62 = vsel %vm8614_vm8, %v9322_v21, 0.0  ;;  %v8663_v21 = vld [vmem:[#allocation5 + $0xa0] sm:$0xff] }
 0x70d   : > { %v10963_v23 = vsel %vm10436_vm0, %v10962_v61, %v10958_v47  ;;  %9769 = vadd.xlane.f32.xlu1 %v9768_v58  ;;  %v19351_v39 = vsel %vm10443_vm1, %v10442_v42, %v19259_v33  ;;  %10006 = vadd.xlane.f32.xlu0 %v10005_v19  ;;  %v10083_v33 = vsel %vm8614_vm8, %v9324_v44, 0.0  ;;  %v9091_v61 = vmul.f32 %v8831_v12, %v19277_v37  ;;  %v8857_v58 = vld [vmem:[%s20563_s5 + $0x150] sm:$0xff]  ;;  %v8910_v44 = vld [vmem:[%s20563_s5 + $0x2f8] sm:$0xff] }
 0x70e   : > { %v9752_v24 = vpop.xlane.xlu1 %9751  ;;  %v9443_v8 = vpop.xlane.xlu0 %9442  ;;  %v9144_v42 = vmul.f32 %v8884_v54, %v19341_v18 }
 0x70f   : > { %v11090_v47 = vrot.slane %v9752_v24, %v19231_v9  ;;  %v10583_v20 = vrot.slane %v9443_v8, %v19318_v15  ;;  %v9383_v38 = vsel %vm8614_vm8, %v9091_v61, 0.0  ;;  %v10452_v61 = vadd.s32 4294967208, %v18540_v63 }
 0x711   : > { %v19361_v32 = vsel %vm10436_vm0, %v11090_v47, %v11086_v28  ;;  %9847 = vadd.xlane.f32.xlu1 %v9846_v55  ;;  %v19370_v41 = vsel %vm10443_vm1, %v10583_v20, %v19281_v5  ;;  %10084 = vadd.xlane.f32.xlu0 %v10083_v33  ;;  %v8858_v28 = vld [vmem:[%s20563_s5 + $0x158] sm:$0xff]  ;;  %v9386_v5 = vsel %vm8614_vm8, %v9092_v26, 0.0  ;;  %v9117_v47 = vmul.f32 %v8857_v58, %v19277_v37  ;;  %v8883_v55 = vld [vmem:[%s20563_s5 + $0x220] sm:$0xff]  ;;  %v8936_v26 = vld [vmem:[%s20563_s5 + $0x3c8] sm:$0xff] }
 0x712   : > { %v9830_v22 = vpop.xlane.xlu1 %9829  ;;  %v9521_v1 = vpop.xlane.xlu0 %9520  ;;  %v9118_v34 = vmul.f32 %v8858_v28, %v19341_v18  ;;  %v9170_v20 = vmul.f32 %v8910_v44, %v19341_v18 }
 0x713   : > { %v11218_v52 = vrot.slane %v9830_v22, %v19231_v9  ;;  %v10711_v57 = vrot.slane %v9521_v1, %v19318_v15  ;;  %v9462_v28 = vsel %vm8614_vm8, %v9117_v47, 0.0  ;;  %v19477_v47 = vsub.s32 %v10452_v61, %v18549_v17 }
 0x715   : > { %v19380_v13 = vsel %vm10436_vm0, %v11218_v52, %v11214_v45  ;;  %10000 = vadd.xlane.f32.xlu1 %v9999_v14  ;;  %v19389_v51 = vsel %vm10443_vm1, %v10711_v57, %v19302_v60  ;;  %9387 = vadd.xlane.f32.xlu0 %v9386_v5  ;;  %v9465_v60 = vsel %vm8614_vm8, %v9118_v34, 0.0  ;;  %v9143_v52 = vmul.f32 %v8883_v55, %v19277_v37  ;;  %v8909_v14 = vld [vmem:[%s20563_s5 + $0x2f0] sm:$0xff]  ;;  %v8689_v5 = vld [vmem:[#allocation5 + $0xa1] sm:$0xff] }
 0x716   : > { %v9983_v7 = vpop.xlane.xlu1 %9982  ;;  %v9599_v43 = vpop.xlane.xlu0 %9598  ;;  %v9196_v57 = vmul.f32 %v8936_v26, %v19341_v18 }
 0x717   : > { %v11469_v45 = vrot.slane %v9983_v7, %v19148_v29  ;;  %v10839_v10 = vrot.slane %v9599_v43, %v19318_v15  ;;  %v8962_v7 = vld [vmem:[%s20563_s5 + $0x498] sm:$0xff]  ;;  %v10445_v43 = vadd.s32 4294967216, %v18540_v63 }
 0x718   : > { %v9222_v58 = vmul.f32 %v8962_v7, %v19341_v18 }
 0x719   : > { %v11470_v3 = vsel %vm10429_vm15, %v11469_v45, %v19201_v6  ;;  %10078 = vadd.xlane.f32.xlu1 %v10077_v62  ;;  %v19407_v31 = vsel %vm10443_vm1, %v10839_v10, %v19323_v35  ;;  %9466 = vadd.xlane.f32.xlu0 %v9465_v60  ;;  %v9543_v35 = vsel %vm8614_vm8, %v9144_v42, 0.0  ;;  %v9540_v62 = vsel %vm8614_vm8, %v9143_v52, 0.0 }
 0x71a   : > { %v9905_v19 = vpop.xlane.xlu1 %9904  ;;  %v9677_v25 = vpop.xlane.xlu0 %9676  ;;  %v9699_v42 = vsel %vm8614_vm8, %v9196_v57, 0.0  ;;  %v19501_v57 = vld [vmem:[%s20562_s4] ss:$0 sm:$0xff] }
 0x71b   : > { %v11341_v6 = vrot.slane %v9905_v19, %v19148_v29  ;;  %v10967_v24 = vrot.slane %v9677_v25, %v19318_v15  ;;  %v8935_v19 = vld [vmem:[%s20563_s5 + $0x3c0] sm:$0xff] }
 0x71d   : > { %v11342_v8 = vsel %vm10429_vm15, %v11341_v6, %v19227_v0  ;;  %9384 = vadd.xlane.f32.xlu1 %v9383_v38  ;;  %v19424_v48 = vsel %vm10443_vm1, %v10967_v24, %v10963_v23  ;;  %9544 = vadd.xlane.f32.xlu0 %v9543_v35  ;;  %v9621_v23 = vsel %vm8614_vm8, %v9170_v20, 0.0  ;;  %v19474_v38 = vsub.s32 %v10445_v43, %v18549_v17  ;;  %v9066_v43 = vld [vmem:[%s20563_s5 + $0x7d8] sm:$0xff] }
 0x71e   : > { %v9986_v33 = vpop.xlane.xlu1 %9985  ;;  %v9755_v59 = vpop.xlane.xlu0 %9754 }
 0x71f   : > { %v11474_v0 = vrot.slane %v9986_v33, %v19231_v9  ;;  %v11095_v22 = vrot.slane %v9755_v59, %v19318_v15  ;;  %v9777_v33 = vsel %vm8614_vm8, %v9222_v58, 0.0 }
 0x721   : > { %v19434_v1 = vsel %vm10436_vm0, %v11474_v0, %v11470_v3  ;;  %9463 = vadd.xlane.f32.xlu1 %v9462_v28  ;;  %v19443_v34 = vsel %vm10443_vm1, %v11095_v22, %v19361_v32  ;;  %9622 = vadd.xlane.f32.xlu0 %v9621_v23  ;;  %v9169_v32 = vmul.f32 %v8909_v14, %v19277_v37  ;;  %v8961_v0 = vld [vmem:[%s20563_s5 + $0x490] sm:$0xff]  ;;  %v9014_v22 = vld [vmem:[%s20563_s5 + $0x638] sm:$0xff] }
 0x722   : > { %v10064_v12 = vpop.xlane.xlu1 %10063  ;;  %v9833_v45 = vpop.xlane.xlu0 %9832  ;;  %v19454_v3 = vmax.f32 %v8663_v21, %v8689_v5  ;;  %v9221_v23 = vmul.f32 %v8961_v0, %v19277_v37  ;;  %v8690_v21 = vld [vmem:[#allocation5 + $0xa9] sm:$0xff]  ;;  %v9274_v7 = vmul.f32 %v9014_v22, %v19341_v18 }
 0x723   : > { %v11602_v54 = vrot.slane %v10064_v12, %v19231_v9  ;;  %v11223_v10 = vrot.slane %v9833_v45, %v19318_v15  ;;  %v9618_v35 = vsel %vm8614_vm8, %v9169_v32, 0.0 }
 0x724   : > { %v8748_v20 = vmax.f32 %v19210_v2, %v19454_v3  ;;  %v9774_v58 = vsel %vm8614_vm8, %v9221_v23, 0.0  ;;  %v9065_v23 = vld [vmem:[%s20563_s5 + $0x7d0] sm:$0xff] }
 0x725   : > { %v19458_v60 = vsel %vm10436_vm0, %v11602_v54, %v19332_v4  ;;  %9541 = vadd.xlane.f32.xlu1 %v9540_v62  ;;  %v19467_v44 = vsel %vm10443_vm1, %v11223_v10, %v19380_v13  ;;  %9700 = vadd.xlane.f32.xlu0 %v9699_v42  ;;  %v8988_v4 = vld [vmem:[%s20563_s5 + $0x568] sm:$0xff]  ;;  %v9195_v13 = vmul.f32 %v8935_v19, %v19277_v37  ;;  %v8987_v54 = vld [vmem:[%s20563_s5 + $0x560] sm:$0xff] }
 0x726   : > { %v9908_v6 = vpop.xlane.xlu1 %9907  ;;  %v9370_v24 = vpop.xlane.xlu0 %9369  ;;  %v9248_v26 = vmul.f32 %v8988_v4, %v19341_v18  ;;  %v8781_v14 = vadd.f32 %v19501_v57, %v8748_v20  ;;  %v8664_v62 = vld [vmem:[#allocation5 + $0xa8] sm:$0xff]  ;;  %v9247_v19 = vmul.f32 %v8987_v54, %v19277_v37  ;;  %v9015_v20 = vld [vmem:[%s20563_s5 + $0x640] sm:$0xff]  ;;  %v9325_v54 = vmul.f32 %v9065_v23, %v19277_v37 }
 0x727   : > { %v11346_v25 = vrot.slane %v9908_v6, %v19231_v9  ;;  %v10456_v28 = vrot.slane %v9370_v24, %v19477_v47  ;;  %v9696_v52 = vsel %vm8614_vm8, %v9195_v13, 0.0  ;;  %v19518_v32 = vmax.f32 %v8664_v62, %v8690_v21  ;;  %v9041_v21 = vld [vmem:[%s20563_s5 + $0x710] sm:$0xff] }
 0x728   : > { %v9855_v12 = vsel %vm8614_vm8, %v9248_v26, 0.0  ;;  %v19523_v6 = vmax.f32 %v8781_v14, 0.0  ;;  %v9326_v24 = vmul.f32 %v9066_v43, %v19341_v18 }
 0x729   : > { %v19484_v55 = vsel %vm10436_vm0, %v11346_v25, %v11342_v8  ;;  %9619 = vadd.xlane.f32.xlu1 %v9618_v35  ;;  %9778 = vadd.xlane.f32.xlu0 %v9777_v33  ;;  %v9933_v25 = vsel %vm8614_vm8, %v9274_v7, 0.0  ;;  %v9013_v35 = vld [vmem:[%s20563_s5 + $0x630] sm:$0xff] }
 0x72a   : > { %v9367_v59 = vpop.xlane.xlu1 %9366  ;;  %v9449_v8 = vpop.xlane.xlu0 %9448  ;;  %v9273_v22 = vmul.f32 %v9013_v35, %v19277_v37  ;;  %v9067_v37 = vld [vmem:[%s20563_s5 + $0x7e0] sm:$0xff] }
 0x72b   : > { %v10449_v2 = vrot.slane %v9367_v59, %v19474_v38  ;;  %v10593_v42 = vrot.slane %v9449_v8, %v19477_v47  ;;  %v9852_v59 = vsel %vm8614_vm8, %v9247_v19, 0.0 }
 0x72c   : > { %v9930_v7 = vsel %vm8614_vm8, %v9273_v22, 0.0 }
 0x72d   : > { %v10451_v5 = vsel %vm10450_vm2, %v10449_v2, %v19351_v39  ;;  %9697 = vadd.xlane.f32.xlu1 %v9696_v52  ;;  %9856 = vadd.xlane.f32.xlu0 %v9855_v12  ;;  %v8749_v2 = vmax.f32 %v19272_v46, %v19518_v32  ;;  %v9275_v52 = vmul.f32 %v9015_v20, %v19523_v6 }
 0x72e   : > { %v9446_v45 = vpop.xlane.xlu1 %9445  ;;  %v19515_v10 = vsel %vm10457_vm3, %v10456_v28, %v10451_v5  ;;  %v9527_v61 = vpop.xlane.xlu0 %9526  ;;  %v10089_v28 = vsel %vm8614_vm8, %v9326_v24, 0.0 }
 0x72f   : > { %v10588_v39 = vrot.slane %v9446_v45, %v19474_v38  ;;  %v10721_v0 = vrot.slane %v9527_v61, %v19477_v47  ;;  %v8782_v45 = vadd.f32 %v19501_v57, %v8749_v2  ;;  %v9936_v62 = vsel %vm8614_vm8, %v9275_v52, 0.0  ;;  %v8833_v61 = vld [vmem:[%s20563_s5 + $0x90] sm:$0xff] }
 0x730   : > { %v9093_v24 = vmul.f32 %v8833_v61, %v19523_v6 }
 0x731   : > { %v10589_v4 = vsel %vm10450_vm2, %v10588_v39, %v19370_v41  ;;  %9775 = vadd.xlane.f32.xlu1 %v9774_v58  ;;  %9934 = vadd.xlane.f32.xlu0 %v9933_v25  ;;  %v9301_v39 = vmul.f32 %v9041_v21, %v19523_v6  ;;  %v10086_v25 = vsel %vm8614_vm8, %v9325_v54, 0.0  ;;  %v19579_v35 = vmax.f32 %v8782_v45, 0.0 }
 0x732   : > { %v9524_v13 = vpop.xlane.xlu1 %9523  ;;  %v19536_v33 = vsel %vm10457_vm3, %v10593_v42, %v10589_v4  ;;  %v9605_v26 = vpop.xlane.xlu0 %9604 }
 0x733   : > { %v10716_v41 = vrot.slane %v9524_v13, %v19474_v38  ;;  %v10849_v12 = vrot.slane %v9605_v26, %v19477_v47  ;;  %v10014_v20 = vsel %vm8614_vm8, %v9301_v39, 0.0  ;;  %v8859_v26 = vld [vmem:[%s20563_s5 + $0x160] sm:$0xff] }
 0x734   : > { %v9119_v52 = vmul.f32 %v8859_v26, %v19523_v6 }
 0x735   : > { %v10717_v8 = vsel %vm10450_vm2, %v10716_v41, %v19389_v51  ;;  %9853 = vadd.xlane.f32.xlu1 %v9852_v59  ;;  %10090 = vadd.xlane.f32.xlu0 %v10089_v28  ;;  %v9327_v41 = vmul.f32 %v9067_v37, %v19523_v6  ;;  %v8834_v59 = vld [vmem:[%s20563_s5 + $0x98] sm:$0xff]  ;;  %v9389_v28 = vsel %vm8614_vm8, %v9093_v24, 0.0  ;;  %v8911_v37 = vld [vmem:[%s20563_s5 + $0x300] sm:$0xff] }
 0x736   : > { %v9602_v14 = vpop.xlane.xlu1 %9601  ;;  %v19555_v46 = vsel %vm10457_vm3, %v10721_v0, %v10717_v8  ;;  %v9683_v5 = vpop.xlane.xlu0 %9682  ;;  %v9094_v21 = vmul.f32 %v8834_v59, %v19579_v35 }
 0x737   : > { %v10844_v51 = vrot.slane %v9602_v14, %v19474_v38  ;;  %v10977_v4 = vrot.slane %v9683_v5, %v19477_v47  ;;  %v10092_v14 = vsel %vm8614_vm8, %v9327_v41, 0.0  ;;  %v8691_v41 = vld [vmem:[#allocation5 + $0xb1] sm:$0xff] }
 0x738   : > { %v9392_v61 = vsel %vm8614_vm8, %v9094_v21, 0.0 }
 0x739   : > { %v10845_v43 = vsel %vm10450_vm2, %v10844_v51, %v19407_v31  ;;  %9931 = vadd.xlane.f32.xlu1 %v9930_v7  ;;  %9937 = vadd.xlane.f32.xlu0 %v9936_v62  ;;  %v8885_v51 = vld [vmem:[%s20563_s5 + $0x230] sm:$0xff] }
 0x73a   : > { %v9680_v42 = vpop.xlane.xlu1 %9679  ;;  %v19573_v58 = vsel %vm10457_vm3, %v10849_v12, %v10845_v43  ;;  %v9761_v19 = vpop.xlane.xlu0 %9760  ;;  %v8860_v12 = vld [vmem:[%s20563_s5 + $0x168] sm:$0xff]  ;;  %v9468_v43 = vsel %vm8614_vm8, %v9119_v52, 0.0  ;;  %v9145_v62 = vmul.f32 %v8885_v51, %v19523_v6 }
 0x73b   : > { %v10972_v31 = vrot.slane %v9680_v42, %v19474_v38  ;;  %v11105_v8 = vrot.slane %v9761_v19, %v19477_v47  ;;  %v9120_v42 = vmul.f32 %v8860_v12, %v19579_v35  ;;  %v8886_v19 = vld [vmem:[%s20563_s5 + $0x238] sm:$0xff]  ;;  %v8963_v12 = vld [vmem:[%s20563_s5 + $0x4a0] sm:$0xff] }
 0x73c   : > { %v9546_v24 = vsel %vm8614_vm8, %v9145_v62, 0.0  ;;  %v9146_v59 = vmul.f32 %v8886_v19, %v19579_v35  ;;  %v8989_v19 = vld [vmem:[%s20563_s5 + $0x570] sm:$0xff] }
 0x73d   : > { %v10973_v13 = vsel %vm10450_vm2, %v10972_v31, %v19424_v48  ;;  %10087 = vadd.xlane.f32.xlu1 %v10086_v25  ;;  %10015 = vadd.xlane.f32.xlu0 %v10014_v20  ;;  %v8665_v20 = vld [vmem:[#allocation5 + $0xb0] sm:$0xff] }
 0x73e   : > { %v9758_v0 = vpop.xlane.xlu1 %9757  ;;  %v19592_v22 = vsel %vm10457_vm3, %v10977_v4, %v10973_v13  ;;  %v9839_v2 = vpop.xlane.xlu0 %9838  ;;  %v9171_v13 = vmul.f32 %v8911_v37, %v19523_v6  ;;  %v9549_v51 = vsel %vm8614_vm8, %v9146_v59, 0.0 }
 0x73f   : > { %v11100_v48 = vrot.slane %v9758_v0, %v19474_v38  ;;  %v11233_v45 = vrot.slane %v9839_v2, %v19477_v47  ;;  %v9471_v0 = vsel %vm8614_vm8, %v9120_v42, 0.0 }
 0x741   : > { %v11101_v23 = vsel %vm10450_vm2, %v11100_v48, %v19443_v34  ;;  %9390 = vadd.xlane.f32.xlu1 %v9389_v28  ;;  %10093 = vadd.xlane.f32.xlu0 %v10092_v14  ;;  %v8937_v48 = vld [vmem:[%s20563_s5 + $0x3d0] sm:$0xff] }
 0x742   : > { %v9836_v5 = vpop.xlane.xlu1 %9835  ;;  %v19609_v7 = vsel %vm10457_vm3, %v11105_v8, %v11101_v23  ;;  %v19612_v54 = vpop.xlane.xlu0 %9916  ;;  %v8912_v8 = vld [vmem:[%s20563_s5 + $0x308] sm:$0xff]  ;;  %v9624_v23 = vsel %vm8614_vm8, %v9171_v13, 0.0  ;;  %v9197_v14 = vmul.f32 %v8937_v48, %v19523_v6 }
 0x743   : > { %v11228_v34 = vrot.slane %v9836_v5, %v19474_v38  ;;  %v9172_v5 = vmul.f32 %v8912_v8, %v19579_v35 }
 0x745   : > { %v11229_v39 = vsel %vm10450_vm2, %v11228_v34, %v19467_v44  ;;  %9469 = vadd.xlane.f32.xlu1 %v9468_v43  ;;  %9393 = vadd.xlane.f32.xlu0 %v9392_v61  ;;  %v9223_v61 = vmul.f32 %v8963_v12, %v19523_v6  ;;  %v9627_v37 = vsel %vm8614_vm8, %v9172_v5, 0.0  ;;  %v10459_v12 = vadd.s32 4294967200, %v18540_v63 }
 0x746   : > { %v9989_v31 = vpop.xlane.xlu1 %9988  ;;  %v19628_v4 = vsel %vm10457_vm3, %v11233_v45, %v11229_v39  ;;  %v19631_v25 = vpop.xlane.xlu0 %9997  ;;  %v8938_v45 = vld [vmem:[%s20563_s5 + $0x3d8] sm:$0xff]  ;;  %v9702_v39 = vsel %vm8614_vm8, %v9197_v14, 0.0  ;;  %v10466_v14 = vadd.s32 4294967192, %v18540_v63 }
 0x747   : > { %v11479_v44 = vrot.slane %v9989_v31, %v19318_v15  ;;  %v9198_v31 = vmul.f32 %v8938_v45, %v19579_v35 }
 0x749   : > { %v11480_v26 = vsel %vm10443_vm1, %v11479_v44, %v19434_v1  ;;  %9547 = vadd.xlane.f32.xlu1 %v9546_v24  ;;  %9472 = vadd.xlane.f32.xlu0 %v9471_v0  ;;  %v19648_v1 = vmax.f32 %v8665_v20, %v8691_v41  ;;  %v9780_v20 = vsel %vm8614_vm8, %v9223_v61, 0.0  ;;  %v9249_v41 = vmul.f32 %v8989_v19, %v19523_v6 }
 0x74a   : > { %v10067_v2 = vpop.xlane.xlu1 %10066  ;;  %v19646_v52 = vpop.xlane.xlu0 %10075  ;;  %v9705_v59 = vsel %vm8614_vm8, %v9198_v31, 0.0  ;;  %v19722_v31 = vsub.s32 %v10466_v14, %v18549_v17 }
 0x74b   : > { %v11607_v28 = vrot.slane %v10067_v2, %v19318_v15  ;;  %v9040_v2 = vld [vmem:[%s20563_s5 + $0x708] sm:$0xff] }
 0x74c   : > { %v9300_v5 = vmul.f32 %v9040_v2, %v19341_v18  ;;  %v9016_v18 = vld [vmem:[%s20563_s5 + $0x648] sm:$0xff] }
 0x74d   : > { %v11608_v21 = vsel %vm10443_vm1, %v11607_v28, %v19458_v60  ;;  %9625 = vadd.xlane.f32.xlu1 %v9624_v23  ;;  %9550 = vadd.xlane.f32.xlu0 %v9549_v51  ;;  %v8750_v60 = vmax.f32 %v19454_v3, %v19648_v1  ;;  %v8964_v3 = vld [vmem:[%s20563_s5 + $0x4a8] sm:$0xff]  ;;  %v8990_v28 = vld [vmem:[%s20563_s5 + $0x578] sm:$0xff]  ;;  %v9858_v51 = vsel %vm8614_vm8, %v9249_v41, 0.0 }
 0x74e   : > { %v9911_v34 = vpop.xlane.xlu1 %9910  ;;  %v19663_v62 = vpop.xlane.xlu0 %9375  ;;  %v9224_v48 = vmul.f32 %v8964_v3, %v19579_v35  ;;  %v10011_v19 = vsel %vm8614_vm8, %v9300_v5, 0.0  ;;  %v19727_v3 = vsub.s32 %v10459_v12, %v18549_v17  ;;  %v9042_v41 = vld [vmem:[%s20563_s5 + $0x718] sm:$0xff]  ;;  %v8887_v5 = vld [vmem:[%s20563_s5 + $0x240] sm:$0xff] }
 0x74f   : > { %v11351_v43 = vrot.slane %v9911_v34, %v19318_v15  ;;  %v10470_v2 = vrot.slane %v19663_v62, %v19722_v31  ;;  %v9068_v62 = vld [vmem:[%s20563_s5 + $0x7e8] sm:$0xff] }
 0x750   : > { %v9783_v45 = vsel %vm8614_vm8, %v9224_v48, 0.0 }
 0x751   : > { %v11352_v42 = vsel %vm10443_vm1, %v11351_v43, %v19484_v55  ;;  %9703 = vadd.xlane.f32.xlu1 %v9702_v39  ;;  %9628 = vadd.xlane.f32.xlu0 %v9627_v37  ;;  %v8783_v55 = vadd.f32 %v19501_v57, %v8750_v60  ;;  %v9250_v43 = vmul.f32 %v8990_v28, %v19579_v35  ;;  %v8835_v60 = vld [vmem:[%s20563_s5 + $0xa0] sm:$0xff] }
 0x752   : > { %v9992_v44 = vpop.xlane.xlu1 %9991  ;;  %v19680_v13 = vpop.xlane.xlu0 %9454 }
 0x753   : > { %v11484_v24 = vrot.slane %v9992_v44, %v19474_v38 }
 0x755   : > { %v19686_v0 = vsel %vm10450_vm2, %v11484_v24, %v11480_v26  ;;  %9781 = vadd.xlane.f32.xlu1 %v9780_v20  ;;  %9706 = vadd.xlane.f32.xlu0 %v9705_v59  ;;  %v19699_v26 = vmax.f32 %v8783_v55, 0.0  ;;  %v9276_v55 = vmul.f32 %v9016_v18, %v19579_v35 }
 0x756   : > { %v10070_v8 = vpop.xlane.xlu1 %10069  ;;  %v19697_v23 = vpop.xlane.xlu0 %9532 }
 0x757   : > { %v11612_v6 = vrot.slane %v10070_v8, %v19474_v38  ;;  %v9095_v44 = vmul.f32 %v8835_v60, %v19699_v26  ;;  %v9939_v14 = vsel %vm8614_vm8, %v9276_v55, 0.0  ;;  %v10603_v60 = vrot.slane %v19680_v13, %v19722_v31  ;;  %v9017_v55 = vld [vmem:[%s20563_s5 + $0x650] sm:$0xff] }
 0x758   : > { %v9147_v18 = vmul.f32 %v8887_v5, %v19699_v26  ;;  %v9043_v5 = vld [vmem:[%s20563_s5 + $0x720] sm:$0xff] }
 0x759   : > { %v19706_v34 = vsel %vm10450_vm2, %v11612_v6, %v11608_v21  ;;  %9859 = vadd.xlane.f32.xlu1 %v9858_v51  ;;  %9784 = vadd.xlane.f32.xlu0 %v9783_v45  ;;  %v11361_v21 = vrot.slane %v19612_v54, %v19477_v47  ;;  %v8861_v54 = vld [vmem:[%s20563_s5 + $0x170] sm:$0xff]  ;;  %v9395_v8 = vsel %vm8614_vm8, %v9095_v44, 0.0  ;;  %v9302_v51 = vmul.f32 %v9042_v41, %v19579_v35 }
 0x75a   : > { %v9914_v39 = vpop.xlane.xlu1 %9913  ;;  %v19717_v37 = vpop.xlane.xlu0 %9610  ;;  %v9121_v28 = vmul.f32 %v8861_v54, %v19699_v26 }
 0x75b   : > { %v11356_v61 = vrot.slane %v9914_v39, %v19474_v38  ;;  %v9861_v38 = vsel %vm8614_vm8, %v9250_v43, 0.0  ;;  %v10017_v44 = vsel %vm8614_vm8, %v9302_v51, 0.0  ;;  %v8939_v51 = vld [vmem:[%s20563_s5 + $0x3e0] sm:$0xff] }
 0x75c   : > { %v9474_v39 = vsel %vm8614_vm8, %v9121_v28, 0.0 }
 0x75d   : > { %v11357_v24 = vsel %vm10450_vm2, %v11356_v61, %v11352_v42  ;;  %10012 = vadd.xlane.f32.xlu1 %v10011_v19  ;;  %9862 = vadd.xlane.f32.xlu0 %v9861_v38  ;;  %v8667_v61 = vld [vmem:[#allocation5 + $0xc0] sm:$0xff]  ;;  %v8913_v38 = vld [vmem:[%s20563_s5 + $0x310] sm:$0xff]  ;;  %vm11688_vm2 = vcmask 1041409  }
 0x75e   : > { %v9373_v20 = vpop.xlane.xlu1 %9372  ;;  %v19739_v59 = vsel %vm10457_vm3, %v11361_v21, %v11357_v24  ;;  %v19742_v48 = vpop.xlane.xlu0 %9688  ;;  %v8693_v21 = vld [vmem:[#allocation5 + $0xc1] sm:$0xff]  ;;  %v9328_v24 = vmul.f32 %v9068_v62, %v19579_v35  ;;  %v10731_v35 = vrot.slane %v19697_v23, %v19722_v31  ;;  %v10859_v62 = vrot.slane %v19717_v37, %v19722_v31 }
 0x75f   : > { %v10463_v42 = vrot.slane %v9373_v20, %v19727_v3  ;;  %v19784_v41 = vmax.f32 %v8667_v61, %v8693_v21  ;;  %v9303_v21 = vmul.f32 %v9043_v5, %v19699_v26 }
 0x761   : > { %v10465_v6 = vsel %vm10464_vm4, %v10463_v42, %v19515_v10  ;;  %9396 = vadd.xlane.f32.xlu1 %v9395_v8  ;;  %9940 = vadd.xlane.f32.xlu0 %v9939_v14  ;;  %v9552_v42 = vsel %vm8614_vm8, %v9147_v18, 0.0  ;;  %v8751_v8 = vmax.f32 %v19518_v32, %v18184_v56  ;;  %v9277_v14 = vmul.f32 %v9017_v55, %v19699_v26 }
 0x762   : > { %v9452_v12 = vpop.xlane.xlu1 %9451  ;;  %v19759_v45 = vsel %vm10471_vm5, %v10470_v2, %v10465_v6  ;;  %v19762_v43 = vpop.xlane.xlu0 %9766  ;;  %v9173_v2 = vmul.f32 %v8913_v38, %v19699_v26  ;;  %v10095_v6 = vsel %vm8614_vm8, %v9328_v24, 0.0 }
 0x763   : > { %v10598_v10 = vrot.slane %v9452_v12, %v19727_v3  ;;  %v8752_v12 = vmax.f32 %v19648_v1, %v19784_v41  ;;  %v9942_v61 = vsel %vm8614_vm8, %v9277_v14, 0.0  ;;  %v8965_v1 = vld [vmem:[%s20563_s5 + $0x4b0] sm:$0xff]  ;;  %v11115_v5 = vrot.slane %v19762_v43, %v19722_v31  ;;  %v8862_v43 = vld [vmem:[%s20563_s5 + $0x178] sm:$0xff] }
 0x765   : > { %v10599_v19 = vsel %vm10464_vm4, %v10598_v10, %v19536_v33  ;;  %9475 = vadd.xlane.f32.xlu1 %v9474_v39  ;;  %10018 = vadd.xlane.f32.xlu0 %v10017_v44  ;;  %v9630_v10 = vsel %vm8614_vm8, %v9173_v2, 0.0  ;;  %v8784_v39 = vadd.f32 %v19501_v57, %v8751_v8  ;;  %v8785_v38 = vadd.f32 %v19501_v57, %v8752_v12 }
 0x766   : > { %v9530_v13 = vpop.xlane.xlu1 %9529  ;;  %v19779_v54 = vsel %vm10471_vm5, %v10603_v60, %v10599_v19  ;;  %v19782_v20 = vpop.xlane.xlu0 %9844  ;;  %v9199_v60 = vmul.f32 %v8939_v51, %v19699_v26  ;;  %v9069_v19 = vld [vmem:[%s20563_s5 + $0x7f0] sm:$0xff]  ;;  %v10020_v2 = vsel %vm8614_vm8, %v9303_v21, 0.0 }
 0x767   : > { %v10726_v33 = vrot.slane %v9530_v13, %v19727_v3  ;;  %v10987_v13 = vrot.slane %v19742_v48, %v19722_v31  ;;  %v9329_v8 = vmul.f32 %v9069_v19, %v19699_v26  ;;  %v11243_v21 = vrot.slane %v19782_v20, %v19722_v31  ;;  %v8888_v20 = vld [vmem:[%s20563_s5 + $0x248] sm:$0xff] }
 0x768   : > { %v9708_v55 = vsel %vm8614_vm8, %v9199_v60, 0.0 }
 0x769   : > { %v10727_v28 = vsel %vm10464_vm4, %v10726_v33, %v19555_v46  ;;  %9553 = vadd.xlane.f32.xlu1 %v9552_v42  ;;  %10096 = vadd.xlane.f32.xlu0 %v10095_v6  ;;  %v9225_v33 = vmul.f32 %v8965_v1, %v19699_v26  ;;  %v8836_v6 = vld [vmem:[%s20563_s5 + $0xa8] sm:$0xff] }
 0x76a   : > { %v9608_v23 = vpop.xlane.xlu1 %9607  ;;  %v19803_v56 = vsel %vm10471_vm5, %v10731_v35, %v10727_v28  ;;  %v19806_v46 = vpop.xlane.xlu0 %9922  ;;  %v19836_v35 = vmax.f32 %v8784_v39, 0.0  ;;  %v8991_v28 = vld [vmem:[%s20563_s5 + $0x580] sm:$0xff]  ;;  %v8837_v39 = vld [vmem:[%s20563_s5 + $0xb0] sm:$0xff] }
 0x76b   : > { %v10854_v32 = vrot.slane %v9608_v23, %v19727_v3  ;;  %v19854_v23 = vmax.f32 %v8785_v38, 0.0  ;;  %v9251_v12 = vmul.f32 %v8991_v28, %v19699_v26 }
 0x76c   : > { %v9096_v60 = vmul.f32 %v8836_v6, %v19836_v35  ;;  %v9122_v38 = vmul.f32 %v8862_v43, %v19836_v35 }
 0x76d   : > { %v10855_v18 = vsel %vm10464_vm4, %v10854_v32, %v19573_v58  ;;  %9631 = vadd.xlane.f32.xlu1 %v9630_v10  ;;  %9943 = vadd.xlane.f32.xlu0 %v9942_v61  ;;  %v9786_v32 = vsel %vm8614_vm8, %v9225_v33, 0.0  ;;  %v10098_v10 = vsel %vm8614_vm8, %v9329_v8, 0.0  ;;  %v9864_v1 = vsel %vm8614_vm8, %v9251_v12, 0.0 }
 0x76e   : > { %v9686_v37 = vpop.xlane.xlu1 %9685  ;;  %v19826_v44 = vsel %vm10471_vm5, %v10859_v62, %v10855_v18  ;;  %v19829_v24 = vpop.xlane.xlu0 %10003  ;;  %v9477_v6 = vsel %vm8614_vm8, %v9122_v38, 0.0 }
 0x76f   : > { %v10982_v58 = vrot.slane %v9686_v37, %v19727_v3  ;;  %v9097_v37 = vmul.f32 %v8837_v39, %v19854_v23  ;;  %v10480_v39 = vadd.s32 4294967176, %v18540_v63 }
 0x771   : > { %v10983_v42 = vsel %vm10464_vm4, %v10982_v58, %v19592_v22  ;;  %9709 = vadd.xlane.f32.xlu1 %v9708_v55  ;;  %10021 = vadd.xlane.f32.xlu0 %v10020_v2  ;;  %v9398_v58 = vsel %vm8614_vm8, %v9096_v60, 0.0  ;;  %v11494_v2 = vrot.slane %v19631_v25, %v19727_v3  ;;  %v9401_v8 = vsel %vm8614_vm8, %v9097_v37, 0.0  ;;  %v8914_v25 = vld [vmem:[%s20563_s5 + $0x318] sm:$0xff] }
 0x772   : > { %v9764_v48 = vpop.xlane.xlu1 %9763  ;;  %v19849_v14 = vsel %vm10471_vm5, %v10987_v13, %v10983_v42  ;;  %v19852_v51 = vpop.xlane.xlu0 %10081  ;;  %v8863_v13 = vld [vmem:[%s20563_s5 + $0x180] sm:$0xff]  ;;  %v11622_v60 = vrot.slane %v19646_v52, %v19727_v3 }
 0x773   : > { %v11110_v22 = vrot.slane %v9764_v48, %v19727_v3  ;;  %v9123_v28 = vmul.f32 %v8863_v13, %v19854_v23  ;;  %v11371_v13 = vrot.slane %v19806_v46, %v19722_v31  ;;  %v8941_v46 = vld [vmem:[%s20563_s5 + $0x3f0] sm:$0xff] }
 0x775   : > { %v11111_v62 = vsel %vm10464_vm4, %v11110_v22, %v19609_v7  ;;  %9787 = vadd.xlane.f32.xlu1 %v9786_v32  ;;  %10099 = vadd.xlane.f32.xlu0 %v10098_v10  ;;  %v9148_v22 = vmul.f32 %v8888_v20, %v19836_v35 }
 0x776   : > { %v9842_v18 = vpop.xlane.xlu1 %9841  ;;  %v19871_v26 = vsel %vm10471_vm5, %v11115_v5, %v11111_v62  ;;  %v19874_v61 = vpop.xlane.xlu0 %9925  ;;  %v8889_v5 = vld [vmem:[%s20563_s5 + $0x250] sm:$0xff] }
 0x777   : > { %v11238_v7 = vrot.slane %v9842_v18, %v19727_v3  ;;  %v9480_v18 = vsel %vm8614_vm8, %v9123_v28, 0.0  ;;  %v9149_v43 = vmul.f32 %v8889_v5, %v19854_v23 }
 0x779   : > { %v11239_v19 = vsel %vm10464_vm4, %v11238_v7, %v19628_v4  ;;  %9865 = vadd.xlane.f32.xlu1 %v9864_v1  ;;  %9399 = vadd.xlane.f32.xlu0 %v9398_v58  ;;  %v8915_v7 = vld [vmem:[%s20563_s5 + $0x320] sm:$0xff]  ;;  %v9174_v1 = vmul.f32 %v8914_v25, %v19836_v35  ;;  %v9558_v20 = vsel %vm8614_vm8, %v9149_v43, 0.0 }
 0x77a   : > { %v9995_v55 = vpop.xlane.xlu1 %9994  ;;  %v19891_v33 = vsel %vm10471_vm5, %v11243_v21, %v11239_v19  ;;  %v19894_v42 = vpop.xlane.xlu0 %9381  ;;  %v9175_v38 = vmul.f32 %v8915_v7, %v19854_v23  ;;  %v8992_v7 = vld [vmem:[%s20563_s5 + $0x588] sm:$0xff] }
 0x77b   : > { %v11489_v4 = vrot.slane %v9995_v55, %v19477_v47  ;;  %v19945_v55 = vsub.s32 %v10480_v39, %v18549_v17  ;;  %v8723_v39 = vld [vmem:[#allocation5 + $0xd8] sm:$0x7f] }
 0x77c   : > { %v9636_v5 = vsel %vm8614_vm8, %v9175_v38, 0.0 }
 0x77d   : > { %v11490_v48 = vsel %vm10457_vm3, %v11489_v4, %v19686_v0  ;;  %9402 = vadd.xlane.f32.xlu1 %v9401_v8  ;;  %9478 = vadd.xlane.f32.xlu0 %v9477_v6  ;;  %v10473_v0 = vadd.s32 4294967184, %v18540_v63  ;;  %v8940_v63 = vld [vmem:[%s20563_s5 + $0x3e8] sm:$0xff] }
 0x77e   : > { %v10073_v32 = vpop.xlane.xlu1 %10072  ;;  %v19911_v12 = vsel %vm10464_vm4, %v11494_v2, %v11490_v48  ;;  %v19915_v10 = vpop.xlane.xlu0 %9460  ;;  %v9200_v8 = vmul.f32 %v8940_v63, %v19836_v35 }
 0x77f   : > { %v11617_v62 = vrot.slane %v10073_v32, %v19477_v47  ;;  %v9555_v47 = vsel %vm8614_vm8, %v9148_v22, 0.0  ;;  %v19936_v19 = vsub.s32 %v10473_v0, %v18549_v17  ;;  %v10484_v22 = vrot.slane %v19894_v42, %v19945_v55 }
 0x780   : > { %v9201_v32 = vmul.f32 %v8941_v46, %v19854_v23  ;;  %v9711_v0 = vsel %vm8614_vm8, %v9200_v8, 0.0  ;;  %v9018_v8 = vld [vmem:[%s20563_s5 + $0x658] sm:$0xff] }
 0x781   : > { %v11618_v21 = vsel %vm10457_vm3, %v11617_v62, %v19706_v34  ;;  %9481 = vadd.xlane.f32.xlu1 %v9480_v18  ;;  %9556 = vadd.xlane.f32.xlu0 %v9555_v47  ;;  %v11376_v4 = vrot.slane %v19874_v61, %v19936_v19  ;;  %v8966_v61 = vld [vmem:[%s20563_s5 + $0x4b8] sm:$0xff]  ;;  %v8668_v47 = vld [vmem:[#allocation5 + $0xc8] sm:$0x7f]  ;;  %vm20655_vm3 = vcmask 1042434  }
 0x782   : > { %v9920_v52 = vpop.xlane.xlu1 %9919  ;;  %v19933_v37 = vsel %vm10464_vm4, %v11622_v60, %v11618_v21  ;;  %v19939_v34 = vpop.xlane.xlu0 %9538  ;;  %v9226_v62 = vmul.f32 %v8966_v61, %v19836_v35  ;;  %v8967_v60 = vld [vmem:[%s20563_s5 + $0x4c0] sm:$0xff]  ;;  %v8726_v18 = vld [vmem:[#allocation5 + $0xd9] sm:$0x7f]  ;;  %v9714_v63 = vsel %vm8614_vm8, %v9201_v32, 0.0 }
 0x783   : > { %v11366_v58 = vrot.slane %v9920_v52, %v19727_v3  ;;  %v9633_v3 = vsel %vm8614_vm8, %v9174_v1, 0.0  ;;  %v8694_v1 = vld [vmem:[#allocation5 + $0xc9] sm:$0x7f]  ;;  %v10613_v52 = vrot.slane %v19915_v10, %v19945_v55  ;;  %v8729_v38 = vmax.f32 %v8723_v39, %v8726_v18 }
 0x784   : > { %v8720_v46 = vmax.f32 %v8668_v47, %v8694_v1  ;;  %v10741_v61 = vrot.slane %v19939_v34, %v19945_v55  ;;  %v9044_v39 = vld [vmem:[%s20563_s5 + $0x728] sm:$0xff] }
 0x785   : > { %v11367_v2 = vsel %vm10464_vm4, %v11366_v58, %v19739_v59  ;;  %9559 = vadd.xlane.f32.xlu1 %v9558_v20  ;;  %9634 = vadd.xlane.f32.xlu0 %v9633_v3  ;;  %v9227_v58 = vmul.f32 %v8967_v60, %v19854_v23  ;;  %v9789_v20 = vsel %vm8614_vm8, %v9226_v62, 0.0  ;;  %v9019_v62 = vld [vmem:[%s20563_s5 + $0x660] sm:$0xff]  ;;  %vm20653_vm4 = vcmask 1043459  }
 0x786   : > { %v11372_v17 = vsel %vm10471_vm5, %v11371_v13, %v11367_v2  ;;  %v9379_v28 = vpop.xlane.xlu1 %9378  ;;  %v19962_v48 = vpop.xlane.xlu0 %9616  ;;  %v8993_v2 = vld [vmem:[%s20563_s5 + $0x590] sm:$0xff] }
 0x787   : > { %v10477_v59 = vrot.slane %v9379_v28, %v19936_v19  ;;  %v19965_v6 = vsel %vm10478_vm6, %v11376_v4, %v11372_v17  ;;  %v9252_v4 = vmul.f32 %v8992_v7, %v19836_v35 }
 0x789   : > { %v10479_v25 = vsel %vm10478_vm6, %v10477_v59, %v19759_v45  ;;  %9637 = vadd.xlane.f32.xlu1 %v9636_v5  ;;  %9712 = vadd.xlane.f32.xlu0 %v9711_v0  ;;  %v9792_v59 = vsel %vm8614_vm8, %v9227_v58, 0.0  ;;  %v8755_v5 = vmax.f32 %v8720_v46, %v8729_v38  ;;  %v9278_v0 = vmul.f32 %v9018_v8, %v19836_v35  ;;  %v9045_v58 = vld [vmem:[%s20563_s5 + $0x730] sm:$0xff] }
 0x78a   : > { %v10486_v42 = vsel %vm10485_vm7, %v10484_v22, %v10479_v25  ;;  %v9458_v43 = vpop.xlane.xlu1 %9457  ;;  %v19983_v21 = vpop.xlane.xlu0 %9694  ;;  %v9253_v22 = vmul.f32 %v8993_v2, %v19854_v23  ;;  %v9867_v25 = vsel %vm8614_vm8, %v9252_v4, 0.0  ;;  %v8722_v46 = vld [vmem:[#allocation5 + $0xd0] sm:$0xff] }
 0x78b   : > { %v10608_v45 = vrot.slane %v9458_v43, %v19936_v19  ;;  %v10869_v43 = vrot.slane %v19962_v48, %v19945_v55  ;;  %v8788_v47 = vadd.f32 %v19501_v57, %v8755_v5  ;;  %v10997_v2 = vrot.slane %v19983_v21, %v19945_v55  ;;  %v9071_v21 = vld [vmem:[%s20563_s5 + $0x800] sm:$0xff] }
 0x78c   : > { %v9870_v7 = vsel %vm8614_vm8, %v9253_v22, 0.0 }
 0x78d   : > { %v10609_v13 = vsel %vm10478_vm6, %v10608_v45, %v19779_v54  ;;  %9715 = vadd.xlane.f32.xlu1 %v9714_v63  ;;  %9790 = vadd.xlane.f32.xlu0 %v9789_v20  ;;  %v9279_v45 = vmul.f32 %v9019_v62, %v19854_v23  ;;  %v9304_v63 = vmul.f32 %v9044_v39, %v19836_v35  ;;  %v20047_v8 = vmax.f32 %v8788_v47, 0.0 }
 0x78e   : > { %v10614_v3 = vsel %vm10485_vm7, %v10613_v52, %v10609_v13  ;;  %v9536_v10 = vpop.xlane.xlu1 %9535  ;;  %v20001_v17 = vpop.xlane.xlu0 %9772  ;;  %v9945_v52 = vsel %vm8614_vm8, %v9278_v0, 0.0  ;;  %v9070_v13 = vld [vmem:[%s20563_s5 + $0x7f8] sm:$0xff] }
 0x78f   : > { %v10736_v54 = vrot.slane %v9536_v10, %v19936_v19  ;;  %v11689_v28 = vsel %vm11688_vm2, %v10614_v3, %v10486_v42  ;;  %v9948_v3 = vsel %vm8614_vm8, %v9279_v45, 0.0  ;;  %v9305_v10 = vmul.f32 %v9045_v58, %v19854_v23 }
 0x791   : > { %v10737_v32 = vsel %vm10478_vm6, %v10736_v54, %v19803_v56  ;;  %9793 = vadd.xlane.f32.xlu1 %v9792_v59  ;;  %9868 = vadd.xlane.f32.xlu0 %v9867_v25  ;;  %v8725_v54 = vld [vmem:[#allocation5 + $0xd1] sm:$0xff]  ;;  %v9330_v59 = vmul.f32 %v9070_v13, %v19836_v35  ;;  %v11125_v35 = vrot.slane %v20001_v17, %v19945_v55 }
 0x792   : > { %v10742_v60 = vsel %vm10485_vm7, %v10741_v61, %v10737_v32  ;;  %v9614_v34 = vpop.xlane.xlu1 %9613  ;;  %v20020_v18 = vpop.xlane.xlu0 %9850  ;;  %v10023_v61 = vsel %vm8614_vm8, %v9304_v63, 0.0  ;;  %v8840_v32 = vld [vmem:[%s20563_s5 + $0xc8] sm:$0x7f]  ;;  %v8728_v62 = vmax.f32 %v8722_v46, %v8725_v54  ;;  %v11504_v46 = vrot.slane %v19829_v24, %v19936_v19 }
 0x793   : > { %v10864_v56 = vrot.slane %v9614_v34, %v19936_v19  ;;  %v11691_v42 = vsel %vm20655_vm3, %v10742_v60, %v11689_v28  ;;  %v10026_v60 = vsel %vm8614_vm8, %v9305_v10, 0.0  ;;  %v9331_v34 = vmul.f32 %v9071_v21, %v19854_v23  ;;  %v8866_v23 = vld [vmem:[%s20563_s5 + $0x198] sm:$0x7f] }
 0x794   : > { %vm20656_vm3 = vcmask 1045509   ;;  %v9126_v13 = vmul.f32 %v8866_v23, %v20047_v8 }
 0x795   : > { %v10865_v1 = vsel %vm10478_vm6, %v10864_v56, %v19826_v44  ;;  %9871 = vadd.xlane.f32.xlu1 %v9870_v7  ;;  %9946 = vadd.xlane.f32.xlu0 %v9945_v52  ;;  %v10101_v56 = vsel %vm8614_vm8, %v9330_v59, 0.0  ;;  %v11253_v52 = vrot.slane %v20020_v18, %v19945_v55  ;;  %v10104_v63 = vsel %vm8614_vm8, %v9331_v34, 0.0 }
 0x796   : > { %v10870_v48 = vsel %vm10485_vm7, %v10869_v43, %v10865_v1  ;;  %v9692_v38 = vpop.xlane.xlu1 %9691  ;;  %v20040_v20 = vpop.xlane.xlu0 %10009  ;;  %v8996_v43 = vld [vmem:[%s20563_s5 + $0x5a8] sm:$0x7f]  ;;  %v8754_v1 = vmax.f32 %v19784_v41, %v8728_v62  ;;  %v11632_v62 = vrot.slane %v19852_v51, %v19936_v19 }
 0x797   : > { %v10992_v44 = vrot.slane %v9692_v38, %v19936_v19  ;;  %v11693_v4 = vsel %vm20653_vm4, %v10870_v48, %v11691_v42  ;;  %vm20654_vm4 = vcmask 1044484   ;;  %v9100_v42 = vmul.f32 %v8840_v32, %v20047_v8  ;;  %v8918_v32 = vld [vmem:[%s20563_s5 + $0x338] sm:$0x7f] }
 0x798   : > { %v9256_v58 = vmul.f32 %v8996_v43, %v20047_v8  ;;  %v8787_v10 = vadd.f32 %v19501_v57, %v8754_v1  ;;  %v9048_v57 = vld [vmem:[%s20563_s5 + $0x748] sm:$0x7f] }
 0x799   : > { %v10993_v28 = vsel %vm10478_vm6, %v10992_v44, %v19849_v14  ;;  %9949 = vadd.xlane.f32.xlu1 %v9948_v3  ;;  %10024 = vadd.xlane.f32.xlu0 %v10023_v61  ;;  %v9022_v44 = vld [vmem:[%s20563_s5 + $0x678] sm:$0x7f]  ;;  %v8944_v43 = vld [vmem:[%s20563_s5 + $0x408] sm:$0x7f] }
 0x79a   : > { %v10998_v22 = vsel %vm10485_vm7, %v10997_v2, %v10993_v28  ;;  %v9770_v5 = vpop.xlane.xlu1 %9769  ;;  %v10007_v25 = vpop.xlane.xlu0 %10006  ;;  %v9282_v28 = vmul.f32 %v9022_v44, %v20047_v8 }
 0x79b   : > { %v11120_v14 = vrot.slane %v9770_v5, %v19936_v19  ;;  %v11695_v0 = vsel %vm20654_vm4, %v10998_v22, %v11693_v4  ;;  %vm9410_vm4 = vcmask 260096   ;;  %v8892_v4 = vld [vmem:[%s20563_s5 + $0x268] sm:$0x7f]  ;;  %v11509_v61 = vrot.slane %v10007_v25, %v19945_v55 }
 0x79c   : > { %v9411_v38 = vsel %vm9410_vm4, %v9100_v42, 0.0  ;;  %v9879_v54 = vsel %vm9410_vm4, %v9256_v58, 0.0  ;;  %v9489_v21 = vsel %vm9410_vm4, %v9126_v13, 0.0  ;;  %v9152_v22 = vmul.f32 %v8892_v4, %v20047_v8  ;;  %v8839_v42 = vld [vmem:[%s20563_s5 + $0xc0] sm:$0xff]  ;;  %v8865_v58 = vld [vmem:[%s20563_s5 + $0x190] sm:$0xff] }
 0x79d   : > { %v11121_v39 = vsel %vm10478_vm6, %v11120_v14, %v19871_v26  ;;  %10027 = vadd.xlane.f32.xlu1 %v10026_v60  ;;  %10102 = vadd.xlane.f32.xlu0 %v10101_v56  ;;  %v9308_v60 = vmul.f32 %v9048_v57, %v20047_v8  ;;  %v9178_v56 = vmul.f32 %v8918_v32, %v20047_v8 }
 0x79e   : > { %v11126_v7 = vsel %vm10485_vm7, %v11125_v35, %v11121_v39  ;;  %v9848_v17 = vpop.xlane.xlu1 %9847  ;;  %v10085_v45 = vpop.xlane.xlu0 %10084  ;;  %v9957_v35 = vsel %vm9410_vm4, %v9282_v28, 0.0 }
 0x79f   : > { %v11248_v26 = vrot.slane %v9848_v17, %v19936_v19  ;;  %v11697_v47 = vsel %vm20656_vm3, %v11126_v7, %v11695_v0  ;;  %vm11698_vm3 = vcmask 1046534   ;;  %v20118_v0 = vmax.f32 %v8787_v10, 0.0 }
 0x7a0   : > { %v11637_v34 = vrot.slane %v10085_v45, %v19945_v55 }
 0x7a1   : > { %v11249_v48 = vsel %vm10478_vm6, %v11248_v26, %v19891_v33  ;;  %10105 = vadd.xlane.f32.xlu1 %v10104_v63  ;;  %9412 = vadd.xlane.f32.xlu0 %v9411_v38  ;;  %v10035_v26 = vsel %vm9410_vm4, %v9308_v60, 0.0  ;;  %v9099_v45 = vmul.f32 %v8839_v42, %v20118_v0  ;;  %v9204_v63 = vmul.f32 %v8944_v43, %v20047_v8  ;;  %v8970_v38 = vld [vmem:[%s20563_s5 + $0x4d8] sm:$0x7f] }
 0x7a2   : > { %v11254_v41 = vsel %vm10485_vm7, %v11253_v52, %v11249_v48  ;;  %v10001_v18 = vpop.xlane.xlu1 %10000  ;;  %v9388_v2 = vpop.xlane.xlu0 %9387  ;;  %v9645_v52 = vsel %vm9410_vm4, %v9178_v56, 0.0  ;;  %v9125_v4 = vmul.f32 %v8865_v58, %v20118_v0  ;;  %v8890_v42 = vld [vmem:[%s20563_s5 + $0x258] sm:$0xff] }
 0x7a3   : > { %v11499_v33 = vrot.slane %v10001_v18, %v19722_v31  ;;  %v20097_v3 = vsel %vm11698_vm3, %v11254_v41, %v11697_v47  ;;  %v10494_v7 = vrot.slane %v9388_v2, %v18573_v49  ;;  %v9407_v18 = vsel %vm8614_vm8, %v9099_v45, 0.0  ;;  %v8969_v45 = vld [vmem:[%s20563_s5 + $0x4d0] sm:$0xff] }
 0x7a4   : > { %v9723_v10 = vsel %vm9410_vm4, %v9204_v63, 0.0  ;;  %v8916_v63 = vld [vmem:[%s20563_s5 + $0x328] sm:$0xff] }
 0x7a5   : > { %v11500_v59 = vsel %vm10471_vm5, %v11499_v33, %v19911_v12  ;;  %9880 = vadd.xlane.f32.xlu1 %v9879_v54  ;;  %9490 = vadd.xlane.f32.xlu0 %v9489_v21  ;;  %v20162_v33 = vmax.f32 %v18199_v16, 0.0  ;;  %v8891_v54 = vld [vmem:[%s20563_s5 + $0x260] sm:$0xff] }
 0x7a6   : > { %v11505_v24 = vsel %vm10478_vm6, %v11504_v46, %v11500_v59  ;;  %v10079_v5 = vpop.xlane.xlu1 %10078  ;;  %v9467_v12 = vpop.xlane.xlu0 %9466  ;;  %v9230_v46 = vmul.f32 %v8970_v38, %v20047_v8  ;;  %v9151_v57 = vmul.f32 %v8891_v54, %v20118_v0 }
 0x7a7   : > { %v11627_v14 = vrot.slane %v10079_v5, %v19722_v31  ;;  %v11510_v25 = vsel %vm10485_vm7, %v11509_v61, %v11505_v24  ;;  %v9567_v31 = vsel %vm9410_vm4, %v9152_v22, 0.0  ;;  %v10622_v13 = vrot.slane %v9467_v12, %v18573_v49  ;;  %v8838_v61 = vld [vmem:[%s20563_s5 + $0xb8] sm:$0xff] }
 0x7a8   : > { %v9486_v22 = vsel %vm8614_vm8, %v9125_v4, 0.0  ;;  %v9801_v5 = vsel %vm9410_vm4, %v9230_v46, 0.0  ;;  %v9098_v32 = vmul.f32 %v8838_v61, %v20162_v33  ;;  %v8994_v46 = vld [vmem:[%s20563_s5 + $0x598] sm:$0xff] }
 0x7a9   : > { %v11628_v39 = vsel %vm10471_vm5, %v11627_v14, %v19933_v37  ;;  %9958 = vadd.xlane.f32.xlu1 %v9957_v35  ;;  %9568 = vadd.xlane.f32.xlu0 %v9567_v31  ;;  %v8917_v14 = vld [vmem:[%s20563_s5 + $0x330] sm:$0xff]  ;;  %v9564_v35 = vsel %vm8614_vm8, %v9151_v57, 0.0  ;;  %v8943_v31 = vld [vmem:[%s20563_s5 + $0x400] sm:$0xff]  ;;  %vm11720_vm5 = vcmask 1041408  }
 0x7aa   : > { %v11633_v51 = vsel %vm10478_vm6, %v11632_v62, %v11628_v39  ;;  %v9385_v19 = vpop.xlane.xlu1 %9384  ;;  %v9545_v17 = vpop.xlane.xlu0 %9544  ;;  %v9177_v60 = vmul.f32 %v8917_v14, %v20118_v0  ;;  %v9021_v14 = vld [vmem:[%s20563_s5 + $0x670] sm:$0xff] }
 0x7ab   : > { %v10490_v37 = vrot.slane %v9385_v19, %v18569_v30  ;;  %v11638_v23 = vsel %vm10485_vm7, %v11637_v34, %v11633_v51  ;;  %v10750_v16 = vrot.slane %v9545_v17, %v18573_v49  ;;  %v9404_v34 = vsel %vm8614_vm8, %v9098_v32, 0.0 }
 0x7ac   : > { %v20142_v47 = vsel %vm11688_vm2, %v11638_v23, %v11510_v25  ;;  %v8864_v25 = vld [vmem:[%s20563_s5 + $0x188] sm:$0xff] }
 0x7ad   : > { %v20145_v1 = vsel %vm10387_vm9, %v10494_v7, %v10490_v37  ;;  %10036 = vadd.xlane.f32.xlu1 %v10035_v26  ;;  %9646 = vadd.xlane.f32.xlu0 %v9645_v52  ;;  %v9124_v39 = vmul.f32 %v8864_v25, %v20162_v33  ;;  %v9642_v7 = vsel %vm8614_vm8, %v9177_v60, 0.0  ;;  %v9203_v37 = vmul.f32 %v8943_v31, %v20118_v0 }
 0x7ae   : > { %v9464_v48 = vpop.xlane.xlu1 %9463  ;;  %v20157_v41 = vpop.xlane.xlu0 %9622  ;;  %v9150_v26 = vmul.f32 %v8890_v42, %v20162_v33 }
 0x7af   : > { %v10618_v44 = vrot.slane %v9464_v48, %v18569_v30  ;;  %v9483_v23 = vsel %vm8614_vm8, %v9124_v39, 0.0 }
 0x7b0   : > { %v9561_v4 = vsel %vm8614_vm8, %v9150_v26, 0.0 }
 0x7b1   : > { %v20165_v2 = vsel %vm10387_vm9, %v10622_v13, %v10618_v44  ;;  %9408 = vadd.xlane.f32.xlu1 %v9407_v18  ;;  %9724 = vadd.xlane.f32.xlu0 %v9723_v10  ;;  %v9720_v13 = vsel %vm8614_vm8, %v9203_v37, 0.0  ;;  %v9229_v44 = vmul.f32 %v8969_v45, %v20118_v0  ;;  %v9176_v10 = vmul.f32 %v8916_v63, %v20162_v33 }
 0x7b2   : > { %v9542_v28 = vpop.xlane.xlu1 %9541  ;;  %v9701_v21 = vpop.xlane.xlu0 %9700 }
 0x7b3   : > { %v10746_v59 = vrot.slane %v9542_v28, %v18569_v30  ;;  %v11006_v51 = vrot.slane %v9701_v21, %v18573_v49  ;;  %v8942_v28 = vld [vmem:[%s20563_s5 + $0x3f8] sm:$0xff]  ;;  %v9798_v21 = vsel %vm8614_vm8, %v9229_v44, 0.0  ;;  %v9073_v44 = vld [vmem:[%s20563_s5 + $0x810] sm:$0xff] }
 0x7b4   : > { %v9202_v32 = vmul.f32 %v8942_v28, %v20162_v33 }
 0x7b5   : > { %v20180_v24 = vsel %vm10387_vm9, %v10750_v16, %v10746_v59  ;;  %9487 = vadd.xlane.f32.xlu1 %v9486_v22  ;;  %9802 = vadd.xlane.f32.xlu0 %v9801_v5  ;;  %v9254_v22 = vmul.f32 %v8994_v46, %v20162_v33  ;;  %v9639_v5 = vsel %vm8614_vm8, %v9176_v10, 0.0  ;;  %v9020_v10 = vld [vmem:[%s20563_s5 + $0x668] sm:$0xff] }
 0x7b6   : > { %v20187_v12 = vpop.xlane.xlu1 %9619  ;;  %v9779_v62 = vpop.xlane.xlu0 %9778 }
 0x7b7   : > { %v11134_v58 = vrot.slane %v9779_v62, %v18573_v49  ;;  %v8968_v62 = vld [vmem:[%s20563_s5 + $0x4c8] sm:$0xff]  ;;  %v9873_v31 = vsel %vm8614_vm8, %v9254_v22, 0.0  ;;  %v9280_v22 = vmul.f32 %v9020_v10, %v20162_v33 }
 0x7b9   : > { %9565 = vadd.xlane.f32.xlu1 %v9564_v35  ;;  %9405 = vadd.xlane.f32.xlu0 %v9404_v34 }
 0x7ba   : > { %v9698_v56 = vpop.xlane.xlu1 %9697  ;;  %v9857_v43 = vpop.xlane.xlu0 %9856 }
 0x7bb   : > { %v11002_v19 = vrot.slane %v9698_v56, %v18569_v30  ;;  %v11262_v61 = vrot.slane %v9857_v43, %v18573_v49  ;;  %v9281_v56 = vmul.f32 %v9021_v14, %v20118_v0  ;;  %v9047_v43 = vld [vmem:[%s20563_s5 + $0x740] sm:$0xff] }
 0x7bd   : > { %v20207_v17 = vsel %vm10387_vm9, %v11006_v51, %v11002_v19  ;;  %9643 = vadd.xlane.f32.xlu1 %v9642_v7  ;;  %9484 = vadd.xlane.f32.xlu0 %v9483_v23  ;;  %v9717_v51 = vsel %vm8614_vm8, %v9202_v32, 0.0  ;;  %v9228_v19 = vmul.f32 %v8968_v62, %v20162_v33  ;;  %v8995_v23 = vld [vmem:[%s20563_s5 + $0x5a0] sm:$0xff]  ;;  %v9954_v63 = vsel %vm8614_vm8, %v9281_v56, 0.0 }
 0x7be   : > { %v9776_v52 = vpop.xlane.xlu1 %9775  ;;  %v9935_v38 = vpop.xlane.xlu0 %9934 }
 0x7bf   : > { %v11130_v48 = vrot.slane %v9776_v52, %v18569_v30  ;;  %v11390_v35 = vrot.slane %v9935_v38, %v18573_v49  ;;  %v9795_v38 = vsel %vm8614_vm8, %v9228_v19, 0.0 }
 0x7c1   : > { %v20222_v18 = vsel %vm10387_vm9, %v11134_v58, %v11130_v48  ;;  %9721 = vadd.xlane.f32.xlu1 %v9720_v13  ;;  %9562 = vadd.xlane.f32.xlu0 %v9561_v4  ;;  %v9307_v58 = vmul.f32 %v9047_v43, %v20118_v0  ;;  %v9255_v13 = vmul.f32 %v8995_v23, %v20118_v0 }
 0x7c2   : > { %v9854_v54 = vpop.xlane.xlu1 %9853  ;;  %v10091_v59 = vpop.xlane.xlu0 %10090 }
 0x7c3   : > { %v11258_v16 = vrot.slane %v9854_v54, %v18569_v30  ;;  %v11646_v26 = vrot.slane %v10091_v59, %v18573_v49 }
 0x7c5   : > { %v20237_v57 = vsel %vm10387_vm9, %v11262_v61, %v11258_v16  ;;  %9799 = vadd.xlane.f32.xlu1 %v9798_v21  ;;  %9640 = vadd.xlane.f32.xlu0 %v9639_v5  ;;  %v10032_v61 = vsel %vm8614_vm8, %v9307_v58, 0.0  ;;  %v9333_v16 = vmul.f32 %v9073_v44, %v20118_v0  ;;  %v9876_v21 = vsel %vm8614_vm8, %v9255_v13, 0.0  ;;  %v9074_v5 = vld [vmem:[%s20563_s5 + $0x818] sm:$0x7f] }
 0x7c6   : > { %v9932_v25 = vpop.xlane.xlu1 %9931  ;;  %v9938_v34 = vpop.xlane.xlu0 %9937  ;;  %v9046_v0 = vld [vmem:[%s20563_s5 + $0x738] sm:$0xff] }
 0x7c7   : > { %v11386_v60 = vrot.slane %v9932_v25, %v18569_v30  ;;  %v11395_v39 = vrot.slane %v9938_v34, %v18587_v50 }
 0x7c9   : > { %v11391_v42 = vsel %vm10387_vm9, %v11390_v35, %v11386_v60  ;;  %9874 = vadd.xlane.f32.xlu1 %v9873_v31  ;;  %9718 = vadd.xlane.f32.xlu0 %v9717_v51  ;;  %v10110_v35 = vsel %vm8614_vm8, %v9333_v16, 0.0  ;;  %v9334_v60 = vmul.f32 %v9074_v5, %v20047_v8  ;;  %v9306_v31 = vmul.f32 %v9046_v0, %v20162_v33  ;;  %v9072_v51 = vld [vmem:[%s20563_s5 + $0x808] sm:$0xff] }
 0x7ca   : > { %v20259_v7 = vsel %vm10394_vm10, %v11395_v39, %v11391_v42  ;;  %v10088_v37 = vpop.xlane.xlu1 %10087  ;;  %v20266_v52 = vpop.xlane.xlu0 %10015  ;;  %v9951_v39 = vsel %vm8614_vm8, %v9280_v22, 0.0  ;;  %v10874_v8 = vrot.slane %v20187_v12, %v18569_v30  ;;  %v9012_v12 = vld [vmem:[%s20563_s5 + $0x628] sm:$0xff] }
 0x7cb   : > { %v11642_v45 = vrot.slane %v10088_v37, %v18569_v30  ;;  %v10113_v37 = vsel %vm9410_vm4, %v9334_v60, 0.0 }
 0x7cd   : > { %v11647_v48 = vsel %vm10387_vm9, %v11646_v26, %v11642_v45  ;;  %9955 = vadd.xlane.f32.xlu1 %v9954_v63  ;;  %9796 = vadd.xlane.f32.xlu0 %v9795_v38  ;;  %v10029_v26 = vsel %vm8614_vm8, %v9306_v31, 0.0  ;;  %v9332_v45 = vmul.f32 %v9072_v51, %v20162_v33  ;;  %v10878_v63 = vrot.slane %v20157_v41, %v18573_v49 }
 0x7ce   : > { %v9391_v4 = vpop.xlane.xlu1 %9390  ;;  %v10094_v46 = vpop.xlane.xlu0 %10093  ;;  %v9272_v41 = vmul.f32 %v9012_v12, %v19130_v40  ;;  %v11514_v31 = vrot.slane %v20040_v20, %v18569_v30  ;;  %v11523_v51 = vrot.slane %v20266_v52, %v18587_v50 }
 0x7cf   : > { %v10499_v54 = vrot.slane %v9391_v4, %v18587_v50  ;;  %v11651_v28 = vrot.slane %v10094_v46, %v18587_v50  ;;  %v10107_v4 = vsel %vm8614_vm8, %v9332_v45, 0.0 }
 0x7d1   : > { %v10500_v59 = vsel %vm10394_vm10, %v10499_v54, %v20145_v1  ;;  %10033 = vadd.xlane.f32.xlu1 %v10032_v61  ;;  %v20291_v32 = vsel %vm10394_vm10, %v11651_v28, %v11647_v48  ;;  %9877 = vadd.xlane.f32.xlu0 %v9876_v21 }
 0x7d2   : > { %v9470_v14 = vpop.xlane.xlu1 %9469  ;;  %v9394_v25 = vpop.xlane.xlu0 %9393 }
 0x7d3   : > { %v10627_v1 = vrot.slane %v9470_v14, %v18587_v50  ;;  %v10504_v62 = vrot.slane %v9394_v25, %v18736_v11 }
 0x7d5   : > { %v10628_v34 = vsel %vm10394_vm10, %v10627_v1, %v20165_v2  ;;  %10111 = vadd.xlane.f32.xlu1 %v10110_v35  ;;  %v10505_v56 = vsel %vm10401_vm11, %v10504_v62, %v10500_v59  ;;  %9952 = vadd.xlane.f32.xlu0 %v9951_v39  ;;  %v9927_v59 = vsel %vm8614_vm8, %v9272_v41, 0.0  ;;  %vm20877_vm8 = vcmask 1042434  }
 0x7d6   : > { %v9548_v42 = vpop.xlane.xlu1 %9547  ;;  %v9473_v43 = vpop.xlane.xlu0 %9472 }
 0x7d7   : > { %v10755_v19 = vrot.slane %v9548_v42, %v18587_v50  ;;  %v10632_v2 = vrot.slane %v9473_v43, %v18736_v11 }
 0x7d9   : > { %v10756_v23 = vsel %vm10394_vm10, %v10755_v19, %v20180_v24  ;;  %10114 = vadd.xlane.f32.xlu1 %v10113_v37  ;;  %v10633_v58 = vsel %vm10401_vm11, %v10632_v2, %v10628_v34  ;;  %10030 = vadd.xlane.f32.xlu0 %v10029_v26  ;;  %v10879_v24 = vsel %vm10387_vm9, %v10878_v63, %v10874_v8 }
 0x7da   : > { %v9626_v48 = vpop.xlane.xlu1 %9625  ;;  %v9551_v13 = vpop.xlane.xlu0 %9550 }
 0x7db   : > { %v10883_v38 = vrot.slane %v9626_v48, %v18587_v50  ;;  %v10760_v44 = vrot.slane %v9551_v13, %v18736_v11 }
 0x7dd   : > { %v10884_v33 = vsel %vm10394_vm10, %v10883_v38, %v10879_v24  ;;  %v10761_v10 = vsel %vm10401_vm11, %v10760_v44, %v10756_v23  ;;  %10108 = vadd.xlane.f32.xlu0 %v10107_v4 }
 0x7de   : > { %v9704_v46 = vpop.xlane.xlu1 %9703  ;;  %v9629_v28 = vpop.xlane.xlu0 %9628 }
 0x7df   : > { %v11011_v54 = vrot.slane %v9704_v46, %v18587_v50  ;;  %v10888_v61 = vrot.slane %v9629_v28, %v18736_v11 }
 0x7e1   : > { %v11012_v16 = vsel %vm10394_vm10, %v11011_v54, %v20207_v17  ;;  %v10889_v21 = vsel %vm10401_vm11, %v10888_v61, %v10884_v33  ;;  %9928 = vadd.xlane.f32.xlu0 %v9927_v59 }
 0x7e2   : > { %v9782_v22 = vpop.xlane.xlu1 %9781  ;;  %v9707_v5 = vpop.xlane.xlu0 %9706 }
 0x7e3   : > { %v11139_v40 = vrot.slane %v9782_v22, %v18587_v50  ;;  %v11016_v14 = vrot.slane %v9707_v5, %v18736_v11 }
 0x7e5   : > { %v11140_v0 = vsel %vm10394_vm10, %v11139_v40, %v20222_v18  ;;  %v11017_v1 = vsel %vm10401_vm11, %v11016_v14, %v11012_v16 }
 0x7e6   : > { %v9860_v25 = vpop.xlane.xlu1 %9859  ;;  %v9785_v17 = vpop.xlane.xlu0 %9784 }
 0x7e7   : > { %v11267_v62 = vrot.slane %v9860_v25, %v18587_v50  ;;  %v11144_v35 = vrot.slane %v9785_v17, %v18736_v11 }
 0x7e9   : > { %v11268_v60 = vsel %vm10394_vm10, %v11267_v62, %v20237_v57  ;;  %v11145_v34 = vsel %vm10401_vm11, %v11144_v35, %v11140_v0 }
 0x7ea   : > { %v10013_v39 = vpop.xlane.xlu1 %10012  ;;  %v9863_v18 = vpop.xlane.xlu0 %9862 }
 0x7eb   : > { %v11518_v42 = vrot.slane %v10013_v39, %v18573_v49  ;;  %v11272_v19 = vrot.slane %v9863_v18, %v18736_v11 }
 0x7ed   : > { %v11519_v43 = vsel %vm10387_vm9, %v11518_v42, %v11514_v31  ;;  %v11273_v8 = vsel %vm10401_vm11, %v11272_v19, %v11268_v60  ;;  %vm20878_vm9 = vcmask 1043459  }
 0x7ee   : > { %v9397_v2 = vpop.xlane.xlu1 %9396  ;;  %v11524_v57 = vsel %vm10394_vm10, %v11523_v51, %v11519_v43  ;;  %v9941_v37 = vpop.xlane.xlu0 %9940  ;;  %vm20879_vm10 = vcmask 1044484  }
 0x7ef   : > { %v10509_v23 = vrot.slane %v9397_v2, %v18821_v36  ;;  %v11400_v30 = vrot.slane %v9941_v37, %v18736_v11 }
 0x7f1   : > { %v10510_v49 = vsel %vm10408_vm12, %v10509_v23, %v10505_v56  ;;  %v11401_v20 = vsel %vm10401_vm11, %v11400_v30, %v20259_v7 }
 0x7f2   : > { %v9476_v50 = vpop.xlane.xlu1 %9475  ;;  %v10019_v52 = vpop.xlane.xlu0 %10018 }
 0x7f3   : > { %v10637_v26 = vrot.slane %v9476_v50, %v18821_v36  ;;  %v11528_v45 = vrot.slane %v10019_v52, %v18736_v11 }
 0x7f5   : > { %v10638_v63 = vsel %vm10408_vm12, %v10637_v26, %v10633_v58  ;;  %v11529_v48 = vsel %vm10401_vm11, %v11528_v45, %v11524_v57 }
 0x7f6   : > { %v9554_v12 = vpop.xlane.xlu1 %9553  ;;  %v10097_v38 = vpop.xlane.xlu0 %10096 }
 0x7f7   : > { %v10765_v13 = vrot.slane %v9554_v12, %v18821_v36  ;;  %v11656_v24 = vrot.slane %v10097_v38, %v18736_v11 }
 0x7f9   : > { %v10766_v56 = vsel %vm10408_vm12, %v10765_v13, %v10761_v10  ;;  %v11657_v7 = vsel %vm10401_vm11, %v11656_v24, %v20291_v32  ;;  %vm20880_vm11 = vcmask 1045509  }
 0x7fa   : > { %v9632_v44 = vpop.xlane.xlu1 %9631  ;;  %v9944_v33 = vpop.xlane.xlu0 %9943 }
 0x7fb   : > { %v10893_v4 = vrot.slane %v9632_v44, %v18821_v36  ;;  %v11405_v41 = vrot.slane %v9944_v33, %v18821_v36 }
 0x7fd   : > { %v10894_v58 = vsel %vm10408_vm12, %v10893_v4, %v10889_v21  ;;  %v11406_v46 = vsel %vm10408_vm12, %v11405_v41, %v11401_v20 }
 0x7fe   : > { %v9710_v54 = vpop.xlane.xlu1 %9709  ;;  %v10022_v28 = vpop.xlane.xlu0 %10021 }
 0x7ff   : > { %v11021_v61 = vrot.slane %v9710_v54, %v18821_v36  ;;  %v11533_v11 = vrot.slane %v10022_v28, %v18821_v36 }
 0x801   : > { %v11022_v10 = vsel %vm10408_vm12, %v11021_v61, %v11017_v1  ;;  %v11534_v32 = vsel %vm10408_vm12, %v11533_v11, %v11529_v48 }
 0x802   : > { %v9788_v16 = vpop.xlane.xlu1 %9787  ;;  %v10100_v59 = vpop.xlane.xlu0 %10099 }
 0x803   : > { %v11149_v22 = vrot.slane %v9788_v16, %v18821_v36  ;;  %v11661_v40 = vrot.slane %v10100_v59, %v18821_v36 }
 0x805   : > { %v11150_v21 = vsel %vm10408_vm12, %v11149_v22, %v11145_v34  ;;  %v20381_v5 = vsel %vm10408_vm12, %v11661_v40, %v11657_v7 }
 0x806   : > { %v9866_v14 = vpop.xlane.xlu1 %9865  ;;  %v9400_v25 = vpop.xlane.xlu0 %9399 }
 0x807   : > { %v11277_v0 = vrot.slane %v9866_v14, %v18821_v36  ;;  %v10514_v62 = vrot.slane %v9400_v25, %v18944_v27 }
 0x809   : > { %v11278_v1 = vsel %vm10408_vm12, %v11277_v0, %v11273_v8  ;;  %v10515_v17 = vsel %vm10415_vm13, %v10514_v62, %v10510_v49  ;;  %vm11700_vm12 = vcmask 1047559  }
 0x80a   : > { %v9403_v35 = vpop.xlane.xlu1 %9402  ;;  %v9479_v60 = vpop.xlane.xlu0 %9478 }
 0x80b   : > { %v10519_v39 = vrot.slane %v9403_v35, %v19025_v53  ;;  %v10642_v31 = vrot.slane %v9479_v60, %v18944_v27 }
 0x80d   : > { %v10520_v34 = vsel %vm10422_vm14, %v10519_v39, %v10515_v17  ;;  %v10643_v42 = vsel %vm10415_vm13, %v10642_v31, %v10638_v63 }
 0x80e   : > { %v9482_v18 = vpop.xlane.xlu1 %9481  ;;  %v9557_v51 = vpop.xlane.xlu0 %9556 }
 0x80f   : > { %v10647_v36 = vrot.slane %v9482_v18, %v19025_v53  ;;  %v10770_v19 = vrot.slane %v9557_v51, %v18944_v27 }
 0x811   : > { %v20394_v43 = vsel %vm10422_vm14, %v10647_v36, %v10643_v42  ;;  %v10771_v8 = vsel %vm10415_vm13, %v10770_v19, %v10766_v56 }
 0x812   : > { %v9560_v2 = vpop.xlane.xlu1 %9559  ;;  %v9635_v57 = vpop.xlane.xlu0 %9634 }
 0x813   : > { %v10775_v37 = vrot.slane %v9560_v2, %v19025_v53  ;;  %v10898_v23 = vrot.slane %v9635_v57, %v18944_v27 }
 0x815   : > { %v20400_v30 = vsel %vm10422_vm14, %v10775_v37, %v10771_v8  ;;  %v10899_v49 = vsel %vm10415_vm13, %v10898_v23, %v10894_v58 }
 0x816   : > { %v9638_v20 = vpop.xlane.xlu1 %9637  ;;  %v9713_v50 = vpop.xlane.xlu0 %9712 }
 0x817   : > { %v10903_v52 = vrot.slane %v9638_v20, %v19025_v53  ;;  %v11026_v26 = vrot.slane %v9713_v50, %v18944_v27 }
 0x819   : > { %v20406_v45 = vsel %vm10422_vm14, %v10903_v52, %v10899_v49  ;;  %v11027_v63 = vsel %vm10415_vm13, %v11026_v26, %v11022_v10 }
 0x81a   : > { %v9716_v48 = vpop.xlane.xlu1 %9715  ;;  %v9791_v12 = vpop.xlane.xlu0 %9790 }
 0x81b   : > { %v11031_v38 = vrot.slane %v9716_v48, %v19025_v53  ;;  %v11154_v13 = vrot.slane %v9791_v12, %v18944_v27 }
 0x81d   : > { %v20412_v24 = vsel %vm10422_vm14, %v11031_v38, %v11027_v63  ;;  %v11155_v56 = vsel %vm10415_vm13, %v11154_v13, %v11150_v21 }
 0x81e   : > { %v9794_v7 = vpop.xlane.xlu1 %9793  ;;  %v9869_v44 = vpop.xlane.xlu0 %9868 }
 0x81f   : > { %v11159_v33 = vrot.slane %v9794_v7, %v19025_v53  ;;  %v11282_v4 = vrot.slane %v9869_v44, %v18944_v27 }
 0x821   : > { %v20418_v41 = vsel %vm10422_vm14, %v11159_v33, %v11155_v56  ;;  %v11283_v58 = vsel %vm10415_vm13, %v11282_v4, %v11278_v1 }
 0x822   : > { %v9872_v54 = vpop.xlane.xlu1 %9871  ;;  %v9947_v28 = vpop.xlane.xlu0 %9946 }
 0x823   : > { %v11287_v61 = vrot.slane %v9872_v54, %v19025_v53  ;;  %v11410_v11 = vrot.slane %v9947_v28, %v18944_v27 }
 0x825   : > { %v20424_v10 = vsel %vm10422_vm14, %v11287_v61, %v11283_v58  ;;  %v20427_v16 = vsel %vm10415_vm13, %v11410_v11, %v11406_v46 }
 0x826   : > { %v20429_v59 = vpop.xlane.xlu1 %9949  ;;  %v10025_v22 = vpop.xlane.xlu0 %10024 }
 0x827   : > { %v11538_v40 = vrot.slane %v10025_v22, %v18944_v27 }
 0x829   : > { %v20433_v21 = vsel %vm10415_vm13, %v11538_v40, %v11534_v32 }
 0x82a   : > { %v20435_v14 = vpop.xlane.xlu1 %10027  ;;  %v20437_v0 = vpop.xlane.xlu0 %10102 }
 0x82e   : > { %v20439_v25 = vpop.xlane.xlu1 %10105  ;;  %v9413_v62 = vpop.xlane.xlu0 %9412 }
 0x82f   : > { %v10534_v50 = vrot.slane %v9413_v62, %v19318_v15 }
 0x832   : > { %v20441_v1 = vpop.xlane.xlu1 %9880  ;;  %v9491_v17 = vpop.xlane.xlu0 %9490 }
 0x833   : > { %v10662_v52 = vrot.slane %v9491_v17, %v19318_v15 }
 0x836   : > { %v20443_v46 = vpop.xlane.xlu1 %9958  ;;  %v9569_v35 = vpop.xlane.xlu0 %9568 }
 0x837   : > { %v10790_v44 = vrot.slane %v9569_v35, %v19318_v15 }
 0x83a   : > { %v20445_v60 = vpop.xlane.xlu1 %10036  ;;  %v9647_v39 = vpop.xlane.xlu0 %9646 }
 0x83b   : > { %v10918_v22 = vrot.slane %v9647_v39, %v19318_v15 }
 0x83e   : > { %v9409_v31 = vpop.xlane.xlu1 %9408  ;;  %v9725_v42 = vpop.xlane.xlu0 %9724 }
 0x83f   : > { %v10529_v57 = vrot.slane %v9409_v31, %v19231_v9 }
 0x842   : > { %v9488_v32 = vpop.xlane.xlu1 %9487  ;;  %v9803_v18 = vpop.xlane.xlu0 %9802 }
 0x843   : > { %v10657_v49 = vrot.slane %v9488_v32, %v19231_v9 }
 0x846   : > { %v9566_v51 = vpop.xlane.xlu1 %9565  ;;  %v9406_v36 = vpop.xlane.xlu0 %9405 }
 0x847   : > { %v10524_v19 = vrot.slane %v9406_v36, %v19148_v29  ;;  %v10785_v56 = vrot.slane %v9566_v51, %v19231_v9  ;;  %v11046_v36 = vrot.slane %v9725_v42, %v19318_v15 }
 0x849   : > { %v10525_v8 = vsel %vm10429_vm15, %v10524_v19, %v10520_v34 }
 0x84a   : > { %v9644_v2 = vpop.xlane.xlu1 %9643  ;;  %v9485_v37 = vpop.xlane.xlu0 %9484  ;;  %v10530_v20 = vsel %vm10436_vm0, %v10529_v57, %v10525_v8 }
 0x84b   : > { %v10652_v23 = vrot.slane %v9485_v37, %v19148_v29  ;;  %v10535_v12 = vsel %vm10443_vm1, %v10534_v50, %v10530_v20  ;;  %v10913_v61 = vrot.slane %v9644_v2, %v19231_v9  ;;  %v11174_v20 = vrot.slane %v9803_v18, %v19318_v15 }
 0x84d   : > { %v10653_v26 = vsel %vm10429_vm15, %v10652_v23, %v20394_v43 }
 0x84e   : > { %v9722_v63 = vpop.xlane.xlu1 %9721  ;;  %v10658_v34 = vsel %vm10436_vm0, %v10657_v49, %v10653_v26  ;;  %v9563_v48 = vpop.xlane.xlu0 %9562 }
 0x84f   : > { %v10663_v38 = vsel %vm10443_vm1, %v10662_v52, %v10658_v34  ;;  %v10780_v13 = vrot.slane %v9563_v48, %v19148_v29  ;;  %v11041_v32 = vrot.slane %v9722_v63, %v19231_v9  ;;  %v11415_v34 = vrot.slane %v20429_v59, %v19025_v53 }
 0x850   : > { %v11702_v7 = vsel %vm11688_vm2, %v10663_v38, %v10535_v12  ;;  %v11302_v48 = vrot.slane %v20441_v1, %v19318_v15  ;;  %v11543_v1 = vrot.slane %v20435_v14, %v19025_v53 }
 0x851   : > { %v10781_v33 = vsel %vm10429_vm15, %v10780_v13, %v20400_v30  ;;  %v11416_v59 = vsel %vm10422_vm14, %v11415_v34, %v20427_v16 }
 0x852   : > { %v9800_v43 = vpop.xlane.xlu1 %9799  ;;  %v10786_v4 = vsel %vm10436_vm0, %v10785_v56, %v10781_v33  ;;  %v9641_v58 = vpop.xlane.xlu0 %9640  ;;  %v11430_v33 = vrot.slane %v20443_v46, %v19318_v15  ;;  %v11544_v14 = vsel %vm10422_vm14, %v11543_v1, %v20433_v21 }
 0x853   : > { %v10791_v54 = vsel %vm10443_vm1, %v10790_v44, %v10786_v4  ;;  %v10908_v28 = vrot.slane %v9641_v58, %v19148_v29  ;;  %v11169_v37 = vrot.slane %v9800_v43, %v19231_v9 }
 0x854   : > { %v11703_v11 = vsel %vm20877_vm8, %v10791_v54, %v11702_v7  ;;  %v11666_v54 = vrot.slane %v20437_v0, %v18944_v27 }
 0x855   : > { %v10909_v40 = vsel %vm10429_vm15, %v10908_v28, %v20406_v45 }
 0x856   : > { %v9875_v62 = vpop.xlane.xlu1 %9874  ;;  %v10914_v30 = vsel %vm10436_vm0, %v10913_v61, %v10909_v40  ;;  %v9719_v17 = vpop.xlane.xlu0 %9718  ;;  %v11671_v61 = vrot.slane %v20439_v25, %v19025_v53  ;;  %v11667_v27 = vsel %vm10415_vm13, %v11666_v54, %v20381_v5  ;;  %v11558_v53 = vrot.slane %v20445_v60, %v19318_v15 }
 0x857   : > { %v10919_v35 = vsel %vm10443_vm1, %v10918_v22, %v10914_v30  ;;  %v11036_v31 = vrot.slane %v9719_v17, %v19148_v29  ;;  %v11292_v23 = vrot.slane %v9875_v62, %v19148_v29  ;;  %vm11722_vm13 = vcmask 640000  }
 0x858   : > { %v11704_v51 = vsel %vm20878_vm9, %v10919_v35, %v11703_v11  ;;  %v11672_v30 = vsel %vm10422_vm14, %v11671_v61, %v11667_v27  ;;  %vm11715_vm14 = vcmask 646144   ;;  %v11721_v60 = vsel %vm11720_vm5, %v20142_v47, 0.0 }
 0x859   : > { %v11037_v39 = vsel %vm10429_vm15, %v11036_v31, %v20412_v24  ;;  %v11293_v18 = vsel %vm10429_vm15, %v11292_v23, %v20424_v10 }
 0x85a   : > { %v9956_v19 = vpop.xlane.xlu1 %9955  ;;  %v11042_v45 = vsel %vm10436_vm0, %v11041_v32, %v11037_v39  ;;  %v9797_v8 = vpop.xlane.xlu0 %9796 }
 0x85b   : > { %v11047_v2 = vsel %vm10443_vm1, %v11046_v36, %v11042_v45  ;;  %v11164_v57 = vrot.slane %v9797_v8, %v19148_v29  ;;  %v11425_v44 = vrot.slane %v9956_v19, %v19231_v9 }
 0x85c   : > { %v11705_v49 = vsel %vm20879_vm10, %v11047_v2, %v11704_v51 }
 0x85d   : > { %v11165_v42 = vsel %vm10429_vm15, %v11164_v57, %v20418_v41 }
 0x85e   : > { %v11170_v24 = vsel %vm10436_vm0, %v11169_v37, %v11165_v42  ;;  %v9878_v50 = vpop.xlane.xlu0 %9877  ;;  %v10034_v52 = vpop.xlane.xlu1 %10033 }
 0x85f   : > { %v11175_v26 = vsel %vm10443_vm1, %v11174_v20, %v11170_v24  ;;  %v11297_v63 = vrot.slane %v9878_v50, %v19231_v9  ;;  %v11553_v22 = vrot.slane %v10034_v52, %v19231_v9 }
 0x860   : > { %v11706_v12 = vsel %vm20880_vm11, %v11175_v26, %v11705_v49 }
 0x861   : > { %v11298_v41 = vsel %vm10436_vm0, %v11297_v63, %v11293_v18 }
 0x862   : > { %v11303_v38 = vsel %vm10443_vm1, %v11302_v48, %v11298_v41  ;;  %v9953_v13 = vpop.xlane.xlu0 %9952  ;;  %v10112_v10 = vpop.xlane.xlu1 %10111 }
 0x863   : > { %v11420_v56 = vrot.slane %v9953_v13, %v19148_v29  ;;  %v11707_v7 = vsel %vm11698_vm3, %v11303_v38, %v11706_v12  ;;  %v11681_v21 = vrot.slane %v10112_v10, %v19231_v9 }
 0x865   : > { %v11421_v43 = vsel %vm10429_vm15, %v11420_v56, %v11416_v59 }
 0x866   : > { %v11426_v4 = vsel %vm10436_vm0, %v11425_v44, %v11421_v43  ;;  %v10031_v58 = vpop.xlane.xlu0 %10030  ;;  %v10115_v40 = vpop.xlane.xlu1 %10114 }
 0x867   : > { %v11548_v16 = vrot.slane %v10031_v58, %v19148_v29  ;;  %v11431_v28 = vsel %vm10443_vm1, %v11430_v33, %v11426_v4  ;;  %v11686_v25 = vrot.slane %v10115_v40, %v19318_v15 }
 0x868   : > { %v11708_v46 = vsel %vm11700_vm12, %v11431_v28, %v11707_v7 }
 0x869   : > { %v11549_v11 = vsel %vm10429_vm15, %v11548_v16, %v11544_v14  ;;  %v11716_v45 = vsel %vm11715_vm14, %v11708_v46, 0.0 }
 0x86a   : > { %v10109_v62 = vpop.xlane.xlu0 %10108  ;;  %v11554_v17 = vsel %vm10436_vm0, %v11553_v22, %v11549_v11 }
 0x86b   : > { %v11676_v0 = vrot.slane %v10109_v62, %v19148_v29  ;;  %v11559_v5 = vsel %vm10443_vm1, %v11558_v53, %v11554_v17 }
 0x86d   : > { %v11677_v35 = vsel %vm10429_vm15, %v11676_v0, %v11672_v30  ;;  %vm11733_vm15 = vcmask 1024  }
 0x86e   : > { %v11682_v31 = vsel %vm10436_vm0, %v11681_v21, %v11677_v35  ;;  %v9929_v32 = vpop.xlane.xlu0 %9928  ;;  %vm11731_vm0 = vcmask 7168  }
 0x86f   : > { %v11381_v29 = vrot.slane %v9929_v32, %v19945_v55  ;;  %v11687_v9 = vsel %vm10443_vm1, %v11686_v25, %v11682_v31  ;;  %v11728_v55 = vld [vmem:[%s20564_s6 + $0x8] sm:$0x3] }
 0x870   : > { %v11710_v51 = vsel %vm11688_vm2, %v11687_v9, %v11559_v5 }
 0x871   : > { %v11382_v15 = vsel %vm10485_vm7, %v11381_v29, %v19965_v6  ;;  %v11723_v36 = vsel %vm11722_vm13, %v11710_v51, 0.0  ;;  %v11727_v6 = vld [vmem:[%s20564_s6] sm:$0xff] }
 0x872   : > { %v11724_v39 = vadd.f32 %v11723_v36, %v11721_v60  ;;  %v11701_v19 = vsel %vm11700_vm12, %v11382_v15, %v20097_v3 }
 0x873   : > { %v11717_v8 = vadd.f32 %v11716_v45, %v11701_v19 }
 0x874   : > { %11725 = vadd.xlane.f32.xlu0 %v11724_v39 }
 0x875   : > { %11718 = vadd.xlane.f32.xlu1 %v11717_v8 }
 0x901   : > { %v11726_v47 = vpop.xlane.xlu0 %11725 }
 0x902   : > { %v11730_v3 = vadd.f32 %v11728_v55, %v11726_v47  ;;  %v11719_v2 = vpop.xlane.xlu1 %11718 }
 0x903   : > { %v11729_v57 = vadd.f32 %v11727_v6, %v11719_v2 }
 0x904   : > { %11734 = vst.msk [vmem:[%s278_s18 + $0x8] sm:$0x3] %vm11733_vm15, %v11730_v3 }
 0x905   : > { %11732 = vst.msk [vmem:[%s278_s18] sm:$0xff] %vm11731_vm0, %v11729_v57 }
 0x906 PF: > { %s17_s24 = sadd.s32 1, %s15151_s24  }
 0x907   : > { %p14_p4 = scmp.ge.s32.totalorder %s17_s24, 4  }
 0x909   :  { %16 = sbr.rel (!%p14_p4) target bundleno = 1 (0x1), region = 86 }

</bundles_post_ra>
